<compile_context>
chip_gen: v5e
topology: v5e:2x2
jax: 0.10.0
libtpu: 0.0.40
codegen_flags: <defaults>
</compile_context>

<pallas_src>
import functools

import jax
import jax.numpy as jnp
from jax.experimental import pallas as pl
from jax.experimental.pallas import tpu as pltpu


_TILE_M_TARGET = 256   # fills the 2x256x256 MXU on v6e/v7x; harmless on v5e.


# --------------------------------------------------------------------------- #
# Hardware / tiling helpers
# --------------------------------------------------------------------------- #
def _vmem_capacity_bytes():
  """Per-core VMEM capacity; conservative fallback if the query is unavailable."""
  try:
    cap = int(pltpu.get_tpu_info().vmem_capacity_bytes)
    if cap > 0:
      return cap
  except Exception:
    pass
  return 64 * 2**20   # conservative: v7x per-TensorCore VMEM


def _vmem_estimate_bytes(tile_m, tile_c, K, peep_rows):
  """Estimated VMEM footprint of one grid step (double-buffered BlockSpec tiles
  + the in-kernel f32 temporaries).  Compute dtype assumed bf16 (2 bytes)."""
  est = 2 * K * 4 * tile_c * 2          # fused weight slab (double-buffered)
  est += 2 * tile_m * K * 2             # im2col patch tile (double-buffered)
  est += 2 * 4 * tile_c * 4             # fused bias
  est += 2 * 3 * peep_rows * tile_c * 4  # peephole weights (f32)
  est += 2 * tile_m * tile_c * 4        # c_prev tile (f32)
  est += 2 * 2 * tile_m * tile_c * 4    # c_new / h_new output tiles
  est += tile_m * 4 * tile_c * 4        # f32 gate pre-activation slab
  est += 8 * tile_m * tile_c * 4        # elementwise temporaries headroom
  return est


def _tile_c_candidates(C):
  if C % 128 == 0:
    return [t for t in range(C, 0, -128) if C % t == 0]
  # TODO(synk): pad C up to a multiple of 128 instead of a non-lane-aligned tile.
  return [C]


def _tile_m_candidates(M, HW, target=_TILE_M_TARGET):
  cands = set()
  # Whole-image multiples of H*W that divide M (peephole is replicated in-kernel).
  q = 1
  while q * HW <= M and q * HW <= max(target, HW):
    if M % (q * HW) == 0:
      cands.add(q * HW)
    q += 1
  # Sub-image divisors of H*W (peephole mapped via a modular index_map).
  upper = min(HW, max(target, 8))
  for d in range(8, upper + 1, 8):
    if HW % d == 0:
      cands.add(d)
  return sorted(cands, reverse=True)


def _choose_tiles(M, C, HW, budget_bytes, tile_c=None):
  """Largest (tile_m, tile_c) whose estimated footprint fits the VMEM budget,
  preferring large tile_c (fewer patch re-reads) then large tile_m."""
  K = 18 * C
  tc_cands = [tile_c] if tile_c is not None else _tile_c_candidates(C)
  tm_cands = _tile_m_candidates(M, HW)
  for tc in tc_cands:
    for tm in tm_cands:
      if _vmem_estimate_bytes(tm, tc, K, min(tm, HW)) <= budget_bytes:
        return tm, tc
  # Fallback: smallest tiles even if over budget.
  return tm_cands[-1], tc_cands[-1]


# --------------------------------------------------------------------------- #
# Kernel: one fused gate matmul + all elementwise cell math per tile
# --------------------------------------------------------------------------- #
def _cell_kernel(patch_ref, w_ref, b_ref, cprev_ref, wci_ref, wcf_ref, wco_ref,
                 c_out_ref, h_out_ref, *, tc, peep_rep):
  # Single MXU matmul for all 4 gates of this (row-tile, channel-tile):
  #   (tm, K) bf16 @ (K, 4*tc) bf16 -> (tm, 4*tc) f32 (accumulated on the MXU)
  pre = jnp.dot(patch_ref[...], w_ref[...], preferred_element_type=jnp.float32)

  b = b_ref[...].astype(jnp.float32)             # (4, tc)
  c_prev = cprev_ref[...].astype(jnp.float32)    # (tm, tc)

  def peep(ref):
    w = ref[...].astype(jnp.float32)             # (peep_rows, tc)
    if peep_rep > 1:
      # Replicate the per-image peephole map across the images in this row tile
      # (cheap sublane concat; avoids a (M, C) broadcast in HBM).
      w = jnp.concatenate([w] * peep_rep, axis=0)
    return w

  wci = peep(wci_ref)
  wcf = peep(wcf_ref)
  wco = peep(wco_ref)

  def gate(g):
    # Static lane slice of the fused gate slab (lane-aligned when tc % 128 == 0).
    return pre[:, g * tc:(g + 1) * tc] + b[g:g + 1, :]

  i = jax.nn.sigmoid(gate(0) + wci * c_prev)
  f = jax.nn.sigmoid(gate(1) + wcf * c_prev)
  c_cand = jnp.tanh(gate(2))
  c_new = (f * c_prev + i * c_cand) * 0.5
  o = jax.nn.sigmoid(gate(3) + wco * c_new)
  h_new = o * jnp.tanh(c_new)

  c_out_ref[...] = c_new.astype(c_out_ref.dtype)
  h_out_ref[...] = h_new.astype(h_out_ref.dtype)


# --------------------------------------------------------------------------- #
# One-time parameter fusion (do this once per sequence, not per time step)
# --------------------------------------------------------------------------- #
def fuse_convlstm_params(params, *, channels, height, width, tile_c,
                         compute_dtype=jnp.bfloat16):
  """Fuses the 8 conv weights into a (num_ct, 18C, 4*tile_c) bf16 slab, the 8
  biases into (num_ct, 4, tile_c) f32, and reshapes the peephole weights to
  (H*W, C) f32.  Column order within a channel tile is gate-major
  [i | f | c | o], each of width tile_c."""
  (wxi, whi, wxf, whf, wxc, whc, wxo, who,
   bxi, bhi, bxf, bhf, bxc, bhc, bxo, bho,
   wci, wcf, wco) = params
  C = channels
  assert C % tile_c == 0, "tile_c must divide channels"
  num_ct = C // tile_c
  K = 18 * C  # 9 taps * 2C fused input channels

  w_gates = jnp.stack([
      jnp.concatenate([wxi, whi], axis=2),     # (3,3,2C,C) per gate
      jnp.concatenate([wxf, whf], axis=2),
      jnp.concatenate([wxc, whc], axis=2),
      jnp.concatenate([wxo, who], axis=2)], axis=3)          # (3,3,2C,4,C)
  w_flat = w_gates.reshape(K, 4, C)                          # (K, gate, cout)
  w_tiled = (w_flat.reshape(K, 4, num_ct, tile_c)
                   .transpose(2, 0, 1, 3)
                   .reshape(num_ct, K, 4 * tile_c)
                   .astype(compute_dtype))                   # (num_ct, K, 4*tc)

  b_all = jnp.stack([bxi + bhi, bxf + bhf, bxc + bhc, bxo + bho], axis=0)  # (4,C)
  b_tiled = (b_all.reshape(4, num_ct, tile_c)
                  .transpose(1, 0, 2)
                  .astype(jnp.float32))                      # (num_ct, 4, tc)

  HW = height * width
  peep = lambda w: w.reshape(HW, C).astype(jnp.float32)
  return (w_tiled, b_tiled, peep(wci), peep(wcf), peep(wco))


# --------------------------------------------------------------------------- #
# Per-step cell forward on pre-fused params
# --------------------------------------------------------------------------- #
def support_convlstm_cell_fused(x, c_prev, h_prev, fused_params, *,
                                tile_m=None, h_dtype=None):
  w_tiled, b_tiled, wci_hw, wcf_hw, wco_hw = fused_params
  N, H, W, C = x.shape
  HW = H * W
  M = N * HW
  K = 18 * C
  compute_dtype = w_tiled.dtype
  h_dtype = x.dtype if h_dtype is None else h_dtype

  num_ct = w_tiled.shape[0]
  tile_c = w_tiled.shape[2] // 4
  assert w_tiled.shape == (num_ct, K, 4 * tile_c) and num_ct * tile_c == C
  assert tile_c % 128 == 0 or tile_c == C, (
      "tile_c must be a multiple of 128 (lane width) or equal to C")
  assert wci_hw.shape == (HW, C)

  cap = _vmem_capacity_bytes()
  if tile_m is None:
    tile_m, _ = _choose_tiles(M, C, HW, int(0.75 * cap), tile_c=tile_c)
  assert M % tile_m == 0, "tile_m must divide N*H*W"
  assert HW % tile_m == 0 or tile_m % HW == 0, (
      "tile_m must divide H*W or be a multiple of H*W (peephole block mapping)")
  num_mt = M // tile_m

  # im2col of the fused [x ; h_prev] input, done once in XLA outside the kernel;
  # cast to bf16 BEFORE pad/concat so the 18C-wide intermediate is 2 B/elt.
  # TODO(synk): move the 9-tap im2col into the kernel (halo'd row-block DMA +
  # 9 accumulating K=2C matmuls) to cut activation HBM traffic ~9x.
  xh = jnp.concatenate([x.astype(compute_dtype), h_prev.astype(compute_dtype)],
                       axis=-1)                              # (N,H,W,2C) bf16
  xh_p = jnp.pad(xh, ((0, 0), (1, 1), (1, 1), (0, 0)))
  taps = [xh_p[:, ky:ky + H, kx:kx + W, :]
          for ky in range(3) for kx in range(3)]
  patch = jnp.concatenate(taps, axis=-1).reshape(M, K)       # (M, 18C) bf16

  c_flat = c_prev.reshape(M, C)

  # Grid: (channel tiles, row tiles) with the weight slab resident across the
  # inner row axis; collapse to a 1-D row-tile grid when num_ct == 1 so the
  # megacore-parallel axis is the m axis (v7x).
  if num_ct == 1:
    grid = (num_mt,)
    dims = ("parallel",)
    def ij(fn):
      return lambda m: fn(0, m)
  else:
    grid = (num_ct, num_mt)
    dims = ("parallel", "parallel")
    def ij(fn):
      return lambda j, m: fn(j, m)

  row_spec = pl.BlockSpec((tile_m, tile_c), ij(lambda j, m: (m, j)))

  # Peephole weights: (H*W, C) in HBM, mapped per row tile (no (M,C) broadcast).
  if tile_m <= HW:
    n_hw_tiles = HW // tile_m
    peep_rows = tile_m
    peep_rep = 1
    peep_spec = pl.BlockSpec((tile_m, tile_c),
                             ij(lambda j, m: (m % n_hw_tiles, j)))
  else:
    peep_rows = HW
    peep_rep = tile_m // HW
    peep_spec = pl.BlockSpec((HW, tile_c), ij(lambda j, m: (0, j)))

  kernel = functools.partial(_cell_kernel, tc=tile_c, peep_rep=peep_rep)

  # VMEM limit: estimate (already double-buffered) + margin, capped at ~80% of
  # the per-core capacity (generation-aware; no hard 64 MiB cap).
  est = _vmem_estimate_bytes(tile_m, tile_c, K, peep_rows)
  vmem_limit = int(min(0.8 * cap, max(1.25 * est, 32 * 2**20)))

  c_new, h_new = pl.pallas_call(
      kernel,
      grid=grid,
      in_specs=[
          pl.BlockSpec((tile_m, K), ij(lambda j, m: (m, 0))),               # patch
          pl.BlockSpec((None, K, 4 * tile_c), ij(lambda j, m: (j, 0, 0))),  # W slab
          pl.BlockSpec((None, 4, tile_c), ij(lambda j, m: (j, 0, 0))),      # bias
          row_spec,    # c_prev
          peep_spec,   # Wci
          peep_spec,   # Wcf
          peep_spec,   # Wco
      ],
      out_specs=(row_spec, row_spec),
      out_shape=(jax.ShapeDtypeStruct((M, C), c_prev.dtype),
                 jax.ShapeDtypeStruct((M, C), h_dtype)),
      compiler_params=pltpu.CompilerParams(
          dimension_semantics=dims,
          vmem_limit_bytes=vmem_limit),
  )(patch, w_tiled, b_tiled, c_flat, wci_hw, wcf_hw, wco_hw)

  return c_new.reshape(N, H, W, C), h_new.reshape(N, H, W, C)


def support_convlstm_cell(x, c_prev, h_prev, params, *,
                          compute_dtype=jnp.bfloat16, tile_m=None, tile_c=None,
                          h_dtype=None):
  """x, c_prev, h_prev: (N, H, W, C) float32.  Returns (c_new, h_new)."""
  N, H, W, C = x.shape
  if tile_m is None or tile_c is None:
    budget = int(0.75 * _vmem_capacity_bytes())
    tm_auto, tc_auto = _choose_tiles(N * H * W, C, H * W, budget, tile_c=tile_c)
    tile_m = tm_auto if tile_m is None else tile_m
    tile_c = tc_auto if tile_c is None else tile_c
  fused = fuse_convlstm_params(params, channels=C, height=H, width=W,
                               tile_c=tile_c, compute_dtype=compute_dtype)
  return support_convlstm_cell_fused(x, c_prev, h_prev, fused,
                                     tile_m=tile_m, h_dtype=h_dtype)


def support_convlstm_sequence(xs, c0, h0, params, *,
                              compute_dtype=jnp.bfloat16, tile_m=None,
                              tile_c=None, h_dtype=None):
  """Runs the cell over xs: (T, N, H, W, C).  The ~144*C^2-byte fused weight
  slab is built ONCE per sequence (not per step)."""
  T, N, H, W, C = xs.shape
  if tile_m is None or tile_c is None:
    budget = int(0.75 * _vmem_capacity_bytes())
    tm_auto, tc_auto = _choose_tiles(N * H * W, C, H * W, budget, tile_c=tile_c)
    tile_m = tm_auto if tile_m is None else tile_m
    tile_c = tc_auto if tile_c is None else tile_c
  fused = fuse_convlstm_params(params, channels=C, height=H, width=W,
                               tile_c=tile_c, compute_dtype=compute_dtype)
  # TODO(synk): keep the fused slab resident across pallas_calls (cross-call
  # future / fold T into the grid) instead of re-staging it from HBM each step.
  c, h = c0, h0
  for t in range(T):
    c, h = support_convlstm_cell_fused(xs[t], c, h, fused,
                                       tile_m=tile_m, h_dtype=h_dtype)
  return c, h


# --------------------------------------------------------------------------- #
# Pure-JAX reference (same conv precision policy as the kernel)
# --------------------------------------------------------------------------- #
def _conv_ref(x, w, b, conv_dtype):
  y = jax.lax.conv_general_dilated(
      x.astype(conv_dtype), w.astype(conv_dtype),
      window_strides=(1, 1), padding='SAME',
      dimension_numbers=('NHWC', 'HWIO', 'NHWC'),
      preferred_element_type=jnp.float32)
  return y + b.astype(jnp.float32)[None, None, None, :]


def _cell_ref(x, c_prev, h_prev, params, conv_dtype=jnp.bfloat16):
  (wxi, whi, wxf, whf, wxc, whc, wxo, who,
   bxi, bhi, bxf, bhf, bxc, bhc, bxo, bho,
   wci, wcf, wco) = params
  i = jax.nn.sigmoid(_conv_ref(x, wxi, bxi, conv_dtype)
                     + _conv_ref(h_prev, whi, bhi, conv_dtype)
                     + wci[None] * c_prev)
  f = jax.nn.sigmoid(_conv_ref(x, wxf, bxf, conv_dtype)
                     + _conv_ref(h_prev, whf, bhf, conv_dtype)
                     + wcf[None] * c_prev)
  c_cand = jnp.tanh(_conv_ref(x, wxc, bxc, conv_dtype)
                    + _conv_ref(h_prev, whc, bhc, conv_dtype))
  c_new = (f * c_prev + i * c_cand) * 0.5
  o = jax.nn.sigmoid(_conv_ref(x, wxo, bxo, conv_dtype)
                     + _conv_ref(h_prev, who, bho, conv_dtype)
                     + wco[None] * c_new)
  h_new = o * jnp.tanh(c_new)
  return c_new, h_new


# --------------------------------------------------------------------------- #
# Test
# --------------------------------------------------------------------------- #
if __name__ == "__main__":
  def make_params(key, C, H, W):
    keys = jax.random.split(key, 19)
    wscale = (18.0 * C) ** -0.5   # keep pre-activations O(1) (non-saturated)
    cw = lambda k: wscale * jax.random.normal(k, (3, 3, C, C), jnp.float32)
    cb = lambda k: 0.1 * jax.random.normal(k, (C,), jnp.float32)
    pw = lambda k: 0.1 * jax.random.normal(k, (H, W, C), jnp.float32)
    return (cw(keys[0]), cw(keys[1]), cw(keys[2]), cw(keys[3]),
            cw(keys[4]), cw(keys[5]), cw(keys[6]), cw(keys[7]),
            cb(keys[8]), cb(keys[9]), cb(keys[10]), cb(keys[11]),
            cb(keys[12]), cb(keys[13]), cb(keys[14]), cb(keys[15]),
            pw(keys[16]), pw(keys[17]), pw(keys[18]))

  def check(a, b, name, atol, rtol):
    assert a.shape == b.shape, f"{name}: shape {a.shape} vs {b.shape}"
    err = float(jnp.max(jnp.abs(a.astype(jnp.float32) - b.astype(jnp.float32))))
    assert jnp.allclose(a.astype(jnp.float32), b.astype(jnp.float32),
                        atol=atol, rtol=rtol), f"{name} mismatch, max err {err}"

  def run_case(case_id, N, H, W, C, tile_m=None, tile_c=None):
    key = jax.random.fold_in(jax.random.PRNGKey(0), case_id)
    kp, kx, kc, kh = jax.random.split(key, 4)
    params = make_params(kp, C, H, W)
    x = jax.random.normal(kx, (N, H, W, C), jnp.float32)
    c_prev = jax.random.normal(kc, (N, H, W, C), jnp.float32)
    h_prev = jax.random.normal(kh, (N, H, W, C), jnp.float32)

    c_new, h_new = support_convlstm_cell(x, c_prev, h_prev, params,
                                         tile_m=tile_m, tile_c=tile_c)
    jax.block_until_ready((c_new, h_new))

    c_ref, h_ref = _cell_ref(x, c_prev, h_prev, params, conv_dtype=jnp.bfloat16)
    check(c_new, c_ref, f"c (case {case_id})", 5e-3, 5e-3)
    check(h_new, h_ref, f"h (case {case_id})", 5e-3, 5e-3)

  # Case 0: tile_m = 2*H*W (in-kernel peephole replication), single channel tile.
  run_case(0, N=2, H=8, W=8, C=128, tile_m=128, tile_c=128)
  # Case 1: channel-tiled 2-D grid + tile_m < H*W (modular peephole index map).
  run_case(1, N=1, H=8, W=8, C=256, tile_m=32, tile_c=128)
  # Case 2: 1-D grid with multiple row tiles (num_ct == 1, num_mt == 2).
  run_case(2, N=2, H=8, W=8, C=128, tile_m=64, tile_c=128)
  # Case 3: fully automatic (VMEM-budget-driven) tiling.
  run_case(3, N=2, H=8, W=8, C=256)

  # Sequence: params fused once, reused across T steps.
  key = jax.random.fold_in(jax.random.PRNGKey(0), 100)
  kp, kx, kc, kh = jax.random.split(key, 4)
  T, N, H, W, C = 2, 1, 8, 8, 128
  params = make_params(kp, C, H, W)
  xs = jax.random.normal(kx, (T, N, H, W, C), jnp.float32)
  c0 = jax.random.normal(kc, (N, H, W, C), jnp.float32)
  h0 = jax.random.normal(kh, (N, H, W, C), jnp.float32)
  c_out, h_out = support_convlstm_sequence(xs, c0, h0, params)
  jax.block_until_ready((c_out, h_out))
  c_ref, h_ref = c0, h0
  for t in range(T):
    c_ref, h_ref = _cell_ref(xs[t], c_ref, h_ref, params,
                             conv_dtype=jnp.bfloat16)
  check(c_out, c_ref, "c (sequence)", 1e-2, 1e-2)
  check(h_out, h_ref, "h (sequence)", 1e-2, 1e-2)

  print("KERNEL_OK")
</pallas_src>

<mosaic_0001>
module attributes {stable_mosaic.version = 11 : i64} {
  func.func @_cell_kernel(%arg0: i32, %arg1: memref<128x2304xbf16, #tpu.memory_space<vmem>>, %arg2: memref<1x2304x512xbf16, #tpu.memory_space<vmem>>, %arg3: memref<1x4x128xf32, #tpu.memory_space<vmem>>, %arg4: memref<128x128xf32, #tpu.memory_space<vmem>>, %arg5: memref<64x128xf32, #tpu.memory_space<vmem>>, %arg6: memref<64x128xf32, #tpu.memory_space<vmem>>, %arg7: memref<64x128xf32, #tpu.memory_space<vmem>>, %arg8: memref<128x128xf32, #tpu.memory_space<vmem>>, %arg9: memref<128x128xf32, #tpu.memory_space<vmem>>) attributes {dimension_semantics = [#tpu.dimension_semantics<parallel>], iteration_bounds = array<i64: 1>, scalar_prefetch = 0 : i64, scratch_operands = 0 : i64, tpu.core_type = #tpu.core_type<tc>, window_params = [{transform_indices = @transform_0, window_bounds = array<i64: 128, 2304>}, {pipeline_mode = #tpu.pipeline_mode<synchronous>, transform_indices = @transform_1, window_bounds = array<i64: 1, 2304, 512>}, {pipeline_mode = #tpu.pipeline_mode<synchronous>, transform_indices = @transform_2, window_bounds = array<i64: 1, 4, 128>}, {transform_indices = @transform_3, window_bounds = array<i64: 128, 128>}, {pipeline_mode = #tpu.pipeline_mode<synchronous>, transform_indices = @transform_4, window_bounds = array<i64: 64, 128>}, {pipeline_mode = #tpu.pipeline_mode<synchronous>, transform_indices = @transform_5, window_bounds = array<i64: 64, 128>}, {pipeline_mode = #tpu.pipeline_mode<synchronous>, transform_indices = @transform_6, window_bounds = array<i64: 64, 128>}, {transform_indices = @transform_7, window_bounds = array<i64: 128, 128>}, {transform_indices = @transform_8, window_bounds = array<i64: 128, 128>}]} {
    %c0 = arith.constant 0 : index
    %c0_0 = arith.constant 0 : index
    %0 = vector.load %arg1[%c0, %c0_0] : memref<128x2304xbf16, #tpu.memory_space<vmem>>, vector<128x2304xbf16>
    %c0_1 = arith.constant 0 : index
    %c0_2 = arith.constant 0 : index
    %c0_3 = arith.constant 0 : index
    %1 = vector.load %arg2[%c0_1, %c0_2, %c0_3] : memref<1x2304x512xbf16, #tpu.memory_space<vmem>>, vector<1x2304x512xbf16>
    %2 = vector.shape_cast %1 : vector<1x2304x512xbf16> to vector<2304x512xbf16>
    %cst = arith.constant dense<0.000000e+00> : vector<128x512xf32>
    %3 = tpu.matmul %0, %2, %cst {dimension_numbers = #tpu.dot_dimension_numbers<[1], [0], [0], [1], [0, 0, 1, 1], [], []>} : vector<128x2304xbf16>, vector<2304x512xbf16>, vector<128x512xf32> -> vector<128x512xf32>
    %c0_4 = arith.constant 0 : index
    %c0_5 = arith.constant 0 : index
    %c0_6 = arith.constant 0 : index
    %4 = vector.load %arg3[%c0_4, %c0_5, %c0_6] : memref<1x4x128xf32, #tpu.memory_space<vmem>>, vector<1x4x128xf32>
    %5 = vector.shape_cast %4 : vector<1x4x128xf32> to vector<4x128xf32>
    %c0_7 = arith.constant 0 : index
    %c0_8 = arith.constant 0 : index
    %6 = vector.load %arg4[%c0_7, %c0_8] : memref<128x128xf32, #tpu.memory_space<vmem>>, vector<128x128xf32>
    %c0_9 = arith.constant 0 : index
    %c0_10 = arith.constant 0 : index
    %7 = vector.load %arg5[%c0_9, %c0_10] : memref<64x128xf32, #tpu.memory_space<vmem>>, vector<64x128xf32>
    %8 = tpu.concatenate %7, %7 in 0 : vector<64x128xf32>, vector<64x128xf32> -> vector<128x128xf32>
    %c0_11 = arith.constant 0 : index
    %c0_12 = arith.constant 0 : index
    %9 = vector.load %arg6[%c0_11, %c0_12] : memref<64x128xf32, #tpu.memory_space<vmem>>, vector<64x128xf32>
    %10 = tpu.concatenate %9, %9 in 0 : vector<64x128xf32>, vector<64x128xf32> -> vector<128x128xf32>
    %c0_13 = arith.constant 0 : index
    %c0_14 = arith.constant 0 : index
    %11 = vector.load %arg7[%c0_13, %c0_14] : memref<64x128xf32, #tpu.memory_space<vmem>>, vector<64x128xf32>
    %12 = tpu.concatenate %11, %11 in 0 : vector<64x128xf32>, vector<64x128xf32> -> vector<128x128xf32>
    %13 = vector.extract_strided_slice %3 {offsets = [0, 0], sizes = [128, 128], strides = [1, 1]} : vector<128x512xf32> to vector<128x128xf32>
    %14 = vector.extract_strided_slice %5 {offsets = [0, 0], sizes = [1, 128], strides = [1, 1]} : vector<4x128xf32> to vector<1x128xf32>
    %15 = vector.broadcast %14 : vector<1x128xf32> to vector<128x128xf32>
    %16 = arith.addf %13, %15 : vector<128x128xf32>
    %17 = arith.mulf %8, %6 : vector<128x128xf32>
    %18 = arith.addf %16, %17 : vector<128x128xf32>
    %19 = arith.negf %18 : vector<128x128xf32>
    %20 = math.exp %19 : vector<128x128xf32>
    %cst_15 = arith.constant 1.000000e+00 : f32
    %21 = vector.broadcast %cst_15 : f32 to vector<128x128xf32>
    %22 = arith.addf %21, %20 : vector<128x128xf32>
    %23 = arith.divf %21, %22 : vector<128x128xf32>
    %24 = vector.extract_strided_slice %3 {offsets = [0, 128], sizes = [128, 128], strides = [1, 1]} : vector<128x512xf32> to vector<128x128xf32>
    %25 = vector.extract_strided_slice %5 {offsets = [1, 0], sizes = [1, 128], strides = [1, 1]} : vector<4x128xf32> to vector<1x128xf32>
    %26 = vector.broadcast %25 : vector<1x128xf32> to vector<128x128xf32>
    %27 = arith.addf %24, %26 : vector<128x128xf32>
    %28 = arith.mulf %10, %6 : vector<128x128xf32>
    %29 = arith.addf %27, %28 : vector<128x128xf32>
    %30 = arith.negf %29 : vector<128x128xf32>
    %31 = math.exp %30 : vector<128x128xf32>
    %cst_16 = arith.constant 1.000000e+00 : f32
    %32 = vector.broadcast %cst_16 : f32 to vector<128x128xf32>
    %33 = arith.addf %32, %31 : vector<128x128xf32>
    %34 = arith.divf %32, %33 : vector<128x128xf32>
    %35 = vector.extract_strided_slice %3 {offsets = [0, 256], sizes = [128, 128], strides = [1, 1]} : vector<128x512xf32> to vector<128x128xf32>
    %36 = vector.extract_strided_slice %5 {offsets = [2, 0], sizes = [1, 128], strides = [1, 1]} : vector<4x128xf32> to vector<1x128xf32>
    %37 = vector.broadcast %36 : vector<1x128xf32> to vector<128x128xf32>
    %38 = arith.addf %35, %37 : vector<128x128xf32>
    %39 = math.tanh %38 : vector<128x128xf32>
    %40 = arith.mulf %34, %6 : vector<128x128xf32>
    %41 = arith.mulf %23, %39 : vector<128x128xf32>
    %42 = arith.addf %40, %41 : vector<128x128xf32>
    %cst_17 = arith.constant 5.000000e-01 : f32
    %43 = vector.broadcast %cst_17 : f32 to vector<128x128xf32>
    %44 = arith.mulf %42, %43 : vector<128x128xf32>
    %45 = vector.extract_strided_slice %3 {offsets = [0, 384], sizes = [128, 128], strides = [1, 1]} : vector<128x512xf32> to vector<128x128xf32>
    %46 = vector.extract_strided_slice %5 {offsets = [3, 0], sizes = [1, 128], strides = [1, 1]} : vector<4x128xf32> to vector<1x128xf32>
    %47 = vector.broadcast %46 : vector<1x128xf32> to vector<128x128xf32>
    %48 = arith.addf %45, %47 : vector<128x128xf32>
    %49 = arith.mulf %12, %44 : vector<128x128xf32>
    %50 = arith.addf %48, %49 : vector<128x128xf32>
    %51 = arith.negf %50 : vector<128x128xf32>
    %52 = math.exp %51 : vector<128x128xf32>
    %cst_18 = arith.constant 1.000000e+00 : f32
    %53 = vector.broadcast %cst_18 : f32 to vector<128x128xf32>
    %54 = arith.addf %53, %52 : vector<128x128xf32>
    %55 = arith.divf %53, %54 : vector<128x128xf32>
    %56 = math.tanh %44 : vector<128x128xf32>
    %57 = arith.mulf %55, %56 : vector<128x128xf32>
    %c0_19 = arith.constant 0 : index
    %c0_20 = arith.constant 0 : index
    %58 = vector.load %arg8[%c0_19, %c0_20] : memref<128x128xf32, #tpu.memory_space<vmem>>, vector<128x128xf32>
    tpu.vector_store %arg8[%c0_19, %c0_20], %44 {strides = array<i32>} : memref<128x128xf32, #tpu.memory_space<vmem>>, vector<128x128xf32>,
    %c0_21 = arith.constant 0 : index
    %c0_22 = arith.constant 0 : index
    %59 = vector.load %arg9[%c0_21, %c0_22] : memref<128x128xf32, #tpu.memory_space<vmem>>, vector<128x128xf32>
    tpu.vector_store %arg9[%c0_21, %c0_22], %57 {strides = array<i32>} : memref<128x128xf32, #tpu.memory_space<vmem>>, vector<128x128xf32>,
    return
  }
  func.func @transform_0(%arg0: i32) -> (i32, i32) {
    %c0_i32 = arith.constant 0 : i32
    %c0_i32_0 = arith.constant 0 : i32
    return %arg0, %c0_i32 : i32, i32
  }
  func.func @transform_1(%arg0: i32) -> (i32, i32, i32) {
    %c0_i32 = arith.constant 0 : i32
    %c0_i32_0 = arith.constant 0 : i32
    %c0_i32_1 = arith.constant 0 : i32
    %c0_i32_2 = arith.constant 0 : i32
    return %c0_i32, %c0_i32_0, %c0_i32_1 : i32, i32, i32
  }
  func.func @transform_2(%arg0: i32) -> (i32, i32, i32) {
    %c0_i32 = arith.constant 0 : i32
    %c0_i32_0 = arith.constant 0 : i32
    %c0_i32_1 = arith.constant 0 : i32
    %c0_i32_2 = arith.constant 0 : i32
    return %c0_i32, %c0_i32_0, %c0_i32_1 : i32, i32, i32
  }
  func.func @transform_3(%arg0: i32) -> (i32, i32) {
    %c0_i32 = arith.constant 0 : i32
    %c0_i32_0 = arith.constant 0 : i32
    return %arg0, %c0_i32 : i32, i32
  }
  func.func @transform_4(%arg0: i32) -> (i32, i32) {
    %c0_i32 = arith.constant 0 : i32
    %c0_i32_0 = arith.constant 0 : i32
    %c0_i32_1 = arith.constant 0 : i32
    return %c0_i32, %c0_i32_0 : i32, i32
  }
  func.func @transform_5(%arg0: i32) -> (i32, i32) {
    %c0_i32 = arith.constant 0 : i32
    %c0_i32_0 = arith.constant 0 : i32
    %c0_i32_1 = arith.constant 0 : i32
    return %c0_i32, %c0_i32_0 : i32, i32
  }
  func.func @transform_6(%arg0: i32) -> (i32, i32) {
    %c0_i32 = arith.constant 0 : i32
    %c0_i32_0 = arith.constant 0 : i32
    %c0_i32_1 = arith.constant 0 : i32
    return %c0_i32, %c0_i32_0 : i32, i32
  }
  func.func @transform_7(%arg0: i32) -> (i32, i32) {
    %c0_i32 = arith.constant 0 : i32
    %c0_i32_0 = arith.constant 0 : i32
    return %arg0, %c0_i32 : i32, i32
  }
  func.func @transform_8(%arg0: i32) -> (i32, i32) {
    %c0_i32 = arith.constant 0 : i32
    %c0_i32_0 = arith.constant 0 : i32
    return %arg0, %c0_i32 : i32, i32
  }
}

</mosaic_0001>

<bundles_post_ra>
// kernel: tpu_custom_call.1
= control target key start
LH: loop header
LB: loop body
LE: loop exit
PB: predicated region body
PF: predicated region fallthrough
CT: control target
= control target key end

     0   :  { %14 = vsyncpa [#allocation3], 0  ;;  %s16567_s0 = inlined_call_operand.hbm [shape: bf16[128,2304], index: 0, kind: input, shape index: {}]   ;;  %s16568_s1 = inlined_call_operand.hbm [shape: bf16[1,2304,512], index: 1, kind: input, shape index: {}]   ;;  %s16569_s2 = inlined_call_operand.hbm [shape: f32[1,4,128], index: 2, kind: input, shape index: {}]   ;;  %s16570_s3 = inlined_call_operand.hbm [shape: f32[128,128], index: 3, kind: input, shape index: {}]   ;;  %s16571_s4 = inlined_call_operand.hbm [shape: f32[64,128], index: 4, kind: input, shape index: {}]   ;;  %s16572_s5 = inlined_call_operand.hbm [shape: f32[64,128], index: 5, kind: input, shape index: {}]   ;;  %s16573_s6 = inlined_call_operand.hbm [shape: f32[64,128], index: 6, kind: input, shape index: {}]   ;;  %s16574_s7 = inlined_call_operand.hbm [shape: f32[128,128], index: 7, kind: output, shape index: {0}]   ;;  %s16575_s8 = inlined_call_operand.hbm [shape: f32[128,128], index: 8, kind: output, shape index: {1}]  }
   0x1   :  { %15 = vsyncpa [#allocation6], 0 }
   0x2   :  { %16 = vsyncpa [#allocation9], 0 }
   0x3   :  { %17 = vsyncpa [#allocation12], 0 }
   0x4   :  { %18 = vsyncpa [#allocation4], 0  ;;  %s37_s29 = sshll.u32 %s16568_s1, 4  ;;  %s38_s29 = int_to_ptr.hbm [resolvable:$true] %s37_s29 }
   0x5   :  { %19 = vsyncpa [#allocation16], 0  ;;  %s13486_s30 = smov [#allocation5]   ;;  %s61_s12 = sshll.u32 %s16570_s3, 4  ;;  %s62_s12 = int_to_ptr.hbm [resolvable:$true] %s61_s12 }
   0x6   :  { %s39_s9 = sshll.u32 %s13486_s30, 4  ;;  %s13487_s13 = smov 256   ;;  %s40_s9 = int_to_ptr.vmem [resolvable:$true] %s39_s9 }
   0x7   :  { %s13488_s14 = smov 16   ;;  %s13489_s15 = smov [#allocation8]  }
   0x8   :  { %45 = dma.hbm_to_vmem [thread:$0]  %s38_s29, 73728, %s40_s9, [#allocation6], %s13487_s13, %s13487_s13, %s13488_s14  }
   0x9   :  { %s63_s16 = sshll.u32 %s13489_s15, 4  ;;  %s13490_s17 = smov 128   ;;  %s64_s16 = int_to_ptr.vmem [resolvable:$true] %s63_s16 }
   0xa   :  { %s13491_s18 = smov 8   ;;  %s87_s20 = sshll.u32 %s16572_s5, 4  ;;  %s88_s20 = int_to_ptr.hbm [resolvable:$true] %s87_s20 }
   0xb   :  { %69 = dma.hbm_to_vmem [thread:$0]  %s62_s12, 2048, %s64_s16, [#allocation9], %s13490_s17, %s13490_s17, %s13491_s18  }
   0xc   :  { %s13492_s21 = smov [#allocation11]   ;;  %s24_s24 = sshll.u32 %s16567_s0, 4  ;;  %s25_s24 = int_to_ptr.hbm [resolvable:$true] %s24_s24 }
   0xd   :  { %s89_s3 = sshll.u32 %s13492_s21, 4  ;;  %s13493_s25 = smov [#allocation2]   ;;  %s90_s3 = int_to_ptr.vmem [resolvable:$true] %s89_s3 }
   0xe   :  { %95 = dma.hbm_to_vmem [thread:$0]  %s88_s20, 1024, %s90_s3, [#allocation12], %s13490_s17, %s13490_s17, %s13491_s18  }
   0xf   :  { %s26_s26 = sshll.u32 %s13493_s25, 4  ;;  %s13494_s27 = smov 1152   ;;  %s27_s26 = int_to_ptr.vmem [resolvable:$true] %s26_s26 }
  0x10   :  { %s13495_s28 = smov 72   ;;  %s51_s30 = sshll.u32 %s16569_s2, 4  ;;  %s52_s30 = int_to_ptr.hbm [resolvable:$true] %s51_s30 }
  0x11   :  { %32 = dma.hbm_to_vmem [thread:$0]  %s25_s24, 18432, %s27_s26, [#allocation3], %s13494_s27, %s13494_s27, %s13495_s28  }
  0x12   :  { %s13496_s9 = smov [#allocation7]   ;;  %s74_s12 = sshll.u32 %s16571_s4, 4  ;;  %s75_s12 = int_to_ptr.hbm [resolvable:$true] %s74_s12 }
  0x13   :  { %s53_s10 = sshll.u32 %s13496_s9, 4  ;;  %s13497_s13 = smov [#allocation10]   ;;  %s54_s10 = int_to_ptr.vmem [resolvable:$true] %s53_s10 }
  0x14   :  { %56 = dma.hbm_to_vmem [thread:$0]  %s52_s30, 64, %s54_s10, [#allocation6]  }
  0x15   :  { %s76_s14 = sshll.u32 %s13497_s13, 4  ;;  %s100_s1 = sshll.u32 %s16573_s6, 4  ;;  %s77_s14 = int_to_ptr.vmem [resolvable:$true] %s76_s14  ;;  %s101_s1 = int_to_ptr.hbm [resolvable:$true] %s100_s1 }
  0x16   :  { %82 = dma.hbm_to_vmem [thread:$0]  %s75_s12, 1024, %s77_s14, [#allocation9], %s13490_s17, %s13490_s17, %s13491_s18  }
  0x17   :  { %s13498_s2 = smov [#allocation13]  }
  0x18   :  { %s102_s19 = sshll.u32 %s13498_s2, 4  ;;  %s103_s19 = int_to_ptr.vmem [resolvable:$true] %s102_s19 }
  0x19   :  { %108 = dma.hbm_to_vmem [thread:$0]  %s101_s1, 1024, %s103_s19, [#allocation12], %s13490_s17, %s13490_s17, %s13491_s18  }
  0x1a   :  { %13474 = dma.done.wait [#allocation3], 18432  }
  0x1b   :  { %13475 = vsyncadd [#allocation3], 4294948864 }
  0x1c   :  { %13476 = dma.done.wait [#allocation6], 73792  }
  0x1d   :  { %13477 = vsyncadd [#allocation6], 4294893504 }
  0x1e   :  { %13478 = dma.done.wait [#allocation9], 3072  }
  0x1f   :  { %13479 = vsyncadd [#allocation9], 4294964224 }
  0x20   :  { %13480 = dma.done.wait [#allocation12], 2048  }
  0x21   :  { %13481 = vsyncadd [#allocation12], 4294965248  ;;  %v9976_v0 = vld [vmem:[#allocation5 + $0xe0] sm:$0xf]  ;;  %v12388_v1 = vld [vmem:[#allocation5 + $0xec] sm:$0xf0] }
  0x22   :  { %v10104_v2 = vld [vmem:[#allocation5 + $0x1e0] sm:$0xf]  ;;  %v9977_v3 = vor.u32 %v12388_v1, %v9976_v0  ;;  %v12420_v4 = vld [vmem:[#allocation5 + $0x1ec] sm:$0xf0]  ;;  %s9252_s20 = sshll.u32 %s16574_s7, 4  ;;  %s13499_s21 = smov [#allocation14]   ;;  %s9253_s20 = int_to_ptr.hbm [resolvable:$true] %s9252_s20 }
  0x23   :  { %v10232_v5 = vld [vmem:[#allocation5 + $0x2e0] sm:$0xf]  ;;  %v12452_v6 = vld [vmem:[#allocation5 + $0x2ec] sm:$0xf0]  ;;  %v10105_v7 = vor.u32 %v12420_v4, %v10104_v2  ;;  %s9250_s3 = sshll.u32 %s13499_s21, 4  ;;  %s13500_s7 = smov [#allocation15]   ;;  %s9251_s3 = int_to_ptr.vmem [resolvable:$true] %s9250_s3 }
  0x24   :  { %v10233_v8 = vor.u32 %v12452_v6, %v10232_v5  ;;  %v10360_v9 = vld [vmem:[#allocation5 + $0x3e0] sm:$0xf]  ;;  %v12484_v10 = vld [vmem:[#allocation5 + $0x3ec] sm:$0xf0]  ;;  %4457 = vmatpush.bf16.msra.mxu0 %v9977_v3  ;;  %s9263_s22 = sshll.u32 %s13500_s7, 4  ;;  %s9265_s25 = sshll.u32 %s16575_s8, 4  ;;  %s9264_s22 = int_to_ptr.vmem [resolvable:$true] %s9263_s22  ;;  %s9266_s25 = int_to_ptr.hbm [resolvable:$true] %s9265_s25 }
  0x25   :  { %v9960_v11 = vld [vmem:[#allocation5 + $0xc0] sm:$0xf]  ;;  %v10361_v12 = vor.u32 %v12484_v10, %v10360_v9  ;;  %v12384_v13 = vld [vmem:[#allocation5 + $0xcc] sm:$0xf0]  ;;  %4506 = vmatpush.bf16.msra.mxu1 %v10105_v7 }
  0x26   :  { %v10088_v14 = vld [vmem:[#allocation5 + $0x1c0] sm:$0xf]  ;;  %v12416_v15 = vld [vmem:[#allocation5 + $0x1cc] sm:$0xf0]  ;;  %4555 = vmatpush.bf16.msra.mxu2 %v10233_v8  ;;  %v9961_v16 = vor.u32 %v12384_v13, %v9960_v11 }
  0x27   :  { %v10089_v17 = vor.u32 %v12416_v15, %v10088_v14  ;;  %v10216_v18 = vld [vmem:[#allocation5 + $0x2c0] sm:$0xf]  ;;  %v12448_v19 = vld [vmem:[#allocation5 + $0x2cc] sm:$0xf0]  ;;  %4604 = vmatpush.bf16.msra.mxu3 %v10361_v12 }
  0x28   :  { %v10344_v20 = vld [vmem:[#allocation5 + $0x3c0] sm:$0xf]  ;;  %v10217_v21 = vor.u32 %v12448_v19, %v10216_v18  ;;  %v12480_v22 = vld [vmem:[#allocation5 + $0x3cc] sm:$0xf0]  ;;  %4458 = vmatpush.bf16.msra.mxu0 %v9961_v16 }
  0x29   :  { %v9944_v23 = vld [vmem:[#allocation5 + $0xa0] sm:$0xf]  ;;  %v12380_v24 = vld [vmem:[#allocation5 + $0xac] sm:$0xf0]  ;;  %v10345_v25 = vor.u32 %v12480_v22, %v10344_v20  ;;  %4507 = vmatpush.bf16.msra.mxu1 %v10089_v17 }
  0x2a   :  { %v10072_v26 = vld [vmem:[#allocation5 + $0x1a0] sm:$0xf]  ;;  %v12412_v27 = vld [vmem:[#allocation5 + $0x1ac] sm:$0xf0]  ;;  %v9945_v29 = vor.u32 %v12380_v24, %v9944_v23  ;;  %4556 = vmatpush.bf16.msra.mxu2 %v10217_v21 }
  0x2b   :  { %v10200_v28 = vld [vmem:[#allocation5 + $0x2a0] sm:$0xf]  ;;  %v12444_v30 = vld [vmem:[#allocation5 + $0x2ac] sm:$0xf0]  ;;  %v10073_v33 = vor.u32 %v12412_v27, %v10072_v26  ;;  %4605 = vmatpush.bf16.msra.mxu3 %v10345_v25 }
  0x2c   :  { %v10328_v31 = vld [vmem:[#allocation5 + $0x3a0] sm:$0xf]  ;;  %v12476_v32 = vld [vmem:[#allocation5 + $0x3ac] sm:$0xf0]  ;;  %v10201_v34 = vor.u32 %v12444_v30, %v10200_v28  ;;  %4459 = vmatpush.bf16.msra.mxu0 %v9945_v29  ;;  %v12223_v29 = vld [vmem:[#allocation2 + $0x44] sm:$0xf0] }
  0x2d   :  { %v9928_v35 = vld [vmem:[#allocation5 + $0x80] sm:$0xf]  ;;  %v12376_v36 = vld [vmem:[#allocation5 + $0x8c] sm:$0xf0]  ;;  %v10329_v38 = vor.u32 %v12476_v32, %v10328_v31  ;;  %4508 = vmatpush.bf16.msra.mxu1 %v10073_v33  ;;  %v12214_v30 = vld [vmem:[#allocation2 + $0x4] sm:$0xf] }
  0x2e   :  { %v10056_v37 = vld [vmem:[#allocation5 + $0x180] sm:$0xf]  ;;  %v12408_v39 = vld [vmem:[#allocation5 + $0x18c] sm:$0xf0]  ;;  %v9929_v44 = vor.u32 %v12376_v36, %v9928_v35  ;;  %4557 = vmatpush.bf16.msra.mxu2 %v10201_v34  ;;  %v9290_v31 = vld [vmem:[#allocation2 + $0x48] sm:$0xf0] }
  0x2f   :  { %v10184_v40 = vld [vmem:[#allocation5 + $0x280] sm:$0xf]  ;;  %v12440_v41 = vld [vmem:[#allocation5 + $0x28c] sm:$0xf0]  ;;  %v10057_v45 = vor.u32 %v12408_v39, %v10056_v37  ;;  %4606 = vmatpush.bf16.msra.mxu3 %v10329_v38  ;;  %v9296_v35 = vld [vmem:[#allocation2 + $0x8] sm:$0xf] }
  0x30   :  { %v10312_v42 = vld [vmem:[#allocation5 + $0x380] sm:$0xf]  ;;  %v12472_v43 = vld [vmem:[#allocation5 + $0x38c] sm:$0xf0]  ;;  %v10185_v46 = vor.u32 %v12440_v41, %v10184_v40  ;;  %4460 = vmatpush.bf16.msra.mxu0 %v9929_v44  ;;  %v12215_v41 = vld [vmem:[#allocation2 + $0xc] sm:$0xf] }
  0x31   :  { %v9912_v47 = vld [vmem:[#allocation5 + $0x60] sm:$0xf]  ;;  %v12372_v48 = vld [vmem:[#allocation5 + $0x6c] sm:$0xf0]  ;;  %v10313_v50 = vor.u32 %v12472_v43, %v10312_v42  ;;  %4509 = vmatpush.bf16.msra.mxu1 %v10057_v45  ;;  %v9298_v42 = vld [vmem:[#allocation2 + $0x50] sm:$0xf0] }
  0x32   :  { %v10040_v49 = vld [vmem:[#allocation5 + $0x160] sm:$0xf]  ;;  %v12404_v51 = vld [vmem:[#allocation5 + $0x16c] sm:$0xf0]  ;;  %v9913_v56 = vor.u32 %v12372_v48, %v9912_v47  ;;  %4558 = vmatpush.bf16.msra.mxu2 %v10185_v46 }
  0x33   :  { %v10168_v52 = vld [vmem:[#allocation5 + $0x260] sm:$0xf]  ;;  %v12436_v53 = vld [vmem:[#allocation5 + $0x26c] sm:$0xf0]  ;;  %v10041_v57 = vor.u32 %v12404_v51, %v10040_v49  ;;  %4607 = vmatpush.bf16.msra.mxu3 %v10313_v50 }
  0x34   :  { %v10296_v54 = vld [vmem:[#allocation5 + $0x360] sm:$0xf]  ;;  %v12468_v55 = vld [vmem:[#allocation5 + $0x36c] sm:$0xf0]  ;;  %v10169_v58 = vor.u32 %v12436_v53, %v10168_v52  ;;  %4461 = vmatpush.bf16.msra.mxu0 %v9913_v56  ;;  %v13581_v53 = vor.u32 %v12214_v30, %v9290_v31 }
  0x35   :  { %v9896_v59 = vld [vmem:[#allocation5 + $0x40] sm:$0xf]  ;;  %v12368_v60 = vld [vmem:[#allocation5 + $0x4c] sm:$0xf0]  ;;  %v10297_v62 = vor.u32 %v12468_v55, %v10296_v54  ;;  %4510 = vmatpush.bf16.msra.mxu1 %v10041_v57  ;;  %v13585_v57 = vor.u32 %v12215_v41, %v9298_v42  ;;  %v12259_v41 = vld [vmem:[#allocation2 + $0x164] sm:$0xf0] }
  0x36   :  { %v10024_v61 = vld [vmem:[#allocation5 + $0x140] sm:$0xf]  ;;  %v12400_v63 = vld [vmem:[#allocation5 + $0x14c] sm:$0xf0]  ;;  %v9897_v4 = vor.u32 %v12368_v60, %v9896_v59  ;;  %4559 = vmatpush.bf16.msra.mxu2 %v10169_v58  ;;  %16887 = vst [vmem:[#allocation24_spill] sm:$0xff] %v13581_v53 }
  0x37   :  { %v10152_v0 = vld [vmem:[#allocation5 + $0x240] sm:$0xf]  ;;  %v12432_v1 = vld [vmem:[#allocation5 + $0x24c] sm:$0xf0]  ;;  %v10025_v5 = vor.u32 %v12400_v63, %v10024_v61  ;;  %4608 = vmatpush.bf16.msra.mxu3 %v10297_v62  ;;  %16889 = vst [vmem:[#allocation26_spill] sm:$0xff] %v13585_v57 }
  0x38   :  { %v10280_v2 = vld [vmem:[#allocation5 + $0x340] sm:$0xf]  ;;  %v12464_v3 = vld [vmem:[#allocation5 + $0x34c] sm:$0xf0]  ;;  %v10153_v6 = vor.u32 %v12432_v1, %v10152_v0  ;;  %4462 = vmatpush.bf16.msra.mxu0 %v9897_v4  ;;  %v12250_v42 = vld [vmem:[#allocation2 + $0x124] sm:$0xf] }
  0x39   :  { %v9880_v7 = vld [vmem:[#allocation5 + $0x20] sm:$0xf]  ;;  %v12364_v8 = vld [vmem:[#allocation5 + $0x2c] sm:$0xf0]  ;;  %v10281_v10 = vor.u32 %v12464_v3, %v10280_v2  ;;  %4511 = vmatpush.bf16.msra.mxu1 %v10025_v5 }
  0x3a   :  { %v10008_v9 = vld [vmem:[#allocation5 + $0x120] sm:$0xf]  ;;  %v12396_v11 = vld [vmem:[#allocation5 + $0x12c] sm:$0xf0]  ;;  %v9881_v17 = vor.u32 %v12364_v8, %v9880_v7  ;;  %4560 = vmatpush.bf16.msra.mxu2 %v10153_v6 }
  0x3b   :  { %v10136_v12 = vld [vmem:[#allocation5 + $0x220] sm:$0xf]  ;;  %v12428_v13 = vld [vmem:[#allocation5 + $0x22c] sm:$0xf0]  ;;  %v10009_v21 = vor.u32 %v12396_v11, %v10008_v9  ;;  %4609 = vmatpush.bf16.msra.mxu3 %v10281_v10 }
  0x3c   :  { %v10264_v14 = vld [vmem:[#allocation5 + $0x320] sm:$0xf]  ;;  %v12460_v15 = vld [vmem:[#allocation5 + $0x32c] sm:$0xf0]  ;;  %v10137_v22 = vor.u32 %v12428_v13, %v10136_v12  ;;  %4463 = vmatpush.bf16.msra.mxu0 %v9881_v17  ;;  %v12241_v17 = vld [vmem:[#allocation2 + $0xd4] sm:$0xf0] }
  0x3d   :  { %v9864_v16 = vld [vmem:[#allocation5] sm:$0xf]  ;;  %v12360_v18 = vld [vmem:[#allocation5 + $0xc] sm:$0xf0]  ;;  %v10265_v26 = vor.u32 %v12460_v15, %v10264_v14  ;;  %4512 = vmatpush.bf16.msra.mxu1 %v10009_v21 }
  0x3e   :  { %v9992_v19 = vld [vmem:[#allocation5 + $0x100] sm:$0xf]  ;;  %v12392_v20 = vld [vmem:[#allocation5 + $0x10c] sm:$0xf0]  ;;  %v9865_v34 = vor.u32 %v12360_v18, %v9864_v16  ;;  %4561 = vmatpush.bf16.msra.mxu2 %v10137_v22  ;;  %v12232_v18 = vld [vmem:[#allocation2 + $0x94] sm:$0xf] }
  0x3f   :  { %v10120_v23 = vld [vmem:[#allocation5 + $0x200] sm:$0xf]  ;;  %v12424_v24 = vld [vmem:[#allocation5 + $0x20c] sm:$0xf0]  ;;  %v9993_v38 = vor.u32 %v12392_v20, %v9992_v19  ;;  %4610 = vmatpush.bf16.msra.mxu3 %v10265_v26  ;;  %v9362_v19 = vld [vmem:[#allocation2 + $0xd8] sm:$0xf0] }
  0x40   :  { %v10248_v25 = vld [vmem:[#allocation5 + $0x300] sm:$0xf]  ;;  %v12456_v27 = vld [vmem:[#allocation5 + $0x30c] sm:$0xf0]  ;;  %v10121_v39 = vor.u32 %v12424_v24, %v10120_v23  ;;  %4464 = vmatpush.bf16.msra.mxu0 %v9865_v34  ;;  %v9368_v20 = vld [vmem:[#allocation2 + $0x98] sm:$0xf] }
  0x41   :  { %v9288_v28 = vld [vmem:[#allocation2] sm:$0xf]  ;;  %v12580_v33 = vld [vmem:[#allocation5 + $0x6ec] sm:$0xf0]  ;;  %v10249_v43 = vor.u32 %v12456_v27, %v10248_v25  ;;  %4513 = vmatpush.bf16.msra.mxu1 %v9993_v38  ;;  %v12233_v22 = vld [vmem:[#allocation2 + $0x9c] sm:$0xf]  ;;  %v13593_v25 = vor.u32 %v12232_v18, %v9362_v19 }
  0x42   :  { %v10744_v32 = vld [vmem:[#allocation5 + $0x6e0] sm:$0xf]  ;;  %v12612_v37 = vld [vmem:[#allocation5 + $0x7ec] sm:$0xf0]  ;;  %v13579_v48 = vor.u32 %v12223_v29, %v9288_v28  ;;  %4562 = vmatpush.bf16.msra.mxu2 %v10121_v39  ;;  %v9370_v23 = vld [vmem:[#allocation2 + $0xe0] sm:$0xf0] }
  0x43   :  { %v10872_v36 = vld [vmem:[#allocation5 + $0x7e0] sm:$0xf]  ;;  %v12224_v40 = vld [vmem:[#allocation2 + $0x4c] sm:$0xf0]  ;;  %v10745_v44 = vor.u32 %v12580_v33, %v10744_v32  ;;  %4611 = vmatpush.bf16.msra.mxu3 %v10249_v43  ;;  %16891 = vst [vmem:[#allocation28_spill] sm:$0xff] %v13593_v25  ;;  %v13597_v27 = vor.u32 %v12233_v22, %v9370_v23 }
  0x44   :  { %v10488_v45 = vld [vmem:[#allocation5 + $0x4e0] sm:$0xf]  ;;  %v12516_v46 = vld [vmem:[#allocation5 + $0x4ec] sm:$0xf0]  ;;  %16886 = vst [vmem:[#allocation23_spill] sm:$0xff] %v13579_v48  ;;  %v10873_v49 = vor.u32 %v12612_v37, %v10872_v36  ;;  %v13583_v54 = vor.u32 %v12224_v40, %v9296_v35  ;;  %4465 = vmatmul.bf16.vlgmr.msra.gmra.mxu0 %v13579_v48  ;;  %4514 = vmatmul.bf16.vlgmr.msra.gmra.mxu1 %v13581_v53 }
  0x45   :  { %v10616_v47 = vld [vmem:[#allocation5 + $0x5e0] sm:$0xf]  ;;  %v12548_v50 = vld [vmem:[#allocation5 + $0x5ec] sm:$0xf0]  ;;  %v10489_v58 = vor.u32 %v12516_v46, %v10488_v45  ;;  %16893 = vst [vmem:[#allocation30_spill] sm:$0xff] %v13597_v27 }
  0x46   :  { %v10728_v51 = vld [vmem:[#allocation5 + $0x6c0] sm:$0xf]  ;;  %v12576_v52 = vld [vmem:[#allocation5 + $0x6cc] sm:$0xf0]  ;;  %16888 = vst [vmem:[#allocation25_spill] sm:$0xff] %v13583_v54  ;;  %4751 = vmatpush.bf16.msrb.mxu2 %v10745_v44  ;;  %v10617_v59 = vor.u32 %v12548_v50, %v10616_v47  ;;  %4612 = vmatmul.bf16.vlgmr.msra.gmra.mxu3 %v13585_v57 }
  0x47   :  { %v10856_v55 = vld [vmem:[#allocation5 + $0x7c0] sm:$0xf]  ;;  %v12608_v56 = vld [vmem:[#allocation5 + $0x7cc] sm:$0xf0]  ;;  %v10729_v60 = vor.u32 %v12576_v52, %v10728_v51  ;;  %4800 = vmatpush.bf16.msrb.mxu3 %v10873_v49  ;;  %4563 = vmatmul.bf16.vlgmr.msra.gmra.mxu2 %v13583_v54  ;;  %v9434_v43 = vld [vmem:[#allocation2 + $0x168] sm:$0xf0] }
  0x48   :  { %v10472_v61 = vld [vmem:[#allocation5 + $0x4c0] sm:$0xf]  ;;  %v12512_v62 = vld [vmem:[#allocation5 + $0x4cc] sm:$0xf0]  ;;  %v10857_v63 = vor.u32 %v12608_v56, %v10856_v55  ;;  %4653 = vmatpush.bf16.msrb.mxu0 %v10489_v58  ;;  %4702 = vmatpush.bf16.msrb.mxu1 %v10617_v59  ;;  %v9440_v44 = vld [vmem:[#allocation2 + $0x128] sm:$0xf]  ;;  %v13605_v50 = vor.u32 %v12250_v42, %v9434_v43 }
  0x49   :  { %v10600_v0 = vld [vmem:[#allocation5 + $0x5c0] sm:$0xf]  ;;  %v12544_v1 = vld [vmem:[#allocation5 + $0x5cc] sm:$0xf0]  ;;  %v10473_v2 = vor.u32 %v12512_v62, %v10472_v61  ;;  %v12251_v46 = vld [vmem:[#allocation2 + $0x12c] sm:$0xf] }
  0x4a   :  { %v10712_v3 = vld [vmem:[#allocation5 + $0x6a0] sm:$0xf]  ;;  %v12572_v4 = vld [vmem:[#allocation5 + $0x6ac] sm:$0xf0]  ;;  %4752 = vmatpush.bf16.msrb.mxu2 %v10729_v60  ;;  %v10601_v6 = vor.u32 %v12544_v1, %v10600_v0  ;;  %v9442_v47 = vld [vmem:[#allocation2 + $0x170] sm:$0xf0] }
  0x4b   :  { %v10456_v5 = vld [vmem:[#allocation5 + $0x4a0] sm:$0xf]  ;;  %v10713_v7 = vor.u32 %v12572_v4, %v10712_v3  ;;  %v12508_v8 = vld [vmem:[#allocation5 + $0x4ac] sm:$0xf0]  ;;  %4801 = vmatpush.bf16.msrb.mxu3 %v10857_v63  ;;  %16895 = vst [vmem:[#allocation32_spill] sm:$0xff] %v13605_v50  ;;  %v13609_v52 = vor.u32 %v12251_v46, %v9442_v47 }
  0x4c   :  { %v10840_v9 = vld [vmem:[#allocation5 + $0x7a0] sm:$0xf]  ;;  %v12604_v10 = vld [vmem:[#allocation5 + $0x7ac] sm:$0xf0]  ;;  %4654 = vmatpush.bf16.msrb.mxu0 %v10473_v2  ;;  %v10457_v14 = vor.u32 %v12508_v8, %v10456_v5  ;;  %4703 = vmatpush.bf16.msrb.mxu1 %v10601_v6  ;;  %v12277_v5 = vld [vmem:[#allocation2 + $0x1f4] sm:$0xf0] }
  0x4d   :  { %v10841_v11 = vor.u32 %v12604_v10, %v10840_v9  ;;  %v10584_v12 = vld [vmem:[#allocation5 + $0x5a0] sm:$0xf]  ;;  %v12540_v13 = vld [vmem:[#allocation5 + $0x5ac] sm:$0xf0]  ;;  %16897 = vst [vmem:[#allocation34_spill] sm:$0xff] %v13609_v52 }
  0x4e   :  { %4753 = vmatpush.bf16.msrb.mxu2 %v10713_v7  ;;  %v10585_v15 = vor.u32 %v12540_v13, %v10584_v12  ;;  %v9360_v16 = vld [vmem:[#allocation2 + $0x90] sm:$0xf]  ;;  %v12242_v21 = vld [vmem:[#allocation2 + $0xdc] sm:$0xf0]  ;;  %v12268_v6 = vld [vmem:[#allocation2 + $0x1b4] sm:$0xf] }
  0x4f   :  { %4802 = vmatpush.bf16.msrb.mxu3 %v10841_v11  ;;  %v13591_v24 = vor.u32 %v12241_v17, %v9360_v16  ;;  %v13595_v26 = vor.u32 %v12242_v21, %v9368_v20  ;;  %v10696_v28 = vld [vmem:[#allocation5 + $0x680] sm:$0xf]  ;;  %v12568_v29 = vld [vmem:[#allocation5 + $0x68c] sm:$0xf0]  ;;  %v9506_v7 = vld [vmem:[#allocation2 + $0x1f8] sm:$0xf0] }
  0x50   :  { %4655 = vmatpush.bf16.msrb.mxu0 %v10457_v14  ;;  %4704 = vmatpush.bf16.msrb.mxu1 %v10585_v15  ;;  %v10440_v30 = vld [vmem:[#allocation5 + $0x480] sm:$0xf]  ;;  %v10697_v31 = vor.u32 %v12568_v29, %v10696_v28  ;;  %v12504_v32 = vld [vmem:[#allocation5 + $0x48c] sm:$0xf0]  ;;  %v9512_v8 = vld [vmem:[#allocation2 + $0x1b8] sm:$0xf]  ;;  %v13617_v13 = vor.u32 %v12268_v6, %v9506_v7 }
  0x51   :  { %16890 = vst [vmem:[#allocation27_spill] sm:$0xff] %v13591_v24  ;;  %v10824_v33 = vld [vmem:[#allocation5 + $0x780] sm:$0xf]  ;;  %v12600_v34 = vld [vmem:[#allocation5 + $0x78c] sm:$0xf0]  ;;  %v10441_v35 = vor.u32 %v12504_v32, %v10440_v30 }
  0x52   :  { %16892 = vst [vmem:[#allocation29_spill] sm:$0xff] %v13595_v26  ;;  %v10825_v36 = vor.u32 %v12600_v34, %v10824_v33  ;;  %v10568_v37 = vld [vmem:[#allocation5 + $0x580] sm:$0xf]  ;;  %v12536_v38 = vld [vmem:[#allocation5 + $0x58c] sm:$0xf0]  ;;  %4754 = vmatpush.bf16.msrb.mxu2 %v10697_v31 }
  0x53   :  { %v10569_v39 = vor.u32 %v12536_v38, %v10568_v37  ;;  %v9432_v40 = vld [vmem:[#allocation2 + $0x120] sm:$0xf]  ;;  %v12260_v45 = vld [vmem:[#allocation2 + $0x16c] sm:$0xf0]  ;;  %v12269_v10 = vld [vmem:[#allocation2 + $0x1bc] sm:$0xf] }
  0x54   :  { %4470 = vmatmul.bf16.gmra.mxu0 %v13591_v24  ;;  %4519 = vmatmul.bf16.gmra.mxu1 %v13593_v25  ;;  %v13603_v49 = vor.u32 %v12259_v41, %v9432_v40  ;;  %v13607_v51 = vor.u32 %v12260_v45, %v9440_v44  ;;  %v10680_v55 = vld [vmem:[#allocation5 + $0x660] sm:$0xf]  ;;  %v12564_v56 = vld [vmem:[#allocation5 + $0x66c] sm:$0xf0]  ;;  %v9514_v11 = vld [vmem:[#allocation2 + $0x200] sm:$0xf0] }
  0x55   :  { %4656 = vmatpush.bf16.msrb.mxu0 %v10441_v35  ;;  %4803 = vmatpush.bf16.msrb.mxu3 %v10825_v36  ;;  %v10424_v58 = vld [vmem:[#allocation5 + $0x460] sm:$0xf]  ;;  %v10681_v59 = vor.u32 %v12564_v56, %v10680_v55  ;;  %v12500_v60 = vld [vmem:[#allocation5 + $0x46c] sm:$0xf0]  ;;  %16899 = vst [vmem:[#allocation36_spill] sm:$0xff] %v13617_v13  ;;  %v13621_v15 = vor.u32 %v12269_v10, %v9514_v11 }
  0x56   :  { %4617 = vmatmul.bf16.gmra.mxu3 %v13597_v27  ;;  %4705 = vmatpush.bf16.msrb.mxu1 %v10569_v39  ;;  %16894 = vst [vmem:[#allocation31_spill] sm:$0xff] %v13603_v49  ;;  %v10808_v61 = vld [vmem:[#allocation5 + $0x760] sm:$0xf]  ;;  %v12596_v62 = vld [vmem:[#allocation5 + $0x76c] sm:$0xf0]  ;;  %v10425_v63 = vor.u32 %v12500_v60, %v10424_v58 }
  0x57   :  { %4568 = vmatmul.bf16.gmra.mxu2 %v13595_v26  ;;  %16896 = vst [vmem:[#allocation33_spill] sm:$0xff] %v13607_v51  ;;  %v10809_v0 = vor.u32 %v12596_v62, %v10808_v61  ;;  %v10552_v1 = vld [vmem:[#allocation5 + $0x560] sm:$0xf]  ;;  %v12532_v2 = vld [vmem:[#allocation5 + $0x56c] sm:$0xf0] }
  0x58   :  { %4755 = vmatpush.bf16.msrb.mxu2 %v10681_v59  ;;  %v10553_v3 = vor.u32 %v12532_v2, %v10552_v1  ;;  %v9504_v4 = vld [vmem:[#allocation2 + $0x1b0] sm:$0xf]  ;;  %v12278_v9 = vld [vmem:[#allocation2 + $0x1fc] sm:$0xf0]  ;;  %16901 = vst [vmem:[#allocation38_spill] sm:$0xff] %v13621_v15 }
  0x59   :  { %4657 = vmatpush.bf16.msrb.mxu0 %v10425_v63  ;;  %4804 = vmatpush.bf16.msrb.mxu3 %v10809_v0  ;;  %v13615_v12 = vor.u32 %v12277_v5, %v9504_v4  ;;  %v13619_v14 = vor.u32 %v12278_v9, %v9512_v8  ;;  %v10664_v16 = vld [vmem:[#allocation5 + $0x640] sm:$0xf]  ;;  %v12560_v17 = vld [vmem:[#allocation5 + $0x64c] sm:$0xf0]  ;;  %v12295_v33 = vld [vmem:[#allocation2 + $0x284] sm:$0xf0] }
  0x5a   :  { %4706 = vmatpush.bf16.msrb.mxu1 %v10553_v3  ;;  %v10408_v18 = vld [vmem:[#allocation5 + $0x440] sm:$0xf]  ;;  %v10665_v19 = vor.u32 %v12560_v17, %v10664_v16  ;;  %v12496_v20 = vld [vmem:[#allocation5 + $0x44c] sm:$0xf0]  ;;  %v12286_v34 = vld [vmem:[#allocation2 + $0x244] sm:$0xf] }
  0x5b   :  { %16898 = vst [vmem:[#allocation35_spill] sm:$0xff] %v13615_v12  ;;  %v10792_v21 = vld [vmem:[#allocation5 + $0x740] sm:$0xf]  ;;  %v12592_v22 = vld [vmem:[#allocation5 + $0x74c] sm:$0xf0]  ;;  %v10409_v23 = vor.u32 %v12496_v20, %v10408_v18 }
  0x5c   :  { %16900 = vst [vmem:[#allocation37_spill] sm:$0xff] %v13619_v14  ;;  %v10793_v28 = vor.u32 %v12592_v22, %v10792_v21  ;;  %v10536_v29 = vld [vmem:[#allocation5 + $0x540] sm:$0xf]  ;;  %v12528_v30 = vld [vmem:[#allocation5 + $0x54c] sm:$0xf0]  ;;  %4756 = vmatpush.bf16.msrb.mxu2 %v10665_v19 }
  0x5d   :  { %v10537_v31 = vor.u32 %v12528_v30, %v10536_v29  ;;  %4658 = vmatpush.bf16.msrb.mxu0 %v10409_v23  ;;  %v9576_v32 = vld [vmem:[#allocation2 + $0x240] sm:$0xf]  ;;  %v9578_v35 = vld [vmem:[#allocation2 + $0x288] sm:$0xf0]  ;;  %v9584_v36 = vld [vmem:[#allocation2 + $0x248] sm:$0xf] }
  0x5e   :  { %4805 = vmatpush.bf16.msrb.mxu3 %v10793_v28  ;;  %v12296_v37 = vld [vmem:[#allocation2 + $0x28c] sm:$0xf0]  ;;  %v12287_v38 = vld [vmem:[#allocation2 + $0x24c] sm:$0xf]  ;;  %v9586_v39 = vld [vmem:[#allocation2 + $0x290] sm:$0xf0]  ;;  %v13627_v40 = vor.u32 %v12295_v33, %v9576_v32  ;;  %v13629_v41 = vor.u32 %v12286_v34, %v9578_v35 }
  0x5f   :  { %4707 = vmatpush.bf16.msrb.mxu1 %v10537_v31  ;;  %v13631_v42 = vor.u32 %v12296_v37, %v9584_v36  ;;  %v13633_v43 = vor.u32 %v12287_v38, %v9586_v39  ;;  %v10648_v44 = vld [vmem:[#allocation5 + $0x620] sm:$0xf]  ;;  %v12556_v45 = vld [vmem:[#allocation5 + $0x62c] sm:$0xf0]  ;;  %v12313_v1 = vld [vmem:[#allocation2 + $0x314] sm:$0xf0] }
  0x60   :  { %16902 = vst [vmem:[#allocation39_spill] sm:$0xff] %v13627_v40  ;;  %v10392_v46 = vld [vmem:[#allocation5 + $0x420] sm:$0xf]  ;;  %v10649_v47 = vor.u32 %v12556_v45, %v10648_v44  ;;  %v12492_v55 = vld [vmem:[#allocation5 + $0x42c] sm:$0xf0] }
  0x61   :  { %16903 = vst [vmem:[#allocation40_spill] sm:$0xff] %v13629_v41  ;;  %v10776_v56 = vld [vmem:[#allocation5 + $0x720] sm:$0xf]  ;;  %v12588_v58 = vld [vmem:[#allocation5 + $0x72c] sm:$0xf0]  ;;  %v10393_v59 = vor.u32 %v12492_v55, %v10392_v46 }
  0x62   :  { %16904 = vst [vmem:[#allocation41_spill] sm:$0xff] %v13631_v42  ;;  %v10777_v60 = vor.u32 %v12588_v58, %v10776_v56  ;;  %v10520_v61 = vld [vmem:[#allocation5 + $0x520] sm:$0xf]  ;;  %v12524_v62 = vld [vmem:[#allocation5 + $0x52c] sm:$0xf0]  ;;  %4757 = vmatpush.bf16.msrb.mxu2 %v10649_v47 }
  0x63   :  { %16905 = vst [vmem:[#allocation42_spill] sm:$0xff] %v13633_v43  ;;  %v10521_v63 = vor.u32 %v12524_v62, %v10520_v61  ;;  %4659 = vmatpush.bf16.msrb.mxu0 %v10393_v59  ;;  %v9648_v0 = vld [vmem:[#allocation2 + $0x2d0] sm:$0xf]  ;;  %v12304_v2 = vld [vmem:[#allocation2 + $0x2d4] sm:$0xf] }
  0x64   :  { %4475 = vmatmul.bf16.gmra.mxu0 %v13603_v49  ;;  %4524 = vmatmul.bf16.gmra.mxu1 %v13605_v50  ;;  %v9650_v3 = vld [vmem:[#allocation2 + $0x318] sm:$0xf0]  ;;  %v9656_v4 = vld [vmem:[#allocation2 + $0x2d8] sm:$0xf]  ;;  %v12314_v5 = vld [vmem:[#allocation2 + $0x31c] sm:$0xf0]  ;;  %v13639_v8 = vor.u32 %v12313_v1, %v9648_v0 }
  0x65   :  { %4806 = vmatpush.bf16.msrb.mxu3 %v10777_v60  ;;  %4708 = vmatpush.bf16.msrb.mxu1 %v10521_v63  ;;  %v12305_v6 = vld [vmem:[#allocation2 + $0x2dc] sm:$0xf]  ;;  %v9658_v7 = vld [vmem:[#allocation2 + $0x320] sm:$0xf0]  ;;  %v13641_v9 = vor.u32 %v12304_v2, %v9650_v3  ;;  %v13643_v10 = vor.u32 %v12314_v5, %v9656_v4  ;;  %v10632_v16 = vld [vmem:[#allocation5 + $0x600] sm:$0xf] }
  0x66   :  { %4622 = vmatmul.bf16.gmra.mxu3 %v13609_v52  ;;  %16906 = vst [vmem:[#allocation43_spill] sm:$0xff] %v13639_v8  ;;  %v13645_v11 = vor.u32 %v12305_v6, %v9658_v7  ;;  %v12552_v17 = vld [vmem:[#allocation5 + $0x60c] sm:$0xf0]  ;;  %v10376_v18 = vld [vmem:[#allocation5 + $0x400] sm:$0xf] }
  0x67   :  { %4573 = vmatmul.bf16.gmra.mxu2 %v13607_v51  ;;  %16907 = vst [vmem:[#allocation44_spill] sm:$0xff] %v13641_v9  ;;  %v10633_v19 = vor.u32 %v12552_v17, %v10632_v16  ;;  %v12488_v20 = vld [vmem:[#allocation5 + $0x40c] sm:$0xf0]  ;;  %v10760_v21 = vld [vmem:[#allocation5 + $0x700] sm:$0xf] }
  0x68   :  { %16908 = vst [vmem:[#allocation45_spill] sm:$0xff] %v13643_v10  ;;  %v12584_v22 = vld [vmem:[#allocation5 + $0x70c] sm:$0xf0]  ;;  %v10377_v23 = vor.u32 %v12488_v20, %v10376_v18  ;;  %v10504_v29 = vld [vmem:[#allocation5 + $0x500] sm:$0xf] }
  0x69   :  { %16909 = vst [vmem:[#allocation46_spill] sm:$0xff] %v13645_v11  ;;  %v10761_v28 = vor.u32 %v12584_v22, %v10760_v21  ;;  %v12520_v30 = vld [vmem:[#allocation5 + $0x50c] sm:$0xf0]  ;;  %4758 = vmatpush.bf16.msrb.mxu2 %v10633_v19  ;;  %v9720_v32 = vld [vmem:[#allocation2 + $0x360] sm:$0xf] }
  0x6a   :  { %v10505_v31 = vor.u32 %v12520_v30, %v10504_v29  ;;  %4660 = vmatpush.bf16.msrb.mxu0 %v10377_v23  ;;  %v12331_v33 = vld [vmem:[#allocation2 + $0x3a4] sm:$0xf0]  ;;  %v12322_v34 = vld [vmem:[#allocation2 + $0x364] sm:$0xf]  ;;  %v9722_v35 = vld [vmem:[#allocation2 + $0x3a8] sm:$0xf0] }
  0x6b   :  { %4807 = vmatpush.bf16.msrb.mxu3 %v10761_v28  ;;  %v9728_v36 = vld [vmem:[#allocation2 + $0x368] sm:$0xf]  ;;  %v12332_v37 = vld [vmem:[#allocation2 + $0x3ac] sm:$0xf0]  ;;  %v12323_v38 = vld [vmem:[#allocation2 + $0x36c] sm:$0xf]  ;;  %v13651_v44 = vor.u32 %v12331_v33, %v9720_v32  ;;  %v13653_v45 = vor.u32 %v12322_v34, %v9722_v35 }
  0x6c   :  { %4709 = vmatpush.bf16.msrb.mxu1 %v10505_v31  ;;  %v9730_v39 = vld [vmem:[#allocation2 + $0x3b0] sm:$0xf0]  ;;  %v13655_v46 = vor.u32 %v12332_v37, %v9728_v36  ;;  %v11256_v55 = vld [vmem:[#allocation5 + $0xae0] sm:$0xf]  ;;  %v12708_v56 = vld [vmem:[#allocation5 + $0xaec] sm:$0xf0] }
  0x6d   :  { %16910 = vst [vmem:[#allocation47_spill] sm:$0xff] %v13651_v44  ;;  %v13657_v47 = vor.u32 %v12323_v38, %v9730_v39  ;;  %v11000_v58 = vld [vmem:[#allocation5 + $0x8e0] sm:$0xf]  ;;  %v11257_v59 = vor.u32 %v12708_v56, %v11256_v55  ;;  %v12644_v60 = vld [vmem:[#allocation5 + $0x8ec] sm:$0xf0] }
  0x6e   :  { %16911 = vst [vmem:[#allocation48_spill] sm:$0xff] %v13653_v45  ;;  %v11384_v61 = vld [vmem:[#allocation5 + $0xbe0] sm:$0xf]  ;;  %v12740_v62 = vld [vmem:[#allocation5 + $0xbec] sm:$0xf0]  ;;  %v11001_v63 = vor.u32 %v12644_v60, %v11000_v58 }
  0x6f   :  { %16912 = vst [vmem:[#allocation49_spill] sm:$0xff] %v13655_v46  ;;  %v11385_v0 = vor.u32 %v12740_v62, %v11384_v61  ;;  %4947 = vmatpush.bf16.msra.mxu2 %v11257_v59  ;;  %v11128_v1 = vld [vmem:[#allocation5 + $0x9e0] sm:$0xf]  ;;  %v12676_v2 = vld [vmem:[#allocation5 + $0x9ec] sm:$0xf0] }
  0x70   :  { %16913 = vst [vmem:[#allocation50_spill] sm:$0xff] %v13657_v47  ;;  %4849 = vmatpush.bf16.msra.mxu0 %v11001_v63  ;;  %v11129_v3 = vor.u32 %v12676_v2, %v11128_v1  ;;  %v9792_v4 = vld [vmem:[#allocation2 + $0x3f0] sm:$0xf]  ;;  %v12349_v5 = vld [vmem:[#allocation2 + $0x434] sm:$0xf0] }
  0x71   :  { %4996 = vmatpush.bf16.msra.mxu3 %v11385_v0  ;;  %v12340_v6 = vld [vmem:[#allocation2 + $0x3f4] sm:$0xf]  ;;  %v9794_v7 = vld [vmem:[#allocation2 + $0x438] sm:$0xf0]  ;;  %v9800_v16 = vld [vmem:[#allocation2 + $0x3f8] sm:$0xf]  ;;  %v13663_v20 = vor.u32 %v12349_v5, %v9792_v4 }
  0x72   :  { %v12350_v17 = vld [vmem:[#allocation2 + $0x43c] sm:$0xf0]  ;;  %4898 = vmatpush.bf16.msra.mxu1 %v11129_v3  ;;  %v12341_v18 = vld [vmem:[#allocation2 + $0x3fc] sm:$0xf]  ;;  %v9802_v19 = vld [vmem:[#allocation2 + $0x440] sm:$0xf0]  ;;  %v13665_v21 = vor.u32 %v12340_v6, %v9794_v7 }
  0x73   :  { %16914 = vst [vmem:[#allocation51_spill] sm:$0xff] %v13663_v20  ;;  %v13667_v22 = vor.u32 %v12350_v17, %v9800_v16  ;;  %v13669_v23 = vor.u32 %v12341_v18, %v9802_v19  ;;  %v11240_v28 = vld [vmem:[#allocation5 + $0xac0] sm:$0xf]  ;;  %v12704_v29 = vld [vmem:[#allocation5 + $0xacc] sm:$0xf0] }
  0x74   :  { %4480 = vmatmul.bf16.gmra.mxu0 %v13615_v12  ;;  %4529 = vmatmul.bf16.gmra.mxu1 %v13617_v13  ;;  %16915 = vst [vmem:[#allocation52_spill] sm:$0xff] %v13665_v21  ;;  %v10984_v30 = vld [vmem:[#allocation5 + $0x8c0] sm:$0xf]  ;;  %v11241_v31 = vor.u32 %v12704_v29, %v11240_v28  ;;  %v12640_v32 = vld [vmem:[#allocation5 + $0x8cc] sm:$0xf0] }
  0x75   :  { %16916 = vst [vmem:[#allocation53_spill] sm:$0xff] %v13667_v22  ;;  %v11368_v33 = vld [vmem:[#allocation5 + $0xbc0] sm:$0xf]  ;;  %v12736_v34 = vld [vmem:[#allocation5 + $0xbcc] sm:$0xf0]  ;;  %v10985_v35 = vor.u32 %v12640_v32, %v10984_v30 }
  0x76   :  { %4627 = vmatmul.bf16.gmra.mxu3 %v13621_v15  ;;  %16917 = vst [vmem:[#allocation54_spill] sm:$0xff] %v13669_v23  ;;  %v11369_v36 = vor.u32 %v12736_v34, %v11368_v33  ;;  %4948 = vmatpush.bf16.msra.mxu2 %v11241_v31  ;;  %v11112_v37 = vld [vmem:[#allocation5 + $0x9c0] sm:$0xf]  ;;  %v12672_v38 = vld [vmem:[#allocation5 + $0x9cc] sm:$0xf0] }
  0x77   :  { %4578 = vmatmul.bf16.gmra.mxu2 %v13619_v14  ;;  %4850 = vmatpush.bf16.msra.mxu0 %v10985_v35  ;;  %v11113_v39 = vor.u32 %v12672_v38, %v11112_v37  ;;  %v9304_v55 = vld [vmem:[#allocation2 + $0x10] sm:$0xf]  ;;  %v12225_v56 = vld [vmem:[#allocation2 + $0x54] sm:$0xf0]  ;;  %v12216_v58 = vld [vmem:[#allocation2 + $0x14] sm:$0xf] }
  0x78   :  { %4997 = vmatpush.bf16.msra.mxu3 %v11369_v36  ;;  %v9306_v59 = vld [vmem:[#allocation2 + $0x58] sm:$0xf0]  ;;  %v9312_v60 = vld [vmem:[#allocation2 + $0x18] sm:$0xf]  ;;  %v12226_v61 = vld [vmem:[#allocation2 + $0x5c] sm:$0xf0]  ;;  %v13675_v0 = vor.u32 %v12225_v56, %v9304_v55 }
  0x79   :  { %4899 = vmatpush.bf16.msra.mxu1 %v11113_v39  ;;  %v12217_v62 = vld [vmem:[#allocation2 + $0x1c] sm:$0xf]  ;;  %v9314_v63 = vld [vmem:[#allocation2 + $0x60] sm:$0xf0]  ;;  %v13677_v2 = vor.u32 %v12216_v58, %v9306_v59  ;;  %v13679_v3 = vor.u32 %v12226_v61, %v9312_v60  ;;  %v11224_v7 = vld [vmem:[#allocation5 + $0xaa0] sm:$0xf] }
  0x7a   :  { %16918 = vst [vmem:[#allocation55_spill] sm:$0xff] %v13675_v0  ;;  %v13681_v5 = vor.u32 %v12217_v62, %v9314_v63  ;;  %v12700_v16 = vld [vmem:[#allocation5 + $0xaac] sm:$0xf0]  ;;  %v10968_v17 = vld [vmem:[#allocation5 + $0x8a0] sm:$0xf] }
  0x7b   :  { %16919 = vst [vmem:[#allocation56_spill] sm:$0xff] %v13677_v2  ;;  %v11225_v18 = vor.u32 %v12700_v16, %v11224_v7  ;;  %v12636_v19 = vld [vmem:[#allocation5 + $0x8ac] sm:$0xf0]  ;;  %v11352_v28 = vld [vmem:[#allocation5 + $0xba0] sm:$0xf] }
  0x7c   :  { %16920 = vst [vmem:[#allocation57_spill] sm:$0xff] %v13679_v3  ;;  %v12732_v29 = vld [vmem:[#allocation5 + $0xbac] sm:$0xf0]  ;;  %v10969_v31 = vor.u32 %v12636_v19, %v10968_v17  ;;  %v11096_v39 = vld [vmem:[#allocation5 + $0x9a0] sm:$0xf] }
  0x7d   :  { %16921 = vst [vmem:[#allocation58_spill] sm:$0xff] %v13681_v5  ;;  %v11353_v32 = vor.u32 %v12732_v29, %v11352_v28  ;;  %4949 = vmatpush.bf16.msra.mxu2 %v11225_v18  ;;  %v12668_v55 = vld [vmem:[#allocation5 + $0x9ac] sm:$0xf0]  ;;  %v9376_v58 = vld [vmem:[#allocation2 + $0xa0] sm:$0xf] }
  0x7e   :  { %4851 = vmatpush.bf16.msra.mxu0 %v10969_v31  ;;  %v11097_v56 = vor.u32 %v12668_v55, %v11096_v39  ;;  %v12243_v59 = vld [vmem:[#allocation2 + $0xe4] sm:$0xf0]  ;;  %v12234_v60 = vld [vmem:[#allocation2 + $0xa4] sm:$0xf]  ;;  %v9378_v61 = vld [vmem:[#allocation2 + $0xe8] sm:$0xf0] }
  0x7f   :  { %4998 = vmatpush.bf16.msra.mxu3 %v11353_v32  ;;  %v9384_v62 = vld [vmem:[#allocation2 + $0xa8] sm:$0xf]  ;;  %v12244_v63 = vld [vmem:[#allocation2 + $0xec] sm:$0xf0]  ;;  %v13689_v7 = vor.u32 %v12243_v59, %v9376_v58  ;;  %v13691_v19 = vor.u32 %v12234_v60, %v9378_v61  ;;  %v11336_v39 = vld [vmem:[#allocation5 + $0xb80] sm:$0xf] }
  0x80   :  { %4900 = vmatpush.bf16.msra.mxu1 %v11097_v56  ;;  %v13693_v28 = vor.u32 %v12244_v63, %v9384_v62  ;;  %v12728_v55 = vld [vmem:[#allocation5 + $0xb8c] sm:$0xf0]  ;;  %v9816_v15 = vld [vmem:[#allocation2 + $0x408] sm:$0xf]  ;;  %v9322_v14 = vld [vmem:[#allocation2 + $0x68] sm:$0xf0] }
  0x81   :  { %16922 = vst [vmem:[#allocation59_spill] sm:$0xff] %v13689_v7  ;;  %v11337_v59 = vor.u32 %v12728_v55, %v11336_v39 }
  0x82   :  { %16923 = vst [vmem:[#allocation60_spill] sm:$0xff] %v13691_v19 }
  0x83   :  { %16924 = vst [vmem:[#allocation61_spill] sm:$0xff] %v13693_v28  ;;  %4999 = vmatpush.bf16.msra.mxu3 %v11337_v59 }
  0x84   :  { %4485 = vmatmul.bf16.gmra.mxu0 %v13627_v40  ;;  %4534 = vmatmul.bf16.gmra.mxu1 %v13629_v41 }
  0x86   :  { %4632 = vmatmul.bf16.gmra.mxu3 %v13633_v43  ;;  %v9672_v43 = vld [vmem:[#allocation2 + $0x2e8] sm:$0xf] }
  0x87   :  { %4583 = vmatmul.bf16.gmra.mxu2 %v13631_v42  ;;  %v9738_v42 = vld [vmem:[#allocation2 + $0x3b8] sm:$0xf0] }
  0x94   :  { %4490 = vmatmul.bf16.gmra.mxu0 %v13639_v8  ;;  %4539 = vmatmul.bf16.gmra.mxu1 %v13641_v9 }
  0x96   :  { %4637 = vmatmul.bf16.gmra.mxu3 %v13645_v11  ;;  %v9600_v11 = vld [vmem:[#allocation2 + $0x258] sm:$0xf] }
  0x97   :  { %4588 = vmatmul.bf16.gmra.mxu2 %v13643_v10 }
  0xa4   :  { %4495 = vmatmul.bf16.gmra.mxu0 %v13651_v44  ;;  %4544 = vmatmul.bf16.gmra.mxu1 %v13653_v45 }
  0xa6   :  { %4642 = vmatmul.bf16.gmra.mxu3 %v13657_v47  ;;  %v12288_v47 = vld [vmem:[#allocation2 + $0x254] sm:$0xf] }
  0xa7   :  { %4593 = vmatmul.bf16.gmra.mxu2 %v13655_v46  ;;  %v9594_v46 = vld [vmem:[#allocation2 + $0x298] sm:$0xf0] }
  0xb4   :  { %4500 = vmatmul.bf16.gmra.mxu0 %v13663_v20  ;;  %4549 = vmatmul.bf16.gmra.mxu1 %v13665_v21 }
  0xb6   :  { %4647 = vmatmul.bf16.gmra.mxu3 %v13669_v23  ;;  %v9528_v23 = vld [vmem:[#allocation2 + $0x1c8] sm:$0xf] }
  0xb7   :  { %4598 = vmatmul.bf16.gmra.mxu2 %v13667_v22 }
  0xc1   :  { %v4466_v1 = vpop.f32.mrf.mxu0  ;;  %v4515_v4 = vpop.f32.mrf.mxu1 }
  0xc2   :  { %v4516_v6 = vadd.f32 %v4515_v4, %v4466_v1  ;;  %v12235_v1 = vld [vmem:[#allocation2 + $0xac] sm:$0xf]  ;;  %v9386_v4 = vld [vmem:[#allocation2 + $0xf0] sm:$0xf0] }
  0xc4   :  { %4661 = vmatmul.bf16.vlgmr.msrb.gmra.mxu0 %v13675_v0  ;;  %4710 = vmatmul.bf16.vlgmr.msrb.gmra.mxu1 %v13677_v2 }
  0xc6   :  { %4808 = vmatmul.bf16.vlgmr.msrb.gmra.mxu3 %v13681_v5  ;;  %v12270_v5 = vld [vmem:[#allocation2 + $0x1c4] sm:$0xf] }
  0xc7   :  { %4759 = vmatmul.bf16.vlgmr.msrb.gmra.mxu2 %v13679_v3  ;;  %v9522_v3 = vld [vmem:[#allocation2 + $0x208] sm:$0xf0] }
  0xc9   :  { %v4613_v34 = vpop.f32.mrf.mxu3  ;;  %v4468_v35 = vpop.f32.mrf.mxu0 }
  0xca   :  { %v4564_v30 = vpop.f32.mrf.mxu2  ;;  %v4517_v36 = vpop.f32.mrf.mxu1 }
  0xcb   :  { %v4565_v33 = vadd.f32 %v4564_v30, %v4516_v6  ;;  %v4518_v38 = vadd.f32 %v4517_v36, %v4468_v35  ;;  %v13695_v30 = vor.u32 %v12235_v1, %v9386_v4  ;;  %v10952_v35 = vld [vmem:[#allocation5 + $0x880] sm:$0xf] }
  0xcd   :  { %v13687_v37 = vadd.f32 %v4613_v34, %v4565_v33  ;;  %16925 = vst [vmem:[#allocation62_spill] sm:$0xff] %v13695_v30  ;;  %v11208_v33 = vld [vmem:[#allocation5 + $0xa80] sm:$0xf]  ;;  %v12696_v34 = vld [vmem:[#allocation5 + $0xa8c] sm:$0xf0] }
  0xce   :  { %v11209_v36 = vor.u32 %v12696_v34, %v11208_v33  ;;  %v12252_v33 = vld [vmem:[#allocation2 + $0x134] sm:$0xf]  ;;  %v9450_v34 = vld [vmem:[#allocation2 + $0x178] sm:$0xf0] }
  0xcf   :  { %v13707_v59 = vor.u32 %v12252_v33, %v9450_v34  ;;  %v12724_v33 = vld [vmem:[#allocation5 + $0xb6c] sm:$0xf0] }
  0xd0   :  { %4950 = vmatpush.bf16.msra.mxu2 %v11209_v36 }
  0xd1   :  { %v4615_v17 = vpop.f32.mrf.mxu3  ;;  %v4471_v18 = vpop.f32.mrf.mxu0  ;;  %16927 = vst [vmem:[#allocation64_spill] sm:$0xff] %v13707_v59 }
  0xd2   :  { %v4566_v6 = vpop.f32.mrf.mxu2  ;;  %v4520_v29 = vpop.f32.mrf.mxu1 }
  0xd3   :  { %v4567_v16 = vadd.f32 %v4566_v6, %v4518_v38  ;;  %v4521_v32 = vadd.f32 %v4520_v29, %v4471_v18  ;;  %v12632_v38 = vld [vmem:[#allocation5 + $0x88c] sm:$0xf0]  ;;  %v11080_v6 = vld [vmem:[#allocation5 + $0x980] sm:$0xf]  ;;  %v12261_v29 = vld [vmem:[#allocation2 + $0x174] sm:$0xf0] }
  0xd4   :  { %4666 = vmatmul.bf16.gmra.mxu0 %v13689_v7  ;;  %4715 = vmatmul.bf16.gmra.mxu1 %v13691_v19  ;;  %v10953_v58 = vor.u32 %v12632_v38, %v10952_v35  ;;  %v9448_v18 = vld [vmem:[#allocation2 + $0x130] sm:$0xf]  ;;  %v12262_v35 = vld [vmem:[#allocation2 + $0x17c] sm:$0xf0]  ;;  %v9458_v38 = vld [vmem:[#allocation2 + $0x180] sm:$0xf0] }
  0xd5   :  { %v13697_v31 = vadd.f32 %v4615_v17, %v4567_v16  ;;  %v12664_v16 = vld [vmem:[#allocation5 + $0x98c] sm:$0xf0]  ;;  %v13705_v36 = vor.u32 %v12261_v29, %v9448_v18  ;;  %v11320_v29 = vld [vmem:[#allocation5 + $0xb60] sm:$0xf] }
  0xd6   :  { %4813 = vmatmul.bf16.gmra.mxu3 %v13695_v30  ;;  %4852 = vmatpush.bf16.msra.mxu0 %v10953_v58  ;;  %v11081_v17 = vor.u32 %v12664_v16, %v11080_v6  ;;  %v9456_v30 = vld [vmem:[#allocation2 + $0x138] sm:$0xf]  ;;  %v12692_v16 = vld [vmem:[#allocation5 + $0xa6c] sm:$0xf0] }
  0xd7   :  { %4764 = vmatmul.bf16.gmra.mxu2 %v13693_v28  ;;  %16926 = vst [vmem:[#allocation63_spill] sm:$0xff] %v13705_v36 }
  0xd8   :  { %4901 = vmatpush.bf16.msra.mxu1 %v11081_v17  ;;  %v10936_v17 = vld [vmem:[#allocation5 + $0x860] sm:$0xf] }
  0xd9   :  { %v4618_v61 = vpop.f32.mrf.mxu3  ;;  %v4473_v62 = vpop.f32.mrf.mxu0 }
  0xda   :  { %v4569_v56 = vpop.f32.mrf.mxu2  ;;  %v4522_v63 = vpop.f32.mrf.mxu1 }
  0xdb   :  { %v4570_v60 = vadd.f32 %v4569_v56, %v4521_v32  ;;  %v4523_v4 = vadd.f32 %v4522_v63, %v4473_v62  ;;  %v12253_v32 = vld [vmem:[#allocation2 + $0x13c] sm:$0xf] }
  0xdc   :  { %v13711_v62 = vor.u32 %v12253_v32, %v9458_v38  ;;  %v11321_v32 = vor.u32 %v12724_v33, %v11320_v29 }
  0xdd   :  { %v13703_v1 = vadd.f32 %v4618_v61, %v4570_v60  ;;  %v13709_v60 = vor.u32 %v12262_v35, %v9456_v30  ;;  %v12628_v30 = vld [vmem:[#allocation5 + $0x86c] sm:$0xf0] }
  0xde   :  { %16929 = vst [vmem:[#allocation66_spill] sm:$0xff] %v13711_v62  ;;  %v10937_v35 = vor.u32 %v12628_v30, %v10936_v17  ;;  %5000 = vmatpush.bf16.msra.mxu3 %v11321_v32  ;;  %v12280_v17 = vld [vmem:[#allocation2 + $0x20c] sm:$0xf0]  ;;  %v9530_v30 = vld [vmem:[#allocation2 + $0x210] sm:$0xf0]  ;;  %v13723_v32 = vor.u32 %v12270_v5, %v9522_v3 }
  0xdf   :  { %16928 = vst [vmem:[#allocation65_spill] sm:$0xff] %v13709_v60  ;;  %v10920_v3 = vld [vmem:[#allocation5 + $0x840] sm:$0xf] }
  0xe0   :  { %4853 = vmatpush.bf16.msra.mxu0 %v10937_v35  ;;  %16931 = vst [vmem:[#allocation68_spill] sm:$0xff] %v13723_v32 }
  0xe1   :  { %v4620_v56 = vpop.f32.mrf.mxu3  ;;  %v4476_v58 = vpop.f32.mrf.mxu0 }
  0xe2   :  { %v4571_v39 = vpop.f32.mrf.mxu2  ;;  %v4525_v61 = vpop.f32.mrf.mxu1 }
  0xe3   :  { %v4572_v55 = vadd.f32 %v4571_v39, %v4523_v4  ;;  %v4526_v6 = vadd.f32 %v4525_v61, %v4476_v58  ;;  %v11192_v4 = vld [vmem:[#allocation5 + $0xa60] sm:$0xf] }
  0xe4   :  { %4671 = vmatmul.bf16.gmra.mxu0 %v13705_v36  ;;  %4720 = vmatmul.bf16.gmra.mxu1 %v13707_v59  ;;  %v11193_v18 = vor.u32 %v12692_v16, %v11192_v4  ;;  %v9520_v4 = vld [vmem:[#allocation2 + $0x1c0] sm:$0xf]  ;;  %v12279_v16 = vld [vmem:[#allocation2 + $0x204] sm:$0xf0] }
  0xe5   :  { %v13713_v63 = vadd.f32 %v4620_v56, %v4572_v55  ;;  %v9328_v59 = vld [vmem:[#allocation2 + $0x28] sm:$0xf] }
  0xe6   :  { %4818 = vmatmul.bf16.gmra.mxu3 %v13711_v62  ;;  %4951 = vmatpush.bf16.msra.mxu2 %v11193_v18  ;;  %v11064_v62 = vld [vmem:[#allocation5 + $0x960] sm:$0xf]  ;;  %v13721_v18 = vor.u32 %v12279_v16, %v9520_v4  ;;  %v12720_v4 = vld [vmem:[#allocation5 + $0xb4c] sm:$0xf0] }
  0xe7   :  { %4769 = vmatmul.bf16.gmra.mxu2 %v13709_v60  ;;  %v12660_v60 = vld [vmem:[#allocation5 + $0x96c] sm:$0xf0] }
  0xe8   :  { %v11065_v28 = vor.u32 %v12660_v60, %v11064_v62  ;;  %16930 = vst [vmem:[#allocation67_spill] sm:$0xff] %v13721_v18 }
  0xe9   :  { %v4623_v39 = vpop.f32.mrf.mxu3  ;;  %v4478_v55 = vpop.f32.mrf.mxu0 }
  0xea   :  { %v4574_v34 = vpop.f32.mrf.mxu2  ;;  %v4527_v56 = vpop.f32.mrf.mxu1  ;;  %4902 = vmatpush.bf16.msra.mxu1 %v11065_v28  ;;  %v11176_v28 = vld [vmem:[#allocation5 + $0xa40] sm:$0xf] }
  0xeb   :  { %v4575_v38 = vadd.f32 %v4574_v34, %v4526_v6  ;;  %v4528_v61 = vadd.f32 %v4527_v56, %v4478_v55  ;;  %v12271_v6 = vld [vmem:[#allocation2 + $0x1cc] sm:$0xf]  ;;  %v12688_v56 = vld [vmem:[#allocation5 + $0xa4c] sm:$0xf0] }
  0xec   :  { %v13727_v62 = vor.u32 %v12271_v6, %v9530_v30  ;;  %v11177_v5 = vor.u32 %v12688_v56, %v11176_v28  ;;  %v9592_v28 = vld [vmem:[#allocation2 + $0x250] sm:$0xf]  ;;  %v12297_v56 = vld [vmem:[#allocation2 + $0x294] sm:$0xf0] }
  0xed   :  { %v13719_v58 = vadd.f32 %v4623_v39, %v4575_v38  ;;  %v13725_v38 = vor.u32 %v12280_v17, %v9528_v23  ;;  %v12624_v23 = vld [vmem:[#allocation5 + $0x84c] sm:$0xf0] }
  0xee   :  { %16933 = vst [vmem:[#allocation70_spill] sm:$0xff] %v13727_v62  ;;  %v10921_v17 = vor.u32 %v12624_v23, %v10920_v3  ;;  %4952 = vmatpush.bf16.msra.mxu2 %v11177_v5  ;;  %v12298_v3 = vld [vmem:[#allocation2 + $0x29c] sm:$0xf0]  ;;  %v9602_v23 = vld [vmem:[#allocation2 + $0x2a0] sm:$0xf0]  ;;  %v13737_v5 = vor.u32 %v12297_v56, %v9592_v28 }
  0xef   :  { %16932 = vst [vmem:[#allocation69_spill] sm:$0xff] %v13725_v38  ;;  %v12716_v28 = vld [vmem:[#allocation5 + $0xb2c] sm:$0xf0] }
  0xf0   :  { %4854 = vmatpush.bf16.msra.mxu0 %v10921_v17  ;;  %16934 = vst [vmem:[#allocation71_spill] sm:$0xff] %v13737_v5 }
  0xf1   :  { %v4625_v34 = vpop.f32.mrf.mxu3  ;;  %v4481_v35 = vpop.f32.mrf.mxu0 }
  0xf2   :  { %v4576_v29 = vpop.f32.mrf.mxu2  ;;  %v4530_v60 = vpop.f32.mrf.mxu1 }
  0xf3   :  { %v4577_v33 = vadd.f32 %v4576_v29, %v4528_v61  ;;  %v4531_v55 = vadd.f32 %v4530_v60, %v4481_v35  ;;  %v11304_v61 = vld [vmem:[#allocation5 + $0xb40] sm:$0xf] }
  0xf4   :  { %4676 = vmatmul.bf16.gmra.mxu0 %v13721_v18  ;;  %4725 = vmatmul.bf16.gmra.mxu1 %v13723_v32  ;;  %v11305_v6 = vor.u32 %v12720_v4, %v11304_v61  ;;  %v9744_v32 = vld [vmem:[#allocation2 + $0x378] sm:$0xf]  ;;  %v9810_v18 = vld [vmem:[#allocation2 + $0x448] sm:$0xf0] }
  0xf5   :  { %v13729_v39 = vadd.f32 %v4625_v34, %v4577_v33 }
  0xf6   :  { %4823 = vmatmul.bf16.gmra.mxu3 %v13727_v62  ;;  %v11048_v62 = vld [vmem:[#allocation5 + $0x940] sm:$0xf] }
  0xf7   :  { %4774 = vmatmul.bf16.gmra.mxu2 %v13725_v38  ;;  %5001 = vmatpush.bf16.msra.mxu3 %v11305_v6  ;;  %v12656_v38 = vld [vmem:[#allocation5 + $0x94c] sm:$0xf0]  ;;  %v13739_v6 = vor.u32 %v12288_v47, %v9594_v46  ;;  %v10904_v46 = vld [vmem:[#allocation5 + $0x820] sm:$0xf] }
  0xf8   :  { %v11049_v22 = vor.u32 %v12656_v38, %v11048_v62 }
  0xf9   :  { %v4628_v29 = vpop.f32.mrf.mxu3  ;;  %v4483_v33 = vpop.f32.mrf.mxu0  ;;  %16935 = vst [vmem:[#allocation72_spill] sm:$0xff] %v13739_v6 }
  0xfa   :  { %v4579_v16 = vpop.f32.mrf.mxu2  ;;  %v4532_v34 = vpop.f32.mrf.mxu1  ;;  %4903 = vmatpush.bf16.msra.mxu1 %v11049_v22  ;;  %v11160_v22 = vld [vmem:[#allocation5 + $0xa20] sm:$0xf] }
  0xfb   :  { %v4580_v30 = vadd.f32 %v4579_v16, %v4531_v55  ;;  %v4533_v60 = vadd.f32 %v4532_v34, %v4483_v33  ;;  %v12289_v55 = vld [vmem:[#allocation2 + $0x25c] sm:$0xf]  ;;  %v12684_v34 = vld [vmem:[#allocation5 + $0xa2c] sm:$0xf0] }
  0xfc   :  { %v13743_v62 = vor.u32 %v12289_v55, %v9602_v23  ;;  %v11161_v47 = vor.u32 %v12684_v34, %v11160_v22  ;;  %v9664_v22 = vld [vmem:[#allocation2 + $0x2e0] sm:$0xf]  ;;  %v12315_v34 = vld [vmem:[#allocation2 + $0x324] sm:$0xf0] }
  0xfd   :  { %v13735_v35 = vadd.f32 %v4628_v29, %v4580_v30  ;;  %v13741_v30 = vor.u32 %v12298_v3, %v9600_v11  ;;  %v12620_v11 = vld [vmem:[#allocation5 + $0x82c] sm:$0xf0] }
  0xfe   :  { %16937 = vst [vmem:[#allocation74_spill] sm:$0xff] %v13743_v62  ;;  %v10905_v3 = vor.u32 %v12620_v11, %v10904_v46  ;;  %4953 = vmatpush.bf16.msra.mxu2 %v11161_v47  ;;  %v12316_v46 = vld [vmem:[#allocation2 + $0x32c] sm:$0xf0]  ;;  %v9674_v11 = vld [vmem:[#allocation2 + $0x330] sm:$0xf0]  ;;  %v13753_v47 = vor.u32 %v12315_v34, %v9664_v22 }
  0xff   :  { %16936 = vst [vmem:[#allocation73_spill] sm:$0xff] %v13741_v30  ;;  %v12712_v22 = vld [vmem:[#allocation5 + $0xb0c] sm:$0xf0] }
 0x100   :  { %4855 = vmatpush.bf16.msra.mxu0 %v10905_v3  ;;  %16938 = vst [vmem:[#allocation75_spill] sm:$0xff] %v13753_v47 }
 0x101   :  { %v4630_v16 = vpop.f32.mrf.mxu3  ;;  %v4486_v17 = vpop.f32.mrf.mxu0 }
 0x102   :  { %v4581_v61 = vpop.f32.mrf.mxu2  ;;  %v4535_v38 = vpop.f32.mrf.mxu1 }
 0x103   :  { %v4582_v4 = vadd.f32 %v4581_v61, %v4533_v60  ;;  %v4536_v33 = vadd.f32 %v4535_v38, %v4486_v17  ;;  %v11288_v60 = vld [vmem:[#allocation5 + $0xb20] sm:$0xf] }
 0x104   :  { %4681 = vmatmul.bf16.gmra.mxu0 %v13737_v5  ;;  %4730 = vmatmul.bf16.gmra.mxu1 %v13739_v6  ;;  %v11289_v55 = vor.u32 %v12716_v28, %v11288_v60  ;;  %v12306_v6 = vld [vmem:[#allocation2 + $0x2e4] sm:$0xf]  ;;  %v9666_v5 = vld [vmem:[#allocation2 + $0x328] sm:$0xf0] }
 0x105   :  { %v13745_v29 = vadd.f32 %v4630_v16, %v4582_v4 }
 0x106   :  { %4828 = vmatmul.bf16.gmra.mxu3 %v13743_v62  ;;  %v11032_v62 = vld [vmem:[#allocation5 + $0x920] sm:$0xf] }
 0x107   :  { %4779 = vmatmul.bf16.gmra.mxu2 %v13741_v30  ;;  %5002 = vmatpush.bf16.msra.mxu3 %v11289_v55  ;;  %v12652_v30 = vld [vmem:[#allocation5 + $0x92c] sm:$0xf0]  ;;  %v13755_v55 = vor.u32 %v12306_v6, %v9666_v5  ;;  %v10888_v5 = vld [vmem:[#allocation5 + $0x800] sm:$0xf] }
 0x108   :  { %v11033_v10 = vor.u32 %v12652_v30, %v11032_v62 }
 0x109   :  { %v4633_v61 = vpop.f32.mrf.mxu3  ;;  %v4488_v4 = vpop.f32.mrf.mxu0  ;;  %16939 = vst [vmem:[#allocation76_spill] sm:$0xff] %v13755_v55 }
 0x10a   :  { %v4584_v56 = vpop.f32.mrf.mxu2  ;;  %v4537_v16 = vpop.f32.mrf.mxu1  ;;  %4904 = vmatpush.bf16.msra.mxu1 %v11033_v10  ;;  %v11144_v10 = vld [vmem:[#allocation5 + $0xa00] sm:$0xf] }
 0x10b   :  { %v4585_v23 = vadd.f32 %v4584_v56, %v4536_v33  ;;  %v4538_v38 = vadd.f32 %v4537_v16, %v4488_v4  ;;  %v12307_v33 = vld [vmem:[#allocation2 + $0x2ec] sm:$0xf]  ;;  %v12680_v16 = vld [vmem:[#allocation5 + $0xa0c] sm:$0xf0] }
 0x10c   :  { %v13759_v62 = vor.u32 %v12307_v33, %v9674_v11  ;;  %v11145_v6 = vor.u32 %v12680_v16, %v11144_v10  ;;  %v9736_v10 = vld [vmem:[#allocation2 + $0x370] sm:$0xf]  ;;  %v12333_v16 = vld [vmem:[#allocation2 + $0x3b4] sm:$0xf0] }
 0x10d   :  { %v13751_v17 = vadd.f32 %v4633_v61, %v4585_v23  ;;  %v13757_v23 = vor.u32 %v12316_v46, %v9672_v43  ;;  %v12616_v43 = vld [vmem:[#allocation5 + $0x80c] sm:$0xf0] }
 0x10e   :  { %16941 = vst [vmem:[#allocation78_spill] sm:$0xff] %v13759_v62  ;;  %v10889_v46 = vor.u32 %v12616_v43, %v10888_v5  ;;  %4954 = vmatpush.bf16.msra.mxu2 %v11145_v6  ;;  %v12334_v5 = vld [vmem:[#allocation2 + $0x3bc] sm:$0xf0]  ;;  %v9746_v43 = vld [vmem:[#allocation2 + $0x3c0] sm:$0xf0]  ;;  %v13769_v6 = vor.u32 %v12333_v16, %v9736_v10 }
 0x10f   :  { %16940 = vst [vmem:[#allocation77_spill] sm:$0xff] %v13757_v23  ;;  %v12868_v10 = vld [vmem:[#allocation5 + $0xfec] sm:$0xf0] }
 0x110   :  { %4856 = vmatpush.bf16.msra.mxu0 %v10889_v46  ;;  %16942 = vst [vmem:[#allocation79_spill] sm:$0xff] %v13769_v6 }
 0x111   :  { %v4635_v56 = vpop.f32.mrf.mxu3  ;;  %v4491_v3 = vpop.f32.mrf.mxu0 }
 0x112   :  { %v4586_v60 = vpop.f32.mrf.mxu2  ;;  %v4540_v30 = vpop.f32.mrf.mxu1 }
 0x113   :  { %v4587_v28 = vadd.f32 %v4586_v60, %v4538_v38  ;;  %v4541_v4 = vadd.f32 %v4540_v30, %v4491_v3  ;;  %v11272_v38 = vld [vmem:[#allocation5 + $0xb00] sm:$0xf] }
 0x114   :  { %4686 = vmatmul.bf16.gmra.mxu0 %v13753_v47  ;;  %4735 = vmatmul.bf16.gmra.mxu1 %v13755_v55  ;;  %v11273_v33 = vor.u32 %v12712_v22, %v11272_v38  ;;  %v12324_v47 = vld [vmem:[#allocation2 + $0x374] sm:$0xf] }
 0x115   :  { %v13761_v61 = vadd.f32 %v4635_v56, %v4587_v28 }
 0x116   :  { %4833 = vmatmul.bf16.gmra.mxu3 %v13759_v62  ;;  %v11016_v62 = vld [vmem:[#allocation5 + $0x900] sm:$0xf] }
 0x117   :  { %4784 = vmatmul.bf16.gmra.mxu2 %v13757_v23  ;;  %5003 = vmatpush.bf16.msra.mxu3 %v11273_v33  ;;  %v12648_v23 = vld [vmem:[#allocation5 + $0x90c] sm:$0xf0]  ;;  %v13771_v33 = vor.u32 %v12324_v47, %v9738_v42  ;;  %v11512_v42 = vld [vmem:[#allocation5 + $0xce0] sm:$0xf] }
 0x118   :  { %v11017_v55 = vor.u32 %v12648_v23, %v11016_v62 }
 0x119   :  { %v4638_v60 = vpop.f32.mrf.mxu3  ;;  %v4493_v28 = vpop.f32.mrf.mxu0  ;;  %16943 = vst [vmem:[#allocation80_spill] sm:$0xff] %v13771_v33 }
 0x11a   :  { %v4589_v34 = vpop.f32.mrf.mxu2  ;;  %v4542_v56 = vpop.f32.mrf.mxu1  ;;  %4905 = vmatpush.bf16.msra.mxu1 %v11017_v55  ;;  %v11768_v55 = vld [vmem:[#allocation5 + $0xee0] sm:$0xf] }
 0x11b   :  { %v4590_v11 = vadd.f32 %v4589_v34, %v4541_v4  ;;  %v4543_v30 = vadd.f32 %v4542_v56, %v4493_v28  ;;  %v12325_v4 = vld [vmem:[#allocation2 + $0x37c] sm:$0xf]  ;;  %v12836_v56 = vld [vmem:[#allocation5 + $0xeec] sm:$0xf0] }
 0x11c   :  { %v13775_v62 = vor.u32 %v12325_v4, %v9746_v43  ;;  %v11769_v47 = vor.u32 %v12836_v56, %v11768_v55  ;;  %v9808_v55 = vld [vmem:[#allocation2 + $0x400] sm:$0xf]  ;;  %v12351_v56 = vld [vmem:[#allocation2 + $0x444] sm:$0xf0] }
 0x11d   :  { %v13767_v3 = vadd.f32 %v4638_v60, %v4590_v11  ;;  %v13773_v11 = vor.u32 %v12334_v5, %v9744_v32  ;;  %v12772_v32 = vld [vmem:[#allocation5 + $0xcec] sm:$0xf0] }
 0x11e   :  { %16945 = vst [vmem:[#allocation82_spill] sm:$0xff] %v13775_v62  ;;  %v11513_v5 = vor.u32 %v12772_v32, %v11512_v42  ;;  %5143 = vmatpush.bf16.msrb.mxu2 %v11769_v47  ;;  %v12352_v42 = vld [vmem:[#allocation2 + $0x44c] sm:$0xf0]  ;;  %v9818_v32 = vld [vmem:[#allocation2 + $0x450] sm:$0xf0]  ;;  %v13785_v47 = vor.u32 %v12351_v56, %v9808_v55 }
 0x11f   :  { %16944 = vst [vmem:[#allocation81_spill] sm:$0xff] %v13773_v11  ;;  %v12864_v55 = vld [vmem:[#allocation5 + $0xfcc] sm:$0xf0] }
 0x120   :  { %5045 = vmatpush.bf16.msrb.mxu0 %v11513_v5  ;;  %16946 = vst [vmem:[#allocation83_spill] sm:$0xff] %v13785_v47 }
 0x121   :  { %v4640_v34 = vpop.f32.mrf.mxu3  ;;  %v4496_v46 = vpop.f32.mrf.mxu0 }
 0x122   :  { %v4591_v38 = vpop.f32.mrf.mxu2  ;;  %v4545_v23 = vpop.f32.mrf.mxu1 }
 0x123   :  { %v4592_v22 = vadd.f32 %v4591_v38, %v4543_v30  ;;  %v4546_v28 = vadd.f32 %v4545_v23, %v4496_v46  ;;  %v11896_v30 = vld [vmem:[#allocation5 + $0xfe0] sm:$0xf] }
 0x124   :  { %4691 = vmatmul.bf16.gmra.mxu0 %v13769_v6  ;;  %4740 = vmatmul.bf16.gmra.mxu1 %v13771_v33  ;;  %v11897_v4 = vor.u32 %v12868_v10, %v11896_v30  ;;  %v12342_v6 = vld [vmem:[#allocation2 + $0x404] sm:$0xf] }
 0x125   :  { %v13777_v60 = vadd.f32 %v4640_v34, %v4592_v22 }
 0x126   :  { %4838 = vmatmul.bf16.gmra.mxu3 %v13775_v62  ;;  %v11640_v62 = vld [vmem:[#allocation5 + $0xde0] sm:$0xf] }
 0x127   :  { %4789 = vmatmul.bf16.gmra.mxu2 %v13773_v11  ;;  %5192 = vmatpush.bf16.msrb.mxu3 %v11897_v4  ;;  %v12804_v11 = vld [vmem:[#allocation5 + $0xdec] sm:$0xf0]  ;;  %v13787_v4 = vor.u32 %v12342_v6, %v9810_v18  ;;  %v11496_v18 = vld [vmem:[#allocation5 + $0xcc0] sm:$0xf] }
 0x128   :  { %v11641_v33 = vor.u32 %v12804_v11, %v11640_v62 }
 0x129   :  { %v4643_v38 = vpop.f32.mrf.mxu3  ;;  %v4498_v22 = vpop.f32.mrf.mxu0  ;;  %16947 = vst [vmem:[#allocation84_spill] sm:$0xff] %v13787_v4 }
 0x12a   :  { %v4594_v16 = vpop.f32.mrf.mxu2  ;;  %v4547_v34 = vpop.f32.mrf.mxu1  ;;  %5094 = vmatpush.bf16.msrb.mxu1 %v11641_v33  ;;  %v11752_v33 = vld [vmem:[#allocation5 + $0xec0] sm:$0xf] }
 0x12b   :  { %v4595_v43 = vadd.f32 %v4594_v16, %v4546_v28  ;;  %v4548_v23 = vadd.f32 %v4547_v34, %v4498_v22  ;;  %v12343_v28 = vld [vmem:[#allocation2 + $0x40c] sm:$0xf]  ;;  %v12832_v34 = vld [vmem:[#allocation5 + $0xecc] sm:$0xf0] }
 0x12c   :  { %v13791_v62 = vor.u32 %v12343_v28, %v9818_v32  ;;  %v11753_v6 = vor.u32 %v12832_v34, %v11752_v33  ;;  %v9320_v33 = vld [vmem:[#allocation2 + $0x20] sm:$0xf]  ;;  %v12227_v34 = vld [vmem:[#allocation2 + $0x64] sm:$0xf0] }
 0x12d   :  { %v13783_v46 = vadd.f32 %v4643_v38, %v4595_v43  ;;  %v13789_v43 = vor.u32 %v12352_v42, %v9816_v15  ;;  %v12768_v15 = vld [vmem:[#allocation5 + $0xccc] sm:$0xf0] }
 0x12e   :  { %16949 = vst [vmem:[#allocation86_spill] sm:$0xff] %v13791_v62  ;;  %v11497_v42 = vor.u32 %v12768_v15, %v11496_v18  ;;  %5144 = vmatpush.bf16.msrb.mxu2 %v11753_v6  ;;  %v12228_v18 = vld [vmem:[#allocation2 + $0x6c] sm:$0xf0]  ;;  %v9330_v15 = vld [vmem:[#allocation2 + $0x70] sm:$0xf0]  ;;  %v13801_v6 = vor.u32 %v12227_v34, %v9320_v33 }
 0x12f   :  { %16948 = vst [vmem:[#allocation85_spill] sm:$0xff] %v13789_v43  ;;  %v12860_v33 = vld [vmem:[#allocation5 + $0xfac] sm:$0xf0] }
 0x130   :  { %5046 = vmatpush.bf16.msrb.mxu0 %v11497_v42  ;;  %16950 = vst [vmem:[#allocation87_spill] sm:$0xff] %v13801_v6 }
 0x131   :  { %v4645_v16 = vpop.f32.mrf.mxu3  ;;  %v4501_v5 = vpop.f32.mrf.mxu0 }
 0x132   :  { %v4596_v30 = vpop.f32.mrf.mxu2  ;;  %v4550_v11 = vpop.f32.mrf.mxu1 }
 0x133   :  { %v4597_v10 = vadd.f32 %v4596_v30, %v4548_v23  ;;  %v4551_v22 = vadd.f32 %v4550_v11, %v4501_v5  ;;  %v11880_v23 = vld [vmem:[#allocation5 + $0xfc0] sm:$0xf] }
 0x134   :  { %4696 = vmatmul.bf16.gmra.mxu0 %v13785_v47  ;;  %4745 = vmatmul.bf16.gmra.mxu1 %v13787_v4  ;;  %v11881_v28 = vor.u32 %v12864_v55, %v11880_v23  ;;  %v12218_v47 = vld [vmem:[#allocation2 + $0x24] sm:$0xf] }
 0x135   :  { %v13793_v38 = vadd.f32 %v4645_v16, %v4597_v10 }
 0x136   :  { %4843 = vmatmul.bf16.gmra.mxu3 %v13791_v62  ;;  %v11624_v62 = vld [vmem:[#allocation5 + $0xdc0] sm:$0xf] }
 0x137   :  { %4794 = vmatmul.bf16.gmra.mxu2 %v13789_v43  ;;  %5193 = vmatpush.bf16.msrb.mxu3 %v11881_v28  ;;  %v12800_v43 = vld [vmem:[#allocation5 + $0xdcc] sm:$0xf0]  ;;  %v13803_v28 = vor.u32 %v12218_v47, %v9322_v14  ;;  %v11736_v14 = vld [vmem:[#allocation5 + $0xea0] sm:$0xf] }
 0x138   :  { %v11625_v4 = vor.u32 %v12800_v43, %v11624_v62  ;;  %v12828_v47 = vld [vmem:[#allocation5 + $0xeac] sm:$0xf0] }
 0x139   :  { %v4648_v30 = vpop.f32.mrf.mxu3  ;;  %v4503_v10 = vpop.f32.mrf.mxu0  ;;  %16951 = vst [vmem:[#allocation88_spill] sm:$0xff] %v13803_v28 }
 0x13a   :  { %v4599_v56 = vpop.f32.mrf.mxu2  ;;  %v4552_v16 = vpop.f32.mrf.mxu1  ;;  %5095 = vmatpush.bf16.msrb.mxu1 %v11625_v4 }
 0x13b   :  { %v4600_v32 = vadd.f32 %v4599_v56, %v4551_v22  ;;  %v4553_v11 = vadd.f32 %v4552_v16, %v4503_v10  ;;  %v12219_v22 = vld [vmem:[#allocation2 + $0x2c] sm:$0xf]  ;;  %v11737_v16 = vor.u32 %v12828_v47, %v11736_v14 }
 0x13d   :  { %v13799_v5 = vadd.f32 %v4648_v30, %v4600_v32  ;;  %v13805_v32 = vor.u32 %v12228_v18, %v9328_v59  ;;  %v13808_v30 = vor.u32 %v12219_v22, %v9330_v15  ;;  %v11480_v59 = vld [vmem:[#allocation5 + $0xca0] sm:$0xf]  ;;  %5145 = vmatpush.bf16.msrb.mxu2 %v11737_v16  ;;  %v9402_v16 = vld [vmem:[#allocation2 + $0x100] sm:$0xf0] }
 0x13f   :  { %16952 = vst [vmem:[#allocation89_spill] sm:$0xff] %v13805_v32 }
 0x140   :  { %16953 = vst [vmem:[#allocation90_spill] sm:$0xff] %v13808_v30 }
 0x141   :  { %v4650_v56 = vpop.f32.mrf.mxu3  ;;  %v4662_v42 = vpop.f32.mrf.mxu0 }
 0x142   :  { %v4601_v23 = vpop.f32.mrf.mxu2  ;;  %v4663_v43 = vadd.f32 %v4662_v42, %v13687_v37  ;;  %v4711_v62 = vpop.f32.mrf.mxu1  ;;  %v11864_v37 = vld [vmem:[#allocation5 + $0xfa0] sm:$0xf] }
 0x143   :  { %v4602_v55 = vadd.f32 %v4601_v23, %v4553_v11  ;;  %v12764_v11 = vld [vmem:[#allocation5 + $0xcac] sm:$0xf0]  ;;  %v11865_v22 = vor.u32 %v12860_v33, %v11864_v37  ;;  %v12237_v37 = vld [vmem:[#allocation2 + $0xbc] sm:$0xf] }
 0x144   :  { %v4712_v4 = vadd.f32 %v4711_v62, %v4663_v43  ;;  %4857 = vmatmul.bf16.vlgmr.msra.gmra.mxu0 %v13801_v6  ;;  %4906 = vmatmul.bf16.vlgmr.msra.gmra.mxu1 %v13803_v28  ;;  %v11481_v18 = vor.u32 %v12764_v11, %v11480_v59  ;;  %v11608_v62 = vld [vmem:[#allocation5 + $0xda0] sm:$0xf]  ;;  %v12245_v28 = vld [vmem:[#allocation2 + $0xf4] sm:$0xf0]  ;;  %v12236_v6 = vld [vmem:[#allocation2 + $0xb4] sm:$0xf] }
 0x145   :  { %v13810_v10 = vadd.f32 %v4650_v56, %v4602_v55  ;;  %5194 = vmatpush.bf16.msrb.mxu3 %v11865_v22  ;;  %v9394_v59 = vld [vmem:[#allocation2 + $0xf8] sm:$0xf0]  ;;  %v9400_v11 = vld [vmem:[#allocation2 + $0xb8] sm:$0xf] }
 0x146   :  { %5004 = vmatmul.bf16.vlgmr.msra.gmra.mxu3 %v13808_v30  ;;  %5047 = vmatpush.bf16.msrb.mxu0 %v11481_v18  ;;  %v12796_v30 = vld [vmem:[#allocation5 + $0xdac] sm:$0xf0] }
 0x147   :  { %4955 = vmatmul.bf16.vlgmr.msra.gmra.mxu2 %v13805_v32  ;;  %v11609_v47 = vor.u32 %v12796_v30, %v11608_v62  ;;  %v9392_v32 = vld [vmem:[#allocation2 + $0xb0] sm:$0xf] }
 0x149   :  { %v4809_v23 = vpop.f32.mrf.mxu3  ;;  %v4664_v55 = vpop.f32.mrf.mxu0  ;;  %5096 = vmatpush.bf16.msrb.mxu1 %v11609_v47  ;;  %v12760_v47 = vld [vmem:[#allocation5 + $0xc8c] sm:$0xf0] }
 0x14a   :  { %v4760_v34 = vpop.f32.mrf.mxu2  ;;  %v4665_v56 = vadd.f32 %v4664_v55, %v13697_v31  ;;  %v4713_v42 = vpop.f32.mrf.mxu1  ;;  %v13819_v31 = vor.u32 %v12245_v28, %v9392_v32  ;;  %v12824_v28 = vld [vmem:[#allocation5 + $0xe8c] sm:$0xf0]  ;;  %v11464_v32 = vld [vmem:[#allocation5 + $0xc80] sm:$0xf] }
 0x14b   :  { %v4761_v15 = vadd.f32 %v4760_v34, %v4712_v4  ;;  %v12246_v4 = vld [vmem:[#allocation2 + $0xfc] sm:$0xf0] }
 0x14c   :  { %v4714_v14 = vadd.f32 %v4713_v42, %v4665_v56  ;;  %16954 = vst [vmem:[#allocation91_spill] sm:$0xff] %v13819_v31  ;;  %v13826_v56 = vor.u32 %v12237_v37, %v9402_v16 }
 0x14d   :  { %v13817_v43 = vadd.f32 %v4809_v23, %v4761_v15  ;;  %v13821_v15 = vor.u32 %v12236_v6, %v9394_v59  ;;  %v13823_v23 = vor.u32 %v12246_v4, %v9400_v11  ;;  %v11720_v6 = vld [vmem:[#allocation5 + $0xe80] sm:$0xf]  ;;  %v12856_v59 = vld [vmem:[#allocation5 + $0xf8c] sm:$0xf0]  ;;  %v11465_v4 = vor.u32 %v12760_v47, %v11464_v32  ;;  %v9466_v32 = vld [vmem:[#allocation2 + $0x188] sm:$0xf0] }
 0x14e   :  { %16957 = vst [vmem:[#allocation94_spill] sm:$0xff] %v13826_v56  ;;  %v9472_v47 = vld [vmem:[#allocation2 + $0x148] sm:$0xf] }
 0x14f   :  { %16955 = vst [vmem:[#allocation92_spill] sm:$0xff] %v13821_v15  ;;  %5048 = vmatpush.bf16.msrb.mxu0 %v11465_v4 }
 0x150   :  { %16956 = vst [vmem:[#allocation93_spill] sm:$0xff] %v13823_v23 }
 0x151   :  { %v4811_v18 = vpop.f32.mrf.mxu3  ;;  %v4667_v22 = vpop.f32.mrf.mxu0 }
 0x152   :  { %v4762_v33 = vpop.f32.mrf.mxu2  ;;  %v4668_v30 = vadd.f32 %v4667_v22, %v13703_v1  ;;  %v4716_v55 = vpop.f32.mrf.mxu1  ;;  %v11848_v1 = vld [vmem:[#allocation5 + $0xf80] sm:$0xf] }
 0x153   :  { %v4763_v34 = vadd.f32 %v4762_v33, %v4714_v14  ;;  %v11721_v14 = vor.u32 %v12824_v28, %v11720_v6  ;;  %v11849_v37 = vor.u32 %v12856_v59, %v11848_v1  ;;  %v12255_v1 = vld [vmem:[#allocation2 + $0x14c] sm:$0xf] }
 0x154   :  { %v4717_v62 = vadd.f32 %v4716_v55, %v4668_v30  ;;  %4862 = vmatmul.bf16.gmra.mxu0 %v13819_v31  ;;  %4911 = vmatmul.bf16.gmra.mxu1 %v13821_v15  ;;  %v11592_v55 = vld [vmem:[#allocation5 + $0xd80] sm:$0xf]  ;;  %v12263_v15 = vld [vmem:[#allocation2 + $0x184] sm:$0xf0]  ;;  %v12254_v31 = vld [vmem:[#allocation2 + $0x144] sm:$0xf] }
 0x155   :  { %v13828_v42 = vadd.f32 %v4811_v18, %v4763_v34  ;;  %5146 = vmatpush.bf16.msrb.mxu2 %v11721_v14  ;;  %5195 = vmatpush.bf16.msrb.mxu3 %v11849_v37  ;;  %v9474_v14 = vld [vmem:[#allocation2 + $0x190] sm:$0xf0] }
 0x156   :  { %5009 = vmatmul.bf16.gmra.mxu3 %v13826_v56  ;;  %v12792_v56 = vld [vmem:[#allocation5 + $0xd8c] sm:$0xf0] }
 0x157   :  { %4960 = vmatmul.bf16.gmra.mxu2 %v13823_v23  ;;  %v11593_v28 = vor.u32 %v12792_v56, %v11592_v55  ;;  %v9464_v23 = vld [vmem:[#allocation2 + $0x140] sm:$0xf] }
 0x159   :  { %v4814_v33 = vpop.f32.mrf.mxu3  ;;  %v4669_v34 = vpop.f32.mrf.mxu0  ;;  %5097 = vmatpush.bf16.msrb.mxu1 %v11593_v28  ;;  %v12756_v28 = vld [vmem:[#allocation5 + $0xc6c] sm:$0xf0] }
 0x15a   :  { %v4765_v11 = vpop.f32.mrf.mxu2  ;;  %v4670_v18 = vadd.f32 %v4669_v34, %v13713_v63  ;;  %v4718_v22 = vpop.f32.mrf.mxu1  ;;  %v13837_v63 = vor.u32 %v12263_v15, %v9464_v23  ;;  %v12820_v15 = vld [vmem:[#allocation5 + $0xe6c] sm:$0xf0]  ;;  %v11448_v23 = vld [vmem:[#allocation5 + $0xc60] sm:$0xf] }
 0x15b   :  { %v4766_v16 = vadd.f32 %v4765_v11, %v4717_v62  ;;  %v12264_v62 = vld [vmem:[#allocation2 + $0x18c] sm:$0xf0] }
 0x15c   :  { %v4719_v6 = vadd.f32 %v4718_v22, %v4670_v18  ;;  %16958 = vst [vmem:[#allocation95_spill] sm:$0xff] %v13837_v63  ;;  %v13844_v18 = vor.u32 %v12255_v1, %v9474_v14 }
 0x15d   :  { %v13835_v30 = vadd.f32 %v4814_v33, %v4766_v16  ;;  %v13839_v16 = vor.u32 %v12254_v31, %v9466_v32  ;;  %v13841_v33 = vor.u32 %v12264_v62, %v9472_v47  ;;  %v11704_v31 = vld [vmem:[#allocation5 + $0xe60] sm:$0xf]  ;;  %v12852_v32 = vld [vmem:[#allocation5 + $0xf6c] sm:$0xf0]  ;;  %v11449_v62 = vor.u32 %v12756_v28, %v11448_v23  ;;  %v9538_v23 = vld [vmem:[#allocation2 + $0x218] sm:$0xf0] }
 0x15e   :  { %16961 = vst [vmem:[#allocation98_spill] sm:$0xff] %v13844_v18  ;;  %v9544_v28 = vld [vmem:[#allocation2 + $0x1d8] sm:$0xf] }
 0x15f   :  { %16959 = vst [vmem:[#allocation96_spill] sm:$0xff] %v13839_v16  ;;  %5049 = vmatpush.bf16.msrb.mxu0 %v11449_v62 }
 0x160   :  { %16960 = vst [vmem:[#allocation97_spill] sm:$0xff] %v13841_v33 }
 0x161   :  { %v4816_v4 = vpop.f32.mrf.mxu3  ;;  %v4672_v37 = vpop.f32.mrf.mxu0 }
 0x162   :  { %v4767_v59 = vpop.f32.mrf.mxu2  ;;  %v4673_v56 = vadd.f32 %v4672_v37, %v13719_v58  ;;  %v4721_v34 = vpop.f32.mrf.mxu1  ;;  %v11832_v58 = vld [vmem:[#allocation5 + $0xf60] sm:$0xf] }
 0x163   :  { %v4768_v11 = vadd.f32 %v4767_v59, %v4719_v6  ;;  %v11705_v6 = vor.u32 %v12820_v15, %v11704_v31  ;;  %v11833_v1 = vor.u32 %v12852_v32, %v11832_v58  ;;  %v12273_v58 = vld [vmem:[#allocation2 + $0x1dc] sm:$0xf] }
 0x164   :  { %v4722_v55 = vadd.f32 %v4721_v34, %v4673_v56  ;;  %4867 = vmatmul.bf16.gmra.mxu0 %v13837_v63  ;;  %4916 = vmatmul.bf16.gmra.mxu1 %v13839_v16  ;;  %v11576_v34 = vld [vmem:[#allocation5 + $0xd60] sm:$0xf]  ;;  %v12281_v16 = vld [vmem:[#allocation2 + $0x214] sm:$0xf0]  ;;  %v12272_v63 = vld [vmem:[#allocation2 + $0x1d4] sm:$0xf] }
 0x165   :  { %v13846_v22 = vadd.f32 %v4816_v4, %v4768_v11  ;;  %5147 = vmatpush.bf16.msrb.mxu2 %v11705_v6  ;;  %5196 = vmatpush.bf16.msrb.mxu3 %v11833_v1  ;;  %v9546_v6 = vld [vmem:[#allocation2 + $0x220] sm:$0xf0] }
 0x166   :  { %5014 = vmatmul.bf16.gmra.mxu3 %v13844_v18  ;;  %v12788_v18 = vld [vmem:[#allocation5 + $0xd6c] sm:$0xf0] }
 0x167   :  { %4965 = vmatmul.bf16.gmra.mxu2 %v13841_v33  ;;  %v11577_v15 = vor.u32 %v12788_v18, %v11576_v34  ;;  %v9536_v33 = vld [vmem:[#allocation2 + $0x1d0] sm:$0xf] }
 0x169   :  { %v4819_v59 = vpop.f32.mrf.mxu3  ;;  %v4674_v11 = vpop.f32.mrf.mxu0  ;;  %5098 = vmatpush.bf16.msrb.mxu1 %v11577_v15  ;;  %v12752_v15 = vld [vmem:[#allocation5 + $0xc4c] sm:$0xf0] }
 0x16a   :  { %v4770_v47 = vpop.f32.mrf.mxu2  ;;  %v4675_v4 = vadd.f32 %v4674_v11, %v13729_v39  ;;  %v4723_v37 = vpop.f32.mrf.mxu1  ;;  %v13855_v39 = vor.u32 %v12281_v16, %v9536_v33  ;;  %v12816_v16 = vld [vmem:[#allocation5 + $0xe4c] sm:$0xf0]  ;;  %v11432_v33 = vld [vmem:[#allocation5 + $0xc40] sm:$0xf] }
 0x16b   :  { %v4771_v14 = vadd.f32 %v4770_v47, %v4722_v55  ;;  %v12282_v55 = vld [vmem:[#allocation2 + $0x21c] sm:$0xf0] }
 0x16c   :  { %v4724_v31 = vadd.f32 %v4723_v37, %v4675_v4  ;;  %16962 = vst [vmem:[#allocation99_spill] sm:$0xff] %v13855_v39  ;;  %v13862_v4 = vor.u32 %v12273_v58, %v9546_v6 }
 0x16d   :  { %v13853_v56 = vadd.f32 %v4819_v59, %v4771_v14  ;;  %v13857_v14 = vor.u32 %v12272_v63, %v9538_v23  ;;  %v13859_v59 = vor.u32 %v12282_v55, %v9544_v28  ;;  %v11688_v63 = vld [vmem:[#allocation5 + $0xe40] sm:$0xf]  ;;  %v12848_v23 = vld [vmem:[#allocation5 + $0xf4c] sm:$0xf0]  ;;  %v11433_v55 = vor.u32 %v12752_v15, %v11432_v33  ;;  %v9610_v33 = vld [vmem:[#allocation2 + $0x2a8] sm:$0xf0] }
 0x16e   :  { %16965 = vst [vmem:[#allocation102_spill] sm:$0xff] %v13862_v4  ;;  %v9616_v15 = vld [vmem:[#allocation2 + $0x268] sm:$0xf] }
 0x16f   :  { %16963 = vst [vmem:[#allocation100_spill] sm:$0xff] %v13857_v14  ;;  %5050 = vmatpush.bf16.msrb.mxu0 %v11433_v55 }
 0x170   :  { %16964 = vst [vmem:[#allocation101_spill] sm:$0xff] %v13859_v59 }
 0x171   :  { %v4821_v62 = vpop.f32.mrf.mxu3  ;;  %v4677_v1 = vpop.f32.mrf.mxu0 }
 0x172   :  { %v4772_v32 = vpop.f32.mrf.mxu2  ;;  %v4678_v18 = vadd.f32 %v4677_v1, %v13735_v35  ;;  %v4726_v11 = vpop.f32.mrf.mxu1  ;;  %v11816_v35 = vld [vmem:[#allocation5 + $0xf40] sm:$0xf] }
 0x173   :  { %v4773_v47 = vadd.f32 %v4772_v32, %v4724_v31  ;;  %v11689_v31 = vor.u32 %v12816_v16, %v11688_v63  ;;  %v11817_v58 = vor.u32 %v12848_v23, %v11816_v35  ;;  %v12291_v35 = vld [vmem:[#allocation2 + $0x26c] sm:$0xf] }
 0x174   :  { %v4727_v34 = vadd.f32 %v4726_v11, %v4678_v18  ;;  %4872 = vmatmul.bf16.gmra.mxu0 %v13855_v39  ;;  %4921 = vmatmul.bf16.gmra.mxu1 %v13857_v14  ;;  %v11560_v11 = vld [vmem:[#allocation5 + $0xd40] sm:$0xf]  ;;  %v12299_v14 = vld [vmem:[#allocation2 + $0x2a4] sm:$0xf0]  ;;  %v12290_v39 = vld [vmem:[#allocation2 + $0x264] sm:$0xf] }
 0x175   :  { %v13864_v37 = vadd.f32 %v4821_v62, %v4773_v47  ;;  %5148 = vmatpush.bf16.msrb.mxu2 %v11689_v31  ;;  %5197 = vmatpush.bf16.msrb.mxu3 %v11817_v58  ;;  %v9618_v31 = vld [vmem:[#allocation2 + $0x2b0] sm:$0xf0] }
 0x176   :  { %5019 = vmatmul.bf16.gmra.mxu3 %v13862_v4  ;;  %v12784_v4 = vld [vmem:[#allocation5 + $0xd4c] sm:$0xf0] }
 0x177   :  { %4970 = vmatmul.bf16.gmra.mxu2 %v13859_v59  ;;  %v11561_v16 = vor.u32 %v12784_v4, %v11560_v11  ;;  %v9608_v59 = vld [vmem:[#allocation2 + $0x260] sm:$0xf] }
 0x179   :  { %v4824_v32 = vpop.f32.mrf.mxu3  ;;  %v4679_v47 = vpop.f32.mrf.mxu0  ;;  %5099 = vmatpush.bf16.msrb.mxu1 %v11561_v16  ;;  %v12748_v16 = vld [vmem:[#allocation5 + $0xc2c] sm:$0xf0] }
 0x17a   :  { %v4775_v28 = vpop.f32.mrf.mxu2  ;;  %v4680_v62 = vadd.f32 %v4679_v47, %v13745_v29  ;;  %v4728_v1 = vpop.f32.mrf.mxu1  ;;  %v13873_v29 = vor.u32 %v12299_v14, %v9608_v59  ;;  %v12812_v14 = vld [vmem:[#allocation5 + $0xe2c] sm:$0xf0]  ;;  %v11416_v59 = vld [vmem:[#allocation5 + $0xc20] sm:$0xf] }
 0x17b   :  { %v4776_v6 = vadd.f32 %v4775_v28, %v4727_v34  ;;  %v12300_v34 = vld [vmem:[#allocation2 + $0x2ac] sm:$0xf0] }
 0x17c   :  { %v4729_v63 = vadd.f32 %v4728_v1, %v4680_v62  ;;  %16966 = vst [vmem:[#allocation103_spill] sm:$0xff] %v13873_v29  ;;  %v13880_v62 = vor.u32 %v12291_v35, %v9618_v31 }
 0x17d   :  { %v13871_v18 = vadd.f32 %v4824_v32, %v4776_v6  ;;  %v13875_v6 = vor.u32 %v12290_v39, %v9610_v33  ;;  %v13877_v32 = vor.u32 %v12300_v34, %v9616_v15  ;;  %v11672_v39 = vld [vmem:[#allocation5 + $0xe20] sm:$0xf]  ;;  %v12844_v33 = vld [vmem:[#allocation5 + $0xf2c] sm:$0xf0]  ;;  %v11417_v34 = vor.u32 %v12748_v16, %v11416_v59  ;;  %v9682_v59 = vld [vmem:[#allocation2 + $0x338] sm:$0xf0] }
 0x17e   :  { %16969 = vst [vmem:[#allocation106_spill] sm:$0xff] %v13880_v62  ;;  %v9688_v16 = vld [vmem:[#allocation2 + $0x2f8] sm:$0xf] }
 0x17f   :  { %16967 = vst [vmem:[#allocation104_spill] sm:$0xff] %v13875_v6  ;;  %5051 = vmatpush.bf16.msrb.mxu0 %v11417_v34 }
 0x180   :  { %16968 = vst [vmem:[#allocation105_spill] sm:$0xff] %v13877_v32 }
 0x181   :  { %v4826_v55 = vpop.f32.mrf.mxu3  ;;  %v4682_v58 = vpop.f32.mrf.mxu0 }
 0x182   :  { %v4777_v23 = vpop.f32.mrf.mxu2  ;;  %v4683_v4 = vadd.f32 %v4682_v58, %v13751_v17  ;;  %v4731_v47 = vpop.f32.mrf.mxu1  ;;  %v11800_v17 = vld [vmem:[#allocation5 + $0xf20] sm:$0xf] }
 0x183   :  { %v4778_v28 = vadd.f32 %v4777_v23, %v4729_v63  ;;  %v11673_v63 = vor.u32 %v12812_v14, %v11672_v39  ;;  %v11801_v35 = vor.u32 %v12844_v33, %v11800_v17  ;;  %v12309_v17 = vld [vmem:[#allocation2 + $0x2fc] sm:$0xf] }
 0x184   :  { %v4732_v11 = vadd.f32 %v4731_v47, %v4683_v4  ;;  %4877 = vmatmul.bf16.gmra.mxu0 %v13873_v29  ;;  %4926 = vmatmul.bf16.gmra.mxu1 %v13875_v6  ;;  %v11544_v47 = vld [vmem:[#allocation5 + $0xd20] sm:$0xf]  ;;  %v12317_v6 = vld [vmem:[#allocation2 + $0x334] sm:$0xf0]  ;;  %v12308_v29 = vld [vmem:[#allocation2 + $0x2f4] sm:$0xf] }
 0x185   :  { %v13882_v1 = vadd.f32 %v4826_v55, %v4778_v28  ;;  %5149 = vmatpush.bf16.msrb.mxu2 %v11673_v63  ;;  %5198 = vmatpush.bf16.msrb.mxu3 %v11801_v35  ;;  %v9690_v63 = vld [vmem:[#allocation2 + $0x340] sm:$0xf0] }
 0x186   :  { %5024 = vmatmul.bf16.gmra.mxu3 %v13880_v62  ;;  %v12780_v62 = vld [vmem:[#allocation5 + $0xd2c] sm:$0xf0] }
 0x187   :  { %4975 = vmatmul.bf16.gmra.mxu2 %v13877_v32  ;;  %v11545_v14 = vor.u32 %v12780_v62, %v11544_v47  ;;  %v9680_v32 = vld [vmem:[#allocation2 + $0x2f0] sm:$0xf] }
 0x189   :  { %v4829_v23 = vpop.f32.mrf.mxu3  ;;  %v4684_v28 = vpop.f32.mrf.mxu0  ;;  %5100 = vmatpush.bf16.msrb.mxu1 %v11545_v14  ;;  %v12744_v14 = vld [vmem:[#allocation5 + $0xc0c] sm:$0xf0] }
 0x18a   :  { %v4780_v15 = vpop.f32.mrf.mxu2  ;;  %v4685_v55 = vadd.f32 %v4684_v28, %v13761_v61  ;;  %v4733_v58 = vpop.f32.mrf.mxu1  ;;  %v13891_v61 = vor.u32 %v12317_v6, %v9680_v32  ;;  %v12808_v6 = vld [vmem:[#allocation5 + $0xe0c] sm:$0xf0]  ;;  %v11400_v32 = vld [vmem:[#allocation5 + $0xc00] sm:$0xf] }
 0x18b   :  { %v4781_v31 = vadd.f32 %v4780_v15, %v4732_v11  ;;  %v12318_v11 = vld [vmem:[#allocation2 + $0x33c] sm:$0xf0] }
 0x18c   :  { %v4734_v39 = vadd.f32 %v4733_v58, %v4685_v55  ;;  %16970 = vst [vmem:[#allocation107_spill] sm:$0xff] %v13891_v61  ;;  %v13898_v55 = vor.u32 %v12309_v17, %v9690_v63 }
 0x18d   :  { %v13889_v4 = vadd.f32 %v4829_v23, %v4781_v31  ;;  %v13893_v31 = vor.u32 %v12308_v29, %v9682_v59  ;;  %v13895_v23 = vor.u32 %v12318_v11, %v9688_v16  ;;  %v11656_v29 = vld [vmem:[#allocation5 + $0xe00] sm:$0xf]  ;;  %v12840_v59 = vld [vmem:[#allocation5 + $0xf0c] sm:$0xf0]  ;;  %v11401_v11 = vor.u32 %v12744_v14, %v11400_v32  ;;  %v9754_v32 = vld [vmem:[#allocation2 + $0x3c8] sm:$0xf0] }
 0x18e   :  { %16973 = vst [vmem:[#allocation110_spill] sm:$0xff] %v13898_v55  ;;  %v9760_v14 = vld [vmem:[#allocation2 + $0x388] sm:$0xf] }
 0x18f   :  { %16971 = vst [vmem:[#allocation108_spill] sm:$0xff] %v13893_v31  ;;  %5052 = vmatpush.bf16.msrb.mxu0 %v11401_v11 }
 0x190   :  { %16972 = vst [vmem:[#allocation109_spill] sm:$0xff] %v13895_v23 }
 0x191   :  { %v4831_v34 = vpop.f32.mrf.mxu3  ;;  %v4687_v35 = vpop.f32.mrf.mxu0 }
 0x192   :  { %v4782_v33 = vpop.f32.mrf.mxu2  ;;  %v4688_v62 = vadd.f32 %v4687_v35, %v13767_v3  ;;  %v4736_v28 = vpop.f32.mrf.mxu1  ;;  %v11784_v3 = vld [vmem:[#allocation5 + $0xf00] sm:$0xf] }
 0x193   :  { %v4783_v15 = vadd.f32 %v4782_v33, %v4734_v39  ;;  %v11657_v39 = vor.u32 %v12808_v6, %v11656_v29  ;;  %v11785_v17 = vor.u32 %v12840_v59, %v11784_v3  ;;  %v12327_v3 = vld [vmem:[#allocation2 + $0x38c] sm:$0xf] }
 0x194   :  { %v4737_v47 = vadd.f32 %v4736_v28, %v4688_v62  ;;  %4882 = vmatmul.bf16.gmra.mxu0 %v13891_v61  ;;  %4931 = vmatmul.bf16.gmra.mxu1 %v13893_v31  ;;  %v11528_v28 = vld [vmem:[#allocation5 + $0xd00] sm:$0xf]  ;;  %v12335_v31 = vld [vmem:[#allocation2 + $0x3c4] sm:$0xf0]  ;;  %v12326_v61 = vld [vmem:[#allocation2 + $0x384] sm:$0xf] }
 0x195   :  { %v13900_v58 = vadd.f32 %v4831_v34, %v4783_v15  ;;  %5150 = vmatpush.bf16.msrb.mxu2 %v11657_v39  ;;  %5199 = vmatpush.bf16.msrb.mxu3 %v11785_v17  ;;  %v9762_v39 = vld [vmem:[#allocation2 + $0x3d0] sm:$0xf0] }
 0x196   :  { %5029 = vmatmul.bf16.gmra.mxu3 %v13898_v55  ;;  %v12776_v55 = vld [vmem:[#allocation5 + $0xd0c] sm:$0xf0] }
 0x197   :  { %4980 = vmatmul.bf16.gmra.mxu2 %v13895_v23  ;;  %v11529_v6 = vor.u32 %v12776_v55, %v11528_v28  ;;  %v9752_v23 = vld [vmem:[#allocation2 + $0x380] sm:$0xf] }
 0x199   :  { %v4834_v33 = vpop.f32.mrf.mxu3  ;;  %v4689_v15 = vpop.f32.mrf.mxu0  ;;  %5101 = vmatpush.bf16.msrb.mxu1 %v11529_v6  ;;  %v12900_v6 = vld [vmem:[#allocation5 + $0x10ec] sm:$0xf0] }
 0x19a   :  { %v4785_v16 = vpop.f32.mrf.mxu2  ;;  %v4690_v34 = vadd.f32 %v4689_v15, %v13777_v60  ;;  %v4738_v35 = vpop.f32.mrf.mxu1  ;;  %v13909_v60 = vor.u32 %v12335_v31, %v9752_v23  ;;  %v9978_v31 = vld [vmem:[#allocation5 + $0xf0] sm:$0xf0]  ;;  %v12024_v23 = vld [vmem:[#allocation5 + $0x10e0] sm:$0xf] }
 0x19b   :  { %v4786_v63 = vadd.f32 %v4785_v16, %v4737_v47  ;;  %v12336_v47 = vld [vmem:[#allocation2 + $0x3cc] sm:$0xf0] }
 0x19c   :  { %v4739_v29 = vadd.f32 %v4738_v35, %v4690_v34  ;;  %16974 = vst [vmem:[#allocation111_spill] sm:$0xff] %v13909_v60  ;;  %v13916_v34 = vor.u32 %v12327_v3, %v9762_v39 }
 0x19d   :  { %v13907_v62 = vadd.f32 %v4834_v33, %v4786_v63  ;;  %v13911_v63 = vor.u32 %v12326_v61, %v9754_v32  ;;  %v13913_v33 = vor.u32 %v12336_v47, %v9760_v14  ;;  %v12386_v61 = vld [vmem:[#allocation5 + $0xe4] sm:$0xf]  ;;  %v10106_v32 = vld [vmem:[#allocation5 + $0x1f0] sm:$0xf0]  ;;  %v12025_v47 = vor.u32 %v12900_v6, %v12024_v23  ;;  %v9826_v23 = vld [vmem:[#allocation2 + $0x458] sm:$0xf0] }
 0x19e   :  { %16977 = vst [vmem:[#allocation114_spill] sm:$0xff] %v13916_v34  ;;  %v9832_v6 = vld [vmem:[#allocation2 + $0x418] sm:$0xf] }
 0x19f   :  { %16975 = vst [vmem:[#allocation112_spill] sm:$0xff] %v13911_v63  ;;  %5241 = vmatpush.bf16.msra.mxu0 %v12025_v47 }
 0x1a0   :  { %16976 = vst [vmem:[#allocation113_spill] sm:$0xff] %v13913_v33 }
 0x1a1   :  { %v4836_v11 = vpop.f32.mrf.mxu3  ;;  %v4692_v17 = vpop.f32.mrf.mxu0 }
 0x1a2   :  { %v4787_v59 = vpop.f32.mrf.mxu2  ;;  %v4693_v55 = vadd.f32 %v4692_v17, %v13783_v46  ;;  %v4741_v15 = vpop.f32.mrf.mxu1  ;;  %v12418_v46 = vld [vmem:[#allocation5 + $0x1e4] sm:$0xf] }
 0x1a3   :  { %v4788_v16 = vadd.f32 %v4787_v59, %v4739_v29  ;;  %v9981_v29 = vor.u32 %v12386_v61, %v9978_v31  ;;  %v10109_v3 = vor.u32 %v12418_v46, %v10106_v32  ;;  %v12345_v46 = vld [vmem:[#allocation2 + $0x41c] sm:$0xf] }
 0x1a4   :  { %v4742_v28 = vadd.f32 %v4741_v15, %v4693_v55  ;;  %4887 = vmatmul.bf16.gmra.mxu0 %v13909_v60  ;;  %4936 = vmatmul.bf16.gmra.mxu1 %v13911_v63  ;;  %v12152_v15 = vld [vmem:[#allocation5 + $0x11e0] sm:$0xf]  ;;  %v12353_v63 = vld [vmem:[#allocation2 + $0x454] sm:$0xf0]  ;;  %v12344_v60 = vld [vmem:[#allocation2 + $0x414] sm:$0xf] }
 0x1a5   :  { %v13918_v35 = vadd.f32 %v4836_v11, %v4788_v16  ;;  %5339 = vmatpush.bf16.msra.mxu2 %v9981_v29  ;;  %5388 = vmatpush.bf16.msra.mxu3 %v10109_v3  ;;  %v9834_v29 = vld [vmem:[#allocation2 + $0x460] sm:$0xf0] }
 0x1a6   :  { %5034 = vmatmul.bf16.gmra.mxu3 %v13916_v34  ;;  %v12932_v34 = vld [vmem:[#allocation5 + $0x11ec] sm:$0xf0] }
 0x1a7   :  { %4985 = vmatmul.bf16.gmra.mxu2 %v13913_v33  ;;  %v12153_v31 = vor.u32 %v12932_v34, %v12152_v15  ;;  %v9824_v33 = vld [vmem:[#allocation2 + $0x410] sm:$0xf] }
 0x1a9   :  { %v4839_v59 = vpop.f32.mrf.mxu3  ;;  %v4694_v16 = vpop.f32.mrf.mxu0  ;;  %5290 = vmatpush.bf16.msra.mxu1 %v12153_v31  ;;  %v12896_v31 = vld [vmem:[#allocation5 + $0x10cc] sm:$0xf0] }
 0x1aa   :  { %v4790_v14 = vpop.f32.mrf.mxu2  ;;  %v4695_v11 = vadd.f32 %v4694_v16, %v13793_v38  ;;  %v4743_v17 = vpop.f32.mrf.mxu1  ;;  %v13927_v38 = vor.u32 %v12353_v63, %v9824_v33  ;;  %v9962_v63 = vld [vmem:[#allocation5 + $0xd0] sm:$0xf0]  ;;  %v12008_v33 = vld [vmem:[#allocation5 + $0x10c0] sm:$0xf] }
 0x1ab   :  { %v4791_v39 = vadd.f32 %v4790_v14, %v4742_v28  ;;  %v12354_v28 = vld [vmem:[#allocation2 + $0x45c] sm:$0xf0] }
 0x1ac   :  { %v4744_v61 = vadd.f32 %v4743_v17, %v4695_v11  ;;  %16978 = vst [vmem:[#allocation115_spill] sm:$0xff] %v13927_v38  ;;  %v13934_v11 = vor.u32 %v12345_v46, %v9834_v29 }
 0x1ad   :  { %v13925_v55 = vadd.f32 %v4839_v59, %v4791_v39  ;;  %v13929_v39 = vor.u32 %v12344_v60, %v9826_v23  ;;  %v13931_v59 = vor.u32 %v12354_v28, %v9832_v6  ;;  %v12382_v60 = vld [vmem:[#allocation5 + $0xc4] sm:$0xf]  ;;  %v10090_v23 = vld [vmem:[#allocation5 + $0x1d0] sm:$0xf0]  ;;  %v12009_v28 = vor.u32 %v12896_v31, %v12008_v33  ;;  %v9338_v33 = vld [vmem:[#allocation2 + $0x78] sm:$0xf0] }
 0x1ae   :  { %16981 = vst [vmem:[#allocation118_spill] sm:$0xff] %v13934_v11  ;;  %v9344_v31 = vld [vmem:[#allocation2 + $0x38] sm:$0xf] }
 0x1af   :  { %16979 = vst [vmem:[#allocation116_spill] sm:$0xff] %v13929_v39  ;;  %5242 = vmatpush.bf16.msra.mxu0 %v12009_v28 }
 0x1b0   :  { %16980 = vst [vmem:[#allocation117_spill] sm:$0xff] %v13931_v59 }
 0x1b1   :  { %v4841_v47 = vpop.f32.mrf.mxu3  ;;  %v4697_v3 = vpop.f32.mrf.mxu0 }
 0x1b2   :  { %v4792_v32 = vpop.f32.mrf.mxu2  ;;  %v4698_v34 = vadd.f32 %v4697_v3, %v13799_v5  ;;  %v4746_v16 = vpop.f32.mrf.mxu1  ;;  %v12414_v5 = vld [vmem:[#allocation5 + $0x1c4] sm:$0xf] }
 0x1b3   :  { %v4793_v14 = vadd.f32 %v4792_v32, %v4744_v61  ;;  %v9965_v61 = vor.u32 %v12382_v60, %v9962_v63  ;;  %v10093_v46 = vor.u32 %v12414_v5, %v10090_v23  ;;  %v12221_v5 = vld [vmem:[#allocation2 + $0x3c] sm:$0xf] }
 0x1b4   :  { %v4747_v15 = vadd.f32 %v4746_v16, %v4698_v34  ;;  %4892 = vmatmul.bf16.gmra.mxu0 %v13927_v38  ;;  %4941 = vmatmul.bf16.gmra.mxu1 %v13929_v39  ;;  %v12136_v16 = vld [vmem:[#allocation5 + $0x11c0] sm:$0xf]  ;;  %v12229_v39 = vld [vmem:[#allocation2 + $0x74] sm:$0xf0]  ;;  %v12220_v38 = vld [vmem:[#allocation2 + $0x34] sm:$0xf] }
 0x1b5   :  { %v13936_v17 = vadd.f32 %v4841_v47, %v4793_v14  ;;  %5340 = vmatpush.bf16.msra.mxu2 %v9965_v61  ;;  %5389 = vmatpush.bf16.msra.mxu3 %v10093_v46  ;;  %v9346_v61 = vld [vmem:[#allocation2 + $0x80] sm:$0xf0] }
 0x1b6   :  { %5039 = vmatmul.bf16.gmra.mxu3 %v13934_v11  ;;  %v12928_v11 = vld [vmem:[#allocation5 + $0x11cc] sm:$0xf0] }
 0x1b7   :  { %4990 = vmatmul.bf16.gmra.mxu2 %v13931_v59  ;;  %v12137_v63 = vor.u32 %v12928_v11, %v12136_v16  ;;  %v9336_v59 = vld [vmem:[#allocation2 + $0x30] sm:$0xf] }
 0x1b9   :  { %v4844_v32 = vpop.f32.mrf.mxu3  ;;  %v4699_v14 = vpop.f32.mrf.mxu0  ;;  %5291 = vmatpush.bf16.msra.mxu1 %v12137_v63  ;;  %v12892_v63 = vld [vmem:[#allocation5 + $0x10ac] sm:$0xf0] }
 0x1ba   :  { %v4795_v6 = vpop.f32.mrf.mxu2  ;;  %v4700_v47 = vadd.f32 %v4699_v14, %v13810_v10  ;;  %v4748_v3 = vpop.f32.mrf.mxu1  ;;  %v13945_v10 = vor.u32 %v12229_v39, %v9336_v59  ;;  %v9946_v39 = vld [vmem:[#allocation5 + $0xb0] sm:$0xf0]  ;;  %v11992_v59 = vld [vmem:[#allocation5 + $0x10a0] sm:$0xf] }
 0x1bb   :  { %v4796_v29 = vadd.f32 %v4795_v6, %v4747_v15  ;;  %v12230_v15 = vld [vmem:[#allocation2 + $0x7c] sm:$0xf0] }
 0x1bc   :  { %v4749_v60 = vadd.f32 %v4748_v3, %v4700_v47  ;;  %16982 = vst [vmem:[#allocation119_spill] sm:$0xff] %v13945_v10  ;;  %v13952_v47 = vor.u32 %v12221_v5, %v9346_v61 }
 0x1bd   :  { %v13943_v34 = vadd.f32 %v4844_v32, %v4796_v29  ;;  %v13947_v29 = vor.u32 %v12220_v38, %v9338_v33  ;;  %v13949_v32 = vor.u32 %v12230_v15, %v9344_v31  ;;  %v12378_v38 = vld [vmem:[#allocation5 + $0xa4] sm:$0xf]  ;;  %v10074_v33 = vld [vmem:[#allocation5 + $0x1b0] sm:$0xf0]  ;;  %v11993_v15 = vor.u32 %v12892_v63, %v11992_v59  ;;  %v9410_v59 = vld [vmem:[#allocation2 + $0x108] sm:$0xf0] }
 0x1be   :  { %16985 = vst [vmem:[#allocation122_spill] sm:$0xff] %v13952_v47  ;;  %v9416_v63 = vld [vmem:[#allocation2 + $0xc8] sm:$0xf] }
 0x1bf   :  { %16983 = vst [vmem:[#allocation120_spill] sm:$0xff] %v13947_v29  ;;  %5243 = vmatpush.bf16.msra.mxu0 %v11993_v15 }
 0x1c0   :  { %16984 = vst [vmem:[#allocation121_spill] sm:$0xff] %v13949_v32 }
 0x1c1   :  { %v4846_v28 = vpop.f32.mrf.mxu3  ;;  %v4858_v46 = vpop.f32.mrf.mxu0 }
 0x1c2   :  { %v4797_v23 = vpop.f32.mrf.mxu2  ;;  %v4859_v11 = vadd.f32 %v4858_v46, %v13817_v43  ;;  %v4907_v14 = vpop.f32.mrf.mxu1  ;;  %v12410_v43 = vld [vmem:[#allocation5 + $0x1a4] sm:$0xf] }
 0x1c3   :  { %v4798_v6 = vadd.f32 %v4797_v23, %v4749_v60  ;;  %v9949_v60 = vor.u32 %v12378_v38, %v9946_v39  ;;  %v10077_v5 = vor.u32 %v12410_v43, %v10074_v33  ;;  %v12239_v43 = vld [vmem:[#allocation2 + $0xcc] sm:$0xf] }
 0x1c4   :  { %v4908_v16 = vadd.f32 %v4907_v14, %v4859_v11  ;;  %5053 = vmatmul.bf16.vlgmr.msrb.gmra.mxu0 %v13945_v10  ;;  %5102 = vmatmul.bf16.vlgmr.msrb.gmra.mxu1 %v13947_v29  ;;  %v12120_v14 = vld [vmem:[#allocation5 + $0x11a0] sm:$0xf]  ;;  %v12247_v29 = vld [vmem:[#allocation2 + $0x104] sm:$0xf0]  ;;  %v12238_v10 = vld [vmem:[#allocation2 + $0xc4] sm:$0xf] }
 0x1c5   :  { %v13954_v3 = vadd.f32 %v4846_v28, %v4798_v6  ;;  %5341 = vmatpush.bf16.msra.mxu2 %v9949_v60  ;;  %5390 = vmatpush.bf16.msra.mxu3 %v10077_v5  ;;  %v9418_v60 = vld [vmem:[#allocation2 + $0x110] sm:$0xf0] }
 0x1c6   :  { %5200 = vmatmul.bf16.vlgmr.msrb.gmra.mxu3 %v13952_v47  ;;  %v12924_v47 = vld [vmem:[#allocation5 + $0x11ac] sm:$0xf0] }
 0x1c7   :  { %5151 = vmatmul.bf16.vlgmr.msrb.gmra.mxu2 %v13949_v32  ;;  %v12121_v39 = vor.u32 %v12924_v47, %v12120_v14  ;;  %v9408_v32 = vld [vmem:[#allocation2 + $0xc0] sm:$0xf] }
 0x1c9   :  { %v5005_v23 = vpop.f32.mrf.mxu3  ;;  %v4860_v6 = vpop.f32.mrf.mxu0  ;;  %5292 = vmatpush.bf16.msra.mxu1 %v12121_v39  ;;  %v12888_v39 = vld [vmem:[#allocation5 + $0x108c] sm:$0xf0] }
 0x1ca   :  { %v4956_v31 = vpop.f32.mrf.mxu2  ;;  %v4861_v28 = vadd.f32 %v4860_v6, %v13828_v42  ;;  %v4909_v46 = vpop.f32.mrf.mxu1  ;;  %v13963_v42 = vor.u32 %v12247_v29, %v9408_v32  ;;  %v9930_v29 = vld [vmem:[#allocation5 + $0x90] sm:$0xf0]  ;;  %v11976_v32 = vld [vmem:[#allocation5 + $0x1080] sm:$0xf] }
 0x1cb   :  { %v4957_v61 = vadd.f32 %v4956_v31, %v4908_v16  ;;  %v12248_v16 = vld [vmem:[#allocation2 + $0x10c] sm:$0xf0] }
 0x1cc   :  { %v4910_v38 = vadd.f32 %v4909_v46, %v4861_v28  ;;  %16986 = vst [vmem:[#allocation123_spill] sm:$0xff] %v13963_v42  ;;  %v13970_v28 = vor.u32 %v12239_v43, %v9418_v60 }
 0x1cd   :  { %v13961_v11 = vadd.f32 %v5005_v23, %v4957_v61  ;;  %v13965_v61 = vor.u32 %v12238_v10, %v9410_v59  ;;  %v13967_v23 = vor.u32 %v12248_v16, %v9416_v63  ;;  %v12374_v10 = vld [vmem:[#allocation5 + $0x84] sm:$0xf]  ;;  %v10058_v59 = vld [vmem:[#allocation5 + $0x190] sm:$0xf0]  ;;  %v11977_v16 = vor.u32 %v12888_v39, %v11976_v32  ;;  %v9482_v32 = vld [vmem:[#allocation2 + $0x198] sm:$0xf0] }
 0x1ce   :  { %16989 = vst [vmem:[#allocation126_spill] sm:$0xff] %v13970_v28  ;;  %v9488_v39 = vld [vmem:[#allocation2 + $0x158] sm:$0xf] }
 0x1cf   :  { %16987 = vst [vmem:[#allocation124_spill] sm:$0xff] %v13965_v61  ;;  %5244 = vmatpush.bf16.msra.mxu0 %v11977_v16 }
 0x1d0   :  { %16988 = vst [vmem:[#allocation125_spill] sm:$0xff] %v13967_v23 }
 0x1d1   :  { %v5007_v15 = vpop.f32.mrf.mxu3  ;;  %v4863_v5 = vpop.f32.mrf.mxu0 }
 0x1d2   :  { %v4958_v33 = vpop.f32.mrf.mxu2  ;;  %v4864_v47 = vadd.f32 %v4863_v5, %v13835_v30  ;;  %v4912_v6 = vpop.f32.mrf.mxu1  ;;  %v12406_v30 = vld [vmem:[#allocation5 + $0x184] sm:$0xf] }
 0x1d3   :  { %v4959_v31 = vadd.f32 %v4958_v33, %v4910_v38  ;;  %v9933_v38 = vor.u32 %v12374_v10, %v9930_v29  ;;  %v10061_v43 = vor.u32 %v12406_v30, %v10058_v59  ;;  %v12257_v30 = vld [vmem:[#allocation2 + $0x15c] sm:$0xf] }
 0x1d4   :  { %v4913_v14 = vadd.f32 %v4912_v6, %v4864_v47  ;;  %5058 = vmatmul.bf16.gmra.mxu0 %v13963_v42  ;;  %5107 = vmatmul.bf16.gmra.mxu1 %v13965_v61  ;;  %v12104_v6 = vld [vmem:[#allocation5 + $0x1180] sm:$0xf]  ;;  %v12265_v61 = vld [vmem:[#allocation2 + $0x194] sm:$0xf0]  ;;  %v12256_v42 = vld [vmem:[#allocation2 + $0x154] sm:$0xf] }
 0x1d5   :  { %v13972_v46 = vadd.f32 %v5007_v15, %v4959_v31  ;;  %5342 = vmatpush.bf16.msra.mxu2 %v9933_v38  ;;  %5391 = vmatpush.bf16.msra.mxu3 %v10061_v43  ;;  %v9490_v38 = vld [vmem:[#allocation2 + $0x1a0] sm:$0xf0] }
 0x1d6   :  { %5205 = vmatmul.bf16.gmra.mxu3 %v13970_v28  ;;  %v12920_v28 = vld [vmem:[#allocation5 + $0x118c] sm:$0xf0] }
 0x1d7   :  { %5156 = vmatmul.bf16.gmra.mxu2 %v13967_v23  ;;  %v12105_v29 = vor.u32 %v12920_v28, %v12104_v6  ;;  %v9480_v23 = vld [vmem:[#allocation2 + $0x150] sm:$0xf] }
 0x1d9   :  { %v5010_v33 = vpop.f32.mrf.mxu3  ;;  %v4865_v31 = vpop.f32.mrf.mxu0  ;;  %5293 = vmatpush.bf16.msra.mxu1 %v12105_v29  ;;  %v12884_v29 = vld [vmem:[#allocation5 + $0x106c] sm:$0xf0] }
 0x1da   :  { %v4961_v63 = vpop.f32.mrf.mxu2  ;;  %v4866_v15 = vadd.f32 %v4865_v31, %v13846_v22  ;;  %v4914_v5 = vpop.f32.mrf.mxu1  ;;  %v13981_v22 = vor.u32 %v12265_v61, %v9480_v23  ;;  %v9914_v61 = vld [vmem:[#allocation5 + $0x70] sm:$0xf0]  ;;  %v11960_v23 = vld [vmem:[#allocation5 + $0x1060] sm:$0xf] }
 0x1db   :  { %v4962_v60 = vadd.f32 %v4961_v63, %v4913_v14  ;;  %v12266_v14 = vld [vmem:[#allocation2 + $0x19c] sm:$0xf0] }
 0x1dc   :  { %v4915_v10 = vadd.f32 %v4914_v5, %v4866_v15  ;;  %16990 = vst [vmem:[#allocation127_spill] sm:$0xff] %v13981_v22  ;;  %v13988_v15 = vor.u32 %v12257_v30, %v9490_v38 }
 0x1dd   :  { %v13979_v47 = vadd.f32 %v5010_v33, %v4962_v60  ;;  %v13983_v60 = vor.u32 %v12256_v42, %v9482_v32  ;;  %v13985_v33 = vor.u32 %v12266_v14, %v9488_v39  ;;  %v12370_v42 = vld [vmem:[#allocation5 + $0x64] sm:$0xf]  ;;  %v10042_v32 = vld [vmem:[#allocation5 + $0x170] sm:$0xf0]  ;;  %v11961_v14 = vor.u32 %v12884_v29, %v11960_v23  ;;  %v9554_v23 = vld [vmem:[#allocation2 + $0x228] sm:$0xf0] }
 0x1de   :  { %16993 = vst [vmem:[#allocation130_spill] sm:$0xff] %v13988_v15  ;;  %v9560_v29 = vld [vmem:[#allocation2 + $0x1e8] sm:$0xf] }
 0x1df   :  { %16991 = vst [vmem:[#allocation128_spill] sm:$0xff] %v13983_v60  ;;  %5245 = vmatpush.bf16.msra.mxu0 %v11961_v14 }
 0x1e0   :  { %16992 = vst [vmem:[#allocation129_spill] sm:$0xff] %v13985_v33 }
 0x1e1   :  { %v5012_v16 = vpop.f32.mrf.mxu3  ;;  %v4868_v43 = vpop.f32.mrf.mxu0 }
 0x1e2   :  { %v4963_v59 = vpop.f32.mrf.mxu2  ;;  %v4869_v28 = vadd.f32 %v4868_v43, %v13853_v56  ;;  %v4917_v31 = vpop.f32.mrf.mxu1  ;;  %v12402_v56 = vld [vmem:[#allocation5 + $0x164] sm:$0xf] }
 0x1e3   :  { %v4964_v63 = vadd.f32 %v4963_v59, %v4915_v10  ;;  %v9917_v10 = vor.u32 %v12370_v42, %v9914_v61  ;;  %v10045_v30 = vor.u32 %v12402_v56, %v10042_v32  ;;  %v12275_v56 = vld [vmem:[#allocation2 + $0x1ec] sm:$0xf] }
 0x1e4   :  { %v4918_v6 = vadd.f32 %v4917_v31, %v4869_v28  ;;  %5063 = vmatmul.bf16.gmra.mxu0 %v13981_v22  ;;  %5112 = vmatmul.bf16.gmra.mxu1 %v13983_v60  ;;  %v12088_v31 = vld [vmem:[#allocation5 + $0x1160] sm:$0xf]  ;;  %v12283_v60 = vld [vmem:[#allocation2 + $0x224] sm:$0xf0]  ;;  %v12274_v22 = vld [vmem:[#allocation2 + $0x1e4] sm:$0xf] }
 0x1e5   :  { %v13990_v5 = vadd.f32 %v5012_v16, %v4964_v63  ;;  %5343 = vmatpush.bf16.msra.mxu2 %v9917_v10  ;;  %5392 = vmatpush.bf16.msra.mxu3 %v10045_v30  ;;  %v9562_v10 = vld [vmem:[#allocation2 + $0x230] sm:$0xf0] }
 0x1e6   :  { %5210 = vmatmul.bf16.gmra.mxu3 %v13988_v15  ;;  %v12916_v15 = vld [vmem:[#allocation5 + $0x116c] sm:$0xf0] }
 0x1e7   :  { %5161 = vmatmul.bf16.gmra.mxu2 %v13985_v33  ;;  %v12089_v61 = vor.u32 %v12916_v15, %v12088_v31  ;;  %v9552_v33 = vld [vmem:[#allocation2 + $0x1e0] sm:$0xf] }
 0x1e9   :  { %v5015_v59 = vpop.f32.mrf.mxu3  ;;  %v4870_v63 = vpop.f32.mrf.mxu0  ;;  %5294 = vmatpush.bf16.msra.mxu1 %v12089_v61  ;;  %v12880_v61 = vld [vmem:[#allocation5 + $0x104c] sm:$0xf0] }
 0x1ea   :  { %v4966_v39 = vpop.f32.mrf.mxu2  ;;  %v4871_v16 = vadd.f32 %v4870_v63, %v13864_v37  ;;  %v4919_v43 = vpop.f32.mrf.mxu1  ;;  %v13999_v37 = vor.u32 %v12283_v60, %v9552_v33  ;;  %v9898_v60 = vld [vmem:[#allocation5 + $0x50] sm:$0xf0]  ;;  %v11944_v33 = vld [vmem:[#allocation5 + $0x1040] sm:$0xf] }
 0x1eb   :  { %v4967_v38 = vadd.f32 %v4966_v39, %v4918_v6  ;;  %v12284_v6 = vld [vmem:[#allocation2 + $0x22c] sm:$0xf0] }
 0x1ec   :  { %v4920_v42 = vadd.f32 %v4919_v43, %v4871_v16  ;;  %16994 = vst [vmem:[#allocation131_spill] sm:$0xff] %v13999_v37  ;;  %v14006_v16 = vor.u32 %v12275_v56, %v9562_v10 }
 0x1ed   :  { %v13997_v28 = vadd.f32 %v5015_v59, %v4967_v38  ;;  %v14001_v38 = vor.u32 %v12274_v22, %v9554_v23  ;;  %v14003_v59 = vor.u32 %v12284_v6, %v9560_v29  ;;  %v12366_v22 = vld [vmem:[#allocation5 + $0x44] sm:$0xf]  ;;  %v10026_v23 = vld [vmem:[#allocation5 + $0x150] sm:$0xf0]  ;;  %v11945_v6 = vor.u32 %v12880_v61, %v11944_v33  ;;  %v9626_v33 = vld [vmem:[#allocation2 + $0x2b8] sm:$0xf0] }
 0x1ee   :  { %16997 = vst [vmem:[#allocation134_spill] sm:$0xff] %v14006_v16  ;;  %v9632_v61 = vld [vmem:[#allocation2 + $0x278] sm:$0xf] }
 0x1ef   :  { %16995 = vst [vmem:[#allocation132_spill] sm:$0xff] %v14001_v38  ;;  %5246 = vmatpush.bf16.msra.mxu0 %v11945_v6 }
 0x1f0   :  { %16996 = vst [vmem:[#allocation133_spill] sm:$0xff] %v14003_v59 }
 0x1f1   :  { %v5017_v14 = vpop.f32.mrf.mxu3  ;;  %v4873_v30 = vpop.f32.mrf.mxu0 }
 0x1f2   :  { %v4968_v32 = vpop.f32.mrf.mxu2  ;;  %v4874_v15 = vadd.f32 %v4873_v30, %v13871_v18  ;;  %v4922_v63 = vpop.f32.mrf.mxu1  ;;  %v12398_v18 = vld [vmem:[#allocation5 + $0x144] sm:$0xf] }
 0x1f3   :  { %v4969_v39 = vadd.f32 %v4968_v32, %v4920_v42  ;;  %v9901_v42 = vor.u32 %v12366_v22, %v9898_v60  ;;  %v10029_v56 = vor.u32 %v12398_v18, %v10026_v23  ;;  %v12293_v18 = vld [vmem:[#allocation2 + $0x27c] sm:$0xf] }
 0x1f4   :  { %v4923_v31 = vadd.f32 %v4922_v63, %v4874_v15  ;;  %5068 = vmatmul.bf16.gmra.mxu0 %v13999_v37  ;;  %5117 = vmatmul.bf16.gmra.mxu1 %v14001_v38  ;;  %v12072_v63 = vld [vmem:[#allocation5 + $0x1140] sm:$0xf]  ;;  %v12301_v38 = vld [vmem:[#allocation2 + $0x2b4] sm:$0xf0]  ;;  %v12292_v37 = vld [vmem:[#allocation2 + $0x274] sm:$0xf] }
 0x1f5   :  { %v14008_v43 = vadd.f32 %v5017_v14, %v4969_v39  ;;  %5344 = vmatpush.bf16.msra.mxu2 %v9901_v42  ;;  %5393 = vmatpush.bf16.msra.mxu3 %v10029_v56  ;;  %v9634_v42 = vld [vmem:[#allocation2 + $0x2c0] sm:$0xf0] }
 0x1f6   :  { %5215 = vmatmul.bf16.gmra.mxu3 %v14006_v16  ;;  %v12912_v16 = vld [vmem:[#allocation5 + $0x114c] sm:$0xf0] }
 0x1f7   :  { %5166 = vmatmul.bf16.gmra.mxu2 %v14003_v59  ;;  %v12073_v60 = vor.u32 %v12912_v16, %v12072_v63  ;;  %v9624_v59 = vld [vmem:[#allocation2 + $0x270] sm:$0xf] }
 0x1f9   :  { %v5020_v32 = vpop.f32.mrf.mxu3  ;;  %v4875_v39 = vpop.f32.mrf.mxu0  ;;  %5295 = vmatpush.bf16.msra.mxu1 %v12073_v60  ;;  %v12876_v60 = vld [vmem:[#allocation5 + $0x102c] sm:$0xf0] }
 0x1fa   :  { %v4971_v29 = vpop.f32.mrf.mxu2  ;;  %v4876_v14 = vadd.f32 %v4875_v39, %v13882_v1  ;;  %v4924_v30 = vpop.f32.mrf.mxu1  ;;  %v14017_v1 = vor.u32 %v12301_v38, %v9624_v59  ;;  %v9882_v38 = vld [vmem:[#allocation5 + $0x30] sm:$0xf0]  ;;  %v11928_v59 = vld [vmem:[#allocation5 + $0x1020] sm:$0xf] }
 0x1fb   :  { %v4972_v10 = vadd.f32 %v4971_v29, %v4923_v31  ;;  %v12302_v31 = vld [vmem:[#allocation2 + $0x2bc] sm:$0xf0] }
 0x1fc   :  { %v4925_v22 = vadd.f32 %v4924_v30, %v4876_v14  ;;  %16998 = vst [vmem:[#allocation135_spill] sm:$0xff] %v14017_v1  ;;  %v14024_v14 = vor.u32 %v12293_v18, %v9634_v42 }
 0x1fd   :  { %v14015_v15 = vadd.f32 %v5020_v32, %v4972_v10  ;;  %v14019_v10 = vor.u32 %v12292_v37, %v9626_v33  ;;  %v14021_v32 = vor.u32 %v12302_v31, %v9632_v61  ;;  %v12362_v37 = vld [vmem:[#allocation5 + $0x24] sm:$0xf]  ;;  %v10010_v33 = vld [vmem:[#allocation5 + $0x130] sm:$0xf0]  ;;  %v11929_v31 = vor.u32 %v12876_v60, %v11928_v59  ;;  %v9698_v59 = vld [vmem:[#allocation2 + $0x348] sm:$0xf0] }
 0x1fe   :  { %17001 = vst [vmem:[#allocation138_spill] sm:$0xff] %v14024_v14  ;;  %v9704_v60 = vld [vmem:[#allocation2 + $0x308] sm:$0xf] }
 0x1ff   :  { %16999 = vst [vmem:[#allocation136_spill] sm:$0xff] %v14019_v10  ;;  %5247 = vmatpush.bf16.msra.mxu0 %v11929_v31 }
 0x200   :  { %17000 = vst [vmem:[#allocation137_spill] sm:$0xff] %v14021_v32 }
 0x201   :  { %v5022_v6 = vpop.f32.mrf.mxu3  ;;  %v4878_v56 = vpop.f32.mrf.mxu0 }
 0x202   :  { %v4973_v23 = vpop.f32.mrf.mxu2  ;;  %v4879_v16 = vadd.f32 %v4878_v56, %v13889_v4  ;;  %v4927_v39 = vpop.f32.mrf.mxu1  ;;  %v12394_v4 = vld [vmem:[#allocation5 + $0x124] sm:$0xf] }
 0x203   :  { %v4974_v29 = vadd.f32 %v4973_v23, %v4925_v22  ;;  %v9885_v22 = vor.u32 %v12362_v37, %v9882_v38  ;;  %v10013_v18 = vor.u32 %v12394_v4, %v10010_v33  ;;  %v12311_v4 = vld [vmem:[#allocation2 + $0x30c] sm:$0xf] }
 0x204   :  { %v4928_v63 = vadd.f32 %v4927_v39, %v4879_v16  ;;  %5073 = vmatmul.bf16.gmra.mxu0 %v14017_v1  ;;  %5122 = vmatmul.bf16.gmra.mxu1 %v14019_v10  ;;  %v12056_v39 = vld [vmem:[#allocation5 + $0x1120] sm:$0xf]  ;;  %v12319_v10 = vld [vmem:[#allocation2 + $0x344] sm:$0xf0]  ;;  %v12310_v1 = vld [vmem:[#allocation2 + $0x304] sm:$0xf] }
 0x205   :  { %v14026_v30 = vadd.f32 %v5022_v6, %v4974_v29  ;;  %5345 = vmatpush.bf16.msra.mxu2 %v9885_v22  ;;  %5394 = vmatpush.bf16.msra.mxu3 %v10013_v18  ;;  %v9706_v22 = vld [vmem:[#allocation2 + $0x350] sm:$0xf0] }
 0x206   :  { %5220 = vmatmul.bf16.gmra.mxu3 %v14024_v14  ;;  %v12908_v14 = vld [vmem:[#allocation5 + $0x112c] sm:$0xf0] }
 0x207   :  { %5171 = vmatmul.bf16.gmra.mxu2 %v14021_v32  ;;  %v12057_v38 = vor.u32 %v12908_v14, %v12056_v39  ;;  %v9696_v32 = vld [vmem:[#allocation2 + $0x300] sm:$0xf] }
 0x209   :  { %v5025_v23 = vpop.f32.mrf.mxu3  ;;  %v4880_v29 = vpop.f32.mrf.mxu0  ;;  %5296 = vmatpush.bf16.msra.mxu1 %v12057_v38  ;;  %v12872_v38 = vld [vmem:[#allocation5 + $0x100c] sm:$0xf0] }
 0x20a   :  { %v4976_v61 = vpop.f32.mrf.mxu2  ;;  %v4881_v6 = vadd.f32 %v4880_v29, %v13900_v58  ;;  %v4929_v56 = vpop.f32.mrf.mxu1  ;;  %v14035_v58 = vor.u32 %v12319_v10, %v9696_v32  ;;  %v9866_v10 = vld [vmem:[#allocation5 + $0x10] sm:$0xf0]  ;;  %v11912_v32 = vld [vmem:[#allocation5 + $0x1000] sm:$0xf] }
 0x20b   :  { %v4977_v42 = vadd.f32 %v4976_v61, %v4928_v63  ;;  %v12320_v63 = vld [vmem:[#allocation2 + $0x34c] sm:$0xf0] }
 0x20c   :  { %v4930_v37 = vadd.f32 %v4929_v56, %v4881_v6  ;;  %17002 = vst [vmem:[#allocation139_spill] sm:$0xff] %v14035_v58  ;;  %v14042_v6 = vor.u32 %v12311_v4, %v9706_v22 }
 0x20d   :  { %v14033_v16 = vadd.f32 %v5025_v23, %v4977_v42  ;;  %v14037_v42 = vor.u32 %v12310_v1, %v9698_v59  ;;  %v14039_v23 = vor.u32 %v12320_v63, %v9704_v60  ;;  %v12358_v1 = vld [vmem:[#allocation5 + $0x4] sm:$0xf]  ;;  %v9994_v59 = vld [vmem:[#allocation5 + $0x110] sm:$0xf0]  ;;  %v11913_v63 = vor.u32 %v12872_v38, %v11912_v32  ;;  %v9770_v32 = vld [vmem:[#allocation2 + $0x3d8] sm:$0xf0] }
 0x20e   :  { %17005 = vst [vmem:[#allocation142_spill] sm:$0xff] %v14042_v6  ;;  %v9776_v38 = vld [vmem:[#allocation2 + $0x398] sm:$0xf] }
 0x20f   :  { %17003 = vst [vmem:[#allocation140_spill] sm:$0xff] %v14037_v42  ;;  %5248 = vmatpush.bf16.msra.mxu0 %v11913_v63 }
 0x210   :  { %17004 = vst [vmem:[#allocation141_spill] sm:$0xff] %v14039_v23 }
 0x211   :  { %v5027_v31 = vpop.f32.mrf.mxu3  ;;  %v4883_v18 = vpop.f32.mrf.mxu0 }
 0x212   :  { %v4978_v33 = vpop.f32.mrf.mxu2  ;;  %v4884_v14 = vadd.f32 %v4883_v18, %v13907_v62  ;;  %v4932_v29 = vpop.f32.mrf.mxu1  ;;  %v12390_v62 = vld [vmem:[#allocation5 + $0x104] sm:$0xf] }
 0x213   :  { %v4979_v61 = vadd.f32 %v4978_v33, %v4930_v37  ;;  %v9869_v37 = vor.u32 %v12358_v1, %v9866_v10  ;;  %v9997_v4 = vor.u32 %v12390_v62, %v9994_v59  ;;  %v12329_v62 = vld [vmem:[#allocation2 + $0x39c] sm:$0xf] }
 0x214   :  { %v4933_v39 = vadd.f32 %v4932_v29, %v4884_v14  ;;  %5078 = vmatmul.bf16.gmra.mxu0 %v14035_v58  ;;  %5127 = vmatmul.bf16.gmra.mxu1 %v14037_v42  ;;  %v12040_v29 = vld [vmem:[#allocation5 + $0x1100] sm:$0xf]  ;;  %v12337_v42 = vld [vmem:[#allocation2 + $0x3d4] sm:$0xf0]  ;;  %v12328_v58 = vld [vmem:[#allocation2 + $0x394] sm:$0xf] }
 0x215   :  { %v14044_v56 = vadd.f32 %v5027_v31, %v4979_v61  ;;  %5346 = vmatpush.bf16.msra.mxu2 %v9869_v37  ;;  %5395 = vmatpush.bf16.msra.mxu3 %v9997_v4  ;;  %v9778_v37 = vld [vmem:[#allocation2 + $0x3e0] sm:$0xf0] }
 0x216   :  { %5225 = vmatmul.bf16.gmra.mxu3 %v14042_v6  ;;  %v12904_v6 = vld [vmem:[#allocation5 + $0x110c] sm:$0xf0] }
 0x217   :  { %5176 = vmatmul.bf16.gmra.mxu2 %v14039_v23  ;;  %v12041_v10 = vor.u32 %v12904_v6, %v12040_v29  ;;  %v9768_v23 = vld [vmem:[#allocation2 + $0x390] sm:$0xf] }
 0x219   :  { %v5030_v33 = vpop.f32.mrf.mxu3  ;;  %v4885_v61 = vpop.f32.mrf.mxu0  ;;  %5297 = vmatpush.bf16.msra.mxu1 %v12041_v10  ;;  %v10234_v10 = vld [vmem:[#allocation5 + $0x2f0] sm:$0xf0] }
 0x21a   :  { %v4981_v60 = vpop.f32.mrf.mxu2  ;;  %v4886_v31 = vadd.f32 %v4885_v61, %v13918_v35  ;;  %v4934_v18 = vpop.f32.mrf.mxu1  ;;  %v14053_v35 = vor.u32 %v12337_v42, %v9768_v23  ;;  %v10490_v42 = vld [vmem:[#allocation5 + $0x4f0] sm:$0xf0]  ;;  %v12450_v23 = vld [vmem:[#allocation5 + $0x2e4] sm:$0xf] }
 0x21b   :  { %v4982_v22 = vadd.f32 %v4981_v60, %v4933_v39  ;;  %v12338_v39 = vld [vmem:[#allocation2 + $0x3dc] sm:$0xf0] }
 0x21c   :  { %v4935_v1 = vadd.f32 %v4934_v18, %v4886_v31  ;;  %17006 = vst [vmem:[#allocation143_spill] sm:$0xff] %v14053_v35  ;;  %v14060_v31 = vor.u32 %v12329_v62, %v9778_v37 }
 0x21d   :  { %v14051_v14 = vadd.f32 %v5030_v33, %v4982_v22  ;;  %v14055_v22 = vor.u32 %v12328_v58, %v9770_v32  ;;  %v14057_v33 = vor.u32 %v12338_v39, %v9776_v38  ;;  %v12514_v58 = vld [vmem:[#allocation5 + $0x4e4] sm:$0xf]  ;;  %v10618_v32 = vld [vmem:[#allocation5 + $0x5f0] sm:$0xf0]  ;;  %v10237_v39 = vor.u32 %v12450_v23, %v10234_v10  ;;  %v9842_v23 = vld [vmem:[#allocation2 + $0x468] sm:$0xf0] }
 0x21e   :  { %17009 = vst [vmem:[#allocation146_spill] sm:$0xff] %v14060_v31  ;;  %v9848_v10 = vld [vmem:[#allocation2 + $0x428] sm:$0xf] }
 0x21f   :  { %17007 = vst [vmem:[#allocation144_spill] sm:$0xff] %v14055_v22  ;;  %5437 = vmatpush.bf16.msrb.mxu0 %v10237_v39 }
 0x220   :  { %17008 = vst [vmem:[#allocation145_spill] sm:$0xff] %v14057_v33 }
 0x221   :  { %v5032_v63 = vpop.f32.mrf.mxu3  ;;  %v4888_v4 = vpop.f32.mrf.mxu0 }
 0x222   :  { %v4983_v59 = vpop.f32.mrf.mxu2  ;;  %v4889_v6 = vadd.f32 %v4888_v4, %v13925_v55  ;;  %v4937_v61 = vpop.f32.mrf.mxu1  ;;  %v12546_v55 = vld [vmem:[#allocation5 + $0x5e4] sm:$0xf] }
 0x223   :  { %v4984_v60 = vadd.f32 %v4983_v59, %v4935_v1  ;;  %v10493_v1 = vor.u32 %v12514_v58, %v10490_v42  ;;  %v10621_v62 = vor.u32 %v12546_v55, %v10618_v32  ;;  %v12347_v55 = vld [vmem:[#allocation2 + $0x42c] sm:$0xf] }
 0x224   :  { %v4938_v29 = vadd.f32 %v4937_v61, %v4889_v6  ;;  %5083 = vmatmul.bf16.gmra.mxu0 %v14053_v35  ;;  %5132 = vmatmul.bf16.gmra.mxu1 %v14055_v22  ;;  %v12482_v61 = vld [vmem:[#allocation5 + $0x3e4] sm:$0xf]  ;;  %v12355_v22 = vld [vmem:[#allocation2 + $0x464] sm:$0xf0] }
 0x225   :  { %v14062_v18 = vadd.f32 %v5032_v63, %v4984_v60  ;;  %5535 = vmatpush.bf16.msrb.mxu2 %v10493_v1  ;;  %5584 = vmatpush.bf16.msrb.mxu3 %v10621_v62  ;;  %v12346_v35 = vld [vmem:[#allocation2 + $0x424] sm:$0xf]  ;;  %v9850_v1 = vld [vmem:[#allocation2 + $0x470] sm:$0xf0] }
 0x226   :  { %5230 = vmatmul.bf16.gmra.mxu3 %v14060_v31  ;;  %v10362_v31 = vld [vmem:[#allocation5 + $0x3f0] sm:$0xf0] }
 0x227   :  { %5181 = vmatmul.bf16.gmra.mxu2 %v14057_v33  ;;  %v10365_v42 = vor.u32 %v12482_v61, %v10362_v31  ;;  %v9840_v33 = vld [vmem:[#allocation2 + $0x420] sm:$0xf] }
 0x229   :  { %v5035_v59 = vpop.f32.mrf.mxu3  ;;  %v4890_v60 = vpop.f32.mrf.mxu0  ;;  %5486 = vmatpush.bf16.msrb.mxu1 %v10365_v42  ;;  %v10218_v42 = vld [vmem:[#allocation5 + $0x2d0] sm:$0xf0] }
 0x22a   :  { %v4986_v38 = vpop.f32.mrf.mxu2  ;;  %v4891_v63 = vadd.f32 %v4890_v60, %v13936_v17  ;;  %v4939_v4 = vpop.f32.mrf.mxu1  ;;  %v14071_v17 = vor.u32 %v12355_v22, %v9840_v33  ;;  %v10474_v22 = vld [vmem:[#allocation5 + $0x4d0] sm:$0xf0]  ;;  %v12446_v33 = vld [vmem:[#allocation5 + $0x2c4] sm:$0xf] }
 0x22b   :  { %v4987_v37 = vadd.f32 %v4986_v38, %v4938_v29  ;;  %v12356_v29 = vld [vmem:[#allocation2 + $0x46c] sm:$0xf0] }
 0x22c   :  { %v4940_v58 = vadd.f32 %v4939_v4, %v4891_v63  ;;  %17010 = vst [vmem:[#allocation147_spill] sm:$0xff] %v14071_v17  ;;  %v14078_v63 = vor.u32 %v12347_v55, %v9850_v1 }
 0x22d   :  { %v14069_v6 = vadd.f32 %v5035_v59, %v4987_v37  ;;  %v14073_v37 = vor.u32 %v12346_v35, %v9842_v23  ;;  %v14075_v59 = vor.u32 %v12356_v29, %v9848_v10  ;;  %v12510_v35 = vld [vmem:[#allocation5 + $0x4c4] sm:$0xf]  ;;  %v10602_v23 = vld [vmem:[#allocation5 + $0x5d0] sm:$0xf0]  ;;  %v10221_v29 = vor.u32 %v12446_v33, %v10218_v42  ;;  %v9354_v33 = vld [vmem:[#allocation2 + $0x88] sm:$0xf0] }
 0x22e   :  { %17013 = vst [vmem:[#allocation150_spill] sm:$0xff] %v14078_v63 }
 0x22f   :  { %17011 = vst [vmem:[#allocation148_spill] sm:$0xff] %v14073_v37  ;;  %5438 = vmatpush.bf16.msrb.mxu0 %v10221_v29 }
 0x230   :  { %17012 = vst [vmem:[#allocation149_spill] sm:$0xff] %v14075_v59 }
 0x231   :  { %v5037_v39 = vpop.f32.mrf.mxu3  ;;  %v4893_v62 = vpop.f32.mrf.mxu0 }
 0x232   :  { %v4988_v32 = vpop.f32.mrf.mxu2  ;;  %v4894_v31 = vadd.f32 %v4893_v62, %v13943_v34  ;;  %v4942_v60 = vpop.f32.mrf.mxu1  ;;  %v12542_v34 = vld [vmem:[#allocation5 + $0x5c4] sm:$0xf] }
 0x233   :  { %v4989_v38 = vadd.f32 %v4988_v32, %v4940_v58  ;;  %v10477_v58 = vor.u32 %v12510_v35, %v10474_v22  ;;  %v10605_v55 = vor.u32 %v12542_v34, %v10602_v23 }
 0x234   :  { %v4943_v61 = vadd.f32 %v4942_v60, %v4894_v31  ;;  %5088 = vmatmul.bf16.gmra.mxu0 %v14071_v17  ;;  %5137 = vmatmul.bf16.gmra.mxu1 %v14073_v37  ;;  %v12478_v60 = vld [vmem:[#allocation5 + $0x3c4] sm:$0xf]  ;;  %v12231_v37 = vld [vmem:[#allocation2 + $0x84] sm:$0xf0] }
 0x235   :  { %v14080_v4 = vadd.f32 %v5037_v39, %v4989_v38  ;;  %5536 = vmatpush.bf16.msrb.mxu2 %v10477_v58  ;;  %5585 = vmatpush.bf16.msrb.mxu3 %v10605_v55  ;;  %v12222_v17 = vld [vmem:[#allocation2 + $0x44] sm:$0xf] }
 0x236   :  { %5235 = vmatmul.bf16.gmra.mxu3 %v14078_v63  ;;  %v10346_v63 = vld [vmem:[#allocation5 + $0x3d0] sm:$0xf0]  ;;  %v14091_v23 = vor.u32 %v12222_v17, %v9354_v33 }
 0x237   :  { %5186 = vmatmul.bf16.gmra.mxu2 %v14075_v59  ;;  %v10349_v22 = vor.u32 %v12478_v60, %v10346_v63  ;;  %v9352_v59 = vld [vmem:[#allocation2 + $0x40] sm:$0xf]  ;;  %v12442_v63 = vld [vmem:[#allocation5 + $0x2a4] sm:$0xf]  ;;  %v10202_v17 = vld [vmem:[#allocation5 + $0x2b0] sm:$0xf0] }
 0x238   :  { %v14089_v42 = vor.u32 %v12231_v37, %v9352_v59  ;;  %17015 = vst [vmem:[#allocation152_spill] sm:$0xff] %v14091_v23  ;;  %v12506_v37 = vld [vmem:[#allocation5 + $0x4a4] sm:$0xf]  ;;  %v10458_v59 = vld [vmem:[#allocation5 + $0x4b0] sm:$0xf0] }
 0x239   :  { %v5040_v32 = vpop.f32.mrf.mxu3  ;;  %v4895_v38 = vpop.f32.mrf.mxu0  ;;  %5487 = vmatpush.bf16.msrb.mxu1 %v10349_v22 }
 0x23a   :  { %v4991_v10 = vpop.f32.mrf.mxu2  ;;  %v4896_v39 = vadd.f32 %v4895_v38, %v13954_v3  ;;  %v4944_v62 = vpop.f32.mrf.mxu1  ;;  %17014 = vst [vmem:[#allocation151_spill] sm:$0xff] %v14089_v42  ;;  %v12538_v38 = vld [vmem:[#allocation5 + $0x5a4] sm:$0xf] }
 0x23b   :  { %v4992_v1 = vadd.f32 %v4991_v10, %v4943_v61 }
 0x23c   :  { %v4945_v35 = vadd.f32 %v4944_v62, %v4896_v39  ;;  %v10586_v39 = vld [vmem:[#allocation5 + $0x5b0] sm:$0xf0]  ;;  %v10205_v62 = vor.u32 %v12442_v63, %v10202_v17  ;;  %v9426_v63 = vld [vmem:[#allocation2 + $0x118] sm:$0xf0] }
 0x23d   :  { %v14087_v31 = vadd.f32 %v5040_v32, %v4992_v1  ;;  %v10461_v32 = vor.u32 %v12506_v37, %v10458_v59  ;;  %v10589_v60 = vor.u32 %v12538_v38, %v10586_v39  ;;  %v9424_v59 = vld [vmem:[#allocation2 + $0xd0] sm:$0xf] }
 0x23e   :  { %5439 = vmatpush.bf16.msrb.mxu0 %v10205_v62 }
 0x23f   :  { %5537 = vmatpush.bf16.msrb.mxu2 %v10461_v32  ;;  %5586 = vmatpush.bf16.msrb.mxu3 %v10589_v60 }
 0x241   :  { %v5042_v34 = vpop.f32.mrf.mxu3  ;;  %v5054_v3 = vpop.f32.mrf.mxu0 }
 0x242   :  { %v4993_v61 = vpop.f32.mrf.mxu2  ;;  %v5055_v10 = vadd.f32 %v5054_v3, %v13961_v11  ;;  %v5103_v29 = vpop.f32.mrf.mxu1  ;;  %v12474_v3 = vld [vmem:[#allocation5 + $0x3a4] sm:$0xf] }
 0x243   :  { %v4994_v58 = vadd.f32 %v4993_v61, %v4945_v35 }
 0x244   :  { %v5104_v1 = vadd.f32 %v5103_v29, %v5055_v10  ;;  %5249 = vmatmul.bf16.vlgmr.msra.gmra.mxu0 %v14089_v42  ;;  %5298 = vmatmul.bf16.vlgmr.msra.gmra.mxu1 %v14091_v23  ;;  %v10330_v10 = vld [vmem:[#allocation5 + $0x3b0] sm:$0xf0] }
 0x245   :  { %v14094_v55 = vadd.f32 %v5042_v34, %v4994_v58  ;;  %v10333_v37 = vor.u32 %v12474_v3, %v10330_v10  ;;  %v10570_v3 = vld [vmem:[#allocation5 + $0x590] sm:$0xf0] }
 0x246   :  { %5396 = vmatmul.bf16.vlgmr.msra.gmra.mxu3 %v13581_v53  ;;  %v12249_v53 = vld [vmem:[#allocation2 + $0x114] sm:$0xf0] }
 0x247   :  { %5347 = vmatmul.bf16.vlgmr.msra.gmra.mxu2 %v13579_v48  ;;  %v12240_v48 = vld [vmem:[#allocation2 + $0xd4] sm:$0xf]  ;;  %5488 = vmatpush.bf16.msrb.mxu1 %v10333_v37  ;;  %v14103_v17 = vor.u32 %v12249_v53, %v9424_v59  ;;  %v12502_v53 = vld [vmem:[#allocation5 + $0x484] sm:$0xf] }
 0x248   :  { %v14105_v39 = vor.u32 %v12240_v48, %v9426_v63  ;;  %v10186_v48 = vld [vmem:[#allocation5 + $0x290] sm:$0xf0] }
 0x249   :  { %v5201_v22 = vpop.f32.mrf.mxu3  ;;  %v5056_v33 = vpop.f32.mrf.mxu0  ;;  %17016 = vst [vmem:[#allocation153_spill] sm:$0xff] %v14103_v17 }
 0x24a   :  { %v5152_v11 = vpop.f32.mrf.mxu2  ;;  %v5057_v61 = vadd.f32 %v5056_v33, %v13972_v46  ;;  %v5105_v58 = vpop.f32.mrf.mxu1  ;;  %17017 = vst [vmem:[#allocation154_spill] sm:$0xff] %v14105_v39  ;;  %v12438_v33 = vld [vmem:[#allocation5 + $0x284] sm:$0xf] }
 0x24b   :  { %v5153_v35 = vadd.f32 %v5152_v11, %v5104_v1  ;;  %v10189_v10 = vor.u32 %v12438_v33, %v10186_v48  ;;  %v9498_v33 = vld [vmem:[#allocation2 + $0x1a8] sm:$0xf0] }
 0x24c   :  { %v5106_v29 = vadd.f32 %v5105_v58, %v5057_v61  ;;  %v12534_v58 = vld [vmem:[#allocation5 + $0x584] sm:$0xf] }
 0x24d   :  { %v14101_v34 = vadd.f32 %v5201_v22, %v5153_v35  ;;  %v10442_v22 = vld [vmem:[#allocation5 + $0x490] sm:$0xf0]  ;;  %5440 = vmatpush.bf16.msrb.mxu0 %v10189_v10 }
 0x24e   :  { %v10445_v61 = vor.u32 %v12502_v53, %v10442_v22  ;;  %v9496_v22 = vld [vmem:[#allocation2 + $0x160] sm:$0xf] }
 0x250   :  { %5538 = vmatpush.bf16.msrb.mxu2 %v10445_v61 }
 0x251   :  { %v5203_v38 = vpop.f32.mrf.mxu3  ;;  %v5059_v46 = vpop.f32.mrf.mxu0 }
 0x252   :  { %v5154_v1 = vpop.f32.mrf.mxu2  ;;  %v5060_v11 = vadd.f32 %v5059_v46, %v13979_v47  ;;  %v5108_v62 = vpop.f32.mrf.mxu1  ;;  %v12470_v46 = vld [vmem:[#allocation5 + $0x384] sm:$0xf] }
 0x253   :  { %v5155_v32 = vadd.f32 %v5154_v1, %v5106_v29  ;;  %v10573_v29 = vor.u32 %v12534_v58, %v10570_v3 }
 0x254   :  { %v5109_v35 = vadd.f32 %v5108_v62, %v5060_v11  ;;  %5254 = vmatmul.bf16.gmra.mxu0 %v14103_v17  ;;  %5303 = vmatmul.bf16.gmra.mxu1 %v14105_v39  ;;  %v10314_v11 = vld [vmem:[#allocation5 + $0x390] sm:$0xf0] }
 0x255   :  { %v14108_v60 = vadd.f32 %v5203_v38, %v5155_v32  ;;  %5587 = vmatpush.bf16.msrb.mxu3 %v10573_v29  ;;  %v10317_v53 = vor.u32 %v12470_v46, %v10314_v11  ;;  %v10554_v46 = vld [vmem:[#allocation5 + $0x570] sm:$0xf0] }
 0x256   :  { %5401 = vmatmul.bf16.gmra.mxu3 %v13593_v25  ;;  %v12267_v25 = vld [vmem:[#allocation2 + $0x1a4] sm:$0xf0] }
 0x257   :  { %5352 = vmatmul.bf16.gmra.mxu2 %v13591_v24  ;;  %v12258_v24 = vld [vmem:[#allocation2 + $0x164] sm:$0xf]  ;;  %5489 = vmatpush.bf16.msrb.mxu1 %v10317_v53  ;;  %v14117_v48 = vor.u32 %v12267_v25, %v9496_v22 }
 0x258   :  { %v14119_v3 = vor.u32 %v12258_v24, %v9498_v33  ;;  %v12498_v25 = vld [vmem:[#allocation5 + $0x464] sm:$0xf]  ;;  %v10170_v24 = vld [vmem:[#allocation5 + $0x270] sm:$0xf0] }
 0x259   :  { %v5206_v59 = vpop.f32.mrf.mxu3  ;;  %v5061_v63 = vpop.f32.mrf.mxu0  ;;  %17018 = vst [vmem:[#allocation155_spill] sm:$0xff] %v14117_v48 }
 0x25a   :  { %v5157_v47 = vpop.f32.mrf.mxu2  ;;  %v5062_v1 = vadd.f32 %v5061_v63, %v13990_v5  ;;  %v5110_v32 = vpop.f32.mrf.mxu1  ;;  %17019 = vst [vmem:[#allocation156_spill] sm:$0xff] %v14119_v3  ;;  %v12434_v63 = vld [vmem:[#allocation5 + $0x264] sm:$0xf] }
 0x25b   :  { %v5158_v37 = vadd.f32 %v5157_v47, %v5109_v35  ;;  %v10173_v11 = vor.u32 %v12434_v63, %v10170_v24  ;;  %v9570_v63 = vld [vmem:[#allocation2 + $0x238] sm:$0xf0] }
 0x25c   :  { %v5111_v62 = vadd.f32 %v5110_v32, %v5062_v1  ;;  %v12530_v32 = vld [vmem:[#allocation5 + $0x564] sm:$0xf] }
 0x25d   :  { %v14115_v38 = vadd.f32 %v5206_v59, %v5158_v37  ;;  %v10426_v59 = vld [vmem:[#allocation5 + $0x470] sm:$0xf0]  ;;  %5441 = vmatpush.bf16.msrb.mxu0 %v10173_v11 }
 0x25e   :  { %v10429_v1 = vor.u32 %v12498_v25, %v10426_v59  ;;  %v9568_v59 = vld [vmem:[#allocation2 + $0x1f0] sm:$0xf] }
 0x260   :  { %5539 = vmatpush.bf16.msrb.mxu2 %v10429_v1 }
 0x261   :  { %v5208_v58 = vpop.f32.mrf.mxu3  ;;  %v5064_v5 = vpop.f32.mrf.mxu0 }
 0x262   :  { %v5159_v35 = vpop.f32.mrf.mxu2  ;;  %v5065_v47 = vadd.f32 %v5064_v5, %v13997_v28  ;;  %v5113_v10 = vpop.f32.mrf.mxu1  ;;  %v12466_v5 = vld [vmem:[#allocation5 + $0x364] sm:$0xf] }
 0x263   :  { %v5160_v61 = vadd.f32 %v5159_v35, %v5111_v62  ;;  %v10557_v62 = vor.u32 %v12530_v32, %v10554_v46 }
 0x264   :  { %v5114_v37 = vadd.f32 %v5113_v10, %v5065_v47  ;;  %5259 = vmatmul.bf16.gmra.mxu0 %v14117_v48  ;;  %5308 = vmatmul.bf16.gmra.mxu1 %v14119_v3  ;;  %v10298_v47 = vld [vmem:[#allocation5 + $0x370] sm:$0xf0] }
 0x265   :  { %v14122_v29 = vadd.f32 %v5208_v58, %v5160_v61  ;;  %5588 = vmatpush.bf16.msrb.mxu3 %v10557_v62  ;;  %v10301_v25 = vor.u32 %v12466_v5, %v10298_v47  ;;  %v10538_v5 = vld [vmem:[#allocation5 + $0x550] sm:$0xf0] }
 0x266   :  { %5406 = vmatmul.bf16.gmra.mxu3 %v13605_v50  ;;  %v12285_v50 = vld [vmem:[#allocation2 + $0x234] sm:$0xf0] }
 0x267   :  { %5357 = vmatmul.bf16.gmra.mxu2 %v13603_v49  ;;  %v12276_v49 = vld [vmem:[#allocation2 + $0x1f4] sm:$0xf]  ;;  %5490 = vmatpush.bf16.msrb.mxu1 %v10301_v25  ;;  %v14131_v24 = vor.u32 %v12285_v50, %v9568_v59  ;;  %v12494_v50 = vld [vmem:[#allocation5 + $0x444] sm:$0xf] }
 0x268   :  { %v14133_v46 = vor.u32 %v12276_v49, %v9570_v63  ;;  %v10154_v49 = vld [vmem:[#allocation5 + $0x250] sm:$0xf0] }
 0x269   :  { %v5211_v22 = vpop.f32.mrf.mxu3  ;;  %v5066_v33 = vpop.f32.mrf.mxu0  ;;  %17020 = vst [vmem:[#allocation157_spill] sm:$0xff] %v14131_v24 }
 0x26a   :  { %v5162_v28 = vpop.f32.mrf.mxu2  ;;  %v5067_v35 = vadd.f32 %v5066_v33, %v14008_v43  ;;  %v5115_v61 = vpop.f32.mrf.mxu1  ;;  %17021 = vst [vmem:[#allocation158_spill] sm:$0xff] %v14133_v46  ;;  %v12430_v33 = vld [vmem:[#allocation5 + $0x244] sm:$0xf] }
 0x26b   :  { %v5163_v53 = vadd.f32 %v5162_v28, %v5114_v37  ;;  %v10157_v47 = vor.u32 %v12430_v33, %v10154_v49  ;;  %v9642_v33 = vld [vmem:[#allocation2 + $0x2c8] sm:$0xf0] }
 0x26c   :  { %v5116_v10 = vadd.f32 %v5115_v61, %v5067_v35  ;;  %v12526_v61 = vld [vmem:[#allocation5 + $0x544] sm:$0xf] }
 0x26d   :  { %v14129_v58 = vadd.f32 %v5211_v22, %v5163_v53  ;;  %v10410_v22 = vld [vmem:[#allocation5 + $0x450] sm:$0xf0]  ;;  %5442 = vmatpush.bf16.msrb.mxu0 %v10157_v47 }
 0x26e   :  { %v10413_v35 = vor.u32 %v12494_v50, %v10410_v22  ;;  %v9640_v22 = vld [vmem:[#allocation2 + $0x280] sm:$0xf] }
 0x270   :  { %5540 = vmatpush.bf16.msrb.mxu2 %v10413_v35 }
 0x271   :  { %v5213_v32 = vpop.f32.mrf.mxu3  ;;  %v5069_v43 = vpop.f32.mrf.mxu0 }
 0x272   :  { %v5164_v37 = vpop.f32.mrf.mxu2  ;;  %v5070_v28 = vadd.f32 %v5069_v43, %v14015_v15  ;;  %v5118_v11 = vpop.f32.mrf.mxu1  ;;  %v12462_v43 = vld [vmem:[#allocation5 + $0x344] sm:$0xf] }
 0x273   :  { %v5165_v1 = vadd.f32 %v5164_v37, %v5116_v10  ;;  %v10541_v10 = vor.u32 %v12526_v61, %v10538_v5 }
 0x274   :  { %v5119_v53 = vadd.f32 %v5118_v11, %v5070_v28  ;;  %5264 = vmatmul.bf16.gmra.mxu0 %v14131_v24  ;;  %5313 = vmatmul.bf16.gmra.mxu1 %v14133_v46  ;;  %v10282_v28 = vld [vmem:[#allocation5 + $0x350] sm:$0xf0] }
 0x275   :  { %v14136_v62 = vadd.f32 %v5213_v32, %v5165_v1  ;;  %5589 = vmatpush.bf16.msrb.mxu3 %v10541_v10  ;;  %v10285_v50 = vor.u32 %v12462_v43, %v10282_v28  ;;  %v10522_v43 = vld [vmem:[#allocation5 + $0x530] sm:$0xf0] }
 0x276   :  { %5411 = vmatmul.bf16.gmra.mxu3 %v13617_v13  ;;  %v12303_v13 = vld [vmem:[#allocation2 + $0x2c4] sm:$0xf0] }
 0x277   :  { %5362 = vmatmul.bf16.gmra.mxu2 %v13615_v12  ;;  %v12294_v12 = vld [vmem:[#allocation2 + $0x284] sm:$0xf]  ;;  %5491 = vmatpush.bf16.msrb.mxu1 %v10285_v50  ;;  %v14145_v49 = vor.u32 %v12303_v13, %v9640_v22 }
 0x278   :  { %v14147_v5 = vor.u32 %v12294_v12, %v9642_v33  ;;  %v12490_v13 = vld [vmem:[#allocation5 + $0x424] sm:$0xf]  ;;  %v10138_v12 = vld [vmem:[#allocation5 + $0x230] sm:$0xf0] }
 0x279   :  { %v5216_v59 = vpop.f32.mrf.mxu3  ;;  %v5071_v63 = vpop.f32.mrf.mxu0  ;;  %17022 = vst [vmem:[#allocation159_spill] sm:$0xff] %v14145_v49 }
 0x27a   :  { %v5167_v15 = vpop.f32.mrf.mxu2  ;;  %v5072_v37 = vadd.f32 %v5071_v63, %v14026_v30  ;;  %v5120_v1 = vpop.f32.mrf.mxu1  ;;  %17023 = vst [vmem:[#allocation160_spill] sm:$0xff] %v14147_v5  ;;  %v12426_v63 = vld [vmem:[#allocation5 + $0x224] sm:$0xf] }
 0x27b   :  { %v5168_v25 = vadd.f32 %v5167_v15, %v5119_v53  ;;  %v10141_v28 = vor.u32 %v12426_v63, %v10138_v12  ;;  %v9714_v63 = vld [vmem:[#allocation2 + $0x358] sm:$0xf0] }
 0x27c   :  { %v5121_v11 = vadd.f32 %v5120_v1, %v5072_v37  ;;  %v12522_v1 = vld [vmem:[#allocation5 + $0x524] sm:$0xf] }
 0x27d   :  { %v14143_v32 = vadd.f32 %v5216_v59, %v5168_v25  ;;  %v10394_v59 = vld [vmem:[#allocation5 + $0x430] sm:$0xf0]  ;;  %5443 = vmatpush.bf16.msrb.mxu0 %v10141_v28 }
 0x27e   :  { %v10397_v37 = vor.u32 %v12490_v13, %v10394_v59  ;;  %v9712_v59 = vld [vmem:[#allocation2 + $0x310] sm:$0xf] }
 0x280   :  { %5541 = vmatpush.bf16.msrb.mxu2 %v10397_v37 }
 0x281   :  { %v5218_v61 = vpop.f32.mrf.mxu3  ;;  %v5074_v30 = vpop.f32.mrf.mxu0 }
 0x282   :  { %v5169_v53 = vpop.f32.mrf.mxu2  ;;  %v5075_v15 = vadd.f32 %v5074_v30, %v14033_v16  ;;  %v5123_v47 = vpop.f32.mrf.mxu1  ;;  %v12458_v30 = vld [vmem:[#allocation5 + $0x324] sm:$0xf] }
 0x283   :  { %v5170_v35 = vadd.f32 %v5169_v53, %v5121_v11  ;;  %v10525_v11 = vor.u32 %v12522_v1, %v10522_v43 }
 0x284   :  { %v5124_v25 = vadd.f32 %v5123_v47, %v5075_v15  ;;  %5269 = vmatmul.bf16.gmra.mxu0 %v14145_v49  ;;  %5318 = vmatmul.bf16.gmra.mxu1 %v14147_v5  ;;  %v10266_v15 = vld [vmem:[#allocation5 + $0x330] sm:$0xf0] }
 0x285   :  { %v14150_v10 = vadd.f32 %v5218_v61, %v5170_v35  ;;  %5590 = vmatpush.bf16.msrb.mxu3 %v10525_v11  ;;  %v10269_v13 = vor.u32 %v12458_v30, %v10266_v15  ;;  %v10506_v30 = vld [vmem:[#allocation5 + $0x510] sm:$0xf0] }
 0x286   :  { %5416 = vmatmul.bf16.gmra.mxu3 %v13629_v41  ;;  %v12321_v41 = vld [vmem:[#allocation2 + $0x354] sm:$0xf0] }
 0x287   :  { %5367 = vmatmul.bf16.gmra.mxu2 %v13627_v40  ;;  %v12312_v40 = vld [vmem:[#allocation2 + $0x314] sm:$0xf]  ;;  %5492 = vmatpush.bf16.msrb.mxu1 %v10269_v13  ;;  %v14159_v12 = vor.u32 %v12321_v41, %v9712_v59  ;;  %v12486_v41 = vld [vmem:[#allocation5 + $0x404] sm:$0xf] }
 0x288   :  { %v14161_v43 = vor.u32 %v12312_v40, %v9714_v63  ;;  %v10122_v40 = vld [vmem:[#allocation5 + $0x210] sm:$0xf0] }
 0x289   :  { %v5221_v22 = vpop.f32.mrf.mxu3  ;;  %v5076_v33 = vpop.f32.mrf.mxu0  ;;  %17024 = vst [vmem:[#allocation161_spill] sm:$0xff] %v14159_v12 }
 0x28a   :  { %v5172_v16 = vpop.f32.mrf.mxu2  ;;  %v5077_v53 = vadd.f32 %v5076_v33, %v14044_v56  ;;  %v5125_v35 = vpop.f32.mrf.mxu1  ;;  %17025 = vst [vmem:[#allocation162_spill] sm:$0xff] %v14161_v43  ;;  %v12422_v33 = vld [vmem:[#allocation5 + $0x204] sm:$0xf] }
 0x28b   :  { %v5173_v50 = vadd.f32 %v5172_v16, %v5124_v25  ;;  %v10125_v15 = vor.u32 %v12422_v33, %v10122_v40  ;;  %v9786_v33 = vld [vmem:[#allocation2 + $0x3e8] sm:$0xf0] }
 0x28c   :  { %v5126_v47 = vadd.f32 %v5125_v35, %v5077_v53  ;;  %v12518_v35 = vld [vmem:[#allocation5 + $0x504] sm:$0xf] }
 0x28d   :  { %v14157_v61 = vadd.f32 %v5221_v22, %v5173_v50  ;;  %v10378_v22 = vld [vmem:[#allocation5 + $0x410] sm:$0xf0]  ;;  %5444 = vmatpush.bf16.msrb.mxu0 %v10125_v15 }
 0x28e   :  { %v10381_v53 = vor.u32 %v12486_v41, %v10378_v22  ;;  %v9784_v22 = vld [vmem:[#allocation2 + $0x3a0] sm:$0xf] }
 0x290   :  { %5542 = vmatpush.bf16.msrb.mxu2 %v10381_v53 }
 0x291   :  { %v5223_v1 = vpop.f32.mrf.mxu3  ;;  %v5079_v56 = vpop.f32.mrf.mxu0 }
 0x292   :  { %v5174_v25 = vpop.f32.mrf.mxu2  ;;  %v5080_v16 = vadd.f32 %v5079_v56, %v14051_v14  ;;  %v5128_v28 = vpop.f32.mrf.mxu1  ;;  %v12454_v56 = vld [vmem:[#allocation5 + $0x304] sm:$0xf] }
 0x293   :  { %v5175_v37 = vadd.f32 %v5174_v25, %v5126_v47  ;;  %v10509_v47 = vor.u32 %v12518_v35, %v10506_v30 }
 0x294   :  { %v5129_v50 = vadd.f32 %v5128_v28, %v5080_v16  ;;  %5274 = vmatmul.bf16.gmra.mxu0 %v14159_v12  ;;  %5323 = vmatmul.bf16.gmra.mxu1 %v14161_v43  ;;  %v10250_v16 = vld [vmem:[#allocation5 + $0x310] sm:$0xf0] }
 0x295   :  { %v14164_v11 = vadd.f32 %v5223_v1, %v5175_v37  ;;  %5591 = vmatpush.bf16.msrb.mxu3 %v10509_v47  ;;  %v10253_v41 = vor.u32 %v12454_v56, %v10250_v16  ;;  %v9856_v16 = vld [vmem:[#allocation2 + $0x430] sm:$0xf] }
 0x296   :  { %5421 = vmatmul.bf16.gmra.mxu3 %v13641_v9  ;;  %v12339_v9 = vld [vmem:[#allocation2 + $0x3e4] sm:$0xf0] }
 0x297   :  { %5372 = vmatmul.bf16.gmra.mxu2 %v13639_v8  ;;  %v12330_v8 = vld [vmem:[#allocation2 + $0x3a4] sm:$0xf]  ;;  %5493 = vmatpush.bf16.msrb.mxu1 %v10253_v41  ;;  %v14173_v40 = vor.u32 %v12339_v9, %v9784_v22  ;;  %v12348_v41 = vld [vmem:[#allocation2 + $0x434] sm:$0xf]  ;;  %v9858_v22 = vld [vmem:[#allocation2 + $0x478] sm:$0xf0] }
 0x298   :  { %v14175_v30 = vor.u32 %v12330_v8, %v9786_v33 }
 0x299   :  { %v5226_v59 = vpop.f32.mrf.mxu3  ;;  %v5081_v63 = vpop.f32.mrf.mxu0  ;;  %17026 = vst [vmem:[#allocation163_spill] sm:$0xff] %v14173_v40 }
 0x29a   :  { %v5177_v14 = vpop.f32.mrf.mxu2  ;;  %v5082_v25 = vadd.f32 %v5081_v63, %v14062_v18  ;;  %v5130_v37 = vpop.f32.mrf.mxu1  ;;  %17027 = vst [vmem:[#allocation164_spill] sm:$0xff] %v14175_v30 }
 0x29b   :  { %v5178_v13 = vadd.f32 %v5177_v14, %v5129_v50 }
 0x29c   :  { %v5131_v28 = vadd.f32 %v5130_v37, %v5082_v25 }
 0x29d   :  { %v14171_v1 = vadd.f32 %v5226_v59, %v5178_v13 }
 0x2a1   :  { %v5228_v35 = vpop.f32.mrf.mxu3  ;;  %v5084_v18 = vpop.f32.mrf.mxu0 }
 0x2a2   :  { %v5179_v50 = vpop.f32.mrf.mxu2  ;;  %v5085_v14 = vadd.f32 %v5084_v18, %v14069_v6  ;;  %v5133_v15 = vpop.f32.mrf.mxu1 }
 0x2a3   :  { %v5180_v53 = vadd.f32 %v5179_v50, %v5131_v28  ;;  %v12357_v28 = vld [vmem:[#allocation2 + $0x474] sm:$0xf0] }
 0x2a4   :  { %v5134_v13 = vadd.f32 %v5133_v15, %v5085_v14  ;;  %5279 = vmatmul.bf16.gmra.mxu0 %v14173_v40  ;;  %5328 = vmatmul.bf16.gmra.mxu1 %v14175_v30  ;;  %v14187_v50 = vor.u32 %v12357_v28, %v9856_v16  ;;  %v14189_v14 = vor.u32 %v12348_v41, %v9858_v22  ;;  %v12642_v28 = vld [vmem:[#allocation5 + $0x8e4] sm:$0xf]  ;;  %v11002_v41 = vld [vmem:[#allocation5 + $0x8f0] sm:$0xf0] }
 0x2a5   :  { %v14178_v47 = vadd.f32 %v5228_v35, %v5180_v53  ;;  %v12578_v22 = vld [vmem:[#allocation5 + $0x6e4] sm:$0xf] }
 0x2a6   :  { %5426 = vmatmul.bf16.gmra.mxu3 %v13653_v45  ;;  %17028 = vst [vmem:[#allocation165_spill] sm:$0xff] %v14187_v50 }
 0x2a7   :  { %5377 = vmatmul.bf16.gmra.mxu2 %v13651_v44  ;;  %17029 = vst [vmem:[#allocation166_spill] sm:$0xff] %v14189_v14 }
 0x2a9   :  { %v5231_v63 = vpop.f32.mrf.mxu3  ;;  %v5086_v25 = vpop.f32.mrf.mxu0 }
 0x2aa   :  { %v5182_v9 = vpop.f32.mrf.mxu2  ;;  %v5087_v8 = vadd.f32 %v5086_v25, %v14080_v4  ;;  %v5135_v37 = vpop.f32.mrf.mxu1 }
 0x2ab   :  { %v5183_v59 = vadd.f32 %v5182_v9, %v5134_v13 }
 0x2ac   :  { %v5136_v56 = vadd.f32 %v5135_v37, %v5087_v8 }
 0x2ad   :  { %v14185_v6 = vadd.f32 %v5231_v63, %v5183_v59 }
 0x2b1   :  { %v5233_v35 = vpop.f32.mrf.mxu3  ;;  %v5089_v18 = vpop.f32.mrf.mxu0 }
 0x2b2   :  { %v5184_v33 = vpop.f32.mrf.mxu2  ;;  %v5090_v15 = vadd.f32 %v5089_v18, %v14087_v31  ;;  %v5138_v13 = vpop.f32.mrf.mxu1  ;;  %v11130_v18 = vld [vmem:[#allocation5 + $0x9f0] sm:$0xf0] }
 0x2b3   :  { %v5185_v53 = vadd.f32 %v5184_v33, %v5136_v56  ;;  %v11005_v33 = vor.u32 %v12642_v28, %v11002_v41  ;;  %v12638_v28 = vld [vmem:[#allocation5 + $0x8c4] sm:$0xf]  ;;  %v10986_v41 = vld [vmem:[#allocation5 + $0x8d0] sm:$0xf0] }
 0x2b4   :  { %v5139_v9 = vadd.f32 %v5138_v13, %v5090_v15  ;;  %5284 = vmatmul.bf16.gmra.mxu0 %v14187_v50  ;;  %5333 = vmatmul.bf16.gmra.mxu1 %v14189_v14 }
 0x2b5   :  { %v14192_v4 = vadd.f32 %v5233_v35, %v5185_v53  ;;  %v10746_v53 = vld [vmem:[#allocation5 + $0x6f0] sm:$0xf0]  ;;  %v12674_v35 = vld [vmem:[#allocation5 + $0x9e4] sm:$0xf]  ;;  %5731 = vmatpush.bf16.msra.mxu2 %v11005_v33  ;;  %v10989_v33 = vor.u32 %v12638_v28, %v10986_v41 }
 0x2b6   :  { %5431 = vmatmul.bf16.gmra.mxu3 %v13665_v21  ;;  %v10749_v13 = vor.u32 %v12578_v22, %v10746_v53  ;;  %v11133_v21 = vor.u32 %v12674_v35, %v11130_v18  ;;  %v12574_v22 = vld [vmem:[#allocation5 + $0x6c4] sm:$0xf]  ;;  %v10730_v53 = vld [vmem:[#allocation5 + $0x6d0] sm:$0xf0] }
 0x2b7   :  { %5382 = vmatmul.bf16.gmra.mxu2 %v13663_v20  ;;  %v12610_v20 = vld [vmem:[#allocation5 + $0x7e4] sm:$0xf]  ;;  %v11114_v18 = vld [vmem:[#allocation5 + $0x9d0] sm:$0xf0] }
 0x2b8   :  { %5633 = vmatpush.bf16.msra.mxu0 %v10749_v13  ;;  %5780 = vmatpush.bf16.msra.mxu3 %v11133_v21  ;;  %v12670_v35 = vld [vmem:[#allocation5 + $0x9c4] sm:$0xf]  ;;  %v10733_v13 = vor.u32 %v12574_v22, %v10730_v53 }
 0x2b9   :  { %v5236_v25 = vpop.f32.mrf.mxu3  ;;  %v5091_v8 = vpop.f32.mrf.mxu0  ;;  %5732 = vmatpush.bf16.msra.mxu2 %v10989_v33 }
 0x2ba   :  { %v5187_v59 = vpop.f32.mrf.mxu2  ;;  %v5092_v37 = vadd.f32 %v5091_v8, %v14094_v55  ;;  %v5140_v56 = vpop.f32.mrf.mxu1 }
 0x2bb   :  { %v5188_v63 = vadd.f32 %v5187_v59, %v5139_v9  ;;  %v10874_v9 = vld [vmem:[#allocation5 + $0x7f0] sm:$0xf0] }
 0x2bc   :  { %v5141_v16 = vadd.f32 %v5140_v56, %v5092_v37  ;;  %v10877_v55 = vor.u32 %v12610_v20, %v10874_v9  ;;  %v11117_v9 = vor.u32 %v12670_v35, %v11114_v18  ;;  %5634 = vmatpush.bf16.msra.mxu0 %v10733_v13  ;;  %v12634_v35 = vld [vmem:[#allocation5 + $0x8a4] sm:$0xf]  ;;  %v10970_v18 = vld [vmem:[#allocation5 + $0x8b0] sm:$0xf0] }
 0x2bd   :  { %v14199_v31 = vadd.f32 %v5236_v25, %v5188_v63  ;;  %v12570_v13 = vld [vmem:[#allocation5 + $0x6a4] sm:$0xf] }
 0x2be   :  { %5682 = vmatpush.bf16.msra.mxu1 %v10877_v55  ;;  %v10858_v55 = vld [vmem:[#allocation5 + $0x7d0] sm:$0xf0]  ;;  %5781 = vmatpush.bf16.msra.mxu3 %v11117_v9 }
 0x2bf   :  { %v10714_v9 = vld [vmem:[#allocation5 + $0x6b0] sm:$0xf0] }
 0x2c1   :  { %v5238_v45 = vpop.f32.mrf.mxu3  ;;  %v5250_v44 = vpop.f32.mrf.mxu0 }
 0x2c2   :  { %v5189_v15 = vpop.f32.mrf.mxu2  ;;  %v5251_v63 = vadd.f32 %v5250_v44, %v14101_v34  ;;  %v5299_v25 = vpop.f32.mrf.mxu1 }
 0x2c3   :  { %v5190_v59 = vadd.f32 %v5189_v15, %v5141_v16 }
 0x2c4   :  { %v14204_v37 = vadd.f32 %v5299_v25, %v5251_v63  ;;  %5445 = vmatmul.bf16.vlgmr.msrb.gmra.mxu0 %v13583_v54  ;;  %5494 = vmatmul.bf16.vlgmr.msrb.gmra.mxu1 %v13585_v57 }
 0x2c5   :  { %v14202_v8 = vadd.f32 %v5238_v45, %v5190_v59  ;;  %v12606_v59 = vld [vmem:[#allocation5 + $0x7c4] sm:$0xf] }
 0x2c6   :  { %17030 = vst [vmem:[#allocation167_spill] sm:$0xff] %v14204_v37  ;;  %5592 = vmatmul.bf16.vlgmr.msrb.gmra.mxu3 %v13677_v2  ;;  %v12594_v37 = vld [vmem:[#allocation5 + $0x764] sm:$0xf]  ;;  %v10794_v2 = vld [vmem:[#allocation5 + $0x750] sm:$0xf0] }
 0x2c7   :  { %5543 = vmatmul.bf16.vlgmr.msrb.gmra.mxu2 %v13675_v0  ;;  %v7996_v0 = vld [vmem:[#allocation8 + $0x50] sm:$0xff] }
 0x2c9   :  { %v5397_v20 = vpop.f32.mrf.mxu3  ;;  %v5252_v16 = vpop.f32.mrf.mxu0 }
 0x2ca   :  { %v5348_v56 = vpop.f32.mrf.mxu2  ;;  %v5253_v21 = vadd.f32 %v5252_v16, %v14108_v60  ;;  %v5301_v45 = vpop.f32.mrf.mxu1 }
 0x2cb   :  { %v14210_v44 = vadd.f32 %v5397_v20, %v5348_v56  ;;  %v10861_v56 = vor.u32 %v12606_v59, %v10858_v55  ;;  %v12666_v59 = vld [vmem:[#allocation5 + $0x9a4] sm:$0xf] }
 0x2cc   :  { %v14213_v34 = vadd.f32 %v5301_v45, %v5253_v21 }
 0x2cd   :  { %5683 = vmatpush.bf16.msra.mxu1 %v10861_v56  ;;  %v12602_v56 = vld [vmem:[#allocation5 + $0x7a4] sm:$0xf] }
 0x2ce   :  { %17031 = vst [vmem:[#allocation168_spill] sm:$0xff] %v14213_v34 }
 0x2d1   :  { %v5399_v63 = vpop.f32.mrf.mxu3  ;;  %v5255_v25 = vpop.f32.mrf.mxu0 }
 0x2d2   :  { %v5350_v15 = vpop.f32.mrf.mxu2  ;;  %v5256_v20 = vadd.f32 %v5255_v25, %v14115_v38  ;;  %v5304_v16 = vpop.f32.mrf.mxu1  ;;  %v11098_v25 = vld [vmem:[#allocation5 + $0x9b0] sm:$0xf0] }
 0x2d3   :  { %v14215_v60 = vadd.f32 %v5399_v63, %v5350_v15  ;;  %v10973_v15 = vor.u32 %v12634_v35, %v10970_v18  ;;  %v10717_v63 = vor.u32 %v12570_v13, %v10714_v9  ;;  %v17035_v35 = vld [vmem:[#allocation64_spill] sm:$0xff] }
 0x2d4   :  { %v14218_v21 = vadd.f32 %v5304_v16, %v5256_v20  ;;  %5450 = vmatmul.bf16.gmra.mxu0 %v13595_v26  ;;  %5499 = vmatmul.bf16.gmra.mxu1 %v13597_v27  ;;  %v10842_v20 = vld [vmem:[#allocation5 + $0x7b0] sm:$0xf0] }
 0x2d5   :  { %5733 = vmatpush.bf16.msra.mxu2 %v10973_v15  ;;  %5635 = vmatpush.bf16.msra.mxu0 %v10717_v63  ;;  %v10954_v63 = vld [vmem:[#allocation5 + $0x890] sm:$0xf0] }
 0x2d6   :  { %17032 = vst [vmem:[#allocation169_spill] sm:$0xff] %v14218_v21  ;;  %5597 = vmatmul.bf16.gmra.mxu3 %v13691_v19  ;;  %v17045_v19 = vld [vmem:[#allocation42_spill] sm:$0xff] }
 0x2d7   :  { %5548 = vmatmul.bf16.gmra.mxu2 %v13689_v7 }
 0x2d9   :  { %v5402_v28 = vpop.f32.mrf.mxu3  ;;  %v5257_v41 = vpop.f32.mrf.mxu0 }
 0x2da   :  { %v5353_v45 = vpop.f32.mrf.mxu2  ;;  %v5258_v38 = vadd.f32 %v5257_v41, %v14122_v29  ;;  %v5306_v33 = vpop.f32.mrf.mxu1 }
 0x2db   :  { %v14224_v22 = vadd.f32 %v5402_v28, %v5353_v45  ;;  %v11101_v45 = vor.u32 %v12666_v59, %v11098_v25  ;;  %v10845_v28 = vor.u32 %v12602_v56, %v10842_v20  ;;  %v12566_v56 = vld [vmem:[#allocation5 + $0x684] sm:$0xf]  ;;  %v10698_v20 = vld [vmem:[#allocation5 + $0x690] sm:$0xf0] }
 0x2dc   :  { %v14227_v53 = vadd.f32 %v5306_v33, %v5258_v38 }
 0x2dd   :  { %5782 = vmatpush.bf16.msra.mxu3 %v11101_v45  ;;  %5684 = vmatpush.bf16.msra.mxu1 %v10845_v28  ;;  %v10701_v28 = vor.u32 %v12566_v56, %v10698_v20  ;;  %v17040_v56 = vld [vmem:[#allocation67_spill] sm:$0xff]  ;;  %v17041_v20 = vld [vmem:[#allocation68_spill] sm:$0xff] }
 0x2de   :  { %17033 = vst [vmem:[#allocation170_spill] sm:$0xff] %v14227_v53 }
 0x2df   :  { %5636 = vmatpush.bf16.msra.mxu0 %v10701_v28  ;;  %v12626_v28 = vld [vmem:[#allocation5 + $0x864] sm:$0xf] }
 0x2e1   :  { %v5404_v16 = vpop.f32.mrf.mxu3  ;;  %v5260_v21 = vpop.f32.mrf.mxu0 }
 0x2e2   :  { %v5355_v55 = vpop.f32.mrf.mxu2  ;;  %v5261_v41 = vadd.f32 %v5260_v21, %v14129_v58  ;;  %v5309_v38 = vpop.f32.mrf.mxu1 }
 0x2e3   :  { %v14229_v29 = vadd.f32 %v5404_v16, %v5355_v55  ;;  %v12630_v55 = vld [vmem:[#allocation5 + $0x884] sm:$0xf] }
 0x2e4   :  { %v14232_v33 = vadd.f32 %v5309_v38, %v5261_v41  ;;  %5455 = vmatmul.bf16.gmra.mxu0 %v13607_v51  ;;  %5504 = vmatmul.bf16.gmra.mxu1 %v13609_v52  ;;  %v10957_v25 = vor.u32 %v12630_v55, %v10954_v63  ;;  %v12662_v16 = vld [vmem:[#allocation5 + $0x984] sm:$0xf]  ;;  %v11082_v41 = vld [vmem:[#allocation5 + $0x990] sm:$0xf0]  ;;  %v17039_v63 = vld [vmem:[#allocation38_spill] sm:$0xff] }
 0x2e5   :  { %v12598_v38 = vld [vmem:[#allocation5 + $0x784] sm:$0xf]  ;;  %v17038_v55 = vld [vmem:[#allocation37_spill] sm:$0xff] }
 0x2e6   :  { %17034 = vst [vmem:[#allocation171_spill] sm:$0xff] %v14232_v33  ;;  %5602 = vmatmul.bf16.gmra.mxu3 %v17035_v35  ;;  %v10826_v33 = vld [vmem:[#allocation5 + $0x790] sm:$0xf0]  ;;  %5734 = vmatpush.bf16.msra.mxu2 %v10957_v25 }
 0x2e7   :  { %5553 = vmatmul.bf16.gmra.mxu2 %v13705_v36  ;;  %v17044_v36 = vld [vmem:[#allocation41_spill] sm:$0xff] }
 0x2e9   :  { %v5407_v15 = vpop.f32.mrf.mxu3  ;;  %v5262_v13 = vpop.f32.mrf.mxu0 }
 0x2ea   :  { %v5358_v18 = vpop.f32.mrf.mxu2  ;;  %v5263_v58 = vadd.f32 %v5262_v13, %v14136_v62  ;;  %v5311_v21 = vpop.f32.mrf.mxu1 }
 0x2eb   :  { %v14238_v9 = vadd.f32 %v5407_v15, %v5358_v18  ;;  %v11085_v18 = vor.u32 %v12662_v16, %v11082_v41  ;;  %v10829_v15 = vor.u32 %v12598_v38, %v10826_v33  ;;  %v10938_v41 = vld [vmem:[#allocation5 + $0x870] sm:$0xf0] }
 0x2ec   :  { %v14241_v59 = vadd.f32 %v5311_v21, %v5263_v58  ;;  %v10941_v38 = vor.u32 %v12626_v28, %v10938_v41  ;;  %v8002_v41 = vld [vmem:[#allocation10] sm:$0xff] }
 0x2ed   :  { %5783 = vmatpush.bf16.msra.mxu3 %v11085_v18  ;;  %5685 = vmatpush.bf16.msra.mxu1 %v10829_v15  ;;  %v12562_v18 = vld [vmem:[#allocation5 + $0x664] sm:$0xf]  ;;  %v10682_v15 = vld [vmem:[#allocation5 + $0x670] sm:$0xf0] }
 0x2ee   :  { %17036 = vst [vmem:[#allocation172_spill] sm:$0xff] %v14241_v59  ;;  %v11066_v59 = vld [vmem:[#allocation5 + $0x970] sm:$0xf0]  ;;  %5735 = vmatpush.bf16.msra.mxu2 %v10941_v38  ;;  %v17046_v38 = vld [vmem:[#allocation71_spill] sm:$0xff] }
 0x2f1   :  { %v5409_v53 = vpop.f32.mrf.mxu3  ;;  %v5265_v34 = vpop.f32.mrf.mxu0 }
 0x2f2   :  { %v5360_v45 = vpop.f32.mrf.mxu2  ;;  %v5266_v13 = vadd.f32 %v5265_v34, %v14143_v32  ;;  %v5314_v58 = vpop.f32.mrf.mxu1 }
 0x2f3   :  { %v14243_v62 = vadd.f32 %v5409_v53, %v5360_v45 }
 0x2f4   :  { %v14246_v21 = vadd.f32 %v5314_v58, %v5266_v13  ;;  %5460 = vmatmul.bf16.gmra.mxu0 %v17038_v55  ;;  %5509 = vmatmul.bf16.gmra.mxu1 %v17039_v63  ;;  %v12658_v13 = vld [vmem:[#allocation5 + $0x964] sm:$0xf] }
 0x2f6   :  { %17037 = vst [vmem:[#allocation173_spill] sm:$0xff] %v14246_v21  ;;  %5607 = vmatmul.bf16.gmra.mxu3 %v17041_v20  ;;  %v10685_v21 = vor.u32 %v12562_v18, %v10682_v15  ;;  %v10810_v20 = vld [vmem:[#allocation5 + $0x770] sm:$0xf0] }
 0x2f7   :  { %5558 = vmatmul.bf16.gmra.mxu2 %v17040_v56  ;;  %v7985_v56 = vld [vmem:[#allocation7] sm:$0xf] }
 0x2f8   :  { %5637 = vmatpush.bf16.msra.mxu0 %v10685_v21  ;;  %v14260_v18 = vperm.slane %v7985_v56, 0 }
 0x2f9   :  { %v5412_v33 = vpop.f32.mrf.mxu3  ;;  %v5267_v53 = vpop.f32.mrf.mxu0 }
 0x2fa   :  { %v5363_v25 = vpop.f32.mrf.mxu2  ;;  %v5268_v32 = vadd.f32 %v5267_v53, %v14150_v10  ;;  %v5316_v34 = vpop.f32.mrf.mxu1  ;;  %v11069_v10 = vor.u32 %v12658_v13, %v11066_v59  ;;  %v10813_v53 = vor.u32 %v12594_v37, %v10810_v20  ;;  %17043 = vst [vmem:[#allocation175_spill] sm:$0xff] %v14260_v18  ;;  %v7995_v13 = vld [vmem:[#allocation8 + $0x48] sm:$0xff] }
 0x2fb   :  { %v14252_v16 = vadd.f32 %v5412_v33, %v5363_v25  ;;  %v7994_v33 = vld [vmem:[#allocation8 + $0x40] sm:$0xff] }
 0x2fc   :  { %v14255_v45 = vadd.f32 %v5316_v34, %v5268_v32  ;;  %5784 = vmatpush.bf16.msra.mxu3 %v11069_v10  ;;  %5686 = vmatpush.bf16.msra.mxu1 %v10813_v53 }
 0x2fe   :  { %17042 = vst [vmem:[#allocation174_spill] sm:$0xff] %v14255_v45  ;;  %v8051_v45 = vmul.f32 %v8002_v41, %v7994_v33  ;;  %v8003_v33 = vld [vmem:[#allocation10 + $0x8] sm:$0xff]  ;;  %v10922_v41 = vld [vmem:[#allocation5 + $0x850] sm:$0xf0] }
 0x2ff   :  { %v8052_v53 = vmul.f32 %v8003_v33, %v7995_v13 }
 0x301   :  { %v5414_v35 = vpop.f32.mrf.mxu3  ;;  %v5270_v25 = vpop.f32.mrf.mxu0 }
 0x302   :  { %v5365_v58 = vpop.f32.mrf.mxu2  ;;  %v5271_v34 = vadd.f32 %v5270_v25, %v14157_v61  ;;  %v5319_v28 = vpop.f32.mrf.mxu1 }
 0x303   :  { %v14257_v32 = vadd.f32 %v5414_v35, %v5365_v58  ;;  %v17047_v35 = vld [vmem:[#allocation72_spill] sm:$0xff] }
 0x304   :  { %v5320_v15 = vadd.f32 %v5319_v28, %v5271_v34  ;;  %5465 = vmatmul.bf16.gmra.mxu0 %v17044_v36  ;;  %5514 = vmatmul.bf16.gmra.mxu1 %v17045_v19  ;;  %v12622_v28 = vld [vmem:[#allocation5 + $0x844] sm:$0xf]  ;;  %v17056_v36 = vld [vmem:[#allocation49_spill] sm:$0xff] }
 0x306   :  { %v8035_v37 = vadd.f32 %v14260_v18, %v5320_v15  ;;  %5612 = vmatmul.bf16.gmra.mxu3 %v17047_v35  ;;  %v10925_v15 = vor.u32 %v12622_v28, %v10922_v41  ;;  %v12558_v35 = vld [vmem:[#allocation5 + $0x644] sm:$0xf]  ;;  %v8004_v28 = vld [vmem:[#allocation10 + $0x10] sm:$0xff]  ;;  %v17051_v41 = vld [vmem:[#allocation46_spill] sm:$0xff] }
 0x307   :  { %5563 = vmatmul.bf16.gmra.mxu2 %v17046_v38 }
 0x308   :  { %v14267_v61 = vadd.f32 %v8051_v45, %v8035_v37  ;;  %v10666_v45 = vld [vmem:[#allocation5 + $0x650] sm:$0xf0]  ;;  %v12654_v37 = vld [vmem:[#allocation5 + $0x944] sm:$0xf]  ;;  %5736 = vmatpush.bf16.msra.mxu2 %v10925_v15 }
 0x309   :  { %v5417_v21 = vpop.f32.mrf.mxu3  ;;  %v5272_v20 = vpop.f32.mrf.mxu0  ;;  %v10669_v7 = vor.u32 %v12558_v35, %v10666_v45  ;;  %v8053_v35 = vmul.f32 %v8004_v28, %v7996_v0  ;;  %v17052_v45 = vld [vmem:[#allocation75_spill] sm:$0xff] }
 0x30a   :  { %17048 = vst [vmem:[#allocation176_spill] sm:$0xff] %v14267_v61  ;;  %v5368_v59 = vpop.f32.mrf.mxu2  ;;  %v5273_v58 = vadd.f32 %v5272_v20, %v14164_v11  ;;  %v5321_v25 = vpop.f32.mrf.mxu1  ;;  %v12554_v28 = vld [vmem:[#allocation5 + $0x624] sm:$0xf] }
 0x30b   :  { %v14269_v56 = vadd.f32 %v5417_v21, %v5368_v59  ;;  %v11050_v59 = vld [vmem:[#allocation5 + $0x950] sm:$0xf0]  ;;  %v12590_v21 = vld [vmem:[#allocation5 + $0x744] sm:$0xf]  ;;  %5638 = vmatpush.bf16.msra.mxu0 %v10669_v7 }
 0x30c   :  { %v5322_v10 = vadd.f32 %v5321_v25, %v5273_v58  ;;  %v11053_v13 = vor.u32 %v12654_v37, %v11050_v59  ;;  %v10797_v58 = vor.u32 %v12590_v21, %v10794_v2  ;;  %v17053_v2 = vld [vmem:[#allocation76_spill] sm:$0xff]  ;;  %v7997_v59 = vld [vmem:[#allocation8 + $0x58] sm:$0xff] }
 0x30e   :  { %v8036_v34 = vadd.f32 %v14260_v18, %v5322_v10  ;;  %5785 = vmatpush.bf16.msra.mxu3 %v11053_v13  ;;  %5687 = vmatpush.bf16.msra.mxu1 %v10797_v58 }
 0x310   :  { %v14273_v61 = vadd.f32 %v8052_v53, %v8036_v34  ;;  %v17050_v34 = vld [vmem:[#allocation45_spill] sm:$0xff] }
 0x311   :  { %v5419_v11 = vpop.f32.mrf.mxu3  ;;  %v5275_v20 = vpop.f32.mrf.mxu0 }
 0x312   :  { %17049 = vst [vmem:[#allocation177_spill] sm:$0xff] %v14273_v61  ;;  %v5370_v38 = vpop.f32.mrf.mxu2  ;;  %v5276_v33 = vadd.f32 %v5275_v20, %v14171_v1  ;;  %v5324_v10 = vpop.f32.mrf.mxu1  ;;  %v8005_v20 = vld [vmem:[#allocation10 + $0x18] sm:$0xff]  ;;  %v10650_v61 = vld [vmem:[#allocation5 + $0x630] sm:$0xf0] }
 0x313   :  { %v14275_v25 = vadd.f32 %v5419_v11, %v5370_v38  ;;  %v8054_v58 = vmul.f32 %v8005_v20, %v7997_v59  ;;  %v12614_v59 = vld [vmem:[#allocation5 + $0x804] sm:$0xf] }
 0x314   :  { %v5325_v53 = vadd.f32 %v5324_v10, %v5276_v33  ;;  %5470 = vmatmul.bf16.gmra.mxu0 %v17050_v34  ;;  %5519 = vmatmul.bf16.gmra.mxu1 %v17051_v41  ;;  %v12618_v33 = vld [vmem:[#allocation5 + $0x824] sm:$0xf]  ;;  %v10906_v10 = vld [vmem:[#allocation5 + $0x830] sm:$0xf0] }
 0x315   :  { %v12586_v41 = vld [vmem:[#allocation5 + $0x724] sm:$0xf] }
 0x316   :  { %v8037_v15 = vadd.f32 %v14260_v18, %v5325_v53  ;;  %5617 = vmatmul.bf16.gmra.mxu3 %v17053_v2  ;;  %v10909_v53 = vor.u32 %v12618_v33, %v10906_v10  ;;  %v12650_v2 = vld [vmem:[#allocation5 + $0x924] sm:$0xf] }
 0x317   :  { %5568 = vmatmul.bf16.gmra.mxu2 %v17052_v45  ;;  %v12550_v20 = vld [vmem:[#allocation5 + $0x604] sm:$0xf] }
 0x318   :  { %v14283_v38 = vadd.f32 %v8053_v35, %v8037_v15  ;;  %v11034_v35 = vld [vmem:[#allocation5 + $0x930] sm:$0xf0]  ;;  %5737 = vmatpush.bf16.msra.mxu2 %v10909_v53 }
 0x319   :  { %v5422_v37 = vpop.f32.mrf.mxu3  ;;  %v5277_v7 = vpop.f32.mrf.mxu0  ;;  %v11037_v45 = vor.u32 %v12650_v2, %v11034_v35  ;;  %v11018_v2 = vld [vmem:[#allocation5 + $0x910] sm:$0xf0]  ;;  %v12582_v35 = vld [vmem:[#allocation5 + $0x704] sm:$0xf] }
 0x31a   :  { %17054 = vst [vmem:[#allocation178_spill] sm:$0xff] %v14283_v38  ;;  %v5373_v1 = vpop.f32.mrf.mxu2  ;;  %v5278_v0 = vadd.f32 %v5277_v7, %v14178_v47  ;;  %v5326_v11 = vpop.f32.mrf.mxu1  ;;  %v10653_v38 = vor.u32 %v12554_v28, %v10650_v61  ;;  %v12646_v61 = vld [vmem:[#allocation5 + $0x904] sm:$0xf] }
 0x31b   :  { %v14285_v21 = vadd.f32 %v5422_v37, %v5373_v1  ;;  %v10778_v1 = vld [vmem:[#allocation5 + $0x730] sm:$0xf0]  ;;  %v7998_v37 = vld [vmem:[#allocation8 + $0x60] sm:$0xff]  ;;  %5786 = vmatpush.bf16.msra.mxu3 %v11037_v45  ;;  %v11021_v45 = vor.u32 %v12646_v61, %v11018_v2  ;;  %v8007_v2 = vld [vmem:[#allocation10 + $0x28] sm:$0xff] }
 0x31c   :  { %v5327_v13 = vadd.f32 %v5326_v11, %v5278_v0  ;;  %v10781_v47 = vor.u32 %v12586_v41, %v10778_v1  ;;  %5639 = vmatpush.bf16.msra.mxu0 %v10653_v38  ;;  %v10890_v11 = vld [vmem:[#allocation5 + $0x810] sm:$0xf0]  ;;  %v8006_v38 = vld [vmem:[#allocation10 + $0x20] sm:$0xff] }
 0x31d   :  { %v10893_v34 = vor.u32 %v12614_v59, %v10890_v11  ;;  %v8055_v19 = vmul.f32 %v8006_v38, %v7998_v37  ;;  %v17058_v59 = vld [vmem:[#allocation79_spill] sm:$0xff]  ;;  %v17059_v11 = vld [vmem:[#allocation80_spill] sm:$0xff]  ;;  %v8000_v38 = vld [vmem:[#allocation8 + $0x70] sm:$0xff] }
 0x31e   :  { %v8038_v15 = vadd.f32 %v14260_v18, %v5327_v13  ;;  %5688 = vmatpush.bf16.msra.mxu1 %v10781_v47  ;;  %v10634_v13 = vld [vmem:[#allocation5 + $0x610] sm:$0xf0]  ;;  %v17057_v47 = vld [vmem:[#allocation50_spill] sm:$0xff] }
 0x31f   :  { %5738 = vmatpush.bf16.msra.mxu2 %v10893_v34  ;;  %5787 = vmatpush.bf16.msra.mxu3 %v11021_v45 }
 0x320   :  { %v14289_v7 = vadd.f32 %v8054_v58, %v8038_v15  ;;  %v10637_v58 = vor.u32 %v12550_v20, %v10634_v13  ;;  %v10762_v15 = vld [vmem:[#allocation5 + $0x710] sm:$0xf0] }
 0x321   :  { %v5424_v33 = vpop.f32.mrf.mxu3  ;;  %v5280_v10 = vpop.f32.mrf.mxu0  ;;  %v10765_v1 = vor.u32 %v12582_v35, %v10762_v15 }
 0x322   :  { %17055 = vst [vmem:[#allocation179_spill] sm:$0xff] %v14289_v7  ;;  %v5375_v0 = vpop.f32.mrf.mxu2  ;;  %v5281_v53 = vadd.f32 %v5280_v10, %v14185_v6  ;;  %v5329_v41 = vpop.f32.mrf.mxu1  ;;  %5640 = vmatpush.bf16.msra.mxu0 %v10637_v58  ;;  %v7999_v10 = vld [vmem:[#allocation8 + $0x68] sm:$0xff] }
 0x323   :  { %v14291_v28 = vadd.f32 %v5424_v33, %v5375_v0  ;;  %5689 = vmatpush.bf16.msra.mxu1 %v10765_v1 }
 0x324   :  { %v5330_v7 = vadd.f32 %v5329_v41, %v5281_v53  ;;  %5475 = vmatmul.bf16.gmra.mxu0 %v17056_v36  ;;  %5524 = vmatmul.bf16.gmra.mxu1 %v17057_v47  ;;  %v8056_v41 = vmul.f32 %v8007_v2, %v7999_v10  ;;  %v17064_v10 = vld [vmem:[#allocation83_spill] sm:$0xff]  ;;  %v17065_v2 = vld [vmem:[#allocation84_spill] sm:$0xff]  ;;  %v11626_v36 = vld [vmem:[#allocation5 + $0xdd0] sm:$0xf0] }
 0x326   :  { %v8039_v0 = vadd.f32 %v14260_v18, %v5330_v7  ;;  %5622 = vmatmul.bf16.gmra.mxu3 %v17059_v11 }
 0x327   :  { %5573 = vmatmul.bf16.gmra.mxu2 %v17058_v59 }
 0x328   :  { %v14299_v6 = vadd.f32 %v8055_v19, %v8039_v0 }
 0x329   :  { %v5427_v20 = vpop.f32.mrf.mxu3  ;;  %v5282_v33 = vpop.f32.mrf.mxu0 }
 0x32a   :  { %17060 = vst [vmem:[#allocation180_spill] sm:$0xff] %v14299_v6  ;;  %v5378_v34 = vpop.f32.mrf.mxu2  ;;  %v5283_v13 = vadd.f32 %v5282_v33, %v14192_v4  ;;  %v5331_v61 = vpop.f32.mrf.mxu1  ;;  %v17062_v33 = vld [vmem:[#allocation53_spill] sm:$0xff] }
 0x32b   :  { %v14301_v37 = vadd.f32 %v5427_v20, %v5378_v34  ;;  %v8008_v34 = vld [vmem:[#allocation10 + $0x30] sm:$0xff] }
 0x32c   :  { %v5332_v53 = vadd.f32 %v5331_v61, %v5283_v13  ;;  %v8057_v4 = vmul.f32 %v8008_v34, %v8000_v38  ;;  %v17063_v13 = vld [vmem:[#allocation54_spill] sm:$0xff]  ;;  %v12738_v34 = vld [vmem:[#allocation5 + $0xbe4] sm:$0xf]  ;;  %v11386_v6 = vld [vmem:[#allocation5 + $0xbf0] sm:$0xf0] }
 0x32d   :  { %v11389_v59 = vor.u32 %v12738_v34, %v11386_v6  ;;  %v11370_v34 = vld [vmem:[#allocation5 + $0xbd0] sm:$0xf0] }
 0x32e   :  { %v8040_v7 = vadd.f32 %v14260_v18, %v5332_v53  ;;  %v12770_v53 = vld [vmem:[#allocation5 + $0xce4] sm:$0xf] }
 0x32f   :  { %5878 = vmatpush.bf16.msrb.mxu1 %v11389_v59 }
 0x330   :  { %v14305_v35 = vadd.f32 %v8056_v41, %v8040_v7  ;;  %v11514_v41 = vld [vmem:[#allocation5 + $0xcf0] sm:$0xf0]  ;;  %v8001_v7 = vld [vmem:[#allocation8 + $0x78] sm:$0xff] }
 0x331   :  { %v5429_v15 = vpop.f32.mrf.mxu3  ;;  %v5285_v19 = vpop.f32.mrf.mxu0 }
 0x332   :  { %17061 = vst [vmem:[#allocation181_spill] sm:$0xff] %v14305_v35  ;;  %v5380_v58 = vpop.f32.mrf.mxu2  ;;  %v5286_v1 = vadd.f32 %v5285_v19, %v14199_v31  ;;  %v5334_v0 = vpop.f32.mrf.mxu1  ;;  %v11258_v31 = vld [vmem:[#allocation5 + $0xaf0] sm:$0xf0]  ;;  %v12802_v19 = vld [vmem:[#allocation5 + $0xde4] sm:$0xf] }
 0x333   :  { %v14307_v45 = vadd.f32 %v5429_v15, %v5380_v58  ;;  %v11517_v58 = vor.u32 %v12770_v53, %v11514_v41  ;;  %v12706_v15 = vld [vmem:[#allocation5 + $0xae4] sm:$0xf] }
 0x334   :  { %v5335_v20 = vadd.f32 %v5334_v0, %v5286_v1  ;;  %5480 = vmatmul.bf16.gmra.mxu0 %v17062_v33  ;;  %5529 = vmatmul.bf16.gmra.mxu1 %v17063_v13  ;;  %v11261_v1 = vor.u32 %v12706_v15, %v11258_v31  ;;  %v11642_v0 = vld [vmem:[#allocation5 + $0xdf0] sm:$0xf0]  ;;  %v12702_v33 = vld [vmem:[#allocation5 + $0xac4] sm:$0xf]  ;;  %v8009_v31 = vld [vmem:[#allocation10 + $0x38] sm:$0xff] }
 0x335   :  { %5927 = vmatpush.bf16.msrb.mxu2 %v11517_v58  ;;  %v11498_v13 = vld [vmem:[#allocation5 + $0xcd0] sm:$0xf0]  ;;  %v12798_v15 = vld [vmem:[#allocation5 + $0xdc4] sm:$0xf]  ;;  %v8058_v6 = vmul.f32 %v8009_v31, %v8001_v7 }
 0x336   :  { %v8041_v61 = vadd.f32 %v14260_v18, %v5335_v20  ;;  %5627 = vmatmul.bf16.gmra.mxu3 %v17065_v2  ;;  %v11645_v20 = vor.u32 %v12802_v19, %v11642_v0  ;;  %v12766_v2 = vld [vmem:[#allocation5 + $0xcc4] sm:$0xf]  ;;  %5829 = vmatpush.bf16.msrb.mxu0 %v11261_v1  ;;  %v11629_v0 = vor.u32 %v12798_v15, %v11626_v36  ;;  %v17068_v36 = vld [vmem:[#allocation57_spill] sm:$0xff] }
 0x337   :  { %5578 = vmatmul.bf16.gmra.mxu2 %v17064_v10  ;;  %v12734_v58 = vld [vmem:[#allocation5 + $0xbc4] sm:$0xf]  ;;  %v11226_v31 = vld [vmem:[#allocation5 + $0xab0] sm:$0xf0] }
 0x338   :  { %v14315_v35 = vadd.f32 %v8057_v4, %v8041_v61  ;;  %v11501_v4 = vor.u32 %v12766_v2, %v11498_v13  ;;  %v11242_v61 = vld [vmem:[#allocation5 + $0xad0] sm:$0xf0]  ;;  %5976 = vmatpush.bf16.msrb.mxu3 %v11645_v20  ;;  %v17069_v20 = vld [vmem:[#allocation58_spill] sm:$0xff]  ;;  %v12698_v15 = vld [vmem:[#allocation5 + $0xaa4] sm:$0xf] }
 0x339   :  { %v5432_v11 = vpop.f32.mrf.mxu3  ;;  %v5287_v10 = vpop.f32.mrf.mxu0 }
 0x33a   :  { %17066 = vst [vmem:[#allocation182_spill] sm:$0xff] %v14315_v35  ;;  %v5383_v38 = vpop.f32.mrf.mxu2  ;;  %v5288_v53 = vadd.f32 %v5287_v10, %v14202_v8  ;;  %v5336_v41 = vpop.f32.mrf.mxu1  ;;  %v11245_v35 = vor.u32 %v12702_v33, %v11242_v61  ;;  %5928 = vmatpush.bf16.msrb.mxu2 %v11501_v4  ;;  %v11482_v4 = vld [vmem:[#allocation5 + $0xcb0] sm:$0xf0] }
 0x33b   :  { %v14317_v47 = vadd.f32 %v5432_v11, %v5383_v38  ;;  %v11373_v11 = vor.u32 %v12734_v58, %v11370_v34  ;;  %v12794_v58 = vld [vmem:[#allocation5 + $0xda4] sm:$0xf] }
 0x33c   :  { %v5337_v19 = vadd.f32 %v5336_v41, %v5288_v53  ;;  %5830 = vmatpush.bf16.msrb.mxu0 %v11245_v35  ;;  %5977 = vmatpush.bf16.msrb.mxu3 %v11629_v0  ;;  %v17070_v53 = vld [vmem:[#allocation87_spill] sm:$0xff]  ;;  %v17071_v35 = vld [vmem:[#allocation88_spill] sm:$0xff]  ;;  %v11610_v0 = vld [vmem:[#allocation5 + $0xdb0] sm:$0xf0] }
 0x33d   :  { %5879 = vmatpush.bf16.msrb.mxu1 %v11373_v11  ;;  %v12762_v41 = vld [vmem:[#allocation5 + $0xca4] sm:$0xf] }
 0x33e   :  { %v8042_v38 = vadd.f32 %v14260_v18, %v5337_v19  ;;  %v11485_v61 = vor.u32 %v12762_v41, %v11482_v4 }
 0x340   :  { %v14321_v8 = vadd.f32 %v8058_v6, %v8042_v38  ;;  %v11229_v6 = vor.u32 %v12698_v15, %v11226_v31  ;;  %5929 = vmatpush.bf16.msrb.mxu2 %v11485_v61  ;;  %v11613_v38 = vor.u32 %v12794_v58, %v11610_v0  ;;  %v17072_v0 = vld [vmem:[#allocation61_spill] sm:$0xff] }
 0x341   :  { %v5434_v10 = vpop.f32.mrf.mxu3  ;;  %v5446_v2 = vpop.f32.mrf.mxu0 }
 0x342   :  { %17067 = vst [vmem:[#allocation183_spill] sm:$0xff] %v14321_v8  ;;  %v5385_v13 = vpop.f32.mrf.mxu2  ;;  %v5447_v33 = vadd.f32 %v5446_v2, %v14210_v44  ;;  %v5495_v1 = vpop.f32.mrf.mxu1  ;;  %5831 = vmatpush.bf16.msrb.mxu0 %v11229_v6  ;;  %5978 = vmatpush.bf16.msrb.mxu3 %v11613_v38  ;;  %v17073_v6 = vld [vmem:[#allocation62_spill] sm:$0xff]  ;;  %v11466_v38 = vld [vmem:[#allocation5 + $0xc90] sm:$0xf0] }
 0x343   :  { %v14323_v59 = vadd.f32 %v5434_v10, %v5385_v13 }
 0x344   :  { %v5496_v7 = vadd.f32 %v5495_v1, %v5447_v33  ;;  %5641 = vmatmul.bf16.vlgmr.msra.gmra.mxu0 %v17068_v36  ;;  %5690 = vmatmul.bf16.vlgmr.msra.gmra.mxu1 %v17069_v20  ;;  %v12730_v33 = vld [vmem:[#allocation5 + $0xba4] sm:$0xf]  ;;  %v11354_v1 = vld [vmem:[#allocation5 + $0xbb0] sm:$0xf0] }
 0x345   :  { %v11357_v4 = vor.u32 %v12730_v33, %v11354_v1  ;;  %v12790_v33 = vld [vmem:[#allocation5 + $0xd84] sm:$0xf] }
 0x346   :  { %5788 = vmatmul.bf16.vlgmr.msra.gmra.mxu3 %v17071_v35 }
 0x347   :  { %5739 = vmatmul.bf16.vlgmr.msra.gmra.mxu2 %v17070_v53  ;;  %5880 = vmatpush.bf16.msrb.mxu1 %v11357_v4  ;;  %v11322_v53 = vld [vmem:[#allocation5 + $0xb70] sm:$0xf0] }
 0x349   :  { %v5593_v34 = vpop.f32.mrf.mxu3  ;;  %v5448_v11 = vpop.f32.mrf.mxu0 }
 0x34a   :  { %v5544_v19 = vpop.f32.mrf.mxu2  ;;  %v5449_v13 = vadd.f32 %v5448_v11, %v14215_v60  ;;  %v5497_v10 = vpop.f32.mrf.mxu1  ;;  %v12758_v11 = vld [vmem:[#allocation5 + $0xc84] sm:$0xf] }
 0x34b   :  { %v5545_v44 = vadd.f32 %v5544_v19, %v5496_v7 }
 0x34c   :  { %v5498_v41 = vadd.f32 %v5497_v10, %v5449_v13  ;;  %v11469_v13 = vor.u32 %v12758_v11, %v11466_v38  ;;  %v11210_v10 = vld [vmem:[#allocation5 + $0xa90] sm:$0xf0] }
 0x34d   :  { %v14331_v2 = vadd.f32 %v5593_v34, %v5545_v44  ;;  %v17074_v44 = vld [vmem:[#allocation91_spill] sm:$0xff]  ;;  %v17075_v34 = vld [vmem:[#allocation92_spill] sm:$0xff]  ;;  %v11338_v11 = vld [vmem:[#allocation5 + $0xb90] sm:$0xf0] }
 0x34e   :  { %5930 = vmatpush.bf16.msrb.mxu2 %v11469_v13 }
 0x351   :  { %v5595_v31 = vpop.f32.mrf.mxu3  ;;  %v5451_v7 = vpop.f32.mrf.mxu0 }
 0x352   :  { %v5546_v8 = vpop.f32.mrf.mxu2  ;;  %v5452_v19 = vadd.f32 %v5451_v7, %v14224_v22  ;;  %v5500_v61 = vpop.f32.mrf.mxu1 }
 0x353   :  { %v5547_v15 = vadd.f32 %v5546_v8, %v5498_v41  ;;  %v12694_v8 = vld [vmem:[#allocation5 + $0xa84] sm:$0xf]  ;;  %v11594_v41 = vld [vmem:[#allocation5 + $0xd90] sm:$0xf0] }
 0x354   :  { %v5501_v60 = vadd.f32 %v5500_v61, %v5452_v19  ;;  %5646 = vmatmul.bf16.gmra.mxu0 %v17072_v0  ;;  %5695 = vmatmul.bf16.gmra.mxu1 %v17073_v6  ;;  %v11213_v22 = vor.u32 %v12694_v8, %v11210_v10  ;;  %v11597_v7 = vor.u32 %v12790_v33, %v11594_v41  ;;  %v17076_v41 = vld [vmem:[#allocation65_spill] sm:$0xff] }
 0x355   :  { %v14334_v58 = vadd.f32 %v5595_v31, %v5547_v15 }
 0x356   :  { %5793 = vmatmul.bf16.gmra.mxu3 %v17075_v34  ;;  %5832 = vmatpush.bf16.msrb.mxu0 %v11213_v22  ;;  %v12726_v34 = vld [vmem:[#allocation5 + $0xb84] sm:$0xf]  ;;  %v17077_v22 = vld [vmem:[#allocation66_spill] sm:$0xff] }
 0x357   :  { %5744 = vmatmul.bf16.gmra.mxu2 %v17074_v44  ;;  %5979 = vmatpush.bf16.msrb.mxu3 %v11597_v7  ;;  %v11341_v44 = vor.u32 %v12726_v34, %v11338_v11  ;;  %v12754_v34 = vld [vmem:[#allocation5 + $0xc64] sm:$0xf]  ;;  %v11194_v7 = vld [vmem:[#allocation5 + $0xa70] sm:$0xf0] }
 0x359   :  { %v5598_v15 = vpop.f32.mrf.mxu3  ;;  %v5453_v31 = vpop.f32.mrf.mxu0  ;;  %5881 = vmatpush.bf16.msrb.mxu1 %v11341_v44  ;;  %v11450_v44 = vld [vmem:[#allocation5 + $0xc70] sm:$0xf0] }
 0x35a   :  { %v5549_v1 = vpop.f32.mrf.mxu2  ;;  %v5454_v19 = vadd.f32 %v5453_v31, %v14229_v29  ;;  %v5502_v61 = vpop.f32.mrf.mxu1  ;;  %v12690_v31 = vld [vmem:[#allocation5 + $0xa64] sm:$0xf] }
 0x35b   :  { %v5550_v4 = vadd.f32 %v5549_v1, %v5501_v60  ;;  %v11197_v11 = vor.u32 %v12690_v31, %v11194_v7 }
 0x35c   :  { %v5503_v38 = vadd.f32 %v5502_v61, %v5454_v19  ;;  %v12786_v19 = vld [vmem:[#allocation5 + $0xd64] sm:$0xf]  ;;  %v11578_v61 = vld [vmem:[#allocation5 + $0xd70] sm:$0xf0] }
 0x35d   :  { %v14341_v18 = vadd.f32 %v5598_v15, %v5550_v4  ;;  %v17078_v4 = vld [vmem:[#allocation95_spill] sm:$0xff]  ;;  %v17079_v15 = vld [vmem:[#allocation96_spill] sm:$0xff]  ;;  %5833 = vmatpush.bf16.msrb.mxu0 %v11197_v11 }
 0x35e   :  { %v17082_v11 = vld [vmem:[#allocation99_spill] sm:$0xff] }
 0x361   :  { %v5600_v10 = vpop.f32.mrf.mxu3  ;;  %v5456_v60 = vpop.f32.mrf.mxu0 }
 0x362   :  { %v5551_v35 = vpop.f32.mrf.mxu2  ;;  %v5457_v1 = vadd.f32 %v5456_v60, %v14238_v9  ;;  %v5505_v13 = vpop.f32.mrf.mxu1 }
 0x363   :  { %v5552_v8 = vadd.f32 %v5551_v35, %v5503_v38  ;;  %v11453_v35 = vor.u32 %v12754_v34, %v11450_v44  ;;  %v11581_v38 = vor.u32 %v12786_v19, %v11578_v61  ;;  %v17080_v61 = vld [vmem:[#allocation69_spill] sm:$0xff] }
 0x364   :  { %v5506_v29 = vadd.f32 %v5505_v13, %v5457_v1  ;;  %5651 = vmatmul.bf16.gmra.mxu0 %v17076_v41  ;;  %5700 = vmatmul.bf16.gmra.mxu1 %v17077_v22 }
 0x365   :  { %v14344_v33 = vadd.f32 %v5600_v10, %v5552_v8  ;;  %5931 = vmatpush.bf16.msrb.mxu2 %v11453_v35  ;;  %5980 = vmatpush.bf16.msrb.mxu3 %v11581_v38  ;;  %v17083_v38 = vld [vmem:[#allocation100_spill] sm:$0xff] }
 0x366   :  { %5798 = vmatmul.bf16.gmra.mxu3 %v17079_v15 }
 0x367   :  { %5749 = vmatmul.bf16.gmra.mxu2 %v17078_v4  ;;  %v12722_v4 = vld [vmem:[#allocation5 + $0xb64] sm:$0xf] }
 0x368   :  { %v11325_v44 = vor.u32 %v12722_v4, %v11322_v53  ;;  %v12750_v53 = vld [vmem:[#allocation5 + $0xc44] sm:$0xf]  ;;  %v11434_v4 = vld [vmem:[#allocation5 + $0xc50] sm:$0xf0] }
 0x369   :  { %v5603_v10 = vpop.f32.mrf.mxu3  ;;  %v5458_v60 = vpop.f32.mrf.mxu0 }
 0x36a   :  { %v5554_v9 = vpop.f32.mrf.mxu2  ;;  %v5459_v1 = vadd.f32 %v5458_v60, %v14243_v62  ;;  %v5507_v13 = vpop.f32.mrf.mxu1  ;;  %5882 = vmatpush.bf16.msrb.mxu1 %v11325_v44  ;;  %v12782_v60 = vld [vmem:[#allocation5 + $0xd44] sm:$0xf] }
 0x36b   :  { %v5555_v8 = vadd.f32 %v5554_v9, %v5506_v29  ;;  %v17081_v9 = vld [vmem:[#allocation70_spill] sm:$0xff] }
 0x36c   :  { %v5508_v34 = vadd.f32 %v5507_v13, %v5459_v1  ;;  %v11562_v1 = vld [vmem:[#allocation5 + $0xd50] sm:$0xf0] }
 0x36d   :  { %v14351_v15 = vadd.f32 %v5603_v10, %v5555_v8  ;;  %v12686_v8 = vld [vmem:[#allocation5 + $0xa44] sm:$0xf]  ;;  %v11178_v10 = vld [vmem:[#allocation5 + $0xa50] sm:$0xf0] }
 0x36e   :  { %v11181_v13 = vor.u32 %v12686_v8, %v11178_v10 }
 0x370   :  { %5834 = vmatpush.bf16.msrb.mxu0 %v11181_v13  ;;  %v17086_v13 = vld [vmem:[#allocation103_spill] sm:$0xff] }
 0x371   :  { %v5605_v31 = vpop.f32.mrf.mxu3  ;;  %v5461_v7 = vpop.f32.mrf.mxu0 }
 0x372   :  { %v5556_v22 = vpop.f32.mrf.mxu2  ;;  %v5462_v29 = vadd.f32 %v5461_v7, %v14252_v16  ;;  %v5510_v19 = vpop.f32.mrf.mxu1 }
 0x373   :  { %v5557_v41 = vadd.f32 %v5556_v22, %v5508_v34  ;;  %v11437_v22 = vor.u32 %v12750_v53, %v11434_v4 }
 0x374   :  { %v5511_v62 = vadd.f32 %v5510_v19, %v5462_v29  ;;  %5656 = vmatmul.bf16.gmra.mxu0 %v17080_v61  ;;  %5705 = vmatmul.bf16.gmra.mxu1 %v17081_v9 }
 0x375   :  { %v14354_v35 = vadd.f32 %v5605_v31, %v5557_v41  ;;  %v11565_v41 = vor.u32 %v12782_v60, %v11562_v1  ;;  %5932 = vmatpush.bf16.msrb.mxu2 %v11437_v22  ;;  %v17084_v1 = vld [vmem:[#allocation73_spill] sm:$0xff] }
 0x376   :  { %5803 = vmatmul.bf16.gmra.mxu3 %v17083_v38  ;;  %v12718_v38 = vld [vmem:[#allocation5 + $0xb44] sm:$0xf] }
 0x377   :  { %5754 = vmatmul.bf16.gmra.mxu2 %v17082_v11  ;;  %5981 = vmatpush.bf16.msrb.mxu3 %v11565_v41  ;;  %v11306_v11 = vld [vmem:[#allocation5 + $0xb50] sm:$0xf0]  ;;  %v17087_v41 = vld [vmem:[#allocation104_spill] sm:$0xff] }
 0x378   :  { %v11309_v4 = vor.u32 %v12718_v38, %v11306_v11  ;;  %v12746_v11 = vld [vmem:[#allocation5 + $0xc24] sm:$0xf]  ;;  %v11418_v38 = vld [vmem:[#allocation5 + $0xc30] sm:$0xf0] }
 0x379   :  { %v5608_v44 = vpop.f32.mrf.mxu3  ;;  %v5463_v31 = vpop.f32.mrf.mxu0 }
 0x37a   :  { %v5559_v16 = vpop.f32.mrf.mxu2  ;;  %v5464_v7 = vadd.f32 %v5463_v31, %v14257_v32  ;;  %v5512_v29 = vpop.f32.mrf.mxu1  ;;  %5883 = vmatpush.bf16.msrb.mxu1 %v11309_v4  ;;  %v12778_v31 = vld [vmem:[#allocation5 + $0xd24] sm:$0xf] }
 0x37b   :  { %v5560_v34 = vadd.f32 %v5559_v16, %v5511_v62  ;;  %v17085_v16 = vld [vmem:[#allocation74_spill] sm:$0xff] }
 0x37c   :  { %v5513_v53 = vadd.f32 %v5512_v29, %v5464_v7  ;;  %v11546_v7 = vld [vmem:[#allocation5 + $0xd30] sm:$0xf0] }
 0x37d   :  { %v14361_v19 = vadd.f32 %v5608_v44, %v5560_v34  ;;  %v12682_v34 = vld [vmem:[#allocation5 + $0xa24] sm:$0xf]  ;;  %v11162_v44 = vld [vmem:[#allocation5 + $0xa30] sm:$0xf0] }
 0x37e   :  { %v11165_v29 = vor.u32 %v12682_v34, %v11162_v44 }
 0x380   :  { %5835 = vmatpush.bf16.msrb.mxu0 %v11165_v29  ;;  %v17090_v29 = vld [vmem:[#allocation107_spill] sm:$0xff] }
 0x381   :  { %v5610_v8 = vpop.f32.mrf.mxu3  ;;  %v5466_v10 = vpop.f32.mrf.mxu0 }
 0x382   :  { %v5561_v9 = vpop.f32.mrf.mxu2  ;;  %v5467_v62 = vadd.f32 %v5466_v10, %v14269_v56  ;;  %v5515_v60 = vpop.f32.mrf.mxu1 }
 0x383   :  { %v5562_v61 = vadd.f32 %v5561_v9, %v5513_v53  ;;  %v11421_v9 = vor.u32 %v12746_v11, %v11418_v38 }
 0x384   :  { %v5516_v32 = vadd.f32 %v5515_v60, %v5467_v62  ;;  %5661 = vmatmul.bf16.gmra.mxu0 %v17084_v1  ;;  %5710 = vmatmul.bf16.gmra.mxu1 %v17085_v16 }
 0x385   :  { %v14364_v22 = vadd.f32 %v5610_v8, %v5562_v61  ;;  %v11549_v61 = vor.u32 %v12778_v31, %v11546_v7  ;;  %5933 = vmatpush.bf16.msrb.mxu2 %v11421_v9  ;;  %v17088_v7 = vld [vmem:[#allocation77_spill] sm:$0xff] }
 0x386   :  { %5808 = vmatmul.bf16.gmra.mxu3 %v17087_v41  ;;  %v12714_v41 = vld [vmem:[#allocation5 + $0xb24] sm:$0xf] }
 0x387   :  { %5759 = vmatmul.bf16.gmra.mxu2 %v17086_v13  ;;  %5982 = vmatpush.bf16.msrb.mxu3 %v11549_v61  ;;  %v11290_v13 = vld [vmem:[#allocation5 + $0xb30] sm:$0xf0]  ;;  %v17091_v61 = vld [vmem:[#allocation108_spill] sm:$0xff] }
 0x388   :  { %v11293_v38 = vor.u32 %v12714_v41, %v11290_v13  ;;  %v12742_v13 = vld [vmem:[#allocation5 + $0xc04] sm:$0xf]  ;;  %v11402_v41 = vld [vmem:[#allocation5 + $0xc10] sm:$0xf0] }
 0x389   :  { %v5613_v4 = vpop.f32.mrf.mxu3  ;;  %v5468_v8 = vpop.f32.mrf.mxu0 }
 0x38a   :  { %v5564_v56 = vpop.f32.mrf.mxu2  ;;  %v5469_v10 = vadd.f32 %v5468_v8, %v14275_v25  ;;  %v5517_v62 = vpop.f32.mrf.mxu1  ;;  %5884 = vmatpush.bf16.msrb.mxu1 %v11293_v38  ;;  %v12774_v8 = vld [vmem:[#allocation5 + $0xd04] sm:$0xf] }
 0x38b   :  { %v5565_v53 = vadd.f32 %v5564_v56, %v5516_v32  ;;  %v17089_v56 = vld [vmem:[#allocation78_spill] sm:$0xff] }
 0x38c   :  { %v5518_v11 = vadd.f32 %v5517_v62, %v5469_v10  ;;  %v11530_v10 = vld [vmem:[#allocation5 + $0xd10] sm:$0xf0] }
 0x38d   :  { %v14371_v60 = vadd.f32 %v5613_v4, %v5565_v53  ;;  %v12678_v53 = vld [vmem:[#allocation5 + $0xa04] sm:$0xf]  ;;  %v11146_v4 = vld [vmem:[#allocation5 + $0xa10] sm:$0xf0] }
 0x38e   :  { %v11149_v62 = vor.u32 %v12678_v53, %v11146_v4 }
 0x390   :  { %5836 = vmatpush.bf16.msrb.mxu0 %v11149_v62  ;;  %v17094_v62 = vld [vmem:[#allocation111_spill] sm:$0xff] }
 0x391   :  { %v5615_v34 = vpop.f32.mrf.mxu3  ;;  %v5471_v44 = vpop.f32.mrf.mxu0 }
 0x392   :  { %v5566_v16 = vpop.f32.mrf.mxu2  ;;  %v5472_v32 = vadd.f32 %v5471_v44, %v14285_v21  ;;  %v5520_v31 = vpop.f32.mrf.mxu1 }
 0x393   :  { %v5567_v1 = vadd.f32 %v5566_v16, %v5518_v11  ;;  %v11405_v16 = vor.u32 %v12742_v13, %v11402_v41 }
 0x394   :  { %v5521_v25 = vadd.f32 %v5520_v31, %v5472_v32  ;;  %5666 = vmatmul.bf16.gmra.mxu0 %v17088_v7  ;;  %5715 = vmatmul.bf16.gmra.mxu1 %v17089_v56 }
 0x395   :  { %v14374_v9 = vadd.f32 %v5615_v34, %v5567_v1  ;;  %v11533_v1 = vor.u32 %v12774_v8, %v11530_v10  ;;  %5934 = vmatpush.bf16.msrb.mxu2 %v11405_v16  ;;  %v17092_v10 = vld [vmem:[#allocation81_spill] sm:$0xff] }
 0x396   :  { %5813 = vmatmul.bf16.gmra.mxu3 %v17091_v61  ;;  %v12710_v61 = vld [vmem:[#allocation5 + $0xb04] sm:$0xf] }
 0x397   :  { %5764 = vmatmul.bf16.gmra.mxu2 %v17090_v29  ;;  %5983 = vmatpush.bf16.msrb.mxu3 %v11533_v1  ;;  %v11274_v29 = vld [vmem:[#allocation5 + $0xb10] sm:$0xf0]  ;;  %v17095_v1 = vld [vmem:[#allocation112_spill] sm:$0xff] }
 0x398   :  { %v11277_v41 = vor.u32 %v12710_v61, %v11274_v29  ;;  %v12898_v29 = vld [vmem:[#allocation5 + $0x10e4] sm:$0xf]  ;;  %v12026_v61 = vld [vmem:[#allocation5 + $0x10f0] sm:$0xf0] }
 0x399   :  { %v5618_v38 = vpop.f32.mrf.mxu3  ;;  %v5473_v34 = vpop.f32.mrf.mxu0 }
 0x39a   :  { %v5569_v21 = vpop.f32.mrf.mxu2  ;;  %v5474_v44 = vadd.f32 %v5473_v34, %v14291_v28  ;;  %v5522_v32 = vpop.f32.mrf.mxu1  ;;  %5885 = vmatpush.bf16.msrb.mxu1 %v11277_v41  ;;  %v12930_v34 = vld [vmem:[#allocation5 + $0x11e4] sm:$0xf] }
 0x39b   :  { %v5570_v11 = vadd.f32 %v5569_v21, %v5521_v25  ;;  %v17093_v21 = vld [vmem:[#allocation82_spill] sm:$0xff] }
 0x39c   :  { %v5523_v13 = vadd.f32 %v5522_v32, %v5474_v44  ;;  %v12154_v44 = vld [vmem:[#allocation5 + $0x11f0] sm:$0xf0] }
 0x39d   :  { %v14381_v31 = vadd.f32 %v5618_v38, %v5570_v11  ;;  %v12834_v11 = vld [vmem:[#allocation5 + $0xee4] sm:$0xf]  ;;  %v11770_v38 = vld [vmem:[#allocation5 + $0xef0] sm:$0xf0] }
 0x39e   :  { %v11773_v32 = vor.u32 %v12834_v11, %v11770_v38 }
 0x3a0   :  { %6025 = vmatpush.bf16.msra.mxu0 %v11773_v32  ;;  %v17098_v32 = vld [vmem:[#allocation115_spill] sm:$0xff] }
 0x3a1   :  { %v5620_v53 = vpop.f32.mrf.mxu3  ;;  %v5476_v4 = vpop.f32.mrf.mxu0 }
 0x3a2   :  { %v5571_v56 = vpop.f32.mrf.mxu2  ;;  %v5477_v25 = vadd.f32 %v5476_v4, %v14301_v37  ;;  %v5525_v8 = vpop.f32.mrf.mxu1 }
 0x3a3   :  { %v5572_v7 = vadd.f32 %v5571_v56, %v5523_v13  ;;  %v12029_v56 = vor.u32 %v12898_v29, %v12026_v61 }
 0x3a4   :  { %v5526_v28 = vadd.f32 %v5525_v8, %v5477_v25  ;;  %5671 = vmatmul.bf16.gmra.mxu0 %v17092_v10  ;;  %5720 = vmatmul.bf16.gmra.mxu1 %v17093_v21 }
 0x3a5   :  { %v14384_v16 = vadd.f32 %v5620_v53, %v5572_v7  ;;  %v12157_v7 = vor.u32 %v12930_v34, %v12154_v44  ;;  %6123 = vmatpush.bf16.msra.mxu2 %v12029_v56  ;;  %v17096_v44 = vld [vmem:[#allocation85_spill] sm:$0xff] }
 0x3a6   :  { %5818 = vmatmul.bf16.gmra.mxu3 %v17095_v1  ;;  %v12866_v1 = vld [vmem:[#allocation5 + $0xfe4] sm:$0xf] }
 0x3a7   :  { %5769 = vmatmul.bf16.gmra.mxu2 %v17094_v62  ;;  %6172 = vmatpush.bf16.msra.mxu3 %v12157_v7  ;;  %v11898_v62 = vld [vmem:[#allocation5 + $0xff0] sm:$0xf0]  ;;  %v17099_v7 = vld [vmem:[#allocation116_spill] sm:$0xff] }
 0x3a8   :  { %v11901_v61 = vor.u32 %v12866_v1, %v11898_v62  ;;  %v12894_v62 = vld [vmem:[#allocation5 + $0x10c4] sm:$0xf]  ;;  %v12010_v1 = vld [vmem:[#allocation5 + $0x10d0] sm:$0xf0] }
 0x3a9   :  { %v5623_v41 = vpop.f32.mrf.mxu3  ;;  %v5478_v53 = vpop.f32.mrf.mxu0 }
 0x3aa   :  { %v5574_v37 = vpop.f32.mrf.mxu2  ;;  %v5479_v4 = vadd.f32 %v5478_v53, %v14307_v45  ;;  %v5527_v25 = vpop.f32.mrf.mxu1  ;;  %6074 = vmatpush.bf16.msra.mxu1 %v11901_v61  ;;  %v12926_v53 = vld [vmem:[#allocation5 + $0x11c4] sm:$0xf] }
 0x3ab   :  { %v5575_v13 = vadd.f32 %v5574_v37, %v5526_v28  ;;  %v17097_v37 = vld [vmem:[#allocation86_spill] sm:$0xff] }
 0x3ac   :  { %v5528_v29 = vadd.f32 %v5527_v25, %v5479_v4  ;;  %v12138_v4 = vld [vmem:[#allocation5 + $0x11d0] sm:$0xf0] }
 0x3ad   :  { %v14391_v8 = vadd.f32 %v5623_v41, %v5575_v13  ;;  %v12830_v13 = vld [vmem:[#allocation5 + $0xec4] sm:$0xf]  ;;  %v11754_v41 = vld [vmem:[#allocation5 + $0xed0] sm:$0xf0] }
 0x3ae   :  { %v11757_v25 = vor.u32 %v12830_v13, %v11754_v41 }
 0x3b0   :  { %6026 = vmatpush.bf16.msra.mxu0 %v11757_v25  ;;  %v17102_v25 = vld [vmem:[#allocation119_spill] sm:$0xff] }
 0x3b1   :  { %v5625_v11 = vpop.f32.mrf.mxu3  ;;  %v5481_v38 = vpop.f32.mrf.mxu0 }
 0x3b2   :  { %v5576_v21 = vpop.f32.mrf.mxu2  ;;  %v5482_v28 = vadd.f32 %v5481_v38, %v14317_v47  ;;  %v5530_v34 = vpop.f32.mrf.mxu1 }
 0x3b3   :  { %v5577_v10 = vadd.f32 %v5576_v21, %v5528_v29  ;;  %v12013_v21 = vor.u32 %v12894_v62, %v12010_v1 }
 0x3b4   :  { %v5531_v45 = vadd.f32 %v5530_v34, %v5482_v28  ;;  %5676 = vmatmul.bf16.gmra.mxu0 %v17096_v44  ;;  %5725 = vmatmul.bf16.gmra.mxu1 %v17097_v37 }
 0x3b5   :  { %v14394_v56 = vadd.f32 %v5625_v11, %v5577_v10  ;;  %v12141_v10 = vor.u32 %v12926_v53, %v12138_v4  ;;  %6124 = vmatpush.bf16.msra.mxu2 %v12013_v21  ;;  %v17100_v4 = vld [vmem:[#allocation89_spill] sm:$0xff] }
 0x3b6   :  { %5823 = vmatmul.bf16.gmra.mxu3 %v17099_v7  ;;  %v12862_v7 = vld [vmem:[#allocation5 + $0xfc4] sm:$0xf] }
 0x3b7   :  { %5774 = vmatmul.bf16.gmra.mxu2 %v17098_v32  ;;  %6173 = vmatpush.bf16.msra.mxu3 %v12141_v10  ;;  %v11882_v32 = vld [vmem:[#allocation5 + $0xfd0] sm:$0xf0]  ;;  %v17103_v10 = vld [vmem:[#allocation120_spill] sm:$0xff] }
 0x3b8   :  { %v11885_v1 = vor.u32 %v12862_v7, %v11882_v32  ;;  %v12890_v32 = vld [vmem:[#allocation5 + $0x10a4] sm:$0xf]  ;;  %v11994_v7 = vld [vmem:[#allocation5 + $0x10b0] sm:$0xf0] }
 0x3b9   :  { %v5628_v61 = vpop.f32.mrf.mxu3  ;;  %v5483_v11 = vpop.f32.mrf.mxu0 }
 0x3ba   :  { %v5579_v47 = vpop.f32.mrf.mxu2  ;;  %v5484_v38 = vadd.f32 %v5483_v11, %v14323_v59  ;;  %v5532_v28 = vpop.f32.mrf.mxu1  ;;  %6075 = vmatpush.bf16.msra.mxu1 %v11885_v1  ;;  %v12922_v11 = vld [vmem:[#allocation5 + $0x11a4] sm:$0xf] }
 0x3bb   :  { %v5580_v29 = vadd.f32 %v5579_v47, %v5531_v45  ;;  %v17101_v47 = vld [vmem:[#allocation90_spill] sm:$0xff] }
 0x3bc   :  { %v5533_v62 = vadd.f32 %v5532_v28, %v5484_v38  ;;  %v12122_v38 = vld [vmem:[#allocation5 + $0x11b0] sm:$0xf0] }
 0x3bd   :  { %v14401_v34 = vadd.f32 %v5628_v61, %v5580_v29  ;;  %v12826_v29 = vld [vmem:[#allocation5 + $0xea4] sm:$0xf]  ;;  %v11738_v61 = vld [vmem:[#allocation5 + $0xeb0] sm:$0xf0] }
 0x3be   :  { %v11741_v28 = vor.u32 %v12826_v29, %v11738_v61 }
 0x3c0   :  { %6027 = vmatpush.bf16.msra.mxu0 %v11741_v28  ;;  %v17106_v28 = vld [vmem:[#allocation123_spill] sm:$0xff] }
 0x3c1   :  { %v5630_v13 = vpop.f32.mrf.mxu3  ;;  %v5642_v41 = vpop.f32.mrf.mxu0 }
 0x3c2   :  { %v5581_v37 = vpop.f32.mrf.mxu2  ;;  %v5643_v45 = vadd.f32 %v5642_v41, %v14331_v2  ;;  %v5691_v53 = vpop.f32.mrf.mxu1 }
 0x3c3   :  { %v5582_v44 = vadd.f32 %v5581_v37, %v5533_v62  ;;  %v11997_v37 = vor.u32 %v12890_v32, %v11994_v7 }
 0x3c4   :  { %v5692_v59 = vadd.f32 %v5691_v53, %v5643_v45  ;;  %5837 = vmatmul.bf16.vlgmr.msrb.gmra.mxu0 %v17100_v4  ;;  %5886 = vmatmul.bf16.vlgmr.msrb.gmra.mxu1 %v17101_v47 }
 0x3c5   :  { %v14404_v21 = vadd.f32 %v5630_v13, %v5582_v44  ;;  %v12125_v44 = vor.u32 %v12922_v11, %v12122_v38  ;;  %6125 = vmatpush.bf16.msra.mxu2 %v11997_v37  ;;  %v17104_v38 = vld [vmem:[#allocation93_spill] sm:$0xff] }
 0x3c6   :  { %5984 = vmatmul.bf16.vlgmr.msrb.gmra.mxu3 %v17103_v10  ;;  %v12858_v10 = vld [vmem:[#allocation5 + $0xfa4] sm:$0xf] }
 0x3c7   :  { %5935 = vmatmul.bf16.vlgmr.msrb.gmra.mxu2 %v17102_v25  ;;  %6174 = vmatpush.bf16.msra.mxu3 %v12125_v44  ;;  %v11866_v25 = vld [vmem:[#allocation5 + $0xfb0] sm:$0xf0]  ;;  %v17107_v44 = vld [vmem:[#allocation124_spill] sm:$0xff] }
 0x3c8   :  { %v11869_v7 = vor.u32 %v12858_v10, %v11866_v25  ;;  %v12886_v25 = vld [vmem:[#allocation5 + $0x1084] sm:$0xf]  ;;  %v11978_v10 = vld [vmem:[#allocation5 + $0x1090] sm:$0xf0] }
 0x3c9   :  { %v5789_v1 = vpop.f32.mrf.mxu3  ;;  %v5644_v13 = vpop.f32.mrf.mxu0 }
 0x3ca   :  { %v5740_v2 = vpop.f32.mrf.mxu2  ;;  %v5645_v41 = vadd.f32 %v5644_v13, %v14334_v58  ;;  %v5693_v45 = vpop.f32.mrf.mxu1  ;;  %6076 = vmatpush.bf16.msra.mxu1 %v11869_v7  ;;  %v12918_v13 = vld [vmem:[#allocation5 + $0x1184] sm:$0xf] }
 0x3cb   :  { %v5741_v62 = vadd.f32 %v5740_v2, %v5692_v59  ;;  %v17105_v2 = vld [vmem:[#allocation94_spill] sm:$0xff] }
 0x3cc   :  { %v5694_v32 = vadd.f32 %v5693_v45, %v5645_v41  ;;  %v12106_v41 = vld [vmem:[#allocation5 + $0x1190] sm:$0xf0] }
 0x3cd   :  { %v14411_v53 = vadd.f32 %v5789_v1, %v5741_v62  ;;  %v12822_v62 = vld [vmem:[#allocation5 + $0xe84] sm:$0xf]  ;;  %v11722_v1 = vld [vmem:[#allocation5 + $0xe90] sm:$0xf0] }
 0x3ce   :  { %v11725_v45 = vor.u32 %v12822_v62, %v11722_v1 }
 0x3d0   :  { %6028 = vmatpush.bf16.msra.mxu0 %v11725_v45  ;;  %v17110_v45 = vld [vmem:[#allocation127_spill] sm:$0xff] }
 0x3d1   :  { %v5791_v29 = vpop.f32.mrf.mxu3  ;;  %v5647_v61 = vpop.f32.mrf.mxu0 }
 0x3d2   :  { %v5742_v47 = vpop.f32.mrf.mxu2  ;;  %v5648_v59 = vadd.f32 %v5647_v61, %v14341_v18  ;;  %v5696_v11 = vpop.f32.mrf.mxu1 }
 0x3d3   :  { %v5743_v4 = vadd.f32 %v5742_v47, %v5694_v32  ;;  %v11981_v47 = vor.u32 %v12886_v25, %v11978_v10 }
 0x3d4   :  { %v5697_v58 = vadd.f32 %v5696_v11, %v5648_v59  ;;  %5842 = vmatmul.bf16.gmra.mxu0 %v17104_v38  ;;  %5891 = vmatmul.bf16.gmra.mxu1 %v17105_v2 }
 0x3d5   :  { %v14414_v37 = vadd.f32 %v5791_v29, %v5743_v4  ;;  %v12109_v4 = vor.u32 %v12918_v13, %v12106_v41  ;;  %6126 = vmatpush.bf16.msra.mxu2 %v11981_v47  ;;  %v17108_v41 = vld [vmem:[#allocation97_spill] sm:$0xff] }
 0x3d6   :  { %5989 = vmatmul.bf16.gmra.mxu3 %v17107_v44  ;;  %v12854_v44 = vld [vmem:[#allocation5 + $0xf84] sm:$0xf] }
 0x3d7   :  { %5940 = vmatmul.bf16.gmra.mxu2 %v17106_v28  ;;  %6175 = vmatpush.bf16.msra.mxu3 %v12109_v4  ;;  %v11850_v28 = vld [vmem:[#allocation5 + $0xf90] sm:$0xf0]  ;;  %v17111_v4 = vld [vmem:[#allocation128_spill] sm:$0xff] }
 0x3d8   :  { %v11853_v10 = vor.u32 %v12854_v44, %v11850_v28  ;;  %v12882_v28 = vld [vmem:[#allocation5 + $0x1064] sm:$0xf]  ;;  %v11962_v44 = vld [vmem:[#allocation5 + $0x1070] sm:$0xf0] }
 0x3d9   :  { %v5794_v7 = vpop.f32.mrf.mxu3  ;;  %v5649_v29 = vpop.f32.mrf.mxu0 }
 0x3da   :  { %v5745_v18 = vpop.f32.mrf.mxu2  ;;  %v5650_v61 = vadd.f32 %v5649_v29, %v14344_v33  ;;  %v5698_v59 = vpop.f32.mrf.mxu1  ;;  %6077 = vmatpush.bf16.msra.mxu1 %v11853_v10  ;;  %v12914_v29 = vld [vmem:[#allocation5 + $0x1164] sm:$0xf] }
 0x3db   :  { %v5746_v32 = vadd.f32 %v5745_v18, %v5697_v58  ;;  %v17109_v18 = vld [vmem:[#allocation98_spill] sm:$0xff] }
 0x3dc   :  { %v5699_v25 = vadd.f32 %v5698_v59, %v5650_v61  ;;  %v12090_v61 = vld [vmem:[#allocation5 + $0x1170] sm:$0xf0] }
 0x3dd   :  { %v14421_v11 = vadd.f32 %v5794_v7, %v5746_v32  ;;  %v12818_v32 = vld [vmem:[#allocation5 + $0xe64] sm:$0xf]  ;;  %v11706_v7 = vld [vmem:[#allocation5 + $0xe70] sm:$0xf0] }
 0x3de   :  { %v11709_v59 = vor.u32 %v12818_v32, %v11706_v7 }
 0x3e0   :  { %6029 = vmatpush.bf16.msra.mxu0 %v11709_v59  ;;  %v17114_v59 = vld [vmem:[#allocation131_spill] sm:$0xff] }
 0x3e1   :  { %v5796_v62 = vpop.f32.mrf.mxu3  ;;  %v5652_v1 = vpop.f32.mrf.mxu0 }
 0x3e2   :  { %v5747_v2 = vpop.f32.mrf.mxu2  ;;  %v5653_v58 = vadd.f32 %v5652_v1, %v14351_v15  ;;  %v5701_v13 = vpop.f32.mrf.mxu1 }
 0x3e3   :  { %v5748_v38 = vadd.f32 %v5747_v2, %v5699_v25  ;;  %v11965_v2 = vor.u32 %v12882_v28, %v11962_v44 }
 0x3e4   :  { %v5702_v33 = vadd.f32 %v5701_v13, %v5653_v58  ;;  %5847 = vmatmul.bf16.gmra.mxu0 %v17108_v41  ;;  %5896 = vmatmul.bf16.gmra.mxu1 %v17109_v18 }
 0x3e5   :  { %v14424_v47 = vadd.f32 %v5796_v62, %v5748_v38  ;;  %v12093_v38 = vor.u32 %v12914_v29, %v12090_v61  ;;  %6127 = vmatpush.bf16.msra.mxu2 %v11965_v2  ;;  %v17112_v61 = vld [vmem:[#allocation101_spill] sm:$0xff] }
 0x3e6   :  { %5994 = vmatmul.bf16.gmra.mxu3 %v17111_v4  ;;  %v12850_v4 = vld [vmem:[#allocation5 + $0xf64] sm:$0xf] }
 0x3e7   :  { %5945 = vmatmul.bf16.gmra.mxu2 %v17110_v45  ;;  %6176 = vmatpush.bf16.msra.mxu3 %v12093_v38  ;;  %v11834_v45 = vld [vmem:[#allocation5 + $0xf70] sm:$0xf0]  ;;  %v17115_v38 = vld [vmem:[#allocation132_spill] sm:$0xff] }
 0x3e8   :  { %v11837_v44 = vor.u32 %v12850_v4, %v11834_v45  ;;  %v12878_v45 = vld [vmem:[#allocation5 + $0x1044] sm:$0xf]  ;;  %v11946_v4 = vld [vmem:[#allocation5 + $0x1050] sm:$0xf0] }
 0x3e9   :  { %v5799_v10 = vpop.f32.mrf.mxu3  ;;  %v5654_v62 = vpop.f32.mrf.mxu0 }
 0x3ea   :  { %v5750_v15 = vpop.f32.mrf.mxu2  ;;  %v5655_v1 = vadd.f32 %v5654_v62, %v14354_v35  ;;  %v5703_v58 = vpop.f32.mrf.mxu1  ;;  %6078 = vmatpush.bf16.msra.mxu1 %v11837_v44  ;;  %v12910_v62 = vld [vmem:[#allocation5 + $0x1144] sm:$0xf] }
 0x3eb   :  { %v5751_v25 = vadd.f32 %v5750_v15, %v5702_v33  ;;  %v17113_v15 = vld [vmem:[#allocation102_spill] sm:$0xff] }
 0x3ec   :  { %v5704_v28 = vadd.f32 %v5703_v58, %v5655_v1  ;;  %v12074_v1 = vld [vmem:[#allocation5 + $0x1150] sm:$0xf0] }
 0x3ed   :  { %v14431_v13 = vadd.f32 %v5799_v10, %v5751_v25  ;;  %v12814_v25 = vld [vmem:[#allocation5 + $0xe44] sm:$0xf]  ;;  %v11690_v10 = vld [vmem:[#allocation5 + $0xe50] sm:$0xf0] }
 0x3ee   :  { %v11693_v58 = vor.u32 %v12814_v25, %v11690_v10 }
 0x3f0   :  { %6030 = vmatpush.bf16.msra.mxu0 %v11693_v58  ;;  %v17118_v58 = vld [vmem:[#allocation135_spill] sm:$0xff] }
 0x3f1   :  { %v5801_v32 = vpop.f32.mrf.mxu3  ;;  %v5657_v7 = vpop.f32.mrf.mxu0 }
 0x3f2   :  { %v5752_v18 = vpop.f32.mrf.mxu2  ;;  %v5658_v33 = vadd.f32 %v5657_v7, %v14361_v19  ;;  %v5706_v29 = vpop.f32.mrf.mxu1 }
 0x3f3   :  { %v5753_v41 = vadd.f32 %v5752_v18, %v5704_v28  ;;  %v11949_v18 = vor.u32 %v12878_v45, %v11946_v4 }
 0x3f4   :  { %v5707_v35 = vadd.f32 %v5706_v29, %v5658_v33  ;;  %5852 = vmatmul.bf16.gmra.mxu0 %v17112_v61  ;;  %5901 = vmatmul.bf16.gmra.mxu1 %v17113_v15 }
 0x3f5   :  { %v14434_v2 = vadd.f32 %v5801_v32, %v5753_v41  ;;  %v12077_v41 = vor.u32 %v12910_v62, %v12074_v1  ;;  %6128 = vmatpush.bf16.msra.mxu2 %v11949_v18  ;;  %v17116_v1 = vld [vmem:[#allocation105_spill] sm:$0xff] }
 0x3f6   :  { %5999 = vmatmul.bf16.gmra.mxu3 %v17115_v38  ;;  %v12846_v38 = vld [vmem:[#allocation5 + $0xf44] sm:$0xf] }
 0x3f7   :  { %5950 = vmatmul.bf16.gmra.mxu2 %v17114_v59  ;;  %6177 = vmatpush.bf16.msra.mxu3 %v12077_v41  ;;  %v11818_v59 = vld [vmem:[#allocation5 + $0xf50] sm:$0xf0]  ;;  %v17119_v41 = vld [vmem:[#allocation136_spill] sm:$0xff] }
 0x3f8   :  { %v11821_v4 = vor.u32 %v12846_v38, %v11818_v59  ;;  %v12874_v59 = vld [vmem:[#allocation5 + $0x1024] sm:$0xf]  ;;  %v11930_v38 = vld [vmem:[#allocation5 + $0x1030] sm:$0xf0] }
 0x3f9   :  { %v5804_v44 = vpop.f32.mrf.mxu3  ;;  %v5659_v32 = vpop.f32.mrf.mxu0 }
 0x3fa   :  { %v5755_v19 = vpop.f32.mrf.mxu2  ;;  %v5660_v7 = vadd.f32 %v5659_v32, %v14364_v22  ;;  %v5708_v33 = vpop.f32.mrf.mxu1  ;;  %6079 = vmatpush.bf16.msra.mxu1 %v11821_v4  ;;  %v12906_v32 = vld [vmem:[#allocation5 + $0x1124] sm:$0xf] }
 0x3fb   :  { %v5756_v28 = vadd.f32 %v5755_v19, %v5707_v35  ;;  %v17117_v19 = vld [vmem:[#allocation106_spill] sm:$0xff] }
 0x3fc   :  { %v5709_v45 = vadd.f32 %v5708_v33, %v5660_v7  ;;  %v12058_v7 = vld [vmem:[#allocation5 + $0x1130] sm:$0xf0] }
 0x3fd   :  { %v14441_v29 = vadd.f32 %v5804_v44, %v5756_v28  ;;  %v12810_v28 = vld [vmem:[#allocation5 + $0xe24] sm:$0xf]  ;;  %v11674_v44 = vld [vmem:[#allocation5 + $0xe30] sm:$0xf0] }
 0x3fe   :  { %v11677_v33 = vor.u32 %v12810_v28, %v11674_v44 }
 0x400   :  { %6031 = vmatpush.bf16.msra.mxu0 %v11677_v33  ;;  %v17122_v33 = vld [vmem:[#allocation139_spill] sm:$0xff] }
 0x401   :  { %v5806_v25 = vpop.f32.mrf.mxu3  ;;  %v5662_v10 = vpop.f32.mrf.mxu0 }
 0x402   :  { %v5757_v15 = vpop.f32.mrf.mxu2  ;;  %v5663_v35 = vadd.f32 %v5662_v10, %v14371_v60  ;;  %v5711_v62 = vpop.f32.mrf.mxu1 }
 0x403   :  { %v5758_v61 = vadd.f32 %v5757_v15, %v5709_v45  ;;  %v11933_v15 = vor.u32 %v12874_v59, %v11930_v38 }
 0x404   :  { %v5712_v22 = vadd.f32 %v5711_v62, %v5663_v35  ;;  %5857 = vmatmul.bf16.gmra.mxu0 %v17116_v1  ;;  %5906 = vmatmul.bf16.gmra.mxu1 %v17117_v19 }
 0x405   :  { %v14444_v18 = vadd.f32 %v5806_v25, %v5758_v61  ;;  %v12061_v61 = vor.u32 %v12906_v32, %v12058_v7  ;;  %6129 = vmatpush.bf16.msra.mxu2 %v11933_v15  ;;  %v17120_v7 = vld [vmem:[#allocation109_spill] sm:$0xff] }
 0x406   :  { %6004 = vmatmul.bf16.gmra.mxu3 %v17119_v41  ;;  %v12842_v41 = vld [vmem:[#allocation5 + $0xf24] sm:$0xf] }
 0x407   :  { %5955 = vmatmul.bf16.gmra.mxu2 %v17118_v58  ;;  %6178 = vmatpush.bf16.msra.mxu3 %v12061_v61  ;;  %v11802_v58 = vld [vmem:[#allocation5 + $0xf30] sm:$0xf0]  ;;  %v17123_v61 = vld [vmem:[#allocation140_spill] sm:$0xff] }
 0x408   :  { %v11805_v38 = vor.u32 %v12842_v41, %v11802_v58  ;;  %v12870_v58 = vld [vmem:[#allocation5 + $0x1004] sm:$0xf]  ;;  %v11914_v41 = vld [vmem:[#allocation5 + $0x1010] sm:$0xf0] }
 0x409   :  { %v5809_v4 = vpop.f32.mrf.mxu3  ;;  %v5664_v25 = vpop.f32.mrf.mxu0 }
 0x40a   :  { %v5760_v60 = vpop.f32.mrf.mxu2  ;;  %v5665_v10 = vadd.f32 %v5664_v25, %v14374_v9  ;;  %v5713_v35 = vpop.f32.mrf.mxu1  ;;  %6080 = vmatpush.bf16.msra.mxu1 %v11805_v38  ;;  %v12902_v25 = vld [vmem:[#allocation5 + $0x1104] sm:$0xf] }
 0x40b   :  { %v5761_v45 = vadd.f32 %v5760_v60, %v5712_v22  ;;  %v17121_v60 = vld [vmem:[#allocation110_spill] sm:$0xff] }
 0x40c   :  { %v5714_v59 = vadd.f32 %v5713_v35, %v5665_v10  ;;  %v12042_v10 = vld [vmem:[#allocation5 + $0x1110] sm:$0xf0] }
 0x40d   :  { %v14451_v62 = vadd.f32 %v5809_v4, %v5761_v45  ;;  %v12806_v45 = vld [vmem:[#allocation5 + $0xe04] sm:$0xf]  ;;  %v11658_v4 = vld [vmem:[#allocation5 + $0xe10] sm:$0xf0] }
 0x40e   :  { %v11661_v35 = vor.u32 %v12806_v45, %v11658_v4 }
 0x410   :  { %6032 = vmatpush.bf16.msra.mxu0 %v11661_v35  ;;  %v17126_v35 = vld [vmem:[#allocation143_spill] sm:$0xff] }
 0x411   :  { %v5811_v28 = vpop.f32.mrf.mxu3  ;;  %v5667_v44 = vpop.f32.mrf.mxu0 }
 0x412   :  { %v5762_v19 = vpop.f32.mrf.mxu2  ;;  %v5668_v22 = vadd.f32 %v5667_v44, %v14381_v31  ;;  %v5716_v32 = vpop.f32.mrf.mxu1 }
 0x413   :  { %v5763_v1 = vadd.f32 %v5762_v19, %v5714_v59  ;;  %v11917_v19 = vor.u32 %v12870_v58, %v11914_v41 }
 0x414   :  { %v5717_v9 = vadd.f32 %v5716_v32, %v5668_v22  ;;  %5862 = vmatmul.bf16.gmra.mxu0 %v17120_v7  ;;  %5911 = vmatmul.bf16.gmra.mxu1 %v17121_v60 }
 0x415   :  { %v14454_v15 = vadd.f32 %v5811_v28, %v5763_v1  ;;  %v12045_v1 = vor.u32 %v12902_v25, %v12042_v10  ;;  %6130 = vmatpush.bf16.msra.mxu2 %v11917_v19  ;;  %v17124_v10 = vld [vmem:[#allocation113_spill] sm:$0xff] }
 0x416   :  { %6009 = vmatmul.bf16.gmra.mxu3 %v17123_v61  ;;  %v12838_v61 = vld [vmem:[#allocation5 + $0xf04] sm:$0xf] }
 0x417   :  { %5960 = vmatmul.bf16.gmra.mxu2 %v17122_v33  ;;  %6179 = vmatpush.bf16.msra.mxu3 %v12045_v1  ;;  %v11786_v33 = vld [vmem:[#allocation5 + $0xf10] sm:$0xf0]  ;;  %v17127_v1 = vld [vmem:[#allocation144_spill] sm:$0xff] }
 0x418   :  { %v11789_v41 = vor.u32 %v12838_v61, %v11786_v33  ;;  %v10240_v33 = vld [vmem:[#allocation5 + $0x2e8] sm:$0xf]  ;;  %v12453_v61 = vld [vmem:[#allocation5 + $0x2f4] sm:$0xf0] }
 0x419   :  { %v5814_v38 = vpop.f32.mrf.mxu3  ;;  %v5669_v28 = vpop.f32.mrf.mxu0 }
 0x41a   :  { %v5765_v31 = vpop.f32.mrf.mxu2  ;;  %v5670_v44 = vadd.f32 %v5669_v28, %v14384_v16  ;;  %v5718_v22 = vpop.f32.mrf.mxu1  ;;  %6081 = vmatpush.bf16.msra.mxu1 %v11789_v41  ;;  %v10368_v28 = vld [vmem:[#allocation5 + $0x3e8] sm:$0xf] }
 0x41b   :  { %v5766_v59 = vadd.f32 %v5765_v31, %v5717_v9  ;;  %v17125_v31 = vld [vmem:[#allocation114_spill] sm:$0xff] }
 0x41c   :  { %v5719_v58 = vadd.f32 %v5718_v22, %v5670_v44  ;;  %v12485_v44 = vld [vmem:[#allocation5 + $0x3f4] sm:$0xf0] }
 0x41d   :  { %v14461_v32 = vadd.f32 %v5814_v38, %v5766_v59  ;;  %v9984_v59 = vld [vmem:[#allocation5 + $0xe8] sm:$0xf]  ;;  %v12389_v38 = vld [vmem:[#allocation5 + $0xf4] sm:$0xf0] }
 0x41e   :  { %v9985_v22 = vor.u32 %v12389_v38, %v9984_v59 }
 0x420   :  { %6221 = vmatpush.bf16.msrb.mxu0 %v9985_v22  ;;  %v17130_v22 = vld [vmem:[#allocation147_spill] sm:$0xff] }
 0x421   :  { %v5816_v45 = vpop.f32.mrf.mxu3  ;;  %v5672_v4 = vpop.f32.mrf.mxu0 }
 0x422   :  { %v5767_v60 = vpop.f32.mrf.mxu2  ;;  %v5673_v9 = vadd.f32 %v5672_v4, %v14391_v8  ;;  %v5721_v25 = vpop.f32.mrf.mxu1 }
 0x423   :  { %v5768_v7 = vadd.f32 %v5767_v60, %v5719_v58  ;;  %v10241_v60 = vor.u32 %v12453_v61, %v10240_v33 }
 0x424   :  { %v5722_v16 = vadd.f32 %v5721_v25, %v5673_v9  ;;  %5867 = vmatmul.bf16.gmra.mxu0 %v17124_v10  ;;  %5916 = vmatmul.bf16.gmra.mxu1 %v17125_v31 }
 0x425   :  { %v14464_v19 = vadd.f32 %v5816_v45, %v5768_v7  ;;  %v10369_v7 = vor.u32 %v12485_v44, %v10368_v28  ;;  %6319 = vmatpush.bf16.msrb.mxu2 %v10241_v60  ;;  %v17128_v44 = vld [vmem:[#allocation117_spill] sm:$0xff] }
 0x426   :  { %6014 = vmatmul.bf16.gmra.mxu3 %v17127_v1  ;;  %v10112_v1 = vld [vmem:[#allocation5 + $0x1e8] sm:$0xf] }
 0x427   :  { %5965 = vmatmul.bf16.gmra.mxu2 %v17126_v35  ;;  %6368 = vmatpush.bf16.msrb.mxu3 %v10369_v7  ;;  %v12421_v35 = vld [vmem:[#allocation5 + $0x1f4] sm:$0xf0]  ;;  %v17131_v7 = vld [vmem:[#allocation148_spill] sm:$0xff] }
 0x428   :  { %v10113_v61 = vor.u32 %v12421_v35, %v10112_v1  ;;  %v10224_v35 = vld [vmem:[#allocation5 + $0x2c8] sm:$0xf]  ;;  %v12449_v1 = vld [vmem:[#allocation5 + $0x2d4] sm:$0xf0] }
 0x429   :  { %v5819_v41 = vpop.f32.mrf.mxu3  ;;  %v5674_v45 = vpop.f32.mrf.mxu0 }
 0x42a   :  { %v5770_v8 = vpop.f32.mrf.mxu2  ;;  %v5675_v4 = vadd.f32 %v5674_v45, %v14394_v56  ;;  %v5723_v9 = vpop.f32.mrf.mxu1  ;;  %6270 = vmatpush.bf16.msrb.mxu1 %v10113_v61  ;;  %v10352_v45 = vld [vmem:[#allocation5 + $0x3c8] sm:$0xf] }
 0x42b   :  { %v5771_v58 = vadd.f32 %v5770_v8, %v5722_v16  ;;  %v17129_v8 = vld [vmem:[#allocation118_spill] sm:$0xff] }
 0x42c   :  { %v5724_v33 = vadd.f32 %v5723_v9, %v5675_v4  ;;  %v12481_v4 = vld [vmem:[#allocation5 + $0x3d4] sm:$0xf0] }
 0x42d   :  { %v14471_v25 = vadd.f32 %v5819_v41, %v5771_v58  ;;  %v9968_v58 = vld [vmem:[#allocation5 + $0xc8] sm:$0xf]  ;;  %v12385_v41 = vld [vmem:[#allocation5 + $0xd4] sm:$0xf0] }
 0x42e   :  { %v9969_v9 = vor.u32 %v12385_v41, %v9968_v58 }
 0x430   :  { %6222 = vmatpush.bf16.msrb.mxu0 %v9969_v9  ;;  %v9952_v9 = vld [vmem:[#allocation5 + $0xa8] sm:$0xf] }
 0x431   :  { %v5821_v59 = vpop.f32.mrf.mxu3  ;;  %v5677_v38 = vpop.f32.mrf.mxu0 }
 0x432   :  { %v5772_v31 = vpop.f32.mrf.mxu2  ;;  %v5678_v16 = vadd.f32 %v5677_v38, %v14401_v34  ;;  %v5726_v28 = vpop.f32.mrf.mxu1 }
 0x433   :  { %v5773_v10 = vadd.f32 %v5772_v31, %v5724_v33  ;;  %v10225_v31 = vor.u32 %v12449_v1, %v10224_v35 }
 0x434   :  { %v5727_v56 = vadd.f32 %v5726_v28, %v5678_v16  ;;  %5872 = vmatmul.bf16.gmra.mxu0 %v17128_v44  ;;  %5921 = vmatmul.bf16.gmra.mxu1 %v17129_v8 }
 0x435   :  { %v14474_v60 = vadd.f32 %v5821_v59, %v5773_v10  ;;  %v10353_v10 = vor.u32 %v12481_v4, %v10352_v45  ;;  %6320 = vmatpush.bf16.msrb.mxu2 %v10225_v31  ;;  %v17132_v4 = vld [vmem:[#allocation121_spill] sm:$0xff] }
 0x436   :  { %6019 = vmatmul.bf16.gmra.mxu3 %v17131_v7  ;;  %v10096_v7 = vld [vmem:[#allocation5 + $0x1c8] sm:$0xf] }
 0x437   :  { %5970 = vmatmul.bf16.gmra.mxu2 %v17130_v22  ;;  %6369 = vmatpush.bf16.msrb.mxu3 %v10353_v10  ;;  %v12417_v22 = vld [vmem:[#allocation5 + $0x1d4] sm:$0xf0] }
 0x438   :  { %v10097_v1 = vor.u32 %v12417_v22, %v10096_v7  ;;  %v10208_v22 = vld [vmem:[#allocation5 + $0x2a8] sm:$0xf]  ;;  %v12445_v7 = vld [vmem:[#allocation5 + $0x2b4] sm:$0xf0] }
 0x439   :  { %v5824_v61 = vpop.f32.mrf.mxu3  ;;  %v5679_v59 = vpop.f32.mrf.mxu0  ;;  %v12381_v10 = vld [vmem:[#allocation5 + $0xb4] sm:$0xf0] }
 0x43a   :  { %v5775_v34 = vpop.f32.mrf.mxu2  ;;  %v5680_v38 = vadd.f32 %v5679_v59, %v14404_v21  ;;  %v5728_v16 = vpop.f32.mrf.mxu1  ;;  %6271 = vmatpush.bf16.msrb.mxu1 %v10097_v1  ;;  %v9953_v59 = vor.u32 %v12381_v10, %v9952_v9 }
 0x43b   :  { %v5776_v33 = vadd.f32 %v5775_v34, %v5727_v56  ;;  %v17133_v34 = vld [vmem:[#allocation122_spill] sm:$0xff] }
 0x43c   :  { %v5729_v35 = vadd.f32 %v5728_v16, %v5680_v38  ;;  %6223 = vmatpush.bf16.msrb.mxu0 %v9953_v59  ;;  %v10192_v59 = vld [vmem:[#allocation5 + $0x288] sm:$0xf] }
 0x43d   :  { %v14481_v28 = vadd.f32 %v5824_v61, %v5776_v33  ;;  %v10336_v33 = vld [vmem:[#allocation5 + $0x3a8] sm:$0xf]  ;;  %v12477_v61 = vld [vmem:[#allocation5 + $0x3b4] sm:$0xf0] }
 0x441   :  { %v5826_v58 = vpop.f32.mrf.mxu3  ;;  %v5838_v41 = vpop.f32.mrf.mxu0 }
 0x442   :  { %v5777_v8 = vpop.f32.mrf.mxu2  ;;  %v5839_v56 = vadd.f32 %v5838_v41, %v14411_v53  ;;  %v5887_v45 = vpop.f32.mrf.mxu1 }
 0x443   :  { %v5778_v44 = vadd.f32 %v5777_v8, %v5729_v35  ;;  %v10209_v8 = vor.u32 %v12445_v7, %v10208_v22 }
 0x444   :  { %v5888_v21 = vadd.f32 %v5887_v45, %v5839_v56  ;;  %6033 = vmatmul.bf16.vlgmr.msra.gmra.mxu0 %v17132_v4  ;;  %6082 = vmatmul.bf16.vlgmr.msra.gmra.mxu1 %v17133_v34  ;;  %v10080_v56 = vld [vmem:[#allocation5 + $0x1a8] sm:$0xf]  ;;  %v12413_v45 = vld [vmem:[#allocation5 + $0x1b4] sm:$0xf0] }
 0x445   :  { %v14484_v31 = vadd.f32 %v5826_v58, %v5778_v44  ;;  %v10337_v44 = vor.u32 %v12477_v61, %v10336_v33  ;;  %6321 = vmatpush.bf16.msrb.mxu2 %v10209_v8  ;;  %v10081_v7 = vor.u32 %v12413_v45, %v10080_v56  ;;  %v17134_v61 = vld [vmem:[#allocation125_spill] sm:$0xff] }
 0x446   :  { %6180 = vmatmul.bf16.vlgmr.msra.gmra.mxu3 %v14091_v23 }
 0x447   :  { %6131 = vmatmul.bf16.vlgmr.msra.gmra.mxu2 %v14089_v42  ;;  %6370 = vmatpush.bf16.msrb.mxu3 %v10337_v44  ;;  %v12441_v44 = vld [vmem:[#allocation5 + $0x294] sm:$0xf0] }
 0x448   :  { %6272 = vmatpush.bf16.msrb.mxu1 %v10081_v7 }
 0x449   :  { %v5985_v16 = vpop.f32.mrf.mxu3  ;;  %v5840_v35 = vpop.f32.mrf.mxu0 }
 0x44a   :  { %v5936_v53 = vpop.f32.mrf.mxu2  ;;  %v5841_v1 = vadd.f32 %v5840_v35, %v14414_v37  ;;  %v5889_v58 = vpop.f32.mrf.mxu1  ;;  %v10320_v35 = vld [vmem:[#allocation5 + $0x388] sm:$0xf] }
 0x44b   :  { %v5937_v38 = vadd.f32 %v5936_v53, %v5888_v21  ;;  %v17135_v53 = vld [vmem:[#allocation126_spill] sm:$0xff] }
 0x44c   :  { %v5890_v22 = vadd.f32 %v5889_v58, %v5841_v1  ;;  %v12473_v1 = vld [vmem:[#allocation5 + $0x394] sm:$0xf0] }
 0x44d   :  { %v14491_v41 = vadd.f32 %v5985_v16, %v5937_v38  ;;  %v9936_v38 = vld [vmem:[#allocation5 + $0x88] sm:$0xf]  ;;  %v12377_v16 = vld [vmem:[#allocation5 + $0x94] sm:$0xf0] }
 0x44e   :  { %v9937_v58 = vor.u32 %v12377_v16, %v9936_v38 }
 0x450   :  { %6224 = vmatpush.bf16.msrb.mxu0 %v9937_v58  ;;  %v10176_v58 = vld [vmem:[#allocation5 + $0x268] sm:$0xf] }
 0x451   :  { %v5987_v9 = vpop.f32.mrf.mxu3  ;;  %v5843_v10 = vpop.f32.mrf.mxu0 }
 0x452   :  { %v5938_v23 = vpop.f32.mrf.mxu2  ;;  %v5844_v21 = vadd.f32 %v5843_v10, %v14421_v11  ;;  %v5892_v33 = vpop.f32.mrf.mxu1 }
 0x453   :  { %v5939_v42 = vadd.f32 %v5938_v23, %v5890_v22  ;;  %v10193_v23 = vor.u32 %v12441_v44, %v10192_v59 }
 0x454   :  { %v5893_v37 = vadd.f32 %v5892_v33, %v5844_v21  ;;  %6038 = vmatmul.bf16.gmra.mxu0 %v17134_v61  ;;  %6087 = vmatmul.bf16.gmra.mxu1 %v17135_v53  ;;  %v10064_v21 = vld [vmem:[#allocation5 + $0x188] sm:$0xf]  ;;  %v12409_v33 = vld [vmem:[#allocation5 + $0x194] sm:$0xf0] }
 0x455   :  { %v14494_v8 = vadd.f32 %v5987_v9, %v5939_v42  ;;  %v10321_v42 = vor.u32 %v12473_v1, %v10320_v35  ;;  %6322 = vmatpush.bf16.msrb.mxu2 %v10193_v23  ;;  %v10065_v44 = vor.u32 %v12409_v33, %v10064_v21  ;;  %v17136_v1 = vld [vmem:[#allocation129_spill] sm:$0xff] }
 0x456   :  { %6185 = vmatmul.bf16.gmra.mxu3 %v14105_v39 }
 0x457   :  { %6136 = vmatmul.bf16.gmra.mxu2 %v14103_v17  ;;  %6371 = vmatpush.bf16.msrb.mxu3 %v10321_v42  ;;  %v12437_v42 = vld [vmem:[#allocation5 + $0x274] sm:$0xf0] }
 0x458   :  { %6273 = vmatpush.bf16.msrb.mxu1 %v10065_v44 }
 0x459   :  { %v5990_v45 = vpop.f32.mrf.mxu3  ;;  %v5845_v22 = vpop.f32.mrf.mxu0 }
 0x45a   :  { %v5941_v11 = vpop.f32.mrf.mxu2  ;;  %v5846_v7 = vadd.f32 %v5845_v22, %v14424_v47  ;;  %v5894_v9 = vpop.f32.mrf.mxu1  ;;  %v10304_v22 = vld [vmem:[#allocation5 + $0x368] sm:$0xf] }
 0x45b   :  { %v5942_v56 = vadd.f32 %v5941_v11, %v5893_v37  ;;  %v17137_v11 = vld [vmem:[#allocation130_spill] sm:$0xff] }
 0x45c   :  { %v5895_v59 = vadd.f32 %v5894_v9, %v5846_v7  ;;  %v12469_v7 = vld [vmem:[#allocation5 + $0x374] sm:$0xf0] }
 0x45d   :  { %v14501_v10 = vadd.f32 %v5990_v45, %v5942_v56  ;;  %v9920_v56 = vld [vmem:[#allocation5 + $0x68] sm:$0xf]  ;;  %v12373_v45 = vld [vmem:[#allocation5 + $0x74] sm:$0xf0] }
 0x45e   :  { %v9921_v9 = vor.u32 %v12373_v45, %v9920_v56 }
 0x460   :  { %6225 = vmatpush.bf16.msrb.mxu0 %v9921_v9  ;;  %v10160_v9 = vld [vmem:[#allocation5 + $0x248] sm:$0xf] }
 0x461   :  { %v5992_v38 = vpop.f32.mrf.mxu3  ;;  %v5848_v16 = vpop.f32.mrf.mxu0 }
 0x462   :  { %v5943_v39 = vpop.f32.mrf.mxu2  ;;  %v5849_v37 = vadd.f32 %v5848_v16, %v14431_v13  ;;  %v5897_v35 = vpop.f32.mrf.mxu1 }
 0x463   :  { %v5944_v17 = vadd.f32 %v5943_v39, %v5895_v59  ;;  %v10177_v39 = vor.u32 %v12437_v42, %v10176_v58 }
 0x464   :  { %v5898_v47 = vadd.f32 %v5897_v35, %v5849_v37  ;;  %6043 = vmatmul.bf16.gmra.mxu0 %v17136_v1  ;;  %6092 = vmatmul.bf16.gmra.mxu1 %v17137_v11  ;;  %v10048_v37 = vld [vmem:[#allocation5 + $0x168] sm:$0xf]  ;;  %v12405_v35 = vld [vmem:[#allocation5 + $0x174] sm:$0xf0] }
 0x465   :  { %v14504_v23 = vadd.f32 %v5992_v38, %v5944_v17  ;;  %v10305_v17 = vor.u32 %v12469_v7, %v10304_v22  ;;  %6323 = vmatpush.bf16.msrb.mxu2 %v10177_v39  ;;  %v10049_v42 = vor.u32 %v12405_v35, %v10048_v37  ;;  %v17138_v7 = vld [vmem:[#allocation133_spill] sm:$0xff] }
 0x466   :  { %6190 = vmatmul.bf16.gmra.mxu3 %v14119_v3 }
 0x467   :  { %6141 = vmatmul.bf16.gmra.mxu2 %v14117_v48  ;;  %6372 = vmatpush.bf16.msrb.mxu3 %v10305_v17  ;;  %v12433_v17 = vld [vmem:[#allocation5 + $0x254] sm:$0xf0] }
 0x468   :  { %6274 = vmatpush.bf16.msrb.mxu1 %v10049_v42 }
 0x469   :  { %v5995_v33 = vpop.f32.mrf.mxu3  ;;  %v5850_v59 = vpop.f32.mrf.mxu0 }
 0x46a   :  { %v5946_v13 = vpop.f32.mrf.mxu2  ;;  %v5851_v44 = vadd.f32 %v5850_v59, %v14434_v2  ;;  %v5899_v38 = vpop.f32.mrf.mxu1  ;;  %v10288_v59 = vld [vmem:[#allocation5 + $0x348] sm:$0xf] }
 0x46b   :  { %v5947_v21 = vadd.f32 %v5946_v13, %v5898_v47  ;;  %v17139_v13 = vld [vmem:[#allocation134_spill] sm:$0xff] }
 0x46c   :  { %v5900_v58 = vadd.f32 %v5899_v38, %v5851_v44  ;;  %v12465_v44 = vld [vmem:[#allocation5 + $0x354] sm:$0xf0] }
 0x46d   :  { %v14511_v16 = vadd.f32 %v5995_v33, %v5947_v21  ;;  %v9904_v21 = vld [vmem:[#allocation5 + $0x48] sm:$0xf]  ;;  %v12369_v33 = vld [vmem:[#allocation5 + $0x54] sm:$0xf0] }
 0x46e   :  { %v9905_v38 = vor.u32 %v12369_v33, %v9904_v21 }
 0x470   :  { %6226 = vmatpush.bf16.msrb.mxu0 %v9905_v38  ;;  %v10144_v38 = vld [vmem:[#allocation5 + $0x228] sm:$0xf] }
 0x471   :  { %v5997_v56 = vpop.f32.mrf.mxu3  ;;  %v5853_v45 = vpop.f32.mrf.mxu0 }
 0x472   :  { %v5948_v3 = vpop.f32.mrf.mxu2  ;;  %v5854_v47 = vadd.f32 %v5853_v45, %v14441_v29  ;;  %v5902_v22 = vpop.f32.mrf.mxu1 }
 0x473   :  { %v5949_v48 = vadd.f32 %v5948_v3, %v5900_v58  ;;  %v10161_v3 = vor.u32 %v12433_v17, %v10160_v9 }
 0x474   :  { %v5903_v2 = vadd.f32 %v5902_v22, %v5854_v47  ;;  %6048 = vmatmul.bf16.gmra.mxu0 %v17138_v7  ;;  %6097 = vmatmul.bf16.gmra.mxu1 %v17139_v13  ;;  %v10032_v47 = vld [vmem:[#allocation5 + $0x148] sm:$0xf]  ;;  %v12401_v22 = vld [vmem:[#allocation5 + $0x154] sm:$0xf0] }
 0x475   :  { %v14514_v39 = vadd.f32 %v5997_v56, %v5949_v48  ;;  %v10289_v48 = vor.u32 %v12465_v44, %v10288_v59  ;;  %6324 = vmatpush.bf16.msrb.mxu2 %v10161_v3  ;;  %v10033_v17 = vor.u32 %v12401_v22, %v10032_v47  ;;  %v17140_v44 = vld [vmem:[#allocation137_spill] sm:$0xff] }
 0x476   :  { %6195 = vmatmul.bf16.gmra.mxu3 %v14133_v46 }
 0x477   :  { %6146 = vmatmul.bf16.gmra.mxu2 %v14131_v24  ;;  %6373 = vmatpush.bf16.msrb.mxu3 %v10289_v48  ;;  %v12429_v48 = vld [vmem:[#allocation5 + $0x234] sm:$0xf0] }
 0x478   :  { %6275 = vmatpush.bf16.msrb.mxu1 %v10033_v17 }
 0x479   :  { %v6000_v35 = vpop.f32.mrf.mxu3  ;;  %v5855_v58 = vpop.f32.mrf.mxu0 }
 0x47a   :  { %v5951_v29 = vpop.f32.mrf.mxu2  ;;  %v5856_v42 = vadd.f32 %v5855_v58, %v14444_v18  ;;  %v5904_v56 = vpop.f32.mrf.mxu1  ;;  %v10272_v58 = vld [vmem:[#allocation5 + $0x328] sm:$0xf] }
 0x47b   :  { %v5952_v37 = vadd.f32 %v5951_v29, %v5903_v2  ;;  %v17141_v29 = vld [vmem:[#allocation138_spill] sm:$0xff] }
 0x47c   :  { %v5905_v9 = vadd.f32 %v5904_v56, %v5856_v42  ;;  %v12461_v42 = vld [vmem:[#allocation5 + $0x334] sm:$0xf0] }
 0x47d   :  { %v14521_v45 = vadd.f32 %v6000_v35, %v5952_v37  ;;  %v9888_v37 = vld [vmem:[#allocation5 + $0x28] sm:$0xf]  ;;  %v12365_v35 = vld [vmem:[#allocation5 + $0x34] sm:$0xf0] }
 0x47e   :  { %v9889_v56 = vor.u32 %v12365_v35, %v9888_v37 }
 0x480   :  { %6227 = vmatpush.bf16.msrb.mxu0 %v9889_v56  ;;  %v10128_v56 = vld [vmem:[#allocation5 + $0x208] sm:$0xf] }
 0x481   :  { %v6002_v21 = vpop.f32.mrf.mxu3  ;;  %v5858_v33 = vpop.f32.mrf.mxu0 }
 0x482   :  { %v5953_v46 = vpop.f32.mrf.mxu2  ;;  %v5859_v2 = vadd.f32 %v5858_v33, %v14451_v62  ;;  %v5907_v59 = vpop.f32.mrf.mxu1 }
 0x483   :  { %v5954_v24 = vadd.f32 %v5953_v46, %v5905_v9  ;;  %v10145_v46 = vor.u32 %v12429_v48, %v10144_v38 }
 0x484   :  { %v5908_v18 = vadd.f32 %v5907_v59, %v5859_v2  ;;  %6053 = vmatmul.bf16.gmra.mxu0 %v17140_v44  ;;  %6102 = vmatmul.bf16.gmra.mxu1 %v17141_v29  ;;  %v10016_v2 = vld [vmem:[#allocation5 + $0x128] sm:$0xf]  ;;  %v12397_v59 = vld [vmem:[#allocation5 + $0x134] sm:$0xf0] }
 0x485   :  { %v14524_v3 = vadd.f32 %v6002_v21, %v5954_v24  ;;  %v10273_v24 = vor.u32 %v12461_v42, %v10272_v58  ;;  %6325 = vmatpush.bf16.msrb.mxu2 %v10145_v46  ;;  %v10017_v48 = vor.u32 %v12397_v59, %v10016_v2  ;;  %v17142_v42 = vld [vmem:[#allocation141_spill] sm:$0xff] }
 0x486   :  { %6200 = vmatmul.bf16.gmra.mxu3 %v14147_v5 }
 0x487   :  { %6151 = vmatmul.bf16.gmra.mxu2 %v14145_v49  ;;  %6374 = vmatpush.bf16.msrb.mxu3 %v10273_v24  ;;  %v12425_v24 = vld [vmem:[#allocation5 + $0x214] sm:$0xf0] }
 0x488   :  { %6276 = vmatpush.bf16.msrb.mxu1 %v10017_v48 }
 0x489   :  { %v6005_v22 = vpop.f32.mrf.mxu3  ;;  %v5860_v9 = vpop.f32.mrf.mxu0 }
 0x48a   :  { %v5956_v62 = vpop.f32.mrf.mxu2  ;;  %v5861_v17 = vadd.f32 %v5860_v9, %v14454_v15  ;;  %v5909_v21 = vpop.f32.mrf.mxu1  ;;  %v10256_v9 = vld [vmem:[#allocation5 + $0x308] sm:$0xf] }
 0x48b   :  { %v5957_v47 = vadd.f32 %v5956_v62, %v5908_v18  ;;  %v17143_v62 = vld [vmem:[#allocation142_spill] sm:$0xff] }
 0x48c   :  { %v5910_v38 = vadd.f32 %v5909_v21, %v5861_v17  ;;  %v12457_v17 = vld [vmem:[#allocation5 + $0x314] sm:$0xf0] }
 0x48d   :  { %v14531_v33 = vadd.f32 %v6005_v22, %v5957_v47  ;;  %v9872_v47 = vld [vmem:[#allocation5 + $0x8] sm:$0xf]  ;;  %v12361_v22 = vld [vmem:[#allocation5 + $0x14] sm:$0xf0] }
 0x48e   :  { %v9873_v21 = vor.u32 %v12361_v22, %v9872_v47 }
 0x490   :  { %6228 = vmatpush.bf16.msrb.mxu0 %v9873_v21  ;;  %v10752_v21 = vld [vmem:[#allocation5 + $0x6e8] sm:$0xf] }
 0x491   :  { %v6007_v37 = vpop.f32.mrf.mxu3  ;;  %v5863_v35 = vpop.f32.mrf.mxu0 }
 0x492   :  { %v5958_v5 = vpop.f32.mrf.mxu2  ;;  %v5864_v18 = vadd.f32 %v5863_v35, %v14461_v32  ;;  %v5912_v58 = vpop.f32.mrf.mxu1 }
 0x493   :  { %v5959_v49 = vadd.f32 %v5958_v5, %v5910_v38  ;;  %v10129_v5 = vor.u32 %v12425_v24, %v10128_v56 }
 0x494   :  { %v5913_v15 = vadd.f32 %v5912_v58, %v5864_v18  ;;  %6058 = vmatmul.bf16.gmra.mxu0 %v17142_v42  ;;  %6107 = vmatmul.bf16.gmra.mxu1 %v17143_v62  ;;  %v10000_v18 = vld [vmem:[#allocation5 + $0x108] sm:$0xf]  ;;  %v12393_v58 = vld [vmem:[#allocation5 + $0x114] sm:$0xf0] }
 0x495   :  { %v14534_v46 = vadd.f32 %v6007_v37, %v5959_v49  ;;  %v10257_v49 = vor.u32 %v12457_v17, %v10256_v9  ;;  %6326 = vmatpush.bf16.msrb.mxu2 %v10129_v5  ;;  %v10001_v24 = vor.u32 %v12393_v58, %v10000_v18  ;;  %v17144_v17 = vld [vmem:[#allocation145_spill] sm:$0xff] }
 0x496   :  { %6205 = vmatmul.bf16.gmra.mxu3 %v14161_v43 }
 0x497   :  { %6156 = vmatmul.bf16.gmra.mxu2 %v14159_v12  ;;  %6375 = vmatpush.bf16.msrb.mxu3 %v10257_v49  ;;  %v12581_v49 = vld [vmem:[#allocation5 + $0x6f4] sm:$0xf0] }
 0x498   :  { %6277 = vmatpush.bf16.msrb.mxu1 %v10001_v24 }
 0x499   :  { %v6010_v59 = vpop.f32.mrf.mxu3  ;;  %v5865_v38 = vpop.f32.mrf.mxu0 }
 0x49a   :  { %v5961_v32 = vpop.f32.mrf.mxu2  ;;  %v5866_v48 = vadd.f32 %v5865_v38, %v14464_v19  ;;  %v5914_v37 = vpop.f32.mrf.mxu1  ;;  %v10880_v38 = vld [vmem:[#allocation5 + $0x7e8] sm:$0xf] }
 0x49b   :  { %v5962_v2 = vadd.f32 %v5961_v32, %v5913_v15  ;;  %v17145_v32 = vld [vmem:[#allocation146_spill] sm:$0xff] }
 0x49c   :  { %v5915_v56 = vadd.f32 %v5914_v37, %v5866_v48  ;;  %v12613_v48 = vld [vmem:[#allocation5 + $0x7f4] sm:$0xf0] }
 0x49d   :  { %v14541_v35 = vadd.f32 %v6010_v59, %v5962_v2  ;;  %v10496_v2 = vld [vmem:[#allocation5 + $0x4e8] sm:$0xf]  ;;  %v12517_v59 = vld [vmem:[#allocation5 + $0x4f4] sm:$0xf0] }
 0x49e   :  { %v10497_v37 = vor.u32 %v12517_v59, %v10496_v2 }
 0x4a0   :  { %6417 = vmatpush.bf16.msra.mxu0 %v10497_v37 }
 0x4a1   :  { %v6012_v47 = vpop.f32.mrf.mxu3  ;;  %v5868_v22 = vpop.f32.mrf.mxu0 }
 0x4a2   :  { %v5963_v43 = vpop.f32.mrf.mxu2  ;;  %v5869_v15 = vadd.f32 %v5868_v22, %v14471_v25  ;;  %v5917_v9 = vpop.f32.mrf.mxu1 }
 0x4a3   :  { %v5964_v12 = vadd.f32 %v5963_v43, %v5915_v56  ;;  %v10753_v43 = vor.u32 %v12581_v49, %v10752_v21 }
 0x4a4   :  { %v5918_v19 = vadd.f32 %v5917_v9, %v5869_v15  ;;  %6063 = vmatmul.bf16.gmra.mxu0 %v17144_v17  ;;  %6112 = vmatmul.bf16.gmra.mxu1 %v17145_v32 }
 0x4a5   :  { %v14544_v5 = vadd.f32 %v6012_v47, %v5964_v12  ;;  %v10881_v12 = vor.u32 %v12613_v48, %v10880_v38  ;;  %6515 = vmatpush.bf16.msra.mxu2 %v10753_v43  ;;  %v17146_v38 = vld [vmem:[#allocation149_spill] sm:$0xff]  ;;  %v17147_v43 = vld [vmem:[#allocation150_spill] sm:$0xff] }
 0x4a6   :  { %6210 = vmatmul.bf16.gmra.mxu3 %v14175_v30 }
 0x4a7   :  { %6161 = vmatmul.bf16.gmra.mxu2 %v14173_v40  ;;  %6564 = vmatpush.bf16.msra.mxu3 %v10881_v12 }
 0x4a9   :  { %v6015_v58 = vpop.f32.mrf.mxu3  ;;  %v5870_v56 = vpop.f32.mrf.mxu0 }
 0x4aa   :  { %v5966_v25 = vpop.f32.mrf.mxu2  ;;  %v5871_v24 = vadd.f32 %v5870_v56, %v14474_v60  ;;  %v5919_v47 = vpop.f32.mrf.mxu1 }
 0x4ab   :  { %v5967_v18 = vadd.f32 %v5966_v25, %v5918_v19 }
 0x4ac   :  { %v5920_v15 = vadd.f32 %v5919_v47, %v5871_v24 }
 0x4ad   :  { %v14551_v22 = vadd.f32 %v6015_v58, %v5967_v18 }
 0x4b1   :  { %v6017_v49 = vpop.f32.mrf.mxu3  ;;  %v5873_v30 = vpop.f32.mrf.mxu0 }
 0x4b2   :  { %v5968_v9 = vpop.f32.mrf.mxu2  ;;  %v5874_v40 = vadd.f32 %v5873_v30, %v14481_v28  ;;  %v5922_v2 = vpop.f32.mrf.mxu1 }
 0x4b3   :  { %v5969_v21 = vadd.f32 %v5968_v9, %v5920_v15 }
 0x4b4   :  { %v5923_v19 = vadd.f32 %v5922_v2, %v5874_v40  ;;  %6068 = vmatmul.bf16.gmra.mxu0 %v17146_v38  ;;  %6117 = vmatmul.bf16.gmra.mxu1 %v17147_v43  ;;  %v17149_v2 = vld [vmem:[#allocation24_spill] sm:$0xff] }
 0x4b5   :  { %v14554_v59 = vadd.f32 %v6017_v49, %v5969_v21  ;;  %v17148_v49 = vld [vmem:[#allocation23_spill] sm:$0xff] }
 0x4b6   :  { %6215 = vmatmul.bf16.gmra.mxu3 %v14189_v14 }
 0x4b7   :  { %6166 = vmatmul.bf16.gmra.mxu2 %v14187_v50 }
 0x4b9   :  { %v6020_v25 = vpop.f32.mrf.mxu3  ;;  %v5875_v37 = vpop.f32.mrf.mxu0 }
 0x4ba   :  { %v5971_v60 = vpop.f32.mrf.mxu2  ;;  %v5876_v12 = vadd.f32 %v5875_v37, %v14484_v31  ;;  %v5924_v18 = vpop.f32.mrf.mxu1  ;;  %v10624_v31 = vld [vmem:[#allocation5 + $0x5e8] sm:$0xf] }
 0x4bb   :  { %v5972_v48 = vadd.f32 %v5971_v60, %v5923_v19  ;;  %v12549_v19 = vld [vmem:[#allocation5 + $0x5f4] sm:$0xf0] }
 0x4bc   :  { %v5925_v28 = vadd.f32 %v5924_v18, %v5876_v12 }
 0x4bd   :  { %v14561_v30 = vadd.f32 %v6020_v25, %v5972_v48  ;;  %v10625_v48 = vor.u32 %v12549_v19, %v10624_v31 }
 0x4bf   :  { %6466 = vmatpush.bf16.msra.mxu1 %v10625_v48 }
 0x4c1   :  { %v6022_v56 = vpop.f32.mrf.mxu3  ;;  %v6034_v24 = vpop.f32.mrf.mxu0 }
 0x4c2   :  { %v5973_v58 = vpop.f32.mrf.mxu2  ;;  %v6035_v47 = vadd.f32 %v6034_v24, %v14491_v41  ;;  %v6083_v15 = vpop.f32.mrf.mxu1  ;;  %v10480_v24 = vld [vmem:[#allocation5 + $0x4c8] sm:$0xf] }
 0x4c3   :  { %v5974_v40 = vadd.f32 %v5973_v58, %v5925_v28 }
 0x4c4   :  { %v6084_v21 = vadd.f32 %v6083_v15, %v6035_v47  ;;  %6229 = vmatmul.bf16.vlgmr.msrb.gmra.mxu0 %v17148_v49  ;;  %6278 = vmatmul.bf16.vlgmr.msrb.gmra.mxu1 %v17149_v2  ;;  %v12513_v15 = vld [vmem:[#allocation5 + $0x4d4] sm:$0xf0] }
 0x4c5   :  { %v14564_v9 = vadd.f32 %v6022_v56, %v5974_v40  ;;  %v10736_v40 = vld [vmem:[#allocation5 + $0x6c8] sm:$0xf]  ;;  %v12577_v56 = vld [vmem:[#allocation5 + $0x6d4] sm:$0xf0]  ;;  %v10481_v14 = vor.u32 %v12513_v15, %v10480_v24 }
 0x4c6   :  { %6376 = vmatmul.bf16.vlgmr.msrb.gmra.mxu3 %v13585_v57  ;;  %v10737_v47 = vor.u32 %v12577_v56, %v10736_v40  ;;  %v10864_v57 = vld [vmem:[#allocation5 + $0x7c8] sm:$0xf] }
 0x4c7   :  { %6327 = vmatmul.bf16.vlgmr.msrb.gmra.mxu2 %v13583_v54  ;;  %v12609_v54 = vld [vmem:[#allocation5 + $0x7d4] sm:$0xf0]  ;;  %6418 = vmatpush.bf16.msra.mxu0 %v10481_v14  ;;  %v10720_v15 = vld [vmem:[#allocation5 + $0x6a8] sm:$0xf] }
 0x4c8   :  { %v10865_v50 = vor.u32 %v12609_v54, %v10864_v57  ;;  %6516 = vmatpush.bf16.msra.mxu2 %v10737_v47  ;;  %v10608_v54 = vld [vmem:[#allocation5 + $0x5c8] sm:$0xf]  ;;  %v12545_v57 = vld [vmem:[#allocation5 + $0x5d4] sm:$0xf0] }
 0x4c9   :  { %v6181_v37 = vpop.f32.mrf.mxu3  ;;  %v6036_v12 = vpop.f32.mrf.mxu0 }
 0x4ca   :  { %v6132_v60 = vpop.f32.mrf.mxu2  ;;  %v6037_v41 = vadd.f32 %v6036_v12, %v14494_v8  ;;  %v6085_v18 = vpop.f32.mrf.mxu1  ;;  %6565 = vmatpush.bf16.msra.mxu3 %v10865_v50  ;;  %v17151_v12 = vld [vmem:[#allocation27_spill] sm:$0xff] }
 0x4cb   :  { %v6133_v25 = vadd.f32 %v6132_v60, %v6084_v21 }
 0x4cc   :  { %v6086_v58 = vadd.f32 %v6085_v18, %v6037_v41  ;;  %v17152_v41 = vld [vmem:[#allocation28_spill] sm:$0xff] }
 0x4cd   :  { %v14571_v28 = vadd.f32 %v6181_v37, %v6133_v25 }
 0x4d1   :  { %v6183_v19 = vpop.f32.mrf.mxu3  ;;  %v6039_v60 = vpop.f32.mrf.mxu0 }
 0x4d2   :  { %v6134_v31 = vpop.f32.mrf.mxu2  ;;  %v6040_v8 = vadd.f32 %v6039_v60, %v14501_v10  ;;  %v6088_v48 = vpop.f32.mrf.mxu1  ;;  %v12509_v60 = vld [vmem:[#allocation5 + $0x4b4] sm:$0xf0] }
 0x4d3   :  { %v6135_v21 = vadd.f32 %v6134_v31, %v6086_v58  ;;  %v10609_v58 = vor.u32 %v12545_v57, %v10608_v54  ;;  %v12573_v31 = vld [vmem:[#allocation5 + $0x6b4] sm:$0xf0] }
 0x4d4   :  { %v6089_v37 = vadd.f32 %v6088_v48, %v6040_v8  ;;  %6234 = vmatmul.bf16.gmra.mxu0 %v17151_v12  ;;  %6283 = vmatmul.bf16.gmra.mxu1 %v17152_v41  ;;  %v10848_v8 = vld [vmem:[#allocation5 + $0x7a8] sm:$0xf]  ;;  %v12605_v48 = vld [vmem:[#allocation5 + $0x7b4] sm:$0xf0] }
 0x4d5   :  { %v14574_v25 = vadd.f32 %v6183_v19, %v6135_v21  ;;  %6467 = vmatpush.bf16.msra.mxu1 %v10609_v58  ;;  %v10464_v21 = vld [vmem:[#allocation5 + $0x4a8] sm:$0xf]  ;;  %v10721_v19 = vor.u32 %v12573_v31, %v10720_v15 }
 0x4d6   :  { %6381 = vmatmul.bf16.gmra.mxu3 %v13597_v27  ;;  %v10465_v27 = vor.u32 %v12509_v60, %v10464_v21 }
 0x4d7   :  { %17150 = vst [vmem:[#allocation23_spill] sm:$0xff] %v14574_v25  ;;  %6332 = vmatmul.bf16.gmra.mxu2 %v13595_v26  ;;  %v10849_v26 = vor.u32 %v12605_v48, %v10848_v8  ;;  %v10704_v48 = vld [vmem:[#allocation5 + $0x688] sm:$0xf] }
 0x4d8   :  { %6517 = vmatpush.bf16.msra.mxu2 %v10721_v19  ;;  %6419 = vmatpush.bf16.msra.mxu0 %v10465_v27 }
 0x4d9   :  { %v6186_v50 = vpop.f32.mrf.mxu3  ;;  %v6041_v40 = vpop.f32.mrf.mxu0  ;;  %6566 = vmatpush.bf16.msra.mxu3 %v10849_v26 }
 0x4da   :  { %v6137_v18 = vpop.f32.mrf.mxu2  ;;  %v6042_v10 = vadd.f32 %v6041_v40, %v14504_v23  ;;  %v6090_v56 = vpop.f32.mrf.mxu1  ;;  %v17155_v40 = vld [vmem:[#allocation31_spill] sm:$0xff] }
 0x4db   :  { %v6138_v14 = vadd.f32 %v6137_v18, %v6089_v37 }
 0x4dc   :  { %v6091_v47 = vadd.f32 %v6090_v56, %v6042_v10  ;;  %v17156_v10 = vld [vmem:[#allocation32_spill] sm:$0xff]  ;;  %v10592_v56 = vld [vmem:[#allocation5 + $0x5a8] sm:$0xf] }
 0x4dd   :  { %v14581_v24 = vadd.f32 %v6186_v50, %v6138_v14 }
 0x4df   :  { %17153 = vst [vmem:[#allocation24_spill] sm:$0xff] %v14581_v24 }
 0x4e1   :  { %v6188_v57 = vpop.f32.mrf.mxu3  ;;  %v6044_v18 = vpop.f32.mrf.mxu0 }
 0x4e2   :  { %v6139_v54 = vpop.f32.mrf.mxu2  ;;  %v6045_v23 = vadd.f32 %v6044_v18, %v14511_v16  ;;  %v6093_v58 = vpop.f32.mrf.mxu1  ;;  %v12505_v18 = vld [vmem:[#allocation5 + $0x494] sm:$0xf0] }
 0x4e3   :  { %v6140_v37 = vadd.f32 %v6139_v54, %v6091_v47  ;;  %v12541_v47 = vld [vmem:[#allocation5 + $0x5b4] sm:$0xf0] }
 0x4e4   :  { %v6094_v50 = vadd.f32 %v6093_v58, %v6045_v23  ;;  %6239 = vmatmul.bf16.gmra.mxu0 %v17155_v40  ;;  %6288 = vmatmul.bf16.gmra.mxu1 %v17156_v10  ;;  %v10593_v31 = vor.u32 %v12541_v47, %v10592_v56  ;;  %v12569_v54 = vld [vmem:[#allocation5 + $0x694] sm:$0xf0]  ;;  %v10832_v23 = vld [vmem:[#allocation5 + $0x788] sm:$0xf] }
 0x4e5   :  { %v14584_v14 = vadd.f32 %v6188_v57, %v6140_v37  ;;  %v10705_v37 = vor.u32 %v12569_v54, %v10704_v48  ;;  %v10448_v57 = vld [vmem:[#allocation5 + $0x488] sm:$0xf] }
 0x4e6   :  { %6386 = vmatmul.bf16.gmra.mxu3 %v13609_v52  ;;  %6468 = vmatpush.bf16.msra.mxu1 %v10593_v31  ;;  %v10449_v58 = vor.u32 %v12505_v18, %v10448_v57  ;;  %v12601_v52 = vld [vmem:[#allocation5 + $0x794] sm:$0xf0] }
 0x4e7   :  { %17154 = vst [vmem:[#allocation27_spill] sm:$0xff] %v14584_v14  ;;  %6337 = vmatmul.bf16.gmra.mxu2 %v13607_v51  ;;  %v17175_v14 = vld [vmem:[#allocation47_spill] sm:$0xff] }
 0x4e8   :  { %6518 = vmatpush.bf16.msra.mxu2 %v10705_v37  ;;  %6420 = vmatpush.bf16.msra.mxu0 %v10449_v58  ;;  %v10688_v58 = vld [vmem:[#allocation5 + $0x668] sm:$0xf] }
 0x4e9   :  { %v6191_v26 = vpop.f32.mrf.mxu3  ;;  %v6046_v21 = vpop.f32.mrf.mxu0 }
 0x4ea   :  { %v6142_v15 = vpop.f32.mrf.mxu2  ;;  %v6047_v16 = vadd.f32 %v6046_v21, %v14514_v39  ;;  %v6095_v19 = vpop.f32.mrf.mxu1  ;;  %v17159_v21 = vld [vmem:[#allocation35_spill] sm:$0xff] }
 0x4eb   :  { %v6143_v27 = vadd.f32 %v6142_v15, %v6094_v50  ;;  %v10833_v50 = vor.u32 %v12601_v52, %v10832_v23  ;;  %v10576_v52 = vld [vmem:[#allocation5 + $0x588] sm:$0xf] }
 0x4ec   :  { %v6096_v8 = vadd.f32 %v6095_v19, %v6047_v16  ;;  %v17160_v16 = vld [vmem:[#allocation36_spill] sm:$0xff] }
 0x4ed   :  { %v14591_v60 = vadd.f32 %v6191_v26, %v6143_v27  ;;  %6567 = vmatpush.bf16.msra.mxu3 %v10833_v50  ;;  %v12565_v50 = vld [vmem:[#allocation5 + $0x674] sm:$0xf0] }
 0x4ef   :  { %17157 = vst [vmem:[#allocation28_spill] sm:$0xff] %v14591_v60  ;;  %v12525_v60 = vld [vmem:[#allocation5 + $0x534] sm:$0xf0] }
 0x4f1   :  { %v6193_v47 = vpop.f32.mrf.mxu3  ;;  %v6049_v15 = vpop.f32.mrf.mxu0 }
 0x4f2   :  { %v6144_v51 = vpop.f32.mrf.mxu2  ;;  %v6050_v39 = vadd.f32 %v6049_v15, %v14521_v45  ;;  %v6098_v31 = vpop.f32.mrf.mxu1  ;;  %v12501_v15 = vld [vmem:[#allocation5 + $0x474] sm:$0xf0] }
 0x4f3   :  { %v6145_v56 = vadd.f32 %v6144_v51, %v6096_v8  ;;  %v12537_v51 = vld [vmem:[#allocation5 + $0x594] sm:$0xf0] }
 0x4f4   :  { %v6099_v26 = vadd.f32 %v6098_v31, %v6050_v39  ;;  %6244 = vmatmul.bf16.gmra.mxu0 %v17159_v21  ;;  %6293 = vmatmul.bf16.gmra.mxu1 %v17160_v16  ;;  %v10577_v8 = vor.u32 %v12537_v51, %v10576_v52  ;;  %v10816_v39 = vld [vmem:[#allocation5 + $0x768] sm:$0xf] }
 0x4f5   :  { %v14594_v27 = vadd.f32 %v6193_v47, %v6145_v56  ;;  %v10689_v56 = vor.u32 %v12565_v50, %v10688_v58  ;;  %v10432_v47 = vld [vmem:[#allocation5 + $0x468] sm:$0xf]  ;;  %v17166_v58 = vld [vmem:[#allocation42_spill] sm:$0xff] }
 0x4f6   :  { %6391 = vmatmul.bf16.gmra.mxu3 %v17039_v63  ;;  %6469 = vmatpush.bf16.msra.mxu1 %v10577_v8  ;;  %v10433_v31 = vor.u32 %v12501_v15, %v10432_v47  ;;  %v12597_v63 = vld [vmem:[#allocation5 + $0x774] sm:$0xf0]  ;;  %v8010_v15 = vld [vmem:[#allocation11] sm:$0xff] }
 0x4f7   :  { %17158 = vst [vmem:[#allocation31_spill] sm:$0xff] %v14594_v27  ;;  %6342 = vmatmul.bf16.gmra.mxu2 %v17038_v55 }
 0x4f8   :  { %6519 = vmatpush.bf16.msra.mxu2 %v10689_v56  ;;  %6421 = vmatpush.bf16.msra.mxu0 %v10433_v31 }
 0x4f9   :  { %v6196_v54 = vpop.f32.mrf.mxu3  ;;  %v6051_v45 = vpop.f32.mrf.mxu0 }
 0x4fa   :  { %v6147_v19 = vpop.f32.mrf.mxu2  ;;  %v6052_v37 = vadd.f32 %v6051_v45, %v14524_v3  ;;  %v6100_v57 = vpop.f32.mrf.mxu1  ;;  %v17163_v45 = vld [vmem:[#allocation39_spill] sm:$0xff] }
 0x4fb   :  { %v6148_v48 = vadd.f32 %v6147_v19, %v6099_v26  ;;  %v10817_v26 = vor.u32 %v12597_v63, %v10816_v39  ;;  %v10560_v63 = vld [vmem:[#allocation5 + $0x568] sm:$0xf] }
 0x4fc   :  { %v6101_v23 = vadd.f32 %v6100_v57, %v6052_v37  ;;  %v17164_v37 = vld [vmem:[#allocation40_spill] sm:$0xff]  ;;  %v17165_v57 = vld [vmem:[#allocation41_spill] sm:$0xff] }
 0x4fd   :  { %v14601_v18 = vadd.f32 %v6196_v54, %v6148_v48  ;;  %6568 = vmatpush.bf16.msra.mxu3 %v10817_v26  ;;  %v13205_v26 = vld [vmem:[#allocation7] sm:$0xf] }
 0x4ff   :  { %17161 = vst [vmem:[#allocation32_spill] sm:$0xff] %v14601_v18 }
 0x501   :  { %v6198_v51 = vpop.f32.mrf.mxu3  ;;  %v6054_v19 = vpop.f32.mrf.mxu0 }
 0x502   :  { %v6149_v55 = vpop.f32.mrf.mxu2  ;;  %v6055_v3 = vadd.f32 %v6054_v19, %v14531_v33  ;;  %v6103_v8 = vpop.f32.mrf.mxu1  ;;  %v13206_v19 = vld [vmem:[#allocation8 + $0x40] sm:$0xff] }
 0x503   :  { %v6150_v52 = vadd.f32 %v6149_v55, %v6101_v23  ;;  %v12533_v55 = vld [vmem:[#allocation5 + $0x574] sm:$0xf0] }
 0x504   :  { %v6104_v54 = vadd.f32 %v6103_v8, %v6055_v3  ;;  %6249 = vmatmul.bf16.gmra.mxu0 %v17163_v45  ;;  %6298 = vmatmul.bf16.gmra.mxu1 %v17164_v37  ;;  %v10561_v50 = vor.u32 %v12533_v55, %v10560_v63  ;;  %v8404_v3 = vmul.f32 %v13206_v19, %v8010_v15  ;;  %v12497_v55 = vld [vmem:[#allocation5 + $0x454] sm:$0xf0]  ;;  %v8011_v15 = vld [vmem:[#allocation11 + $0x8] sm:$0xff] }
 0x505   :  { %v14604_v48 = vadd.f32 %v6198_v51, %v6150_v52  ;;  %v14611_v52 = vperm.slane %v13205_v26, 1 }
 0x506   :  { %6396 = vmatmul.bf16.gmra.mxu3 %v17166_v58  ;;  %6470 = vmatpush.bf16.msra.mxu1 %v10561_v50 }
 0x507   :  { %17162 = vst [vmem:[#allocation35_spill] sm:$0xff] %v14604_v48  ;;  %6347 = vmatmul.bf16.gmra.mxu2 %v17165_v57  ;;  %v10672_v57 = vld [vmem:[#allocation5 + $0x648] sm:$0xf]  ;;  %v12561_v48 = vld [vmem:[#allocation5 + $0x654] sm:$0xf0] }
 0x508   :  { %17167 = vst [vmem:[#allocation36_spill] sm:$0xff] %v14611_v52  ;;  %v10673_v63 = vor.u32 %v12561_v48, %v10672_v57  ;;  %v13207_v57 = vld [vmem:[#allocation8 + $0x48] sm:$0xff] }
 0x509   :  { %v6201_v47 = vpop.f32.mrf.mxu3  ;;  %v6056_v33 = vpop.f32.mrf.mxu0 }
 0x50a   :  { %v6152_v23 = vpop.f32.mrf.mxu2  ;;  %v6057_v39 = vadd.f32 %v6056_v33, %v14534_v46  ;;  %v6105_v31 = vpop.f32.mrf.mxu1  ;;  %v12593_v46 = vld [vmem:[#allocation5 + $0x754] sm:$0xf0]  ;;  %6520 = vmatpush.bf16.msra.mxu2 %v10673_v63 }
 0x50b   :  { %v6153_v56 = vadd.f32 %v6152_v23, %v6104_v54  ;;  %v10416_v54 = vld [vmem:[#allocation5 + $0x448] sm:$0xf]  ;;  %v17171_v63 = vld [vmem:[#allocation45_spill] sm:$0xff] }
 0x50c   :  { %v6106_v8 = vadd.f32 %v6105_v31, %v6057_v39  ;;  %v10800_v23 = vld [vmem:[#allocation5 + $0x748] sm:$0xf]  ;;  %v10417_v50 = vor.u32 %v12497_v55, %v10416_v54  ;;  %v17170_v54 = vld [vmem:[#allocation44_spill] sm:$0xff] }
 0x50d   :  { %v6202_v51 = vadd.f32 %v6201_v47, %v6153_v56  ;;  %v10801_v26 = vor.u32 %v12593_v46, %v10800_v23  ;;  %v10544_v23 = vld [vmem:[#allocation5 + $0x548] sm:$0xf] }
 0x50e   :  { %6422 = vmatpush.bf16.msra.mxu0 %v10417_v50 }
 0x50f   :  { %v8388_v58 = vadd.f32 %v14611_v52, %v6202_v51  ;;  %6569 = vmatpush.bf16.msra.mxu3 %v10801_v26  ;;  %v8405_v51 = vmul.f32 %v13207_v57, %v8011_v15 }
 0x511   :  { %v14614_v18 = vadd.f32 %v8404_v3, %v8388_v58  ;;  %v6203_v56 = vpop.f32.mrf.mxu3  ;;  %v6059_v47 = vpop.f32.mrf.mxu0  ;;  %v17169_v58 = vld [vmem:[#allocation43_spill] sm:$0xff] }
 0x512   :  { %v6154_v33 = vpop.f32.mrf.mxu2  ;;  %v6060_v39 = vadd.f32 %v6059_v47, %v14541_v35  ;;  %v6108_v31 = vpop.f32.mrf.mxu1  ;;  %v12529_v35 = vld [vmem:[#allocation5 + $0x554] sm:$0xf0] }
 0x513   :  { %17168 = vst [vmem:[#allocation39_spill] sm:$0xff] %v14614_v18  ;;  %v6155_v27 = vadd.f32 %v6154_v33, %v6106_v8  ;;  %v17172_v8 = vld [vmem:[#allocation46_spill] sm:$0xff]  ;;  %v10545_v46 = vor.u32 %v12529_v35, %v10544_v23  ;;  %v12493_v18 = vld [vmem:[#allocation5 + $0x434] sm:$0xf0]  ;;  %v10784_v23 = vld [vmem:[#allocation5 + $0x728] sm:$0xf] }
 0x514   :  { %v6109_v19 = vadd.f32 %v6108_v31, %v6060_v39  ;;  %6254 = vmatmul.bf16.gmra.mxu0 %v17169_v58  ;;  %6303 = vmatmul.bf16.gmra.mxu1 %v17170_v54  ;;  %v13208_v31 = vld [vmem:[#allocation8 + $0x50] sm:$0xff] }
 0x515   :  { %v6204_v48 = vadd.f32 %v6203_v56, %v6155_v27  ;;  %v8012_v56 = vld [vmem:[#allocation11 + $0x10] sm:$0xff]  ;;  %6471 = vmatpush.bf16.msra.mxu1 %v10545_v46 }
 0x516   :  { %6401 = vmatmul.bf16.gmra.mxu3 %v17172_v8  ;;  %v12557_v8 = vld [vmem:[#allocation5 + $0x634] sm:$0xf0] }
 0x517   :  { %v8389_v3 = vadd.f32 %v14611_v52, %v6204_v48  ;;  %6352 = vmatmul.bf16.gmra.mxu2 %v17171_v63  ;;  %v8406_v48 = vmul.f32 %v13208_v31, %v8012_v56  ;;  %v10656_v63 = vld [vmem:[#allocation5 + $0x628] sm:$0xf]  ;;  %v12589_v35 = vld [vmem:[#allocation5 + $0x734] sm:$0xf0] }
 0x518   :  { %v12553_v56 = vld [vmem:[#allocation5 + $0x614] sm:$0xf0] }
 0x519   :  { %v14622_v55 = vadd.f32 %v8405_v51, %v8389_v3  ;;  %v6206_v33 = vpop.f32.mrf.mxu3  ;;  %v6061_v26 = vpop.f32.mrf.mxu0  ;;  %v10400_v51 = vld [vmem:[#allocation5 + $0x428] sm:$0xf] }
 0x51a   :  { %v6157_v50 = vpop.f32.mrf.mxu2  ;;  %v6062_v47 = vadd.f32 %v6061_v26, %v14544_v5  ;;  %v6110_v15 = vpop.f32.mrf.mxu1  ;;  %v10785_v5 = vor.u32 %v12589_v35, %v10784_v23  ;;  %v10640_v26 = vld [vmem:[#allocation5 + $0x608] sm:$0xf]  ;;  %v12585_v23 = vld [vmem:[#allocation5 + $0x714] sm:$0xf0] }
 0x51b   :  { %17173 = vst [vmem:[#allocation40_spill] sm:$0xff] %v14622_v55  ;;  %v6158_v27 = vadd.f32 %v6157_v50, %v6109_v19  ;;  %v10657_v55 = vor.u32 %v12557_v8, %v10656_v63  ;;  %v10401_v19 = vor.u32 %v12493_v18, %v10400_v51  ;;  %v10528_v50 = vld [vmem:[#allocation5 + $0x528] sm:$0xf]  ;;  %v10641_v63 = vor.u32 %v12553_v56, %v10640_v26  ;;  %v12489_v18 = vld [vmem:[#allocation5 + $0x414] sm:$0xf0]  ;;  %v8013_v51 = vld [vmem:[#allocation11 + $0x18] sm:$0xff] }
 0x51c   :  { %v6111_v57 = vadd.f32 %v6110_v15, %v6062_v47  ;;  %v10384_v47 = vld [vmem:[#allocation5 + $0x408] sm:$0xf]  ;;  %6570 = vmatpush.bf16.msra.mxu3 %v10785_v5  ;;  %v17176_v26 = vld [vmem:[#allocation48_spill] sm:$0xff]  ;;  %v17177_v56 = vld [vmem:[#allocation49_spill] sm:$0xff] }
 0x51d   :  { %v6207_v39 = vadd.f32 %v6206_v33, %v6158_v27  ;;  %6521 = vmatpush.bf16.msra.mxu2 %v10657_v55  ;;  %v10529_v27 = vor.u32 %v12525_v60, %v10528_v50  ;;  %6423 = vmatpush.bf16.msra.mxu0 %v10401_v19  ;;  %v10768_v8 = vld [vmem:[#allocation5 + $0x708] sm:$0xf]  ;;  %v10385_v55 = vor.u32 %v12489_v18, %v10384_v47  ;;  %v13209_v19 = vld [vmem:[#allocation8 + $0x58] sm:$0xff] }
 0x51e   :  { %v10512_v60 = vld [vmem:[#allocation5 + $0x508] sm:$0xf]  ;;  %v8407_v50 = vmul.f32 %v13209_v19, %v8013_v51 }
 0x51f   :  { %v8390_v3 = vadd.f32 %v14611_v52, %v6207_v39  ;;  %6472 = vmatpush.bf16.msra.mxu1 %v10529_v27  ;;  %v8014_v18 = vld [vmem:[#allocation11 + $0x20] sm:$0xff] }
 0x521   :  { %v14626_v46 = vadd.f32 %v8406_v48, %v8390_v3  ;;  %v6208_v31 = vpop.f32.mrf.mxu3  ;;  %v6064_v39 = vpop.f32.mrf.mxu0  ;;  %6522 = vmatpush.bf16.msra.mxu2 %v10641_v63  ;;  %6424 = vmatpush.bf16.msra.mxu0 %v10385_v55 }
 0x522   :  { %v6159_v33 = vpop.f32.mrf.mxu2  ;;  %v6065_v48 = vadd.f32 %v6064_v39, %v14551_v22  ;;  %v6113_v3 = vpop.f32.mrf.mxu1  ;;  %v17178_v22 = vld [vmem:[#allocation50_spill] sm:$0xff] }
 0x523   :  { %17174 = vst [vmem:[#allocation43_spill] sm:$0xff] %v14626_v46  ;;  %v6160_v15 = vadd.f32 %v6159_v33, %v6111_v57  ;;  %v10769_v46 = vor.u32 %v12585_v23, %v10768_v8  ;;  %v12521_v57 = vld [vmem:[#allocation5 + $0x514] sm:$0xf0] }
 0x524   :  { %v6114_v33 = vadd.f32 %v6113_v3, %v6065_v48  ;;  %6259 = vmatmul.bf16.gmra.mxu0 %v17175_v14  ;;  %v10513_v5 = vor.u32 %v12521_v57, %v10512_v60  ;;  %6308 = vmatmul.bf16.gmra.mxu1 %v17176_v26  ;;  %v13210_v3 = vld [vmem:[#allocation8 + $0x60] sm:$0xff] }
 0x525   :  { %v6209_v35 = vadd.f32 %v6208_v31, %v6160_v15  ;;  %6571 = vmatpush.bf16.msra.mxu3 %v10769_v46  ;;  %v8408_v23 = vmul.f32 %v13210_v3, %v8014_v18  ;;  %v17182_v18 = vld [vmem:[#allocation52_spill] sm:$0xff] }
 0x526   :  { %6406 = vmatmul.bf16.gmra.mxu3 %v17178_v22  ;;  %6473 = vmatpush.bf16.msra.mxu1 %v10513_v5  ;;  %v8015_v5 = vld [vmem:[#allocation11 + $0x28] sm:$0xff] }
 0x527   :  { %v8391_v27 = vadd.f32 %v14611_v52, %v6209_v35  ;;  %6357 = vmatmul.bf16.gmra.mxu2 %v17177_v56  ;;  %v13211_v22 = vld [vmem:[#allocation8 + $0x68] sm:$0xff] }
 0x529   :  { %v14634_v47 = vadd.f32 %v8407_v50, %v8391_v27  ;;  %v6211_v39 = vpop.f32.mrf.mxu3  ;;  %v6066_v63 = vpop.f32.mrf.mxu0 }
 0x52a   :  { %v6162_v15 = vpop.f32.mrf.mxu2  ;;  %v6067_v8 = vadd.f32 %v6066_v63, %v14554_v59  ;;  %v6115_v51 = vpop.f32.mrf.mxu1  ;;  %v8409_v59 = vmul.f32 %v13211_v22, %v8015_v5 }
 0x52b   :  { %17179 = vst [vmem:[#allocation184_spill] sm:$0xff] %v14634_v47  ;;  %v6163_v31 = vadd.f32 %v6162_v15, %v6114_v33  ;;  %v11376_v47 = vld [vmem:[#allocation5 + $0xbc8] sm:$0xf] }
 0x52c   :  { %v6116_v60 = vadd.f32 %v6115_v51, %v6067_v8  ;;  %v17183_v8 = vld [vmem:[#allocation53_spill] sm:$0xff]  ;;  %v17184_v51 = vld [vmem:[#allocation54_spill] sm:$0xff] }
 0x52d   :  { %v6212_v48 = vadd.f32 %v6211_v39, %v6163_v31  ;;  %v17181_v31 = vld [vmem:[#allocation51_spill] sm:$0xff] }
 0x52f   :  { %v8392_v35 = vadd.f32 %v14611_v52, %v6212_v48 }
 0x531   :  { %v14638_v19 = vadd.f32 %v8408_v23, %v8392_v35  ;;  %v6213_v46 = vpop.f32.mrf.mxu3  ;;  %v6069_v57 = vpop.f32.mrf.mxu0  ;;  %v8016_v35 = vld [vmem:[#allocation11 + $0x30] sm:$0xff] }
 0x532   :  { %v6164_v55 = vpop.f32.mrf.mxu2  ;;  %v6070_v33 = vadd.f32 %v6069_v57, %v14561_v30  ;;  %v6118_v27 = vpop.f32.mrf.mxu1 }
 0x533   :  { %17180 = vst [vmem:[#allocation185_spill] sm:$0xff] %v14638_v19  ;;  %v6165_v50 = vadd.f32 %v6164_v55, %v6116_v60  ;;  %v12677_v19 = vld [vmem:[#allocation5 + $0x9f4] sm:$0xf0] }
 0x534   :  { %v6119_v63 = vadd.f32 %v6118_v27, %v6070_v33  ;;  %6264 = vmatmul.bf16.gmra.mxu0 %v17181_v31  ;;  %6313 = vmatmul.bf16.gmra.mxu1 %v17182_v18  ;;  %v11264_v27 = vld [vmem:[#allocation5 + $0xae8] sm:$0xf] }
 0x535   :  { %v6214_v15 = vadd.f32 %v6213_v46, %v6165_v50  ;;  %v13212_v46 = vld [vmem:[#allocation8 + $0x70] sm:$0xff]  ;;  %v17187_v18 = vld [vmem:[#allocation55_spill] sm:$0xff] }
 0x536   :  { %6411 = vmatmul.bf16.gmra.mxu3 %v17184_v51  ;;  %v8410_v57 = vmul.f32 %v13212_v46, %v8016_v35  ;;  %v11008_v51 = vld [vmem:[#allocation5 + $0x8e8] sm:$0xf]  ;;  %v12705_v35 = vld [vmem:[#allocation5 + $0xad4] sm:$0xf0] }
 0x537   :  { %v8393_v39 = vadd.f32 %v14611_v52, %v6214_v15  ;;  %6362 = vmatmul.bf16.gmra.mxu2 %v17183_v8  ;;  %v12709_v15 = vld [vmem:[#allocation5 + $0xaf4] sm:$0xf0] }
 0x538   :  { %v11265_v8 = vor.u32 %v12709_v15, %v11264_v27  ;;  %v12641_v15 = vld [vmem:[#allocation5 + $0x8d4] sm:$0xf0] }
 0x539   :  { %v14646_v48 = vadd.f32 %v8409_v59, %v8393_v39  ;;  %v6216_v30 = vpop.f32.mrf.mxu3  ;;  %v6071_v60 = vpop.f32.mrf.mxu0  ;;  %v12645_v59 = vld [vmem:[#allocation5 + $0x8f4] sm:$0xf0]  ;;  %v11392_v39 = vld [vmem:[#allocation5 + $0xbe8] sm:$0xf] }
 0x53a   :  { %v6167_v3 = vpop.f32.mrf.mxu2  ;;  %v6072_v22 = vadd.f32 %v6071_v60, %v14564_v9  ;;  %v6120_v55 = vpop.f32.mrf.mxu1  ;;  %6711 = vmatpush.bf16.msrb.mxu2 %v11265_v8  ;;  %v11248_v60 = vld [vmem:[#allocation5 + $0xac8] sm:$0xf] }
 0x53b   :  { %17185 = vst [vmem:[#allocation186_spill] sm:$0xff] %v14646_v48  ;;  %v6168_v23 = vadd.f32 %v6167_v3, %v6119_v63  ;;  %v11009_v63 = vor.u32 %v12645_v59, %v11008_v51  ;;  %v12741_v3 = vld [vmem:[#allocation5 + $0xbf4] sm:$0xf0]  ;;  %v11136_v48 = vld [vmem:[#allocation5 + $0x9e8] sm:$0xf]  ;;  %v11249_v27 = vor.u32 %v12705_v35, %v11248_v60  ;;  %v17188_v60 = vld [vmem:[#allocation56_spill] sm:$0xff] }
 0x53c   :  { %v6121_v5 = vadd.f32 %v6120_v55, %v6072_v22  ;;  %v10992_v22 = vld [vmem:[#allocation5 + $0x8c8] sm:$0xf]  ;;  %v12737_v59 = vld [vmem:[#allocation5 + $0xbd4] sm:$0xf0] }
 0x53d   :  { %v6217_v50 = vadd.f32 %v6216_v30, %v6168_v23  ;;  %v11393_v23 = vor.u32 %v12741_v3, %v11392_v39  ;;  %v11137_v30 = vor.u32 %v12677_v19, %v11136_v48  ;;  %6613 = vmatpush.bf16.msrb.mxu0 %v11009_v63  ;;  %v10993_v51 = vor.u32 %v12641_v15, %v10992_v22  ;;  %v13213_v39 = vld [vmem:[#allocation8 + $0x78] sm:$0xff]  ;;  %v12673_v3 = vld [vmem:[#allocation5 + $0x9d4] sm:$0xf0]  ;;  %v10976_v35 = vld [vmem:[#allocation5 + $0x8a8] sm:$0xf] }
 0x53e   :  { %6712 = vmatpush.bf16.msrb.mxu2 %v11249_v27 }
 0x53f   :  { %v8394_v33 = vadd.f32 %v14611_v52, %v6217_v50  ;;  %6760 = vmatpush.bf16.msrb.mxu3 %v11393_v23  ;;  %6662 = vmatpush.bf16.msrb.mxu1 %v11137_v30  ;;  %v11232_v23 = vld [vmem:[#allocation5 + $0xaa8] sm:$0xf]  ;;  %v12701_v30 = vld [vmem:[#allocation5 + $0xab4] sm:$0xf0] }
 0x541   :  { %v14650_v56 = vadd.f32 %v8410_v57, %v8394_v33  ;;  %v6218_v50 = vpop.f32.mrf.mxu3  ;;  %v6230_v46 = vpop.f32.mrf.mxu0  ;;  %v8017_v57 = vld [vmem:[#allocation11 + $0x38] sm:$0xff]  ;;  %6614 = vmatpush.bf16.msrb.mxu0 %v10993_v51 }
 0x542   :  { %v6169_v9 = vpop.f32.mrf.mxu2  ;;  %v6279_v33 = vpop.f32.mrf.mxu1  ;;  %v8411_v19 = vmul.f32 %v13213_v39, %v8017_v57 }
 0x543   :  { %17186 = vst [vmem:[#allocation187_spill] sm:$0xff] %v14650_v56  ;;  %v6170_v55 = vadd.f32 %v6169_v9, %v6121_v5  ;;  %v11120_v56 = vld [vmem:[#allocation5 + $0x9c8] sm:$0xf]  ;;  %v6280_v48 = vadd.f32 %v6279_v33, %v6230_v46  ;;  %v11377_v5 = vor.u32 %v12737_v59, %v11376_v47 }
 0x544   :  { %6425 = vmatmul.bf16.vlgmr.msra.gmra.mxu0 %v17187_v18  ;;  %v11121_v63 = vor.u32 %v12673_v3, %v11120_v56  ;;  %6474 = vmatmul.bf16.vlgmr.msra.gmra.mxu1 %v17188_v60  ;;  %v11360_v47 = vld [vmem:[#allocation5 + $0xba8] sm:$0xf]  ;;  %v12733_v56 = vld [vmem:[#allocation5 + $0xbb4] sm:$0xf0] }
 0x545   :  { %v6219_v8 = vadd.f32 %v6218_v50, %v6170_v55  ;;  %6761 = vmatpush.bf16.msrb.mxu3 %v11377_v5  ;;  %v11233_v55 = vor.u32 %v12701_v30, %v11232_v23  ;;  %v12637_v50 = vld [vmem:[#allocation5 + $0x8b4] sm:$0xf0]  ;;  %v11361_v15 = vor.u32 %v12733_v56, %v11360_v47  ;;  %v17190_v47 = vld [vmem:[#allocation59_spill] sm:$0xff] }
 0x546   :  { %6572 = vmatmul.bf16.vlgmr.msra.gmra.mxu3 %v17069_v20  ;;  %6663 = vmatpush.bf16.msrb.mxu1 %v11121_v63  ;;  %v10977_v27 = vor.u32 %v12637_v50, %v10976_v35  ;;  %v12669_v3 = vld [vmem:[#allocation5 + $0x9b4] sm:$0xf0]  ;;  %v11216_v56 = vld [vmem:[#allocation5 + $0xa88] sm:$0xf] }
 0x547   :  { %v8395_v9 = vadd.f32 %v14611_v52, %v6219_v8  ;;  %6523 = vmatmul.bf16.vlgmr.msra.gmra.mxu2 %v17068_v36 }
 0x548   :  { %6713 = vmatpush.bf16.msrb.mxu2 %v11233_v55  ;;  %6615 = vmatpush.bf16.msrb.mxu0 %v10977_v27  ;;  %v17191_v55 = vld [vmem:[#allocation60_spill] sm:$0xff]  ;;  %v10960_v27 = vld [vmem:[#allocation5 + $0x888] sm:$0xf] }
 0x549   :  { %v14657_v22 = vadd.f32 %v8411_v19, %v8395_v9  ;;  %v6377_v33 = vpop.f32.mrf.mxu3  ;;  %v6232_v59 = vpop.f32.mrf.mxu0  ;;  %6762 = vmatpush.bf16.msrb.mxu3 %v11361_v15  ;;  %v11104_v19 = vld [vmem:[#allocation5 + $0x9a8] sm:$0xf] }
 0x54a   :  { %v6328_v46 = vpop.f32.mrf.mxu2  ;;  %v6281_v8 = vpop.f32.mrf.mxu1  ;;  %v11105_v5 = vor.u32 %v12669_v3, %v11104_v19 }
 0x54b   :  { %17189 = vst [vmem:[#allocation188_spill] sm:$0xff] %v14657_v22  ;;  %v6329_v57 = vadd.f32 %v6328_v46, %v6280_v48  ;;  %v6282_v39 = vadd.f32 %v6281_v8, %v6232_v59  ;;  %v12697_v46 = vld [vmem:[#allocation5 + $0xa94] sm:$0xf0] }
 0x54c   :  { %6664 = vmatpush.bf16.msrb.mxu1 %v11105_v5  ;;  %v11217_v15 = vor.u32 %v12697_v46, %v11216_v56  ;;  %v12729_v59 = vld [vmem:[#allocation5 + $0xb94] sm:$0xf0] }
 0x54d   :  { %v14659_v51 = vadd.f32 %v6377_v33, %v6329_v57  ;;  %v12633_v57 = vld [vmem:[#allocation5 + $0x894] sm:$0xf0]  ;;  %v11344_v33 = vld [vmem:[#allocation5 + $0xb88] sm:$0xf] }
 0x54e   :  { %v11345_v19 = vor.u32 %v12729_v59, %v11344_v33  ;;  %6714 = vmatpush.bf16.msrb.mxu2 %v11217_v15  ;;  %v17192_v33 = vld [vmem:[#allocation63_spill] sm:$0xff]  ;;  %v17193_v15 = vld [vmem:[#allocation64_spill] sm:$0xff]  ;;  %v17194_v59 = vld [vmem:[#allocation65_spill] sm:$0xff] }
 0x54f   :  { %v12661_v22 = vld [vmem:[#allocation5 + $0x974] sm:$0xf0] }
 0x550   :  { %6763 = vmatpush.bf16.msrb.mxu3 %v11345_v19  ;;  %v12693_v19 = vld [vmem:[#allocation5 + $0xa74] sm:$0xf0] }
 0x551   :  { %v6379_v23 = vpop.f32.mrf.mxu3  ;;  %v6235_v30 = vpop.f32.mrf.mxu0 }
 0x552   :  { %v6330_v63 = vpop.f32.mrf.mxu2  ;;  %v6284_v35 = vpop.f32.mrf.mxu1 }
 0x553   :  { %v6331_v9 = vadd.f32 %v6330_v63, %v6282_v39  ;;  %v6285_v48 = vadd.f32 %v6284_v35, %v6235_v30  ;;  %v10961_v39 = vor.u32 %v12633_v57, %v10960_v27  ;;  %v11088_v35 = vld [vmem:[#allocation5 + $0x988] sm:$0xf] }
 0x554   :  { %6430 = vmatmul.bf16.gmra.mxu0 %v17190_v47  ;;  %6479 = vmatmul.bf16.gmra.mxu1 %v17191_v55 }
 0x555   :  { %v14661_v50 = vadd.f32 %v6379_v23, %v6331_v9  ;;  %6616 = vmatpush.bf16.msrb.mxu0 %v10961_v39  ;;  %v11200_v39 = vld [vmem:[#allocation5 + $0xa68] sm:$0xf] }
 0x556   :  { %6577 = vmatmul.bf16.gmra.mxu3 %v17073_v6  ;;  %v12665_v6 = vld [vmem:[#allocation5 + $0x994] sm:$0xf0] }
 0x557   :  { %6528 = vmatmul.bf16.gmra.mxu2 %v17072_v0  ;;  %v11089_v0 = vor.u32 %v12665_v6, %v11088_v35  ;;  %v10944_v6 = vld [vmem:[#allocation5 + $0x868] sm:$0xf] }
 0x559   :  { %v6382_v5 = vpop.f32.mrf.mxu3  ;;  %v6237_v63 = vpop.f32.mrf.mxu0  ;;  %6665 = vmatpush.bf16.msrb.mxu1 %v11089_v0  ;;  %v11201_v0 = vor.u32 %v12693_v19, %v11200_v39 }
 0x55a   :  { %v6333_v8 = vpop.f32.mrf.mxu2  ;;  %v6286_v9 = vpop.f32.mrf.mxu1 }
 0x55b   :  { %v6334_v3 = vadd.f32 %v6333_v8, %v6285_v48  ;;  %v6287_v30 = vadd.f32 %v6286_v9, %v6237_v63  ;;  %v17195_v8 = vld [vmem:[#allocation66_spill] sm:$0xff]  ;;  %v12725_v63 = vld [vmem:[#allocation5 + $0xb74] sm:$0xf0]  ;;  %6715 = vmatpush.bf16.msrb.mxu2 %v11201_v0  ;;  %v17197_v0 = vld [vmem:[#allocation68_spill] sm:$0xff] }
 0x55d   :  { %v14667_v23 = vadd.f32 %v6382_v5, %v6334_v3  ;;  %v12629_v3 = vld [vmem:[#allocation5 + $0x874] sm:$0xf0]  ;;  %v11328_v5 = vld [vmem:[#allocation5 + $0xb68] sm:$0xf] }
 0x561   :  { %v6384_v20 = vpop.f32.mrf.mxu3  ;;  %v6240_v36 = vpop.f32.mrf.mxu0 }
 0x562   :  { %v6335_v56 = vpop.f32.mrf.mxu2  ;;  %v6289_v27 = vpop.f32.mrf.mxu1 }
 0x563   :  { %v6336_v46 = vadd.f32 %v6335_v56, %v6287_v30  ;;  %v6290_v48 = vadd.f32 %v6289_v27, %v6240_v36  ;;  %v10945_v30 = vor.u32 %v12629_v3, %v10944_v6 }
 0x564   :  { %6435 = vmatmul.bf16.gmra.mxu0 %v17192_v33  ;;  %6484 = vmatmul.bf16.gmra.mxu1 %v17193_v15 }
 0x565   :  { %v14669_v57 = vadd.f32 %v6384_v20, %v6336_v46  ;;  %v11329_v20 = vor.u32 %v12725_v63, %v11328_v5  ;;  %6617 = vmatpush.bf16.msrb.mxu0 %v10945_v30  ;;  %v17196_v5 = vld [vmem:[#allocation67_spill] sm:$0xff]  ;;  %v17198_v63 = vld [vmem:[#allocation69_spill] sm:$0xff] }
 0x566   :  { %6582 = vmatmul.bf16.gmra.mxu3 %v17195_v8  ;;  %v11184_v30 = vld [vmem:[#allocation5 + $0xa48] sm:$0xf] }
 0x567   :  { %6533 = vmatmul.bf16.gmra.mxu2 %v17194_v59  ;;  %6764 = vmatpush.bf16.msrb.mxu3 %v11329_v20  ;;  %v11072_v59 = vld [vmem:[#allocation5 + $0x968] sm:$0xf]  ;;  %v12689_v20 = vld [vmem:[#allocation5 + $0xa54] sm:$0xf0] }
 0x568   :  { %v11073_v15 = vor.u32 %v12661_v22, %v11072_v59  ;;  %v10928_v22 = vld [vmem:[#allocation5 + $0x848] sm:$0xf]  ;;  %v12625_v59 = vld [vmem:[#allocation5 + $0x854] sm:$0xf0] }
 0x569   :  { %v6387_v36 = vpop.f32.mrf.mxu3  ;;  %v6242_v56 = vpop.f32.mrf.mxu0 }
 0x56a   :  { %v6338_v9 = vpop.f32.mrf.mxu2  ;;  %v6291_v46 = vpop.f32.mrf.mxu1  ;;  %6666 = vmatpush.bf16.msrb.mxu1 %v11073_v15  ;;  %v11185_v15 = vor.u32 %v12689_v20, %v11184_v30 }
 0x56b   :  { %v6339_v35 = vadd.f32 %v6338_v9, %v6290_v48  ;;  %v6292_v8 = vadd.f32 %v6291_v46, %v6242_v56  ;;  %v17199_v9 = vld [vmem:[#allocation70_spill] sm:$0xff]  ;;  %v10929_v56 = vor.u32 %v12625_v59, %v10928_v22 }
 0x56c   :  { %6716 = vmatpush.bf16.msrb.mxu2 %v11185_v15  ;;  %v17201_v15 = vld [vmem:[#allocation72_spill] sm:$0xff] }
 0x56d   :  { %v14675_v27 = vadd.f32 %v6387_v36, %v6339_v35  ;;  %v12721_v35 = vld [vmem:[#allocation5 + $0xb54] sm:$0xf0]  ;;  %6618 = vmatpush.bf16.msrb.mxu0 %v10929_v56  ;;  %v11168_v56 = vld [vmem:[#allocation5 + $0xa28] sm:$0xf] }
 0x571   :  { %v6389_v33 = vpop.f32.mrf.mxu3  ;;  %v6245_v55 = vpop.f32.mrf.mxu0 }
 0x572   :  { %v6340_v39 = vpop.f32.mrf.mxu2  ;;  %v6294_v6 = vpop.f32.mrf.mxu1 }
 0x573   :  { %v6341_v19 = vadd.f32 %v6340_v39, %v6292_v8  ;;  %v6295_v48 = vadd.f32 %v6294_v6, %v6245_v55  ;;  %v11312_v8 = vld [vmem:[#allocation5 + $0xb48] sm:$0xf] }
 0x574   :  { %6440 = vmatmul.bf16.gmra.mxu0 %v17196_v5  ;;  %6489 = vmatmul.bf16.gmra.mxu1 %v17197_v0  ;;  %v12657_v0 = vld [vmem:[#allocation5 + $0x954] sm:$0xf0] }
 0x575   :  { %v14677_v3 = vadd.f32 %v6389_v33, %v6341_v19  ;;  %v11313_v33 = vor.u32 %v12721_v35, %v11312_v8  ;;  %v17200_v8 = vld [vmem:[#allocation71_spill] sm:$0xff]  ;;  %v17202_v35 = vld [vmem:[#allocation73_spill] sm:$0xff] }
 0x576   :  { %6587 = vmatmul.bf16.gmra.mxu3 %v17199_v9 }
 0x577   :  { %6538 = vmatmul.bf16.gmra.mxu2 %v17198_v63  ;;  %6765 = vmatpush.bf16.msrb.mxu3 %v11313_v33  ;;  %v11056_v63 = vld [vmem:[#allocation5 + $0x948] sm:$0xf]  ;;  %v12685_v33 = vld [vmem:[#allocation5 + $0xa34] sm:$0xf0] }
 0x578   :  { %v11057_v5 = vor.u32 %v12657_v0, %v11056_v63  ;;  %v10912_v0 = vld [vmem:[#allocation5 + $0x828] sm:$0xf]  ;;  %v12621_v63 = vld [vmem:[#allocation5 + $0x834] sm:$0xf0] }
 0x579   :  { %v6392_v55 = vpop.f32.mrf.mxu3  ;;  %v6247_v39 = vpop.f32.mrf.mxu0 }
 0x57a   :  { %v6343_v36 = vpop.f32.mrf.mxu2  ;;  %v6296_v19 = vpop.f32.mrf.mxu1  ;;  %6667 = vmatpush.bf16.msrb.mxu1 %v11057_v5  ;;  %v11169_v5 = vor.u32 %v12685_v33, %v11168_v56 }
 0x57b   :  { %v6344_v46 = vadd.f32 %v6343_v36, %v6295_v48  ;;  %v6297_v9 = vadd.f32 %v6296_v19, %v6247_v39  ;;  %v17203_v36 = vld [vmem:[#allocation74_spill] sm:$0xff]  ;;  %v10913_v39 = vor.u32 %v12621_v63, %v10912_v0 }
 0x57c   :  { %6717 = vmatpush.bf16.msrb.mxu2 %v11169_v5  ;;  %v17205_v5 = vld [vmem:[#allocation76_spill] sm:$0xff] }
 0x57d   :  { %v14683_v6 = vadd.f32 %v6392_v55, %v6344_v46  ;;  %v12717_v46 = vld [vmem:[#allocation5 + $0xb34] sm:$0xf0]  ;;  %6619 = vmatpush.bf16.msrb.mxu0 %v10913_v39  ;;  %v11152_v39 = vld [vmem:[#allocation5 + $0xa08] sm:$0xf] }
 0x581   :  { %v6394_v47 = vpop.f32.mrf.mxu3  ;;  %v6250_v60 = vpop.f32.mrf.mxu0 }
 0x582   :  { %v6345_v30 = vpop.f32.mrf.mxu2  ;;  %v6299_v22 = vpop.f32.mrf.mxu1 }
 0x583   :  { %v6346_v20 = vadd.f32 %v6345_v30, %v6297_v9  ;;  %v6300_v48 = vadd.f32 %v6299_v22, %v6250_v60  ;;  %v11296_v9 = vld [vmem:[#allocation5 + $0xb28] sm:$0xf] }
 0x584   :  { %6445 = vmatmul.bf16.gmra.mxu0 %v17200_v8  ;;  %6494 = vmatmul.bf16.gmra.mxu1 %v17201_v15  ;;  %v12653_v15 = vld [vmem:[#allocation5 + $0x934] sm:$0xf0] }
 0x585   :  { %v14685_v59 = vadd.f32 %v6394_v47, %v6346_v20  ;;  %v11297_v47 = vor.u32 %v12717_v46, %v11296_v9  ;;  %v17204_v9 = vld [vmem:[#allocation75_spill] sm:$0xff]  ;;  %v17206_v46 = vld [vmem:[#allocation77_spill] sm:$0xff] }
 0x586   :  { %6592 = vmatmul.bf16.gmra.mxu3 %v17203_v36 }
 0x587   :  { %6543 = vmatmul.bf16.gmra.mxu2 %v17202_v35  ;;  %6766 = vmatpush.bf16.msrb.mxu3 %v11297_v47  ;;  %v11040_v35 = vld [vmem:[#allocation5 + $0x928] sm:$0xf]  ;;  %v12681_v47 = vld [vmem:[#allocation5 + $0xa14] sm:$0xf0] }
 0x588   :  { %v11041_v8 = vor.u32 %v12653_v15, %v11040_v35  ;;  %v10896_v15 = vld [vmem:[#allocation5 + $0x808] sm:$0xf]  ;;  %v12617_v35 = vld [vmem:[#allocation5 + $0x814] sm:$0xf0] }
 0x589   :  { %v6397_v60 = vpop.f32.mrf.mxu3  ;;  %v6252_v30 = vpop.f32.mrf.mxu0 }
 0x58a   :  { %v6348_v55 = vpop.f32.mrf.mxu2  ;;  %v6301_v20 = vpop.f32.mrf.mxu1  ;;  %6668 = vmatpush.bf16.msrb.mxu1 %v11041_v8  ;;  %v11153_v8 = vor.u32 %v12681_v47, %v11152_v39 }
 0x58b   :  { %v6349_v19 = vadd.f32 %v6348_v55, %v6300_v48  ;;  %v6302_v36 = vadd.f32 %v6301_v20, %v6252_v30  ;;  %v17207_v55 = vld [vmem:[#allocation78_spill] sm:$0xff]  ;;  %v10897_v30 = vor.u32 %v12617_v35, %v10896_v15 }
 0x58c   :  { %6718 = vmatpush.bf16.msrb.mxu2 %v11153_v8  ;;  %v17209_v8 = vld [vmem:[#allocation80_spill] sm:$0xff] }
 0x58d   :  { %v14691_v22 = vadd.f32 %v6397_v60, %v6349_v19  ;;  %v12713_v19 = vld [vmem:[#allocation5 + $0xb14] sm:$0xf0]  ;;  %6620 = vmatpush.bf16.msrb.mxu0 %v10897_v30  ;;  %v11776_v30 = vld [vmem:[#allocation5 + $0xee8] sm:$0xf] }
 0x591   :  { %v6399_v18 = vpop.f32.mrf.mxu3  ;;  %v6255_v31 = vpop.f32.mrf.mxu0 }
 0x592   :  { %v6350_v56 = vpop.f32.mrf.mxu2  ;;  %v6304_v0 = vpop.f32.mrf.mxu1 }
 0x593   :  { %v6351_v33 = vadd.f32 %v6350_v56, %v6302_v36  ;;  %v6305_v48 = vadd.f32 %v6304_v0, %v6255_v31  ;;  %v11280_v36 = vld [vmem:[#allocation5 + $0xb08] sm:$0xf] }
 0x594   :  { %6450 = vmatmul.bf16.gmra.mxu0 %v17204_v9  ;;  %6499 = vmatmul.bf16.gmra.mxu1 %v17205_v5  ;;  %v12649_v5 = vld [vmem:[#allocation5 + $0x914] sm:$0xf0] }
 0x595   :  { %v14693_v63 = vadd.f32 %v6399_v18, %v6351_v33  ;;  %v11281_v18 = vor.u32 %v12713_v19, %v11280_v36  ;;  %v17208_v36 = vld [vmem:[#allocation79_spill] sm:$0xff]  ;;  %v17210_v19 = vld [vmem:[#allocation81_spill] sm:$0xff] }
 0x596   :  { %6597 = vmatmul.bf16.gmra.mxu3 %v17207_v55 }
 0x597   :  { %6548 = vmatmul.bf16.gmra.mxu2 %v17206_v46  ;;  %6767 = vmatpush.bf16.msrb.mxu3 %v11281_v18  ;;  %v11024_v46 = vld [vmem:[#allocation5 + $0x908] sm:$0xf]  ;;  %v12837_v18 = vld [vmem:[#allocation5 + $0xef4] sm:$0xf0] }
 0x598   :  { %v11025_v9 = vor.u32 %v12649_v5, %v11024_v46  ;;  %v11520_v5 = vld [vmem:[#allocation5 + $0xce8] sm:$0xf]  ;;  %v12773_v46 = vld [vmem:[#allocation5 + $0xcf4] sm:$0xf0] }
 0x599   :  { %v6402_v31 = vpop.f32.mrf.mxu3  ;;  %v6257_v56 = vpop.f32.mrf.mxu0 }
 0x59a   :  { %v6353_v60 = vpop.f32.mrf.mxu2  ;;  %v6306_v33 = vpop.f32.mrf.mxu1  ;;  %6669 = vmatpush.bf16.msrb.mxu1 %v11025_v9  ;;  %v11777_v9 = vor.u32 %v12837_v18, %v11776_v30 }
 0x59b   :  { %v6354_v20 = vadd.f32 %v6353_v60, %v6305_v48  ;;  %v6307_v55 = vadd.f32 %v6306_v33, %v6257_v56  ;;  %v17211_v60 = vld [vmem:[#allocation82_spill] sm:$0xff]  ;;  %v11521_v56 = vor.u32 %v12773_v46, %v11520_v5 }
 0x59c   :  { %6907 = vmatpush.bf16.msra.mxu2 %v11777_v9  ;;  %v17213_v9 = vld [vmem:[#allocation84_spill] sm:$0xff] }
 0x59d   :  { %v14699_v0 = vadd.f32 %v6402_v31, %v6354_v20  ;;  %v12869_v20 = vld [vmem:[#allocation5 + $0xff4] sm:$0xf0]  ;;  %6809 = vmatpush.bf16.msra.mxu0 %v11521_v56  ;;  %v11760_v56 = vld [vmem:[#allocation5 + $0xec8] sm:$0xf] }
 0x5a1   :  { %v6404_v26 = vpop.f32.mrf.mxu3  ;;  %v6260_v24 = vpop.f32.mrf.mxu0 }
 0x5a2   :  { %v6355_v39 = vpop.f32.mrf.mxu2  ;;  %v6309_v15 = vpop.f32.mrf.mxu1 }
 0x5a3   :  { %v6356_v47 = vadd.f32 %v6355_v39, %v6307_v55  ;;  %v6310_v48 = vadd.f32 %v6309_v15, %v6260_v24  ;;  %v11904_v55 = vld [vmem:[#allocation5 + $0xfe8] sm:$0xf] }
 0x5a4   :  { %6455 = vmatmul.bf16.gmra.mxu0 %v17208_v36  ;;  %6504 = vmatmul.bf16.gmra.mxu1 %v17209_v8  ;;  %v12805_v8 = vld [vmem:[#allocation5 + $0xdf4] sm:$0xf0] }
 0x5a5   :  { %v14701_v35 = vadd.f32 %v6404_v26, %v6356_v47  ;;  %v11905_v26 = vor.u32 %v12869_v20, %v11904_v55  ;;  %v17212_v55 = vld [vmem:[#allocation83_spill] sm:$0xff]  ;;  %v17214_v20 = vld [vmem:[#allocation85_spill] sm:$0xff] }
 0x5a6   :  { %6602 = vmatmul.bf16.gmra.mxu3 %v17211_v60 }
 0x5a7   :  { %6553 = vmatmul.bf16.gmra.mxu2 %v17210_v19  ;;  %6956 = vmatpush.bf16.msra.mxu3 %v11905_v26  ;;  %v11648_v19 = vld [vmem:[#allocation5 + $0xde8] sm:$0xf]  ;;  %v12833_v26 = vld [vmem:[#allocation5 + $0xed4] sm:$0xf0] }
 0x5a8   :  { %v11649_v36 = vor.u32 %v12805_v8, %v11648_v19  ;;  %v11504_v8 = vld [vmem:[#allocation5 + $0xcc8] sm:$0xf]  ;;  %v12769_v19 = vld [vmem:[#allocation5 + $0xcd4] sm:$0xf0] }
 0x5a9   :  { %v6407_v24 = vpop.f32.mrf.mxu3  ;;  %v6262_v39 = vpop.f32.mrf.mxu0 }
 0x5aa   :  { %v6358_v31 = vpop.f32.mrf.mxu2  ;;  %v6311_v47 = vpop.f32.mrf.mxu1  ;;  %6858 = vmatpush.bf16.msra.mxu1 %v11649_v36  ;;  %v11761_v36 = vor.u32 %v12833_v26, %v11760_v56 }
 0x5ab   :  { %v6359_v33 = vadd.f32 %v6358_v31, %v6310_v48  ;;  %v6312_v60 = vadd.f32 %v6311_v47, %v6262_v39  ;;  %v17215_v31 = vld [vmem:[#allocation86_spill] sm:$0xff]  ;;  %v11505_v39 = vor.u32 %v12769_v19, %v11504_v8 }
 0x5ac   :  { %6908 = vmatpush.bf16.msra.mxu2 %v11761_v36 }
 0x5ad   :  { %v14707_v15 = vadd.f32 %v6407_v24, %v6359_v33  ;;  %v12865_v33 = vld [vmem:[#allocation5 + $0xfd4] sm:$0xf0]  ;;  %6810 = vmatpush.bf16.msra.mxu0 %v11505_v39  ;;  %v17219_v39 = vld [vmem:[#allocation90_spill] sm:$0xff] }
 0x5b1   :  { %v6409_v14 = vpop.f32.mrf.mxu3  ;;  %v6265_v25 = vpop.f32.mrf.mxu0 }
 0x5b2   :  { %v6360_v30 = vpop.f32.mrf.mxu2  ;;  %v6314_v5 = vpop.f32.mrf.mxu1 }
 0x5b3   :  { %v6361_v18 = vadd.f32 %v6360_v30, %v6312_v60  ;;  %v6315_v48 = vadd.f32 %v6314_v5, %v6265_v25  ;;  %v11888_v60 = vld [vmem:[#allocation5 + $0xfc8] sm:$0xf] }
 0x5b4   :  { %6460 = vmatmul.bf16.gmra.mxu0 %v17212_v55  ;;  %6509 = vmatmul.bf16.gmra.mxu1 %v17213_v9  ;;  %v12801_v9 = vld [vmem:[#allocation5 + $0xdd4] sm:$0xf0] }
 0x5b5   :  { %v14709_v46 = vadd.f32 %v6409_v14, %v6361_v18  ;;  %v11889_v14 = vor.u32 %v12865_v33, %v11888_v60  ;;  %v17216_v60 = vld [vmem:[#allocation87_spill] sm:$0xff]  ;;  %v17217_v33 = vld [vmem:[#allocation88_spill] sm:$0xff] }
 0x5b6   :  { %6607 = vmatmul.bf16.gmra.mxu3 %v17215_v31 }
 0x5b7   :  { %6558 = vmatmul.bf16.gmra.mxu2 %v17214_v20  ;;  %6957 = vmatpush.bf16.msra.mxu3 %v11889_v14  ;;  %v11632_v20 = vld [vmem:[#allocation5 + $0xdc8] sm:$0xf]  ;;  %v12765_v14 = vld [vmem:[#allocation5 + $0xcb4] sm:$0xf0] }
 0x5b8   :  { %v11633_v55 = vor.u32 %v12801_v9, %v11632_v20  ;;  %v11744_v9 = vld [vmem:[#allocation5 + $0xea8] sm:$0xf] }
 0x5b9   :  { %v6412_v25 = vpop.f32.mrf.mxu3  ;;  %v6267_v30 = vpop.f32.mrf.mxu0  ;;  %v11488_v20 = vld [vmem:[#allocation5 + $0xca8] sm:$0xf] }
 0x5ba   :  { %v6363_v24 = vpop.f32.mrf.mxu2  ;;  %v6316_v18 = vpop.f32.mrf.mxu1  ;;  %6859 = vmatpush.bf16.msra.mxu1 %v11633_v55  ;;  %v12829_v55 = vld [vmem:[#allocation5 + $0xeb4] sm:$0xf0] }
 0x5bb   :  { %v6364_v47 = vadd.f32 %v6363_v24, %v6315_v48  ;;  %v6317_v31 = vadd.f32 %v6316_v18, %v6267_v30  ;;  %v17218_v24 = vld [vmem:[#allocation89_spill] sm:$0xff] }
 0x5bd   :  { %v14715_v5 = vadd.f32 %v6412_v25, %v6364_v47  ;;  %v11872_v47 = vld [vmem:[#allocation5 + $0xfa8] sm:$0xf]  ;;  %v12861_v25 = vld [vmem:[#allocation5 + $0xfb4] sm:$0xf0] }
 0x5c1   :  { %v6414_v54 = vpop.f32.mrf.mxu3  ;;  %v6426_v52 = vpop.f32.mrf.mxu0 }
 0x5c2   :  { %v6365_v56 = vpop.f32.mrf.mxu2  ;;  %v6427_v8 = vadd.f32 %v6426_v52, %v14659_v51  ;;  %v6475_v48 = vpop.f32.mrf.mxu1  ;;  %v11489_v51 = vor.u32 %v12765_v14, %v11488_v20 }
 0x5c3   :  { %v6366_v26 = vadd.f32 %v6365_v56, %v6317_v31  ;;  %v11745_v31 = vor.u32 %v12829_v55, %v11744_v9 }
 0x5c4   :  { %v6476_v36 = vadd.f32 %v6475_v48, %v6427_v8  ;;  %6621 = vmatmul.bf16.vlgmr.msrb.gmra.mxu0 %v17216_v60  ;;  %6670 = vmatmul.bf16.vlgmr.msrb.gmra.mxu1 %v17217_v33 }
 0x5c5   :  { %v14718_v19 = vadd.f32 %v6414_v54, %v6366_v26  ;;  %v11873_v54 = vor.u32 %v12861_v25, %v11872_v47  ;;  %6909 = vmatpush.bf16.msra.mxu2 %v11745_v31  ;;  %6811 = vmatpush.bf16.msra.mxu0 %v11489_v51  ;;  %v17220_v25 = vld [vmem:[#allocation91_spill] sm:$0xff]  ;;  %v17222_v51 = vld [vmem:[#allocation93_spill] sm:$0xff] }
 0x5c6   :  { %6768 = vmatmul.bf16.vlgmr.msrb.gmra.mxu3 %v17219_v39  ;;  %v11616_v39 = vld [vmem:[#allocation5 + $0xda8] sm:$0xf] }
 0x5c7   :  { %6719 = vmatmul.bf16.vlgmr.msrb.gmra.mxu2 %v17218_v24  ;;  %6958 = vmatpush.bf16.msra.mxu3 %v11873_v54  ;;  %v12797_v24 = vld [vmem:[#allocation5 + $0xdb4] sm:$0xf0]  ;;  %v17223_v54 = vld [vmem:[#allocation94_spill] sm:$0xff] }
 0x5c8   :  { %v11617_v55 = vor.u32 %v12797_v24, %v11616_v39  ;;  %v11728_v24 = vld [vmem:[#allocation5 + $0xe88] sm:$0xf]  ;;  %v12825_v39 = vld [vmem:[#allocation5 + $0xe94] sm:$0xf0] }
 0x5c9   :  { %v6573_v18 = vpop.f32.mrf.mxu3  ;;  %v6428_v56 = vpop.f32.mrf.mxu0 }
 0x5ca   :  { %v6524_v52 = vpop.f32.mrf.mxu2  ;;  %v6429_v26 = vadd.f32 %v6428_v56, %v14661_v50  ;;  %v6477_v8 = vpop.f32.mrf.mxu1  ;;  %6860 = vmatpush.bf16.msra.mxu1 %v11617_v55  ;;  %v11856_v56 = vld [vmem:[#allocation5 + $0xf88] sm:$0xf] }
 0x5cb   :  { %v6525_v30 = vadd.f32 %v6524_v52, %v6476_v36  ;;  %v17221_v52 = vld [vmem:[#allocation92_spill] sm:$0xff] }
 0x5cc   :  { %v6478_v9 = vadd.f32 %v6477_v8, %v6429_v26  ;;  %v12857_v26 = vld [vmem:[#allocation5 + $0xf94] sm:$0xf0] }
 0x5cd   :  { %v14725_v48 = vadd.f32 %v6573_v18, %v6525_v30  ;;  %v11472_v30 = vld [vmem:[#allocation5 + $0xc88] sm:$0xf]  ;;  %v12761_v18 = vld [vmem:[#allocation5 + $0xc94] sm:$0xf0] }
 0x5ce   :  { %v11473_v8 = vor.u32 %v12761_v18, %v11472_v30 }
 0x5d0   :  { %6812 = vmatpush.bf16.msra.mxu0 %v11473_v8  ;;  %v17226_v8 = vld [vmem:[#allocation97_spill] sm:$0xff] }
 0x5d1   :  { %v6575_v20 = vpop.f32.mrf.mxu3  ;;  %v6431_v14 = vpop.f32.mrf.mxu0 }
 0x5d2   :  { %v6526_v33 = vpop.f32.mrf.mxu2  ;;  %v6432_v36 = vadd.f32 %v6431_v14, %v14667_v23  ;;  %v6480_v47 = vpop.f32.mrf.mxu1 }
 0x5d3   :  { %v6527_v60 = vadd.f32 %v6526_v33, %v6478_v9  ;;  %v11729_v33 = vor.u32 %v12825_v39, %v11728_v24 }
 0x5d4   :  { %v6481_v50 = vadd.f32 %v6480_v47, %v6432_v36  ;;  %6626 = vmatmul.bf16.gmra.mxu0 %v17220_v25  ;;  %6675 = vmatmul.bf16.gmra.mxu1 %v17221_v52 }
 0x5d5   :  { %v14728_v31 = vadd.f32 %v6575_v20, %v6527_v60  ;;  %v11857_v60 = vor.u32 %v12857_v26, %v11856_v56  ;;  %6910 = vmatpush.bf16.msra.mxu2 %v11729_v33  ;;  %v17224_v26 = vld [vmem:[#allocation95_spill] sm:$0xff] }
 0x5d6   :  { %6773 = vmatmul.bf16.gmra.mxu3 %v17223_v54  ;;  %v11600_v54 = vld [vmem:[#allocation5 + $0xd88] sm:$0xf] }
 0x5d7   :  { %6724 = vmatmul.bf16.gmra.mxu2 %v17222_v51  ;;  %6959 = vmatpush.bf16.msra.mxu3 %v11857_v60  ;;  %v12793_v51 = vld [vmem:[#allocation5 + $0xd94] sm:$0xf0]  ;;  %v17227_v60 = vld [vmem:[#allocation98_spill] sm:$0xff] }
 0x5d8   :  { %v11601_v39 = vor.u32 %v12793_v51, %v11600_v54  ;;  %v11712_v51 = vld [vmem:[#allocation5 + $0xe68] sm:$0xf]  ;;  %v12821_v54 = vld [vmem:[#allocation5 + $0xe74] sm:$0xf0] }
 0x5d9   :  { %v6578_v55 = vpop.f32.mrf.mxu3  ;;  %v6433_v20 = vpop.f32.mrf.mxu0 }
 0x5da   :  { %v6529_v23 = vpop.f32.mrf.mxu2  ;;  %v6434_v14 = vadd.f32 %v6433_v20, %v14669_v57  ;;  %v6482_v36 = vpop.f32.mrf.mxu1  ;;  %6861 = vmatpush.bf16.msra.mxu1 %v11601_v39  ;;  %v11840_v20 = vld [vmem:[#allocation5 + $0xf68] sm:$0xf] }
 0x5db   :  { %v6530_v9 = vadd.f32 %v6529_v23, %v6481_v50  ;;  %v17225_v23 = vld [vmem:[#allocation96_spill] sm:$0xff] }
 0x5dc   :  { %v6483_v24 = vadd.f32 %v6482_v36, %v6434_v14  ;;  %v12853_v14 = vld [vmem:[#allocation5 + $0xf74] sm:$0xf0] }
 0x5dd   :  { %v14735_v47 = vadd.f32 %v6578_v55, %v6530_v9  ;;  %v11456_v9 = vld [vmem:[#allocation5 + $0xc68] sm:$0xf]  ;;  %v12757_v55 = vld [vmem:[#allocation5 + $0xc74] sm:$0xf0] }
 0x5de   :  { %v11457_v36 = vor.u32 %v12757_v55, %v11456_v9 }
 0x5e0   :  { %6813 = vmatpush.bf16.msra.mxu0 %v11457_v36  ;;  %v17230_v36 = vld [vmem:[#allocation101_spill] sm:$0xff] }
 0x5e1   :  { %v6580_v30 = vpop.f32.mrf.mxu3  ;;  %v6436_v18 = vpop.f32.mrf.mxu0 }
 0x5e2   :  { %v6531_v52 = vpop.f32.mrf.mxu2  ;;  %v6437_v50 = vadd.f32 %v6436_v18, %v14675_v27  ;;  %v6485_v56 = vpop.f32.mrf.mxu1 }
 0x5e3   :  { %v6532_v25 = vadd.f32 %v6531_v52, %v6483_v24  ;;  %v11713_v52 = vor.u32 %v12821_v54, %v11712_v51 }
 0x5e4   :  { %v6486_v57 = vadd.f32 %v6485_v56, %v6437_v50  ;;  %6631 = vmatmul.bf16.gmra.mxu0 %v17224_v26  ;;  %6680 = vmatmul.bf16.gmra.mxu1 %v17225_v23 }
 0x5e5   :  { %v14738_v33 = vadd.f32 %v6580_v30, %v6532_v25  ;;  %v11841_v25 = vor.u32 %v12853_v14, %v11840_v20  ;;  %6911 = vmatpush.bf16.msra.mxu2 %v11713_v52  ;;  %v17228_v14 = vld [vmem:[#allocation99_spill] sm:$0xff] }
 0x5e6   :  { %6778 = vmatmul.bf16.gmra.mxu3 %v17227_v60  ;;  %v11584_v60 = vld [vmem:[#allocation5 + $0xd68] sm:$0xf] }
 0x5e7   :  { %6729 = vmatmul.bf16.gmra.mxu2 %v17226_v8  ;;  %6960 = vmatpush.bf16.msra.mxu3 %v11841_v25  ;;  %v12789_v8 = vld [vmem:[#allocation5 + $0xd74] sm:$0xf0]  ;;  %v17231_v25 = vld [vmem:[#allocation102_spill] sm:$0xff] }
 0x5e8   :  { %v11585_v54 = vor.u32 %v12789_v8, %v11584_v60  ;;  %v11696_v8 = vld [vmem:[#allocation5 + $0xe48] sm:$0xf]  ;;  %v12817_v60 = vld [vmem:[#allocation5 + $0xe54] sm:$0xf0] }
 0x5e9   :  { %v6583_v39 = vpop.f32.mrf.mxu3  ;;  %v6438_v30 = vpop.f32.mrf.mxu0 }
 0x5ea   :  { %v6534_v27 = vpop.f32.mrf.mxu2  ;;  %v6439_v18 = vadd.f32 %v6438_v30, %v14677_v3  ;;  %v6487_v50 = vpop.f32.mrf.mxu1  ;;  %6862 = vmatpush.bf16.msra.mxu1 %v11585_v54  ;;  %v11824_v30 = vld [vmem:[#allocation5 + $0xf48] sm:$0xf] }
 0x5eb   :  { %v6535_v24 = vadd.f32 %v6534_v27, %v6486_v57  ;;  %v17229_v27 = vld [vmem:[#allocation100_spill] sm:$0xff] }
 0x5ec   :  { %v6488_v51 = vadd.f32 %v6487_v50, %v6439_v18  ;;  %v12849_v18 = vld [vmem:[#allocation5 + $0xf54] sm:$0xf0] }
 0x5ed   :  { %v14745_v56 = vadd.f32 %v6583_v39, %v6535_v24  ;;  %v11440_v24 = vld [vmem:[#allocation5 + $0xc48] sm:$0xf]  ;;  %v12753_v39 = vld [vmem:[#allocation5 + $0xc54] sm:$0xf0] }
 0x5ee   :  { %v11441_v50 = vor.u32 %v12753_v39, %v11440_v24 }
 0x5f0   :  { %6814 = vmatpush.bf16.msra.mxu0 %v11441_v50  ;;  %v17234_v50 = vld [vmem:[#allocation105_spill] sm:$0xff] }
 0x5f1   :  { %v6585_v9 = vpop.f32.mrf.mxu3  ;;  %v6441_v55 = vpop.f32.mrf.mxu0 }
 0x5f2   :  { %v6536_v23 = vpop.f32.mrf.mxu2  ;;  %v6442_v57 = vadd.f32 %v6441_v55, %v14683_v6  ;;  %v6490_v20 = vpop.f32.mrf.mxu1 }
 0x5f3   :  { %v6537_v26 = vadd.f32 %v6536_v23, %v6488_v51  ;;  %v11697_v23 = vor.u32 %v12817_v60, %v11696_v8 }
 0x5f4   :  { %v6491_v3 = vadd.f32 %v6490_v20, %v6442_v57  ;;  %6636 = vmatmul.bf16.gmra.mxu0 %v17228_v14  ;;  %6685 = vmatmul.bf16.gmra.mxu1 %v17229_v27 }
 0x5f5   :  { %v14748_v52 = vadd.f32 %v6585_v9, %v6537_v26  ;;  %v11825_v26 = vor.u32 %v12849_v18, %v11824_v30  ;;  %6912 = vmatpush.bf16.msra.mxu2 %v11697_v23  ;;  %v17232_v18 = vld [vmem:[#allocation103_spill] sm:$0xff] }
 0x5f6   :  { %6783 = vmatmul.bf16.gmra.mxu3 %v17231_v25  ;;  %v11568_v25 = vld [vmem:[#allocation5 + $0xd48] sm:$0xf] }
 0x5f7   :  { %6734 = vmatmul.bf16.gmra.mxu2 %v17230_v36  ;;  %6961 = vmatpush.bf16.msra.mxu3 %v11825_v26  ;;  %v12785_v36 = vld [vmem:[#allocation5 + $0xd54] sm:$0xf0]  ;;  %v17235_v26 = vld [vmem:[#allocation106_spill] sm:$0xff] }
 0x5f8   :  { %v11569_v60 = vor.u32 %v12785_v36, %v11568_v25  ;;  %v11680_v36 = vld [vmem:[#allocation5 + $0xe28] sm:$0xf]  ;;  %v12813_v25 = vld [vmem:[#allocation5 + $0xe34] sm:$0xf0] }
 0x5f9   :  { %v6588_v54 = vpop.f32.mrf.mxu3  ;;  %v6443_v9 = vpop.f32.mrf.mxu0 }
 0x5fa   :  { %v6539_v6 = vpop.f32.mrf.mxu2  ;;  %v6444_v55 = vadd.f32 %v6443_v9, %v14685_v59  ;;  %v6492_v57 = vpop.f32.mrf.mxu1  ;;  %6863 = vmatpush.bf16.msra.mxu1 %v11569_v60  ;;  %v11808_v9 = vld [vmem:[#allocation5 + $0xf28] sm:$0xf] }
 0x5fb   :  { %v6540_v51 = vadd.f32 %v6539_v6, %v6491_v3  ;;  %v17233_v6 = vld [vmem:[#allocation104_spill] sm:$0xff] }
 0x5fc   :  { %v6493_v8 = vadd.f32 %v6492_v57, %v6444_v55  ;;  %v12845_v55 = vld [vmem:[#allocation5 + $0xf34] sm:$0xf0] }
 0x5fd   :  { %v14755_v20 = vadd.f32 %v6588_v54, %v6540_v51  ;;  %v11424_v51 = vld [vmem:[#allocation5 + $0xc28] sm:$0xf]  ;;  %v12749_v54 = vld [vmem:[#allocation5 + $0xc34] sm:$0xf0] }
 0x5fe   :  { %v11425_v57 = vor.u32 %v12749_v54, %v11424_v51 }
 0x600   :  { %6815 = vmatpush.bf16.msra.mxu0 %v11425_v57  ;;  %v17238_v57 = vld [vmem:[#allocation109_spill] sm:$0xff] }
 0x601   :  { %v6590_v24 = vpop.f32.mrf.mxu3  ;;  %v6446_v39 = vpop.f32.mrf.mxu0 }
 0x602   :  { %v6541_v27 = vpop.f32.mrf.mxu2  ;;  %v6447_v3 = vadd.f32 %v6446_v39, %v14691_v22  ;;  %v6495_v30 = vpop.f32.mrf.mxu1 }
 0x603   :  { %v6542_v14 = vadd.f32 %v6541_v27, %v6493_v8  ;;  %v11681_v27 = vor.u32 %v12813_v25, %v11680_v36 }
 0x604   :  { %v6496_v59 = vadd.f32 %v6495_v30, %v6447_v3  ;;  %6641 = vmatmul.bf16.gmra.mxu0 %v17232_v18  ;;  %6690 = vmatmul.bf16.gmra.mxu1 %v17233_v6 }
 0x605   :  { %v14758_v23 = vadd.f32 %v6590_v24, %v6542_v14  ;;  %v11809_v14 = vor.u32 %v12845_v55, %v11808_v9  ;;  %6913 = vmatpush.bf16.msra.mxu2 %v11681_v27  ;;  %v17236_v55 = vld [vmem:[#allocation107_spill] sm:$0xff] }
 0x606   :  { %6788 = vmatmul.bf16.gmra.mxu3 %v17235_v26  ;;  %v11552_v26 = vld [vmem:[#allocation5 + $0xd28] sm:$0xf] }
 0x607   :  { %6739 = vmatmul.bf16.gmra.mxu2 %v17234_v50  ;;  %6962 = vmatpush.bf16.msra.mxu3 %v11809_v14  ;;  %v12781_v50 = vld [vmem:[#allocation5 + $0xd34] sm:$0xf0]  ;;  %v17239_v14 = vld [vmem:[#allocation110_spill] sm:$0xff] }
 0x608   :  { %v11553_v25 = vor.u32 %v12781_v50, %v11552_v26  ;;  %v11664_v50 = vld [vmem:[#allocation5 + $0xe08] sm:$0xf]  ;;  %v12809_v26 = vld [vmem:[#allocation5 + $0xe14] sm:$0xf0] }
 0x609   :  { %v6593_v60 = vpop.f32.mrf.mxu3  ;;  %v6448_v24 = vpop.f32.mrf.mxu0 }
 0x60a   :  { %v6544_v22 = vpop.f32.mrf.mxu2  ;;  %v6449_v39 = vadd.f32 %v6448_v24, %v14693_v63  ;;  %v6497_v3 = vpop.f32.mrf.mxu1  ;;  %6864 = vmatpush.bf16.msra.mxu1 %v11553_v25  ;;  %v11792_v24 = vld [vmem:[#allocation5 + $0xf08] sm:$0xf] }
 0x60b   :  { %v6545_v8 = vadd.f32 %v6544_v22, %v6496_v59  ;;  %v17237_v22 = vld [vmem:[#allocation108_spill] sm:$0xff] }
 0x60c   :  { %v6498_v36 = vadd.f32 %v6497_v3, %v6449_v39  ;;  %v12841_v39 = vld [vmem:[#allocation5 + $0xf14] sm:$0xf0] }
 0x60d   :  { %v14765_v30 = vadd.f32 %v6593_v60, %v6545_v8  ;;  %v11408_v8 = vld [vmem:[#allocation5 + $0xc08] sm:$0xf]  ;;  %v12745_v60 = vld [vmem:[#allocation5 + $0xc14] sm:$0xf0] }
 0x60e   :  { %v11409_v3 = vor.u32 %v12745_v60, %v11408_v8 }
 0x610   :  { %6816 = vmatpush.bf16.msra.mxu0 %v11409_v3  ;;  %v17242_v3 = vld [vmem:[#allocation113_spill] sm:$0xff] }
 0x611   :  { %v6595_v51 = vpop.f32.mrf.mxu3  ;;  %v6451_v54 = vpop.f32.mrf.mxu0 }
 0x612   :  { %v6546_v6 = vpop.f32.mrf.mxu2  ;;  %v6452_v59 = vadd.f32 %v6451_v54, %v14699_v0  ;;  %v6500_v9 = vpop.f32.mrf.mxu1 }
 0x613   :  { %v6547_v18 = vadd.f32 %v6546_v6, %v6498_v36  ;;  %v11665_v6 = vor.u32 %v12809_v26, %v11664_v50 }
 0x614   :  { %v6501_v63 = vadd.f32 %v6500_v9, %v6452_v59  ;;  %6646 = vmatmul.bf16.gmra.mxu0 %v17236_v55  ;;  %6695 = vmatmul.bf16.gmra.mxu1 %v17237_v22 }
 0x615   :  { %v14768_v27 = vadd.f32 %v6595_v51, %v6547_v18  ;;  %v11793_v18 = vor.u32 %v12841_v39, %v11792_v24  ;;  %6914 = vmatpush.bf16.msra.mxu2 %v11665_v6  ;;  %v17240_v39 = vld [vmem:[#allocation111_spill] sm:$0xff] }
 0x616   :  { %6793 = vmatmul.bf16.gmra.mxu3 %v17239_v14  ;;  %v11536_v14 = vld [vmem:[#allocation5 + $0xd08] sm:$0xf] }
 0x617   :  { %6744 = vmatmul.bf16.gmra.mxu2 %v17238_v57  ;;  %6963 = vmatpush.bf16.msra.mxu3 %v11793_v18  ;;  %v12777_v57 = vld [vmem:[#allocation5 + $0xd14] sm:$0xf0]  ;;  %v17243_v18 = vld [vmem:[#allocation114_spill] sm:$0xff] }
 0x618   :  { %v11537_v26 = vor.u32 %v12777_v57, %v11536_v14  ;;  %v12387_v57 = vld [vmem:[#allocation5 + $0xec] sm:$0xf]  ;;  %v9986_v14 = vld [vmem:[#allocation5 + $0xf8] sm:$0xf0] }
 0x619   :  { %v6598_v25 = vpop.f32.mrf.mxu3  ;;  %v6453_v51 = vpop.f32.mrf.mxu0 }
 0x61a   :  { %v6549_v0 = vpop.f32.mrf.mxu2  ;;  %v6454_v54 = vadd.f32 %v6453_v51, %v14701_v35  ;;  %v6502_v59 = vpop.f32.mrf.mxu1  ;;  %6865 = vmatpush.bf16.msra.mxu1 %v11537_v26  ;;  %v12419_v51 = vld [vmem:[#allocation5 + $0x1ec] sm:$0xf] }
 0x61b   :  { %v6550_v36 = vadd.f32 %v6549_v0, %v6501_v63  ;;  %v17241_v0 = vld [vmem:[#allocation112_spill] sm:$0xff] }
 0x61c   :  { %v6503_v50 = vadd.f32 %v6502_v59, %v6454_v54  ;;  %v10114_v54 = vld [vmem:[#allocation5 + $0x1f8] sm:$0xf0] }
 0x61d   :  { %v14775_v9 = vadd.f32 %v6598_v25, %v6550_v36  ;;  %v12032_v36 = vld [vmem:[#allocation5 + $0x10e8] sm:$0xf]  ;;  %v12901_v25 = vld [vmem:[#allocation5 + $0x10f4] sm:$0xf0] }
 0x61e   :  { %v12033_v59 = vor.u32 %v12901_v25, %v12032_v36 }
 0x620   :  { %7005 = vmatpush.bf16.msrb.mxu0 %v12033_v59  ;;  %v17246_v59 = vld [vmem:[#allocation117_spill] sm:$0xff] }
 0x621   :  { %v6600_v8 = vpop.f32.mrf.mxu3  ;;  %v6456_v60 = vpop.f32.mrf.mxu0 }
 0x622   :  { %v6551_v22 = vpop.f32.mrf.mxu2  ;;  %v6457_v63 = vadd.f32 %v6456_v60, %v14707_v15  ;;  %v6505_v24 = vpop.f32.mrf.mxu1 }
 0x623   :  { %v6552_v55 = vadd.f32 %v6551_v22, %v6503_v50  ;;  %v9989_v22 = vor.u32 %v12387_v57, %v9986_v14 }
 0x624   :  { %v6506_v35 = vadd.f32 %v6505_v24, %v6457_v63  ;;  %6651 = vmatmul.bf16.gmra.mxu0 %v17240_v39  ;;  %6700 = vmatmul.bf16.gmra.mxu1 %v17241_v0 }
 0x625   :  { %v14778_v6 = vadd.f32 %v6600_v8, %v6552_v55  ;;  %v10117_v55 = vor.u32 %v12419_v51, %v10114_v54  ;;  %7103 = vmatpush.bf16.msrb.mxu2 %v9989_v22  ;;  %v17244_v54 = vld [vmem:[#allocation115_spill] sm:$0xff] }
 0x626   :  { %6798 = vmatmul.bf16.gmra.mxu3 %v17243_v18  ;;  %v12160_v18 = vld [vmem:[#allocation5 + $0x11e8] sm:$0xf] }
 0x627   :  { %6749 = vmatmul.bf16.gmra.mxu2 %v17242_v3  ;;  %7152 = vmatpush.bf16.msrb.mxu3 %v10117_v55  ;;  %v12933_v3 = vld [vmem:[#allocation5 + $0x11f4] sm:$0xf0]  ;;  %v17247_v55 = vld [vmem:[#allocation118_spill] sm:$0xff] }
 0x628   :  { %v12161_v14 = vor.u32 %v12933_v3, %v12160_v18  ;;  %v12383_v3 = vld [vmem:[#allocation5 + $0xcc] sm:$0xf]  ;;  %v9970_v18 = vld [vmem:[#allocation5 + $0xd8] sm:$0xf0] }
 0x629   :  { %v6603_v26 = vpop.f32.mrf.mxu3  ;;  %v6458_v8 = vpop.f32.mrf.mxu0 }
 0x62a   :  { %v6554_v15 = vpop.f32.mrf.mxu2  ;;  %v6459_v60 = vadd.f32 %v6458_v8, %v14709_v46  ;;  %v6507_v63 = vpop.f32.mrf.mxu1  ;;  %7054 = vmatpush.bf16.msrb.mxu1 %v12161_v14  ;;  %v12415_v8 = vld [vmem:[#allocation5 + $0x1cc] sm:$0xf] }
 0x62b   :  { %v6555_v50 = vadd.f32 %v6554_v15, %v6506_v35  ;;  %v17245_v15 = vld [vmem:[#allocation116_spill] sm:$0xff] }
 0x62c   :  { %v6508_v57 = vadd.f32 %v6507_v63, %v6459_v60  ;;  %v10098_v60 = vld [vmem:[#allocation5 + $0x1d8] sm:$0xf0] }
 0x62d   :  { %v14785_v24 = vadd.f32 %v6603_v26, %v6555_v50  ;;  %v12016_v50 = vld [vmem:[#allocation5 + $0x10c8] sm:$0xf]  ;;  %v12897_v26 = vld [vmem:[#allocation5 + $0x10d4] sm:$0xf0] }
 0x62e   :  { %v12017_v63 = vor.u32 %v12897_v26, %v12016_v50 }
 0x630   :  { %7006 = vmatpush.bf16.msrb.mxu0 %v12017_v63  ;;  %v12000_v63 = vld [vmem:[#allocation5 + $0x10a8] sm:$0xf] }
 0x631   :  { %v6605_v36 = vpop.f32.mrf.mxu3  ;;  %v6461_v25 = vpop.f32.mrf.mxu0 }
 0x632   :  { %v6556_v0 = vpop.f32.mrf.mxu2  ;;  %v6462_v35 = vadd.f32 %v6461_v25, %v14715_v5  ;;  %v6510_v51 = vpop.f32.mrf.mxu1 }
 0x633   :  { %v6557_v39 = vadd.f32 %v6556_v0, %v6508_v57  ;;  %v9973_v0 = vor.u32 %v12383_v3, %v9970_v18 }
 0x634   :  { %v6511_v46 = vadd.f32 %v6510_v51, %v6462_v35  ;;  %6656 = vmatmul.bf16.gmra.mxu0 %v17244_v54  ;;  %6705 = vmatmul.bf16.gmra.mxu1 %v17245_v15 }
 0x635   :  { %v14788_v22 = vadd.f32 %v6605_v36, %v6557_v39  ;;  %v10101_v39 = vor.u32 %v12415_v8, %v10098_v60  ;;  %7104 = vmatpush.bf16.msrb.mxu2 %v9973_v0  ;;  %v17248_v60 = vld [vmem:[#allocation119_spill] sm:$0xff] }
 0x636   :  { %6803 = vmatmul.bf16.gmra.mxu3 %v17247_v55  ;;  %v12144_v55 = vld [vmem:[#allocation5 + $0x11c8] sm:$0xf] }
 0x637   :  { %6754 = vmatmul.bf16.gmra.mxu2 %v17246_v59  ;;  %7153 = vmatpush.bf16.msrb.mxu3 %v10101_v39  ;;  %v12929_v59 = vld [vmem:[#allocation5 + $0x11d4] sm:$0xf0] }
 0x638   :  { %v12145_v18 = vor.u32 %v12929_v59, %v12144_v55  ;;  %v12379_v59 = vld [vmem:[#allocation5 + $0xac] sm:$0xf]  ;;  %v9954_v55 = vld [vmem:[#allocation5 + $0xb8] sm:$0xf0]  ;;  %v12893_v39 = vld [vmem:[#allocation5 + $0x10b4] sm:$0xf0] }
 0x639   :  { %v6608_v14 = vpop.f32.mrf.mxu3  ;;  %v6463_v36 = vpop.f32.mrf.mxu0 }
 0x63a   :  { %v6559_v5 = vpop.f32.mrf.mxu2  ;;  %v6464_v25 = vadd.f32 %v6463_v36, %v14718_v19  ;;  %v6512_v35 = vpop.f32.mrf.mxu1  ;;  %7055 = vmatpush.bf16.msrb.mxu1 %v12145_v18  ;;  %v12001_v36 = vor.u32 %v12893_v39, %v12000_v63 }
 0x63b   :  { %v6560_v57 = vadd.f32 %v6559_v5, %v6511_v46  ;;  %v17249_v5 = vld [vmem:[#allocation120_spill] sm:$0xff] }
 0x63c   :  { %v6513_v3 = vadd.f32 %v6512_v35, %v6464_v25  ;;  %7007 = vmatpush.bf16.msrb.mxu0 %v12001_v36  ;;  %v12375_v36 = vld [vmem:[#allocation5 + $0x8c] sm:$0xf] }
 0x63d   :  { %v14795_v51 = vadd.f32 %v6608_v14, %v6560_v57  ;;  %v12411_v57 = vld [vmem:[#allocation5 + $0x1ac] sm:$0xf]  ;;  %v10082_v14 = vld [vmem:[#allocation5 + $0x1b8] sm:$0xf0] }
 0x641   :  { %v6610_v50 = vpop.f32.mrf.mxu3  ;;  %v6622_v26 = vpop.f32.mrf.mxu0 }
 0x642   :  { %v6561_v15 = vpop.f32.mrf.mxu2  ;;  %v6623_v46 = vadd.f32 %v6622_v26, %v14725_v48  ;;  %v6671_v8 = vpop.f32.mrf.mxu1 }
 0x643   :  { %v6562_v54 = vadd.f32 %v6561_v15, %v6513_v3  ;;  %v9957_v15 = vor.u32 %v12379_v59, %v9954_v55 }
 0x644   :  { %v6672_v19 = vadd.f32 %v6671_v8, %v6623_v46  ;;  %6817 = vmatmul.bf16.vlgmr.msra.gmra.mxu0 %v17248_v60  ;;  %6866 = vmatmul.bf16.vlgmr.msra.gmra.mxu1 %v17249_v5  ;;  %v12128_v46 = vld [vmem:[#allocation5 + $0x11a8] sm:$0xf]  ;;  %v12925_v8 = vld [vmem:[#allocation5 + $0x11b4] sm:$0xf0] }
 0x645   :  { %v14798_v0 = vadd.f32 %v6610_v50, %v6562_v54  ;;  %v10085_v54 = vor.u32 %v12411_v57, %v10082_v14  ;;  %7105 = vmatpush.bf16.msrb.mxu2 %v9957_v15  ;;  %v12129_v55 = vor.u32 %v12925_v8, %v12128_v46  ;;  %v17250_v14 = vld [vmem:[#allocation123_spill] sm:$0xff] }
 0x646   :  { %6964 = vmatmul.bf16.vlgmr.msra.gmra.mxu3 %v17133_v34 }
 0x647   :  { %6915 = vmatmul.bf16.vlgmr.msra.gmra.mxu2 %v17132_v4  ;;  %7154 = vmatpush.bf16.msrb.mxu3 %v10085_v54  ;;  %v9938_v54 = vld [vmem:[#allocation5 + $0x98] sm:$0xf0] }
 0x648   :  { %7056 = vmatpush.bf16.msrb.mxu1 %v12129_v55 }
 0x649   :  { %v6769_v35 = vpop.f32.mrf.mxu3  ;;  %v6624_v3 = vpop.f32.mrf.mxu0 }
 0x64a   :  { %v6720_v48 = vpop.f32.mrf.mxu2  ;;  %v6625_v18 = vadd.f32 %v6624_v3, %v14728_v31  ;;  %v6673_v50 = vpop.f32.mrf.mxu1  ;;  %v12407_v3 = vld [vmem:[#allocation5 + $0x18c] sm:$0xf] }
 0x64b   :  { %v6721_v25 = vadd.f32 %v6720_v48, %v6672_v19  ;;  %v17251_v48 = vld [vmem:[#allocation124_spill] sm:$0xff] }
 0x64c   :  { %v6674_v59 = vadd.f32 %v6673_v50, %v6625_v18  ;;  %v10066_v18 = vld [vmem:[#allocation5 + $0x198] sm:$0xf0] }
 0x64d   :  { %v14805_v26 = vadd.f32 %v6769_v35, %v6721_v25  ;;  %v11984_v25 = vld [vmem:[#allocation5 + $0x1088] sm:$0xf]  ;;  %v12889_v35 = vld [vmem:[#allocation5 + $0x1094] sm:$0xf0] }
 0x64e   :  { %v11985_v50 = vor.u32 %v12889_v35, %v11984_v25 }
 0x650   :  { %7008 = vmatpush.bf16.msrb.mxu0 %v11985_v50  ;;  %v12371_v50 = vld [vmem:[#allocation5 + $0x6c] sm:$0xf] }
 0x651   :  { %v6771_v63 = vpop.f32.mrf.mxu3  ;;  %v6627_v39 = vpop.f32.mrf.mxu0 }
 0x652   :  { %v6722_v34 = vpop.f32.mrf.mxu2  ;;  %v6628_v19 = vadd.f32 %v6627_v39, %v14735_v47  ;;  %v6676_v57 = vpop.f32.mrf.mxu1 }
 0x653   :  { %v6723_v4 = vadd.f32 %v6722_v34, %v6674_v59  ;;  %v9941_v34 = vor.u32 %v12375_v36, %v9938_v54 }
 0x654   :  { %v6677_v31 = vadd.f32 %v6676_v57, %v6628_v19  ;;  %6822 = vmatmul.bf16.gmra.mxu0 %v17250_v14  ;;  %6871 = vmatmul.bf16.gmra.mxu1 %v17251_v48  ;;  %v12112_v19 = vld [vmem:[#allocation5 + $0x1188] sm:$0xf]  ;;  %v12921_v57 = vld [vmem:[#allocation5 + $0x1194] sm:$0xf0]  ;;  %v17290_v14 = vld [vmem:[#allocation176_spill] sm:$0xff] }
 0x655   :  { %v14808_v15 = vadd.f32 %v6771_v63, %v6723_v4  ;;  %v10069_v4 = vor.u32 %v12407_v3, %v10066_v18  ;;  %7106 = vmatpush.bf16.msrb.mxu2 %v9941_v34  ;;  %v12113_v54 = vor.u32 %v12921_v57, %v12112_v19  ;;  %v17252_v18 = vld [vmem:[#allocation127_spill] sm:$0xff]  ;;  %v12174_v5 = vmul.f32 -1.442695, %v17290_v14 }
 0x656   :  { %6969 = vmatmul.bf16.gmra.mxu3 %v17135_v53 }
 0x657   :  { %6920 = vmatmul.bf16.gmra.mxu2 %v17134_v61  ;;  %7155 = vmatpush.bf16.msrb.mxu3 %v10069_v4  ;;  %v9922_v4 = vld [vmem:[#allocation5 + $0x78] sm:$0xf0] }
 0x658   :  { %7057 = vmatpush.bf16.msrb.mxu1 %v12113_v54 }
 0x659   :  { %v6774_v8 = vpop.f32.mrf.mxu3  ;;  %v6629_v59 = vpop.f32.mrf.mxu0 }
 0x65a   :  { %v6725_v47 = vpop.f32.mrf.mxu2  ;;  %v6630_v55 = vadd.f32 %v6629_v59, %v14738_v33  ;;  %v6678_v63 = vpop.f32.mrf.mxu1  ;;  %v12403_v59 = vld [vmem:[#allocation5 + $0x16c] sm:$0xf] }
 0x65b   :  { %v6726_v46 = vadd.f32 %v6725_v47, %v6677_v31  ;;  %v17253_v47 = vld [vmem:[#allocation128_spill] sm:$0xff] }
 0x65c   :  { %v6679_v36 = vadd.f32 %v6678_v63, %v6630_v55  ;;  %v10050_v55 = vld [vmem:[#allocation5 + $0x178] sm:$0xf0] }
 0x65d   :  { %v14815_v39 = vadd.f32 %v6774_v8, %v6726_v46  ;;  %v11968_v46 = vld [vmem:[#allocation5 + $0x1068] sm:$0xf]  ;;  %v12885_v8 = vld [vmem:[#allocation5 + $0x1074] sm:$0xf0] }
 0x65e   :  { %v11969_v63 = vor.u32 %v12885_v8, %v11968_v46 }
 0x660   :  { %7009 = vmatpush.bf16.msrb.mxu0 %v11969_v63  ;;  %v12367_v63 = vld [vmem:[#allocation5 + $0x4c] sm:$0xf] }
 0x661   :  { %v6776_v25 = vpop.f32.mrf.mxu3  ;;  %v6632_v35 = vpop.f32.mrf.mxu0 }
 0x662   :  { %v6727_v53 = vpop.f32.mrf.mxu2  ;;  %v6633_v31 = vadd.f32 %v6632_v35, %v14745_v56  ;;  %v6681_v3 = vpop.f32.mrf.mxu1 }
 0x663   :  { %v6728_v61 = vadd.f32 %v6727_v53, %v6679_v36  ;;  %v9925_v53 = vor.u32 %v12371_v50, %v9922_v4 }
 0x664   :  { %v6682_v33 = vadd.f32 %v6681_v3, %v6633_v31  ;;  %6827 = vmatmul.bf16.gmra.mxu0 %v17252_v18  ;;  %6876 = vmatmul.bf16.gmra.mxu1 %v17253_v47  ;;  %v12096_v31 = vld [vmem:[#allocation5 + $0x1168] sm:$0xf]  ;;  %v12917_v3 = vld [vmem:[#allocation5 + $0x1174] sm:$0xf0] }
 0x665   :  { %v14818_v34 = vadd.f32 %v6776_v25, %v6728_v61  ;;  %v10053_v61 = vor.u32 %v12403_v59, %v10050_v55  ;;  %7107 = vmatpush.bf16.msrb.mxu2 %v9925_v53  ;;  %v12097_v4 = vor.u32 %v12917_v3, %v12096_v31  ;;  %v17254_v55 = vld [vmem:[#allocation131_spill] sm:$0xff] }
 0x666   :  { %6974 = vmatmul.bf16.gmra.mxu3 %v17137_v11 }
 0x667   :  { %6925 = vmatmul.bf16.gmra.mxu2 %v17136_v1  ;;  %7156 = vmatpush.bf16.msrb.mxu3 %v10053_v61  ;;  %v9906_v61 = vld [vmem:[#allocation5 + $0x58] sm:$0xf0] }
 0x668   :  { %7058 = vmatpush.bf16.msrb.mxu1 %v12097_v4 }
 0x669   :  { %v6779_v57 = vpop.f32.mrf.mxu3  ;;  %v6634_v36 = vpop.f32.mrf.mxu0 }
 0x66a   :  { %v6730_v56 = vpop.f32.mrf.mxu2  ;;  %v6635_v54 = vadd.f32 %v6634_v36, %v14748_v52  ;;  %v6683_v25 = vpop.f32.mrf.mxu1  ;;  %v12399_v36 = vld [vmem:[#allocation5 + $0x14c] sm:$0xf] }
 0x66b   :  { %v6731_v19 = vadd.f32 %v6730_v56, %v6682_v33  ;;  %v17255_v56 = vld [vmem:[#allocation132_spill] sm:$0xff] }
 0x66c   :  { %v6684_v50 = vadd.f32 %v6683_v25, %v6635_v54  ;;  %v10034_v54 = vld [vmem:[#allocation5 + $0x158] sm:$0xf0] }
 0x66d   :  { %v14825_v35 = vadd.f32 %v6779_v57, %v6731_v19  ;;  %v11952_v19 = vld [vmem:[#allocation5 + $0x1048] sm:$0xf]  ;;  %v12881_v57 = vld [vmem:[#allocation5 + $0x1054] sm:$0xf0] }
 0x66e   :  { %v11953_v25 = vor.u32 %v12881_v57, %v11952_v19 }
 0x670   :  { %7010 = vmatpush.bf16.msrb.mxu0 %v11953_v25  ;;  %v12363_v25 = vld [vmem:[#allocation5 + $0x2c] sm:$0xf] }
 0x671   :  { %v6781_v46 = vpop.f32.mrf.mxu3  ;;  %v6637_v8 = vpop.f32.mrf.mxu0 }
 0x672   :  { %v6732_v11 = vpop.f32.mrf.mxu2  ;;  %v6638_v33 = vadd.f32 %v6637_v8, %v14755_v20  ;;  %v6686_v59 = vpop.f32.mrf.mxu1 }
 0x673   :  { %v6733_v1 = vadd.f32 %v6732_v11, %v6684_v50  ;;  %v9909_v11 = vor.u32 %v12367_v63, %v9906_v61 }
 0x674   :  { %v6687_v52 = vadd.f32 %v6686_v59, %v6638_v33  ;;  %6832 = vmatmul.bf16.gmra.mxu0 %v17254_v55  ;;  %6881 = vmatmul.bf16.gmra.mxu1 %v17255_v56  ;;  %v12080_v33 = vld [vmem:[#allocation5 + $0x1148] sm:$0xf]  ;;  %v12913_v59 = vld [vmem:[#allocation5 + $0x1154] sm:$0xf0] }
 0x675   :  { %v14828_v53 = vadd.f32 %v6781_v46, %v6733_v1  ;;  %v10037_v1 = vor.u32 %v12399_v36, %v10034_v54  ;;  %7108 = vmatpush.bf16.msrb.mxu2 %v9909_v11  ;;  %v12081_v61 = vor.u32 %v12913_v59, %v12080_v33  ;;  %v17256_v54 = vld [vmem:[#allocation135_spill] sm:$0xff] }
 0x676   :  { %6979 = vmatmul.bf16.gmra.mxu3 %v17139_v13 }
 0x677   :  { %6930 = vmatmul.bf16.gmra.mxu2 %v17138_v7  ;;  %7157 = vmatpush.bf16.msrb.mxu3 %v10037_v1  ;;  %v9890_v1 = vld [vmem:[#allocation5 + $0x38] sm:$0xf0] }
 0x678   :  { %7059 = vmatpush.bf16.msrb.mxu1 %v12081_v61 }
 0x679   :  { %v6784_v3 = vpop.f32.mrf.mxu3  ;;  %v6639_v50 = vpop.f32.mrf.mxu0 }
 0x67a   :  { %v6735_v20 = vpop.f32.mrf.mxu2  ;;  %v6640_v4 = vadd.f32 %v6639_v50, %v14758_v23  ;;  %v6688_v46 = vpop.f32.mrf.mxu1  ;;  %v12395_v50 = vld [vmem:[#allocation5 + $0x12c] sm:$0xf] }
 0x67b   :  { %v6736_v31 = vadd.f32 %v6735_v20, %v6687_v52  ;;  %v17257_v20 = vld [vmem:[#allocation136_spill] sm:$0xff] }
 0x67c   :  { %v6689_v63 = vadd.f32 %v6688_v46, %v6640_v4  ;;  %v10018_v4 = vld [vmem:[#allocation5 + $0x138] sm:$0xf0] }
 0x67d   :  { %v14835_v8 = vadd.f32 %v6784_v3, %v6736_v31  ;;  %v11936_v31 = vld [vmem:[#allocation5 + $0x1028] sm:$0xf]  ;;  %v12877_v3 = vld [vmem:[#allocation5 + $0x1034] sm:$0xf0] }
 0x67e   :  { %v11937_v46 = vor.u32 %v12877_v3, %v11936_v31 }
 0x680   :  { %7011 = vmatpush.bf16.msrb.mxu0 %v11937_v46  ;;  %v12359_v46 = vld [vmem:[#allocation5 + $0xc] sm:$0xf] }
 0x681   :  { %v6786_v19 = vpop.f32.mrf.mxu3  ;;  %v6642_v57 = vpop.f32.mrf.mxu0 }
 0x682   :  { %v6737_v13 = vpop.f32.mrf.mxu2  ;;  %v6643_v52 = vadd.f32 %v6642_v57, %v14765_v30  ;;  %v6691_v36 = vpop.f32.mrf.mxu1 }
 0x683   :  { %v6738_v7 = vadd.f32 %v6737_v13, %v6689_v63  ;;  %v9893_v13 = vor.u32 %v12363_v25, %v9890_v1 }
 0x684   :  { %v6692_v23 = vadd.f32 %v6691_v36, %v6643_v52  ;;  %6837 = vmatmul.bf16.gmra.mxu0 %v17256_v54  ;;  %6886 = vmatmul.bf16.gmra.mxu1 %v17257_v20  ;;  %v12064_v52 = vld [vmem:[#allocation5 + $0x1128] sm:$0xf]  ;;  %v12909_v36 = vld [vmem:[#allocation5 + $0x1134] sm:$0xf0] }
 0x685   :  { %v14838_v11 = vadd.f32 %v6786_v19, %v6738_v7  ;;  %v10021_v7 = vor.u32 %v12395_v50, %v10018_v4  ;;  %7109 = vmatpush.bf16.msrb.mxu2 %v9893_v13  ;;  %v12065_v1 = vor.u32 %v12909_v36, %v12064_v52  ;;  %v17258_v4 = vld [vmem:[#allocation139_spill] sm:$0xff] }
 0x686   :  { %6984 = vmatmul.bf16.gmra.mxu3 %v17141_v29 }
 0x687   :  { %6935 = vmatmul.bf16.gmra.mxu2 %v17140_v44  ;;  %7158 = vmatpush.bf16.msrb.mxu3 %v10021_v7  ;;  %v9874_v7 = vld [vmem:[#allocation5 + $0x18] sm:$0xf0] }
 0x688   :  { %7060 = vmatpush.bf16.msrb.mxu1 %v12065_v1 }
 0x689   :  { %v6789_v59 = vpop.f32.mrf.mxu3  ;;  %v6644_v63 = vpop.f32.mrf.mxu0 }
 0x68a   :  { %v6740_v30 = vpop.f32.mrf.mxu2  ;;  %v6645_v61 = vadd.f32 %v6644_v63, %v14768_v27  ;;  %v6693_v19 = vpop.f32.mrf.mxu1  ;;  %v12391_v63 = vld [vmem:[#allocation5 + $0x10c] sm:$0xf] }
 0x68b   :  { %v6741_v33 = vadd.f32 %v6740_v30, %v6692_v23  ;;  %v17259_v30 = vld [vmem:[#allocation140_spill] sm:$0xff] }
 0x68c   :  { %v6694_v25 = vadd.f32 %v6693_v19, %v6645_v61  ;;  %v10002_v61 = vld [vmem:[#allocation5 + $0x118] sm:$0xf0] }
 0x68d   :  { %v14845_v57 = vadd.f32 %v6789_v59, %v6741_v33  ;;  %v11920_v33 = vld [vmem:[#allocation5 + $0x1008] sm:$0xf]  ;;  %v12873_v59 = vld [vmem:[#allocation5 + $0x1014] sm:$0xf0] }
 0x68e   :  { %v11921_v19 = vor.u32 %v12873_v59, %v11920_v33 }
 0x690   :  { %7012 = vmatpush.bf16.msrb.mxu0 %v11921_v19  ;;  %v12515_v19 = vld [vmem:[#allocation5 + $0x4ec] sm:$0xf] }
 0x691   :  { %v6791_v31 = vpop.f32.mrf.mxu3  ;;  %v6647_v3 = vpop.f32.mrf.mxu0 }
 0x692   :  { %v6742_v29 = vpop.f32.mrf.mxu2  ;;  %v6648_v23 = vadd.f32 %v6647_v3, %v14775_v9  ;;  %v6696_v50 = vpop.f32.mrf.mxu1 }
 0x693   :  { %v6743_v44 = vadd.f32 %v6742_v29, %v6694_v25  ;;  %v9877_v29 = vor.u32 %v12359_v46, %v9874_v7 }
 0x694   :  { %v6697_v27 = vadd.f32 %v6696_v50, %v6648_v23  ;;  %6842 = vmatmul.bf16.gmra.mxu0 %v17258_v4  ;;  %6891 = vmatmul.bf16.gmra.mxu1 %v17259_v30  ;;  %v12048_v23 = vld [vmem:[#allocation5 + $0x1108] sm:$0xf]  ;;  %v12905_v50 = vld [vmem:[#allocation5 + $0x1114] sm:$0xf0] }
 0x695   :  { %v14848_v13 = vadd.f32 %v6791_v31, %v6743_v44  ;;  %v10005_v44 = vor.u32 %v12391_v63, %v10002_v61  ;;  %7110 = vmatpush.bf16.msrb.mxu2 %v9877_v29  ;;  %v12049_v7 = vor.u32 %v12905_v50, %v12048_v23  ;;  %v17260_v61 = vld [vmem:[#allocation143_spill] sm:$0xff] }
 0x696   :  { %6989 = vmatmul.bf16.gmra.mxu3 %v17143_v62 }
 0x697   :  { %6940 = vmatmul.bf16.gmra.mxu2 %v17142_v42  ;;  %7159 = vmatpush.bf16.msrb.mxu3 %v10005_v44  ;;  %v10498_v44 = vld [vmem:[#allocation5 + $0x4f8] sm:$0xf0] }
 0x698   :  { %7061 = vmatpush.bf16.msrb.mxu1 %v12049_v7 }
 0x699   :  { %v6794_v36 = vpop.f32.mrf.mxu3  ;;  %v6649_v25 = vpop.f32.mrf.mxu0 }
 0x69a   :  { %v6745_v9 = vpop.f32.mrf.mxu2  ;;  %v6650_v1 = vadd.f32 %v6649_v25, %v14778_v6  ;;  %v6698_v31 = vpop.f32.mrf.mxu1  ;;  %v12547_v25 = vld [vmem:[#allocation5 + $0x5ec] sm:$0xf] }
 0x69b   :  { %v6746_v52 = vadd.f32 %v6745_v9, %v6697_v27  ;;  %v17261_v9 = vld [vmem:[#allocation144_spill] sm:$0xff] }
 0x69c   :  { %v6699_v46 = vadd.f32 %v6698_v31, %v6650_v1  ;;  %v10626_v1 = vld [vmem:[#allocation5 + $0x5f8] sm:$0xf0] }
 0x69d   :  { %v14855_v3 = vadd.f32 %v6794_v36, %v6746_v52  ;;  %v12451_v52 = vld [vmem:[#allocation5 + $0x2ec] sm:$0xf]  ;;  %v10242_v36 = vld [vmem:[#allocation5 + $0x2f8] sm:$0xf0] }
 0x69e   :  { %v10245_v31 = vor.u32 %v12451_v52, %v10242_v36 }
 0x6a0   :  { %7201 = vmatpush.bf16.msra.mxu0 %v10245_v31  ;;  %v12511_v31 = vld [vmem:[#allocation5 + $0x4cc] sm:$0xf] }
 0x6a1   :  { %v6796_v33 = vpop.f32.mrf.mxu3  ;;  %v6652_v59 = vpop.f32.mrf.mxu0 }
 0x6a2   :  { %v6747_v62 = vpop.f32.mrf.mxu2  ;;  %v6653_v27 = vadd.f32 %v6652_v59, %v14785_v24  ;;  %v6701_v63 = vpop.f32.mrf.mxu1 }
 0x6a3   :  { %v6748_v42 = vadd.f32 %v6747_v62, %v6699_v46  ;;  %v10501_v62 = vor.u32 %v12515_v19, %v10498_v44 }
 0x6a4   :  { %v6702_v6 = vadd.f32 %v6701_v63, %v6653_v27  ;;  %6847 = vmatmul.bf16.gmra.mxu0 %v17260_v61  ;;  %6896 = vmatmul.bf16.gmra.mxu1 %v17261_v9  ;;  %v12483_v27 = vld [vmem:[#allocation5 + $0x3ec] sm:$0xf]  ;;  %v10370_v63 = vld [vmem:[#allocation5 + $0x3f8] sm:$0xf0] }
 0x6a5   :  { %v14858_v29 = vadd.f32 %v6796_v33, %v6748_v42  ;;  %v10629_v42 = vor.u32 %v12547_v25, %v10626_v1  ;;  %7299 = vmatpush.bf16.msra.mxu2 %v10501_v62  ;;  %v10373_v44 = vor.u32 %v12483_v27, %v10370_v63  ;;  %v17262_v1 = vld [vmem:[#allocation147_spill] sm:$0xff] }
 0x6a6   :  { %6994 = vmatmul.bf16.gmra.mxu3 %v17145_v32 }
 0x6a7   :  { %6945 = vmatmul.bf16.gmra.mxu2 %v17144_v17  ;;  %7348 = vmatpush.bf16.msra.mxu3 %v10629_v42  ;;  %v10482_v42 = vld [vmem:[#allocation5 + $0x4d8] sm:$0xf0] }
 0x6a8   :  { %7250 = vmatpush.bf16.msra.mxu1 %v10373_v44 }
 0x6a9   :  { %v6799_v50 = vpop.f32.mrf.mxu3  ;;  %v6654_v46 = vpop.f32.mrf.mxu0 }
 0x6aa   :  { %v6750_v24 = vpop.f32.mrf.mxu2  ;;  %v6655_v7 = vadd.f32 %v6654_v46, %v14788_v22  ;;  %v6703_v33 = vpop.f32.mrf.mxu1  ;;  %v12543_v46 = vld [vmem:[#allocation5 + $0x5cc] sm:$0xf] }
 0x6ab   :  { %v6751_v23 = vadd.f32 %v6750_v24, %v6702_v6  ;;  %v17263_v24 = vld [vmem:[#allocation148_spill] sm:$0xff] }
 0x6ac   :  { %v6704_v19 = vadd.f32 %v6703_v33, %v6655_v7  ;;  %v10610_v7 = vld [vmem:[#allocation5 + $0x5d8] sm:$0xf0] }
 0x6ad   :  { %v14865_v59 = vadd.f32 %v6799_v50, %v6751_v23  ;;  %v12447_v23 = vld [vmem:[#allocation5 + $0x2cc] sm:$0xf]  ;;  %v10226_v50 = vld [vmem:[#allocation5 + $0x2d8] sm:$0xf0] }
 0x6ae   :  { %v10229_v33 = vor.u32 %v12447_v23, %v10226_v50 }
 0x6b0   :  { %7202 = vmatpush.bf16.msra.mxu0 %v10229_v33  ;;  %v12507_v33 = vld [vmem:[#allocation5 + $0x4ac] sm:$0xf] }
 0x6b1   :  { %v6801_v52 = vpop.f32.mrf.mxu3  ;;  %v6657_v36 = vpop.f32.mrf.mxu0 }
 0x6b2   :  { %v6752_v32 = vpop.f32.mrf.mxu2  ;;  %v6658_v6 = vadd.f32 %v6657_v36, %v14795_v51  ;;  %v6706_v25 = vpop.f32.mrf.mxu1 }
 0x6b3   :  { %v6753_v17 = vadd.f32 %v6752_v32, %v6704_v19  ;;  %v10485_v32 = vor.u32 %v12511_v31, %v10482_v42 }
 0x6b4   :  { %v6707_v22 = vadd.f32 %v6706_v25, %v6658_v6  ;;  %6852 = vmatmul.bf16.gmra.mxu0 %v17262_v1  ;;  %6901 = vmatmul.bf16.gmra.mxu1 %v17263_v24  ;;  %v12479_v6 = vld [vmem:[#allocation5 + $0x3cc] sm:$0xf]  ;;  %v10354_v25 = vld [vmem:[#allocation5 + $0x3d8] sm:$0xf0] }
 0x6b5   :  { %v14868_v62 = vadd.f32 %v6801_v52, %v6753_v17  ;;  %v10613_v17 = vor.u32 %v12543_v46, %v10610_v7  ;;  %7300 = vmatpush.bf16.msra.mxu2 %v10485_v32  ;;  %v10357_v42 = vor.u32 %v12479_v6, %v10354_v25  ;;  %v17264_v7 = vld [vmem:[#allocation151_spill] sm:$0xff]  ;;  %v17281_v24 = vld [vmem:[#allocation160_spill] sm:$0xff] }
 0x6b6   :  { %6999 = vmatmul.bf16.gmra.mxu3 %v17147_v43 }
 0x6b7   :  { %6950 = vmatmul.bf16.gmra.mxu2 %v17146_v38  ;;  %7349 = vmatpush.bf16.msra.mxu3 %v10613_v17  ;;  %v10466_v17 = vld [vmem:[#allocation5 + $0x4b8] sm:$0xf0] }
 0x6b8   :  { %7251 = vmatpush.bf16.msra.mxu1 %v10357_v42 }
 0x6b9   :  { %v6804_v63 = vpop.f32.mrf.mxu3  ;;  %v6659_v19 = vpop.f32.mrf.mxu0 }
 0x6ba   :  { %v6755_v51 = vpop.f32.mrf.mxu2  ;;  %v6660_v44 = vadd.f32 %v6659_v19, %v14798_v0  ;;  %v6708_v52 = vpop.f32.mrf.mxu1  ;;  %v12539_v19 = vld [vmem:[#allocation5 + $0x5ac] sm:$0xf] }
 0x6bb   :  { %v6756_v27 = vadd.f32 %v6755_v51, %v6707_v22  ;;  %v17265_v51 = vld [vmem:[#allocation152_spill] sm:$0xff] }
 0x6bc   :  { %v6709_v31 = vadd.f32 %v6708_v52, %v6660_v44  ;;  %v10594_v44 = vld [vmem:[#allocation5 + $0x5b8] sm:$0xf0] }
 0x6bd   :  { %v14875_v36 = vadd.f32 %v6804_v63, %v6756_v27  ;;  %v12443_v27 = vld [vmem:[#allocation5 + $0x2ac] sm:$0xf]  ;;  %v10210_v63 = vld [vmem:[#allocation5 + $0x2b8] sm:$0xf0] }
 0x6be   :  { %v10213_v52 = vor.u32 %v12443_v27, %v10210_v63 }
 0x6c0   :  { %7203 = vmatpush.bf16.msra.mxu0 %v10213_v52  ;;  %v12503_v52 = vld [vmem:[#allocation5 + $0x48c] sm:$0xf] }
 0x6c1   :  { %v6806_v23 = vpop.f32.mrf.mxu3  ;;  %v6818_v50 = vpop.f32.mrf.mxu0 }
 0x6c2   :  { %v6757_v43 = vpop.f32.mrf.mxu2  ;;  %v6819_v22 = vadd.f32 %v6818_v50, %v14805_v26  ;;  %v6867_v46 = vpop.f32.mrf.mxu1  ;;  %v10338_v50 = vld [vmem:[#allocation5 + $0x3b8] sm:$0xf0] }
 0x6c3   :  { %v6758_v38 = vadd.f32 %v6757_v43, %v6709_v31  ;;  %v10469_v43 = vor.u32 %v12507_v33, %v10466_v17 }
 0x6c4   :  { %v6868_v0 = vadd.f32 %v6867_v46, %v6819_v22  ;;  %7013 = vmatmul.bf16.vlgmr.msrb.gmra.mxu0 %v17264_v7  ;;  %7062 = vmatmul.bf16.vlgmr.msrb.gmra.mxu1 %v17265_v51  ;;  %v17274_v7 = vld [vmem:[#allocation157_spill] sm:$0xff] }
 0x6c5   :  { %v14878_v32 = vadd.f32 %v6806_v23, %v6758_v38  ;;  %v10597_v38 = vor.u32 %v12539_v19, %v10594_v44  ;;  %7301 = vmatpush.bf16.msra.mxu2 %v10469_v43  ;;  %v17266_v44 = vld [vmem:[#allocation153_spill] sm:$0xff] }
 0x6c6   :  { %7160 = vmatmul.bf16.vlgmr.msrb.gmra.mxu3 %v17149_v2  ;;  %v12475_v2 = vld [vmem:[#allocation5 + $0x3ac] sm:$0xf] }
 0x6c7   :  { %7111 = vmatmul.bf16.vlgmr.msrb.gmra.mxu2 %v17148_v49  ;;  %7350 = vmatpush.bf16.msra.mxu3 %v10597_v38  ;;  %v10341_v46 = vor.u32 %v12475_v2, %v10338_v50  ;;  %v10450_v38 = vld [vmem:[#allocation5 + $0x498] sm:$0xf0] }
 0x6c9   :  { %v6965_v25 = vpop.f32.mrf.mxu3  ;;  %v6820_v31 = vpop.f32.mrf.mxu0  ;;  %7252 = vmatpush.bf16.msra.mxu1 %v10341_v46 }
 0x6ca   :  { %v6916_v26 = vpop.f32.mrf.mxu2  ;;  %v6821_v42 = vadd.f32 %v6820_v31, %v14808_v15  ;;  %v6869_v23 = vpop.f32.mrf.mxu1  ;;  %v10194_v31 = vld [vmem:[#allocation5 + $0x298] sm:$0xf0] }
 0x6cb   :  { %v6917_v6 = vadd.f32 %v6916_v26, %v6868_v0  ;;  %v17267_v26 = vld [vmem:[#allocation154_spill] sm:$0xff] }
 0x6cc   :  { %v6870_v22 = vadd.f32 %v6869_v23, %v6821_v42  ;;  %v12535_v42 = vld [vmem:[#allocation5 + $0x58c] sm:$0xf]  ;;  %v10578_v23 = vld [vmem:[#allocation5 + $0x598] sm:$0xf0] }
 0x6cd   :  { %v14885_v49 = vadd.f32 %v6965_v25, %v6917_v6  ;;  %v12439_v6 = vld [vmem:[#allocation5 + $0x28c] sm:$0xf]  ;;  %v10453_v25 = vor.u32 %v12503_v52, %v10450_v38  ;;  %v10581_v50 = vor.u32 %v12535_v42, %v10578_v23  ;;  %v17268_v23 = vld [vmem:[#allocation155_spill] sm:$0xff] }
 0x6ce   :  { %v10197_v2 = vor.u32 %v12439_v6, %v10194_v31 }
 0x6cf   :  { %7302 = vmatpush.bf16.msra.mxu2 %v10453_v25  ;;  %7351 = vmatpush.bf16.msra.mxu3 %v10581_v50  ;;  %v12499_v50 = vld [vmem:[#allocation5 + $0x46c] sm:$0xf] }
 0x6d0   :  { %7204 = vmatpush.bf16.msra.mxu0 %v10197_v2  ;;  %v17269_v2 = vld [vmem:[#allocation156_spill] sm:$0xff] }
 0x6d1   :  { %v6967_v27 = vpop.f32.mrf.mxu3  ;;  %v6823_v63 = vpop.f32.mrf.mxu0 }
 0x6d2   :  { %v6918_v33 = vpop.f32.mrf.mxu2  ;;  %v6824_v0 = vadd.f32 %v6823_v63, %v14815_v39  ;;  %v6872_v19 = vpop.f32.mrf.mxu1  ;;  %v10322_v63 = vld [vmem:[#allocation5 + $0x398] sm:$0xf0] }
 0x6d3   :  { %v6919_v17 = vadd.f32 %v6918_v33, %v6870_v22 }
 0x6d4   :  { %v6873_v15 = vadd.f32 %v6872_v19, %v6824_v0  ;;  %7018 = vmatmul.bf16.gmra.mxu0 %v17266_v44  ;;  %7067 = vmatmul.bf16.gmra.mxu1 %v17267_v26  ;;  %v13216_v44 = vld [vmem:[#allocation10 + $0x10] sm:$0xff] }
 0x6d5   :  { %v14888_v43 = vadd.f32 %v6967_v27, %v6919_v17 }
 0x6d6   :  { %7165 = vmatmul.bf16.gmra.mxu3 %v17152_v41  ;;  %v12471_v41 = vld [vmem:[#allocation5 + $0x38c] sm:$0xf] }
 0x6d7   :  { %7116 = vmatmul.bf16.gmra.mxu2 %v17151_v12  ;;  %v10325_v19 = vor.u32 %v12471_v41, %v10322_v63 }
 0x6d9   :  { %v6970_v46 = vpop.f32.mrf.mxu3  ;;  %v6825_v33 = vpop.f32.mrf.mxu0  ;;  %7253 = vmatpush.bf16.msra.mxu1 %v10325_v19 }
 0x6da   :  { %v6921_v39 = vpop.f32.mrf.mxu2  ;;  %v6826_v17 = vadd.f32 %v6825_v33, %v14818_v34  ;;  %v6874_v27 = vpop.f32.mrf.mxu1 }
 0x6db   :  { %v6922_v22 = vadd.f32 %v6921_v39, %v6873_v15  ;;  %v14901_v39 = vld [vmem:[#allocation8] sm:$0xff] }
 0x6dc   :  { %v6875_v0 = vadd.f32 %v6874_v27, %v6826_v17  ;;  %v10178_v17 = vld [vmem:[#allocation5 + $0x278] sm:$0xf0] }
 0x6dd   :  { %v14895_v12 = vadd.f32 %v6970_v46, %v6922_v22  ;;  %v10434_v22 = vld [vmem:[#allocation5 + $0x478] sm:$0xf0]  ;;  %v12435_v46 = vld [vmem:[#allocation5 + $0x26c] sm:$0xf] }
 0x6de   :  { %v10437_v33 = vor.u32 %v12499_v50, %v10434_v22  ;;  %v10562_v27 = vld [vmem:[#allocation5 + $0x578] sm:$0xf0]  ;;  %v10181_v63 = vor.u32 %v12435_v46, %v10178_v17 }
 0x6df   :  { %v10306_v17 = vld [vmem:[#allocation5 + $0x378] sm:$0xf0] }
 0x6e0   :  { %7303 = vmatpush.bf16.msra.mxu2 %v10437_v33  ;;  %7205 = vmatpush.bf16.msra.mxu0 %v10181_v63 }
 0x6e1   :  { %v6972_v6 = vpop.f32.mrf.mxu3  ;;  %v6828_v31 = vpop.f32.mrf.mxu0 }
 0x6e2   :  { %v6923_v52 = vpop.f32.mrf.mxu2  ;;  %v6829_v15 = vadd.f32 %v6828_v31, %v14825_v35  ;;  %v6877_v42 = vpop.f32.mrf.mxu1  ;;  %v12531_v35 = vld [vmem:[#allocation5 + $0x56c] sm:$0xf]  ;;  %v17271_v31 = vld [vmem:[#allocation175_spill] sm:$0xff] }
 0x6e3   :  { %v6924_v38 = vadd.f32 %v6923_v52, %v6875_v0  ;;  %v10565_v0 = vor.u32 %v12531_v35, %v10562_v27  ;;  %v17272_v27 = vld [vmem:[#allocation168_spill] sm:$0xff] }
 0x6e4   :  { %v6878_v34 = vadd.f32 %v6877_v42, %v6829_v15  ;;  %7023 = vmatmul.bf16.gmra.mxu0 %v17268_v23  ;;  %7072 = vmatmul.bf16.gmra.mxu1 %v17269_v2  ;;  %v14909_v42 = vld [vmem:[#allocation8 + $0x8] sm:$0xff]  ;;  %v14911_v2 = vld [vmem:[#allocation8 + $0x10] sm:$0xff] }
 0x6e5   :  { %v14898_v25 = vadd.f32 %v6972_v6, %v6924_v38  ;;  %v17270_v6 = vld [vmem:[#allocation167_spill] sm:$0xff]  ;;  %7352 = vmatpush.bf16.msra.mxu3 %v10565_v0  ;;  %v17273_v23 = vld [vmem:[#allocation169_spill] sm:$0xff] }
 0x6e6   :  { %7170 = vmatmul.bf16.gmra.mxu3 %v17156_v10  ;;  %v8027_v15 = vadd.f32 %v17271_v31, %v17270_v6  ;;  %v13215_v6 = vld [vmem:[#allocation10 + $0x8] sm:$0xff]  ;;  %v8029_v26 = vadd.f32 %v17271_v31, %v17273_v23 }
 0x6e7   :  { %7121 = vmatmul.bf16.gmra.mxu2 %v17155_v40  ;;  %v13214_v40 = vld [vmem:[#allocation10] sm:$0xff] }
 0x6e8   :  { %v8043_v10 = vmul.f32 %v13214_v40, %v14901_v39  ;;  %v8044_v40 = vmul.f32 %v13215_v6, %v14909_v42 }
 0x6e9   :  { %v6975_v52 = vpop.f32.mrf.mxu3  ;;  %v6830_v38 = vpop.f32.mrf.mxu0 }
 0x6ea   :  { %v6926_v41 = vpop.f32.mrf.mxu2  ;;  %v6831_v50 = vadd.f32 %v6830_v38, %v14828_v53  ;;  %v6879_v22 = vpop.f32.mrf.mxu1  ;;  %v8045_v53 = vmul.f32 %v13216_v44, %v14911_v2  ;;  %v8059_v63 = vadd.f32 %v8043_v10, %v8027_v15  ;;  %v17275_v10 = vld [vmem:[#allocation170_spill] sm:$0xff] }
 0x6eb   :  { %v6927_v19 = vadd.f32 %v6926_v41, %v6878_v34  ;;  %v12467_v34 = vld [vmem:[#allocation5 + $0x36c] sm:$0xf]  ;;  %v8028_v41 = vadd.f32 %v17271_v31, %v17272_v27 }
 0x6ec   :  { %v6880_v33 = vadd.f32 %v6879_v22, %v6831_v50  ;;  %v10309_v35 = vor.u32 %v12467_v34, %v10306_v17  ;;  %v12166_v34 = vmul.f32 -1.442695, %v8059_v63  ;;  %v14922_v17 = vld [vmem:[#allocation8 + $0x18] sm:$0xff] }
 0x6ed   :  { %v14914_v46 = vadd.f32 %v6975_v52, %v6927_v19  ;;  %v8060_v19 = vadd.f32 %v8044_v40, %v8028_v41  ;;  %v8061_v52 = vadd.f32 %v8045_v53, %v8029_v26  ;;  %v13217_v26 = vld [vmem:[#allocation10 + $0x18] sm:$0xff]  ;;  %v12431_v53 = vld [vmem:[#allocation5 + $0x24c] sm:$0xf] }
 0x6ee   :  { %7254 = vmatpush.bf16.msra.mxu1 %v10309_v35  ;;  %v8030_v35 = vadd.f32 %v17271_v31, %v17275_v10  ;;  %v17276_v41 = vld [vmem:[#allocation158_spill] sm:$0xff]  ;;  %12949 = vpow2.f32 %v12166_v34 }
 0x6ef   :  { %v12167_v44 = vmul.f32 -1.442695, %v8060_v19  ;;  %v12168_v15 = vmul.f32 -1.442695, %v8061_v52  ;;  %v10418_v40 = vld [vmem:[#allocation5 + $0x458] sm:$0xf0] }
 0x6f0   :  { %v12527_v19 = vld [vmem:[#allocation5 + $0x54c] sm:$0xf]  ;;  %v10546_v52 = vld [vmem:[#allocation5 + $0x558] sm:$0xf0] }
 0x6f1   :  { %v6977_v50 = vpop.f32.mrf.mxu3  ;;  %v6833_v22 = vpop.f32.mrf.mxu0  ;;  %12951 = vpow2.f32 %v12167_v44  ;;  %v13218_v44 = vld [vmem:[#allocation10 + $0x20] sm:$0xff] }
 0x6f2   :  { %v6928_v0 = vpop.f32.mrf.mxu2  ;;  %v6834_v27 = vadd.f32 %v6833_v22, %v14835_v8  ;;  %v6882_v6 = vpop.f32.mrf.mxu1  ;;  %v12495_v8 = vld [vmem:[#allocation5 + $0x44c] sm:$0xf]  ;;  %v10549_v22 = vor.u32 %v12527_v19, %v10546_v52  ;;  %12953 = vpow2.f32 %v12168_v15 }
 0x6f3   :  { %v6929_v38 = vadd.f32 %v6928_v0, %v6880_v33  ;;  %v8046_v33 = vmul.f32 %v13217_v26, %v14922_v17  ;;  %v10421_v63 = vor.u32 %v12495_v8, %v10418_v40  ;;  %v10162_v0 = vld [vmem:[#allocation5 + $0x258] sm:$0xf0]  ;;  %v12463_v40 = vld [vmem:[#allocation5 + $0x34c] sm:$0xf] }
 0x6f4   :  { %v6883_v23 = vadd.f32 %v6882_v6, %v6834_v27  ;;  %7028 = vmatmul.bf16.gmra.mxu0 %v17274_v7  ;;  %7077 = vmatmul.bf16.gmra.mxu1 %v17276_v41  ;;  %v10290_v41 = vld [vmem:[#allocation5 + $0x358] sm:$0xf0]  ;;  %v14942_v52 = vld [vmem:[#allocation8 + $0x28] sm:$0xff] }
 0x6f5   :  { %v14925_v51 = vadd.f32 %v6977_v50, %v6929_v38  ;;  %v10165_v50 = vor.u32 %v12431_v53, %v10162_v0  ;;  %v8062_v27 = vadd.f32 %v8046_v33, %v8030_v35  ;;  %7304 = vmatpush.bf16.msra.mxu2 %v10421_v63  ;;  %7353 = vmatpush.bf16.msra.mxu3 %v10549_v22  ;;  %v12950_v53 = vpop.eup %12949  ;;  %v17277_v33 = vld [vmem:[#allocation171_spill] sm:$0xff]  ;;  %v13219_v22 = vld [vmem:[#allocation10 + $0x28] sm:$0xff] }
 0x6f6   :  { %7175 = vmatmul.bf16.gmra.mxu3 %v17160_v16  ;;  %v10293_v35 = vor.u32 %v12463_v40, %v10290_v41  ;;  %v8031_v63 = vadd.f32 %v17271_v31, %v17277_v33  ;;  %v14949_v40 = vld [vmem:[#allocation8 + $0x30] sm:$0xff] }
 0x6f7   :  { %7126 = vmatmul.bf16.gmra.mxu2 %v17159_v21  ;;  %v14934_v21 = vld [vmem:[#allocation8 + $0x20] sm:$0xff]  ;;  %7206 = vmatpush.bf16.msra.mxu0 %v10165_v50  ;;  %v12952_v15 = vpop.eup %12951 }
 0x6f8   :  { %v8047_v19 = vmul.f32 %v13218_v44, %v14934_v21  ;;  %7255 = vmatpush.bf16.msra.mxu1 %v10293_v35  ;;  %v14953_v33 = vadd.f32 1.0, %v12952_v15  ;;  %v14955_v44 = vld [vmem:[#allocation8 + $0x38] sm:$0xff] }
 0x6f9   :  { %v6980_v10 = vpop.f32.mrf.mxu3  ;;  %v6835_v26 = vpop.f32.mrf.mxu0  ;;  %v17282_v15 = vld [vmem:[#allocation174_spill] sm:$0xff] }
 0x6fa   :  { %v6931_v38 = vpop.f32.mrf.mxu2  ;;  %v6836_v16 = vadd.f32 %v6835_v26, %v14838_v11  ;;  %v6884_v34 = vpop.f32.mrf.mxu1  ;;  %v14944_v11 = vadd.f32 1.0, %v12950_v53  ;;  %vm8159_vm3 = vweird.f32 %v14953_v33  ;;  %v8163_v54 = vand.u32 2147483647, %v14953_v33 }
 0x6fb   :  { %v6932_v6 = vadd.f32 %v6931_v38, %v6883_v23  ;;  %v12169_v23 = vmul.f32 -1.442695, %v8062_v27  ;;  %v17278_v38 = vld [vmem:[#allocation172_spill] sm:$0xff]  ;;  %v12954_v27 = vpop.eup %12953  ;;  %v8165_v56 = vand.u32 2147483648, %v14953_v33 }
 0x6fc   :  { %v6885_v0 = vadd.f32 %v6884_v34, %v6836_v16  ;;  %v8032_v50 = vadd.f32 %v17271_v31, %v17278_v38  ;;  %vm8144_vm0 = vweird.f32 %v14944_v11  ;;  %vm15049_vm5 = vcmp.eq.f32.partialorder %v8163_v54, 8.507059e+37 }
 0x6fd   :  { %v14937_v8 = vadd.f32 %v6980_v10, %v6932_v6  ;;  %v8048_v6 = vmul.f32 %v13219_v22, %v14942_v52  ;;  %12955 = vpow2.f32 %v12169_v23  ;;  %v8063_v10 = vadd.f32 %v8047_v19, %v8031_v63 }
 0x6fe   :  { %12957 = vrcp.f32 %v14944_v11  ;;  %v14959_v22 = vadd.f32 1.0, %v12954_v27  ;;  %v13221_v27 = vld [vmem:[#allocation10 + $0x38] sm:$0xff] }
 0x6ff   :  { %v8064_v23 = vadd.f32 %v8048_v6, %v8032_v50  ;;  %v12170_v19 = vmul.f32 -1.442695, %v8063_v10  ;;  %v8050_v50 = vmul.f32 %v13221_v27, %v14955_v44  ;;  %v12491_v6 = vld [vmem:[#allocation5 + $0x42c] sm:$0xf]  ;;  %v10402_v10 = vld [vmem:[#allocation5 + $0x438] sm:$0xf0]  ;;  %12959 = vrcp.f32 %v14953_v33 }
 0x700   :  { %12961 = vrcp.f32 %v14959_v22  ;;  %vm8174_vm7 = vweird.f32 %v14959_v22  ;;  %v8178_v54 = vand.u32 2147483647, %v14959_v22 }
 0x701   :  { %v6982_v16 = vpop.f32.mrf.mxu3  ;;  %v6838_v34 = vpop.f32.mrf.mxu0  ;;  %12963 = vpow2.f32 %v12170_v19 }
 0x702   :  { %v6933_v41 = vpop.f32.mrf.mxu2  ;;  %v6839_v35 = vadd.f32 %v6838_v34, %v14845_v57  ;;  %v6887_v53 = vpop.f32.mrf.mxu1  ;;  %v13220_v57 = vld [vmem:[#allocation10 + $0x30] sm:$0xff]  ;;  %vm8179_vm12 = vcmp.eq.f32.partialorder %v8178_v54, 8.507059e+37 }
 0x703   :  { %v6934_v26 = vadd.f32 %v6933_v41, %v6885_v0  ;;  %v17279_v0 = vld [vmem:[#allocation159_spill] sm:$0xff]  ;;  %v17280_v41 = vld [vmem:[#allocation173_spill] sm:$0xff]  ;;  %v8049_v34 = vmul.f32 %v13220_v57, %v14949_v40  ;;  %v12523_v57 = vld [vmem:[#allocation5 + $0x52c] sm:$0xf] }
 0x704   :  { %v6888_v63 = vadd.f32 %v6887_v53, %v6839_v35  ;;  %7033 = vmatmul.bf16.gmra.mxu0 %v17279_v0  ;;  %v8033_v7 = vadd.f32 %v17271_v31, %v17280_v41  ;;  %7082 = vmatmul.bf16.gmra.mxu1 %v17281_v24  ;;  %v12956_v35 = vpop.eup %12955  ;;  %v10405_v53 = vor.u32 %v12491_v6, %v10402_v10  ;;  %v10146_v41 = vld [vmem:[#allocation5 + $0x238] sm:$0xf0] }
 0x705   :  { %v14957_v38 = vadd.f32 %v6982_v16, %v6934_v26  ;;  %v8034_v26 = vadd.f32 %v17271_v31, %v17282_v15  ;;  %v12427_v16 = vld [vmem:[#allocation5 + $0x22c] sm:$0xf]  ;;  %v10530_v24 = vld [vmem:[#allocation5 + $0x538] sm:$0xf0]  ;;  %v14973_v1 = vpop.eup %12957  ;;  %v14975_v30 = vadd.f32 1.0, %v12956_v35 }
 0x706   :  { %7180 = vmatmul.bf16.gmra.mxu3 %v17164_v37  ;;  %v10149_v31 = vor.u32 %v12427_v16, %v10146_v41  ;;  %v10533_v15 = vor.u32 %v12523_v57, %v10530_v24  ;;  %v8065_v37 = vadd.f32 %v8049_v34, %v8033_v7  ;;  %7305 = vmatpush.bf16.msra.mxu2 %v10405_v53  ;;  %v12459_v16 = vld [vmem:[#allocation5 + $0x32c] sm:$0xf]  ;;  %v10274_v24 = vld [vmem:[#allocation5 + $0x338] sm:$0xf0]  ;;  %vm8145_vm1 = vweird.f32 %v14973_v1 }
 0x707   :  { %7131 = vmatmul.bf16.gmra.mxu2 %v17163_v45  ;;  %v12171_v45 = vmul.f32 -1.442695, %v8064_v23  ;;  %v8066_v6 = vadd.f32 %v8050_v50, %v8034_v26  ;;  %v8140_v19 = vmul.f32 %v14973_v1, %v14944_v11  ;;  %v8150_v50 = vand.u32 2147483648, %v14944_v11  ;;  %vm15045_vm4 = vmor %vm8144_vm0, %vm8145_vm1 }
 0x708   :  { %7207 = vmatpush.bf16.msra.mxu0 %v10149_v31  ;;  %7354 = vmatpush.bf16.msra.mxu3 %v10533_v15  ;;  %v12172_v34 = vmul.f32 -1.442695, %v8065_v37  ;;  %vm8189_vm13 = vweird.f32 %v14975_v30 }
 0x709   :  { %v6985_v9 = vpop.f32.mrf.mxu3  ;;  %v6840_v61 = vpop.f32.mrf.mxu0  ;;  %12965 = vpow2.f32 %v12171_v45 }
 0x70a   :  { %v6936_v0 = vpop.f32.mrf.mxu2  ;;  %v6841_v10 = vadd.f32 %v6840_v61, %v14848_v13  ;;  %v6889_v4 = vpop.f32.mrf.mxu1  ;;  %12967 = vrcp.f32 %v14975_v30  ;;  %v12173_v13 = vmul.f32 -1.442695, %v8066_v6 }
 0x70b   :  { %v6937_v27 = vadd.f32 %v6936_v0, %v6888_v63  ;;  %v10277_v63 = vor.u32 %v12459_v16, %v10274_v24  ;;  %v14982_v0 = vpop.eup %12959  ;;  %12969 = vpow2.f32 %v12172_v34 }
 0x70c   :  { %v6890_v7 = vadd.f32 %v6889_v4, %v6841_v10  ;;  %v14984_v35 = vpop.eup %12961  ;;  %v8155_v53 = vmul.f32 %v14982_v0, %v14953_v33  ;;  %12971 = vpow2.f32 %v12173_v13  ;;  %v8148_v10 = vand.u32 2147483647, %v14944_v11  ;;  %v17286_v13 = vld [vmem:[#allocation36_spill] sm:$0xff] }
 0x70d   :  { %v14978_v23 = vadd.f32 %v6985_v9, %v6937_v27  ;;  %7256 = vmatpush.bf16.msra.mxu1 %v10277_v63  ;;  %v12964_v61 = vpop.eup %12963  ;;  %v8141_v9 = vsub.f32 1.0, %v8140_v19  ;;  %v8170_v4 = vmul.f32 %v14984_v35, %v14959_v22  ;;  %v17284_v19 = vld [vmem:[#allocation161_spill] sm:$0xff]  ;;  %v15001_v63 = vor.u32 1.1754944e-38, %v8150_v50  ;;  %v17287_v50 = vld [vmem:[#allocation44_spill] sm:$0xff] }
 0x70e   :  { %v14992_v15 = vadd.f32 1.0, %v12964_v61  ;;  %v17285_v61 = vld [vmem:[#allocation162_spill] sm:$0xff]  ;;  %vm15017_vm2 = vcmp.eq.f32.partialorder %v8148_v10, 8.507059e+37  ;;  %vm8160_vm6 = vweird.f32 %v14982_v0  ;;  %vm8175_vm8 = vweird.f32 %v14984_v35 }
 0x70f   :  { %v12966_v31 = vpop.eup %12965  ;;  %v8171_v34 = vsub.f32 1.0, %v8170_v4  ;;  %v10386_v4 = vld [vmem:[#allocation5 + $0x418] sm:$0xf0]  ;;  %vm15075_vm9 = vmor %vm8159_vm3, %vm8160_vm6 }
 0x710   :  { %v14998_v16 = vpop.eup %12967  ;;  %12973 = vrcp.f32 %v14992_v15  ;;  %vm15092_vm10 = vmor %vm8174_vm7, %vm8175_vm8  ;;  %vm8204_vm0 = vweird.f32 %v14992_v15 }
 0x711   :  { %v6987_v57 = vpop.f32.mrf.mxu3  ;;  %v6843_v45 = vpop.f32.mrf.mxu0  ;;  %v8172_v18 = vmul.f32 %v14984_v35, %v8171_v34  ;;  %vm8190_vm11 = vweird.f32 %v14998_v16 }
 0x712   :  { %v6938_v26 = vpop.f32.mrf.mxu2  ;;  %v6844_v37 = vadd.f32 %v6843_v45, %v14855_v3  ;;  %v6892_v27 = vpop.f32.mrf.mxu1  ;;  %v8142_v3 = vmul.f32 %v14973_v1, %v8141_v9  ;;  %vm15133_vm15 = vmor %vm8189_vm13, %vm8190_vm11 }
 0x713   :  { %v6939_v41 = vadd.f32 %v6938_v26, %v6890_v7  ;;  %v8156_v7 = vsub.f32 1.0, %v8155_v53  ;;  %v15003_v26 = vadd.f32 1.0, %v12966_v31  ;;  %v12487_v53 = vld [vmem:[#allocation5 + $0x40c] sm:$0xf] }
 0x714   :  { %v6893_v24 = vadd.f32 %v6892_v27, %v6844_v37  ;;  %7038 = vmatmul.bf16.gmra.mxu0 %v17284_v19  ;;  %7087 = vmatmul.bf16.gmra.mxu1 %v17285_v61  ;;  %v12423_v31 = vld [vmem:[#allocation5 + $0x20c] sm:$0xf]  ;;  %v12970_v37 = vpop.eup %12969  ;;  %v10389_v9 = vor.u32 %v12487_v53, %v10386_v4  ;;  %v10130_v27 = vld [vmem:[#allocation5 + $0x218] sm:$0xf0]  ;;  %v8143_v47 = vadd.f32 %v14973_v1, %v8142_v3 }
 0x715   :  { %v14995_v6 = vadd.f32 %v6987_v57, %v6939_v41  ;;  %v8380_v41 = vadd.f32 %v17286_v13, %v14571_v28  ;;  %v13222_v57 = vld [vmem:[#allocation11] sm:$0xff]  ;;  %v12519_v61 = vld [vmem:[#allocation5 + $0x50c] sm:$0xf]  ;;  %v10514_v19 = vld [vmem:[#allocation5 + $0x518] sm:$0xf0]  ;;  %v8157_v10 = vmul.f32 %v14982_v0, %v8156_v7  ;;  %v15027_v48 = vadd.f32 1.0, %v12970_v37 }
 0x716   :  { %v8396_v45 = vmul.f32 %v13222_v57, %v14901_v39  ;;  %7185 = vmatmul.bf16.gmra.mxu3 %v17287_v50  ;;  %v12972_v39 = vpop.eup %12971  ;;  %v10133_v50 = vor.u32 %v12423_v31, %v10130_v27  ;;  %v10517_v20 = vor.u32 %v12519_v61, %v10514_v19  ;;  %7306 = vmatpush.bf16.msra.mxu2 %v10389_v9  ;;  %12975 = vrcp.f32 %v15003_v26  ;;  %v12455_v7 = vld [vmem:[#allocation5 + $0x30c] sm:$0xf]  ;;  %v10258_v27 = vld [vmem:[#allocation5 + $0x318] sm:$0xf0]  ;;  %v17292_v37 = vld [vmem:[#allocation23_spill] sm:$0xff] }
 0x717   :  { %17283 = vst [vmem:[#allocation167_spill] sm:$0xff] %v14995_v6  ;;  %7136 = vmatmul.bf16.gmra.mxu2 %v17169_v58  ;;  %v8185_v58 = vmul.f32 %v14998_v16, %v14975_v30  ;;  %v15032_v9 = vadd.f32 1.0, %v12972_v39  ;;  %v15036_v34 = vpop.eup %12973  ;;  %v8381_v14 = vadd.f32 %v17286_v13, %v17292_v37  ;;  %v8147_v39 = vsel %vm15045_vm4, %v14973_v1, %v8143_v47 }
 0x718   :  { %v8412_v31 = vadd.f32 %v8396_v45, %v8380_v41  ;;  %7208 = vmatpush.bf16.msra.mxu0 %v10133_v50  ;;  %7355 = vmatpush.bf16.msra.mxu3 %v10517_v20  ;;  %v13223_v41 = vld [vmem:[#allocation11 + $0x8] sm:$0xff]  ;;  %v10261_v45 = vor.u32 %v12455_v7, %v10258_v27  ;;  %12977 = vrcp.f32 %v15027_v48  ;;  %v8200_v50 = vmul.f32 %v15036_v34, %v14992_v15 }
 0x719   :  { %v6990_v4 = vpop.f32.mrf.mxu3  ;;  %v6845_v55 = vpop.f32.mrf.mxu0  ;;  %12979 = vpow2.f32 %v12174_v5  ;;  %v15069_v1 = vsel %vm15017_vm2, %v15001_v63, %v8147_v39  ;;  %v8180_v28 = vand.u32 2147483648, %v14959_v22  ;;  %vm8205_vm1 = vweird.f32 %v15036_v34 }
 0x71a   :  { %v6941_v57 = vpop.f32.mrf.mxu2  ;;  %v6846_v19 = vadd.f32 %v6845_v55, %v14858_v29  ;;  %v6894_v61 = vpop.f32.mrf.mxu1  ;;  %v8397_v55 = vmul.f32 %v13223_v41, %v14909_v42  ;;  %v8158_v42 = vadd.f32 %v14982_v0, %v8157_v10  ;;  %v12182_v11 = vmul.f32 -1.442695, %v8412_v31  ;;  %7257 = vmatpush.bf16.msra.mxu1 %v10261_v45  ;;  %v17302_v45 = vld [vmem:[#allocation163_spill] sm:$0xff]  ;;  %vm15186_vm3 = vmor %vm8204_vm0, %vm8205_vm1 }
 0x71b   :  { %v6942_v53 = vadd.f32 %v6941_v57, %v6893_v24  ;;  %v8186_v24 = vsub.f32 1.0, %v8185_v58  ;;  %v8166_v57 = vor.u32 1.1754944e-38, %v8165_v56  ;;  %12981 = vrcp.f32 %v15032_v9 }
 0x71c   :  { %v6895_v29 = vadd.f32 %v6894_v61, %v6846_v19  ;;  %v8413_v47 = vadd.f32 %v8397_v55, %v8381_v14  ;;  %v8162_v63 = vsel %vm15075_vm9, %v14982_v0, %v8158_v42  ;;  %v8195_v61 = vand.u32 2147483648, %v14975_v30  ;;  %v17303_v42 = vld [vmem:[#allocation164_spill] sm:$0xff] }
 0x71d   :  { %v15034_v3 = vadd.f32 %v6990_v4, %v6942_v53  ;;  %v8173_v53 = vadd.f32 %v14984_v35, %v8172_v18  ;;  %v8187_v5 = vmul.f32 %v14998_v16, %v8186_v24  ;;  %v15080_v18 = vpop.eup %12975  ;;  %12983 = vpow2.f32 %v12182_v11  ;;  %v17304_v11 = vld [vmem:[#allocation47_spill] sm:$0xff]  ;;  %v13224_v4 = vld [vmem:[#allocation11 + $0x10] sm:$0xff] }
 0x71e   :  { %v8193_v0 = vand.u32 2147483647, %v14975_v30  ;;  %v8201_v27 = vsub.f32 1.0, %v8200_v50  ;;  %v8210_v14 = vand.u32 2147483648, %v14992_v15  ;;  %v15104_v41 = vpop.eup %12977  ;;  %v8215_v22 = vmul.f32 %v15080_v18, %v15003_v26 }
 0x71f   :  { %17291 = vst [vmem:[#allocation175_spill] sm:$0xff] %v15034_v3  ;;  %v12183_v55 = vmul.f32 -1.442695, %v8413_v47  ;;  %v15110_v20 = vadd.f32 %v14998_v16, %v8187_v5  ;;  %v12980_v39 = vpop.eup %12979  ;;  %v8181_v50 = vor.u32 1.1754944e-38, %v8180_v28  ;;  %v17305_v47 = vld [vmem:[#allocation24_spill] sm:$0xff]  ;;  %v8398_v5 = vmul.f32 %v13224_v4, %v14911_v2 }
 0x720   :  { %vm15125_vm14 = vcmp.eq.f32.partialorder %v8193_v0, 8.507059e+37  ;;  %v8196_v58 = vor.u32 1.1754944e-38, %v8195_v61  ;;  %v8202_v54 = vmul.f32 %v15036_v34, %v8201_v27  ;;  %v8208_v2 = vand.u32 2147483647, %v14992_v15 }
 0x721   :  { %v6992_v31 = vpop.f32.mrf.mxu3  ;;  %v6848_v19 = vpop.f32.mrf.mxu0  ;;  %12985 = vpow2.f32 %v12183_v55  ;;  %v8192_v61 = vsel %vm15133_vm15, %v14998_v16, %v15110_v20  ;;  %v15154_v0 = vadd.f32 1.0, %v12980_v39  ;;  %v8225_v16 = vand.u32 2147483648, %v15003_v26 }
 0x722   :  { %v6943_v56 = vpop.f32.mrf.mxu2  ;;  %v6849_v33 = vadd.f32 %v6848_v19, %v14865_v59  ;;  %v6897_v7 = vpop.f32.mrf.mxu1  ;;  %v8177_v59 = vsel %vm15092_vm10, %v14984_v35, %v8173_v53  ;;  %v15116_v35 = vsel %vm15049_vm5, %v8166_v57, %v8162_v63  ;;  %v8216_v63 = vsub.f32 1.0, %v8215_v22 }
 0x723   :  { %v6944_v10 = vadd.f32 %v6943_v56, %v6895_v29  ;;  %v15119_v53 = vpop.eup %12981  ;;  %v8382_v56 = vadd.f32 %v17286_v13, %v17305_v47  ;;  %v15129_v57 = vsel %vm8179_vm12, %v8181_v50, %v8177_v59  ;;  %v15164_v47 = vadd.f32 %v15036_v34, %v8202_v54  ;;  %v11138_v54 = vld [vmem:[#allocation5 + $0x9f8] sm:$0xf0] }
 0x724   :  { %v6898_v29 = vadd.f32 %v6897_v7, %v6849_v33  ;;  %7043 = vmatmul.bf16.gmra.mxu0 %v17302_v45  ;;  %7092 = vmatmul.bf16.gmra.mxu1 %v17303_v42  ;;  %v12984_v19 = vpop.eup %12983  ;;  %v15144_v33 = vor.u32 1.1754944e-38, %v8210_v14  ;;  %v15148_v7 = vmul.f32 %v15104_v41, %v15027_v48  ;;  %v15152_v24 = vmul.f32 %v15119_v53, %v15032_v9 }
 0x725   :  { %v15098_v37 = vadd.f32 %v6992_v31, %v6944_v10  ;;  %v17306_v10 = vld [vmem:[#allocation48_spill] sm:$0xff]  ;;  %v8414_v55 = vadd.f32 %v8398_v5, %v8382_v56  ;;  %v15159_v14 = vadd.f32 1.0, %v12984_v19  ;;  %v8223_v39 = vand.u32 2147483647, %v15003_v26 }
 0x726   :  { %7190 = vmatmul.bf16.gmra.mxu3 %v17306_v10  ;;  %vm15168_vm2 = vcmp.eq.f32.partialorder %v8208_v2, 8.507059e+37  ;;  %v8231_v30 = vsub.f32 1.0, %v15148_v7  ;;  %v8246_v19 = vsub.f32 1.0, %v15152_v24  ;;  %12987 = vrcp.f32 %v15154_v0  ;;  %v17316_v2 = vld [vmem:[#allocation27_spill] sm:$0xff]  ;;  %v12643_v24 = vld [vmem:[#allocation5 + $0x8ec] sm:$0xf] }
 0x727   :  { %17301 = vst [vmem:[#allocation168_spill] sm:$0xff] %v15098_v37  ;;  %7141 = vmatmul.bf16.gmra.mxu2 %v17304_v11  ;;  %12989 = vrcp.f32 %v15159_v14  ;;  %vm8219_vm4 = vweird.f32 %v15003_v26  ;;  %vm8220_vm5 = vweird.f32 %v15080_v18  ;;  %v8207_v5 = vsel %vm15186_vm3, %v15036_v34, %v15164_v47  ;;  %v10882_v37 = vld [vmem:[#allocation5 + $0x7f8] sm:$0xf0] }
 0x728   :  { %vm15213_vm6 = vmor %vm8219_vm4, %vm8220_vm5  ;;  %vm15217_vm7 = vcmp.eq.f32.partialorder %v8223_v39, 8.507059e+37  ;;  %vm8234_vm8 = vweird.f32 %v15027_v48  ;;  %v8247_v26 = vmul.f32 %v15119_v53, %v8246_v19  ;;  %v17324_v39 = vld [vmem:[#allocation28_spill] sm:$0xff]  ;;  %vm8235_vm10 = vweird.f32 %v15104_v41 }
 0x729   :  { %v6995_v59 = vpop.f32.mrf.mxu3  ;;  %v6850_v22 = vpop.f32.mrf.mxu0  ;;  %vm8250_vm11 = vweird.f32 %v15119_v53  ;;  %v8270_v47 = vand.u32 2147483648, %v15154_v0  ;;  %vm15272_vm12 = vmor %vm8234_vm8, %vm8235_vm10  ;;  %vm8249_vm13 = vweird.f32 %v15032_v9  ;;  %vm8264_vm0 = vweird.f32 %v15154_v0 }
 0x72a   :  { %v6946_v28 = vpop.f32.mrf.mxu2  ;;  %v6851_v11 = vadd.f32 %v6850_v22, %v14868_v62  ;;  %v6899_v50 = vpop.f32.mrf.mxu1  ;;  %v8217_v62 = vmul.f32 %v15080_v18, %v8216_v63  ;;  %v12184_v22 = vmul.f32 -1.442695, %v8414_v55  ;;  %v15193_v55 = vsel %vm15125_vm14, %v8196_v58, %v8192_v61  ;;  %vm15286_vm14 = vmor %vm8249_vm13, %vm8250_vm11 }
 0x72b   :  { %v6947_v27 = vadd.f32 %v6946_v28, %v6898_v29  ;;  %v17312_v29 = vld [vmem:[#allocation177_spill] sm:$0xff]  ;;  %v12986_v28 = vpop.eup %12985  ;;  %vm8497_vm3 = vweird.f32 %v15159_v14 }
 0x72c   :  { %v12175_v4 = vmul.f32 -1.442695, %v17312_v29  ;;  %v6900_v10 = vadd.f32 %v6899_v50, %v6851_v11  ;;  %v8383_v11 = vadd.f32 %v17286_v13, %v17316_v2  ;;  %v13225_v50 = vld [vmem:[#allocation11 + $0x18] sm:$0xff]  ;;  %v8218_v42 = vadd.f32 %v15080_v18, %v8217_v62  ;;  %v15205_v7 = vpop.eup %12987  ;;  %v17323_v62 = vld [vmem:[#allocation165_spill] sm:$0xff] }
 0x72d   :  { %v15161_v20 = vadd.f32 %v6995_v59, %v6947_v27  ;;  %v17315_v27 = vld [vmem:[#allocation178_spill] sm:$0xff]  ;;  %v8399_v63 = vmul.f32 %v13225_v50, %v14922_v17  ;;  %v12675_v50 = vld [vmem:[#allocation5 + $0x9ec] sm:$0xf]  ;;  %v15202_v31 = vadd.f32 1.0, %v12986_v28  ;;  %vm8265_vm1 = vweird.f32 %v15205_v7 }
 0x72e   :  { %v12176_v59 = vmul.f32 -1.442695, %v17315_v27  ;;  %v11010_v29 = vld [vmem:[#allocation5 + $0x8f8] sm:$0xf0]  ;;  %v12579_v27 = vld [vmem:[#allocation5 + $0x6ec] sm:$0xf]  ;;  %12991 = vpow2.f32 %v12175_v4  ;;  %vm15361_vm4 = vmor %vm8264_vm0, %vm8265_vm1 }
 0x72f   :  { %17311 = vst [vmem:[#allocation169_spill] sm:$0xff] %v15161_v20  ;;  %v11013_v15 = vor.u32 %v12643_v24, %v11010_v29  ;;  %v10754_v2 = vld [vmem:[#allocation5 + $0x6f8] sm:$0xf0]  ;;  %v11141_v20 = vor.u32 %v12675_v50, %v11138_v54  ;;  %v12611_v4 = vld [vmem:[#allocation5 + $0x7ec] sm:$0xf]  ;;  %12993 = vpow2.f32 %v12184_v22  ;;  %v8415_v24 = vadd.f32 %v8399_v63, %v8383_v11  ;;  %v13226_v54 = vld [vmem:[#allocation11 + $0x20] sm:$0xff] }
 0x730   :  { %v10757_v60 = vor.u32 %v12579_v27, %v10754_v2  ;;  %v10885_v6 = vor.u32 %v12611_v4, %v10882_v37  ;;  %v8232_v37 = vmul.f32 %v15104_v41, %v8231_v30  ;;  %12995 = vpow2.f32 %v12176_v59  ;;  %v17325_v30 = vld [vmem:[#allocation166_spill] sm:$0xff]  ;;  %v17327_v28 = vld [vmem:[#allocation52_spill] sm:$0xff] }
 0x731   :  { %v6997_v61 = vpop.f32.mrf.mxu3  ;;  %v6853_v45 = vpop.f32.mrf.mxu0  ;;  %7495 = vmatpush.bf16.msrb.mxu2 %v11013_v15  ;;  %7544 = vmatpush.bf16.msrb.mxu3 %v11141_v20  ;;  %12997 = vrcp.f32 %v15202_v31  ;;  %v12185_v19 = vmul.f32 -1.442695, %v8415_v24  ;;  %v17328_v59 = vand.u32 2147483647, %v15027_v48  ;;  %v8255_v63 = vand.u32 2147483648, %v15032_v9 }
 0x732   :  { %v6948_v17 = vpop.f32.mrf.mxu2  ;;  %v6854_v29 = vadd.f32 %v6853_v45, %v14875_v36  ;;  %v6902_v3 = vpop.f32.mrf.mxu1  ;;  %7397 = vmatpush.bf16.msrb.mxu0 %v10757_v60  ;;  %v8226_v36 = vor.u32 1.1754944e-38, %v8225_v16  ;;  %7446 = vmatpush.bf16.msrb.mxu1 %v10885_v6  ;;  %v8222_v60 = vsel %vm15213_vm6, %v15080_v18, %v8218_v42  ;;  %v8384_v16 = vadd.f32 %v17286_v13, %v17324_v39  ;;  %v17326_v6 = vld [vmem:[#allocation51_spill] sm:$0xff] }
 0x733   :  { %v6949_v58 = vadd.f32 %v6948_v17, %v6900_v10  ;;  %v15228_v20 = vpop.eup %12989  ;;  %v15238_v18 = vsel %vm15168_vm2, %v15144_v33, %v8207_v5  ;;  %vm15244_vm9 = vcmp.eq.f32.partialorder %v17328_v59, 8.507059e+37  ;;  %v8233_v56 = vadd.f32 %v15104_v41, %v8232_v37  ;;  %v11122_v37 = vld [vmem:[#allocation5 + $0x9d8] sm:$0xf0] }
 0x734   :  { %v6903_v45 = vadd.f32 %v6902_v3, %v6854_v29  ;;  %7048 = vmatmul.bf16.gmra.mxu0 %v17323_v62  ;;  %v8400_v3 = vmul.f32 %v13226_v54, %v14934_v21  ;;  %7097 = vmatmul.bf16.gmra.mxu1 %v17325_v30  ;;  %v12992_v42 = vpop.eup %12991  ;;  %v17331_v21 = vand.u32 2147483648, %v15027_v48  ;;  %v15253_v33 = vsel %vm15217_vm7, %v8226_v36, %v8222_v60 }
 0x735   :  { %v15207_v34 = vadd.f32 %v6997_v61, %v6949_v58  ;;  %v8253_v5 = vand.u32 2147483647, %v15032_v9  ;;  %v12994_v27 = vpop.eup %12993  ;;  %v8260_v17 = vmul.f32 %v15205_v7, %v15154_v0  ;;  %v8493_v15 = vmul.f32 %v15228_v20, %v15159_v14 }
 0x736   :  { %7195 = vmatmul.bf16.gmra.mxu3 %v17327_v28  ;;  %v8241_v11 = vor.u32 1.1754944e-38, %v17331_v21  ;;  %v8248_v50 = vadd.f32 %v15119_v53, %v8247_v26  ;;  %v15264_v58 = vadd.f32 1.0, %v12992_v42  ;;  %v8416_v61 = vadd.f32 %v8400_v3, %v8384_v16  ;;  %v17339_v21 = vld [vmem:[#allocation179_spill] sm:$0xff] }
 0x737   :  { %7146 = vmatmul.bf16.gmra.mxu2 %v17326_v6  ;;  %12999 = vpow2.f32 %v12185_v19  ;;  %v8256_v60 = vor.u32 1.1754944e-38, %v8255_v63  ;;  %v15277_v26 = vadd.f32 1.0, %v12994_v27  ;;  %vm15290_vm15 = vcmp.eq.f32.partialorder %v8253_v5, 8.507059e+37  ;;  %v13227_v27 = vld [vmem:[#allocation11 + $0x28] sm:$0xff] }
 0x738   :  { %v8261_v54 = vsub.f32 1.0, %v8260_v17  ;;  %v8494_v3 = vsub.f32 1.0, %v8493_v15  ;;  %v8252_v42 = vsel %vm15286_vm14, %v15119_v53, %v8248_v50  ;;  %13001 = vrcp.f32 %v15264_v58  ;;  %v12639_v15 = vld [vmem:[#allocation5 + $0x8cc] sm:$0xf] }
 0x739   :  { %v7000_v24 = vpop.f32.mrf.mxu3  ;;  %v6855_v29 = vpop.f32.mrf.mxu0  ;;  %v8268_v19 = vand.u32 2147483647, %v15154_v0  ;;  %v15301_v28 = vor.u32 1.1754944e-38, %v8270_v47  ;;  %v12177_v63 = vmul.f32 -1.442695, %v17339_v21  ;;  %v8401_v17 = vmul.f32 %v13227_v27, %v14942_v52 }
 0x73a   :  { %v6951_v2 = vpop.f32.mrf.mxu2  ;;  %v6856_v10 = vadd.f32 %v6855_v29, %v14878_v32  ;;  %v6904_v36 = vpop.f32.mrf.mxu1  ;;  %v8237_v32 = vsel %vm15272_vm12, %v15104_v41, %v8233_v56  ;;  %v12186_v41 = vmul.f32 -1.442695, %v8416_v61  ;;  %v17340_v56 = vld [vmem:[#allocation31_spill] sm:$0xff]  ;;  %13003 = vrcp.f32 %v15277_v26  ;;  %v12575_v50 = vld [vmem:[#allocation5 + $0x6cc] sm:$0xf] }
 0x73b   :  { %v6952_v4 = vadd.f32 %v6951_v2, %v6903_v45  ;;  %v12996_v45 = vpop.eup %12995  ;;  %v8385_v5 = vadd.f32 %v17286_v13, %v17340_v56  ;;  %v10994_v2 = vld [vmem:[#allocation5 + $0x8d8] sm:$0xf0]  ;;  %v15317_v61 = vsel %vm15244_vm9, %v8241_v11, %v8237_v32  ;;  %v13228_v27 = vld [vmem:[#allocation7] sm:$0xf]  ;;  %vm8498_vm2 = vweird.f32 %v15228_v20 }
 0x73c   :  { %v15294_v9 = vpop.eup %12997  ;;  %v6905_v6 = vadd.f32 %v6904_v36, %v6856_v10  ;;  %v15303_v59 = vadd.f32 1.0, %v12996_v45  ;;  %v10997_v47 = vor.u32 %v12639_v15, %v10994_v2  ;;  %v10738_v10 = vld [vmem:[#allocation5 + $0x6d8] sm:$0xf0]  ;;  %v12671_v36 = vld [vmem:[#allocation5 + $0x9cc] sm:$0xf]  ;;  %v8262_v45 = vmul.f32 %v15205_v7, %v8261_v54  ;;  %vm15379_vm5 = vmor %vm8497_vm3, %vm8498_vm2 }
 0x73d   :  { %v15279_v39 = vadd.f32 %v7000_v24, %v6952_v4  ;;  %v15312_v53 = vmul.f32 %v15294_v9, %v15202_v31  ;;  %v15321_v4 = vsel %vm15290_vm15, %v8256_v60, %v8252_v42  ;;  %v13000_v52 = vpop.eup %12999  ;;  %v8495_v24 = vmul.f32 %v15228_v20, %v8494_v3  ;;  %v12607_v60 = vld [vmem:[#allocation5 + $0x7cc] sm:$0xf]  ;;  %v10866_v42 = vld [vmem:[#allocation5 + $0x7d8] sm:$0xf0] }
 0x73e   :  { %13005 = vpow2.f32 %v12186_v41  ;;  %v10741_v48 = vor.u32 %v12575_v50, %v10738_v10  ;;  %v11125_v16 = vor.u32 %v12671_v36, %v11122_v37  ;;  %v8417_v21 = vadd.f32 %v8401_v17, %v8385_v5  ;;  %7496 = vmatpush.bf16.msrb.mxu2 %v10997_v47  ;;  %v15329_v54 = vpop.eup %13001  ;;  %v17342_v10 = vld [vmem:[#allocation25_spill] sm:$0xff]  ;;  %v17344_v37 = vld [vmem:[#allocation26_spill] sm:$0xff] }
 0x73f   :  { %17334 = vst [vmem:[#allocation170_spill] sm:$0xff] %v15279_v39  ;;  %v15327_v15 = vperm.slane %v13228_v27, 2  ;;  %v10869_v2 = vor.u32 %v12607_v60, %v10866_v42  ;;  %v8509_v41 = vsub.f32 1.0, %v15312_v53  ;;  %v8285_v5 = vand.u32 2147483648, %v15264_v58  ;;  %v11106_v27 = vld [vmem:[#allocation5 + $0x9b8] sm:$0xf0] }
 0x740   :  { %7398 = vmatpush.bf16.msrb.mxu0 %v10741_v48  ;;  %7545 = vmatpush.bf16.msrb.mxu3 %v11125_v16  ;;  %13007 = vpow2.f32 %v12177_v63  ;;  %v15340_v47 = vadd.f32 %v15205_v7, %v8262_v45  ;;  %v15342_v53 = vpop.eup %13003  ;;  %v8496_v63 = vadd.f32 %v15228_v20, %v8495_v24  ;;  %v8501_v60 = vand.u32 2147483647, %v15159_v14 }
 0x741   :  { %v7002_v11 = vpop.f32.mrf.mxu3  ;;  %v7014_v32 = vpop.f32.mrf.mxu0  ;;  %7447 = vmatpush.bf16.msrb.mxu1 %v10869_v2  ;;  %13009 = vrcp.f32 %v15303_v59  ;;  %v8510_v42 = vmul.f32 %v15294_v9, %v8509_v41  ;;  %vm15395_vm6 = vcmp.eq.f32.partialorder %v8268_v19, 8.507059e+37  ;;  %vm8513_vm8 = vweird.f32 %v15294_v9 }
 0x742   :  { %v6953_v29 = vpop.f32.mrf.mxu2  ;;  %v7015_v3 = vadd.f32 %v7014_v32, %v14885_v49  ;;  %v7063_v56 = vpop.f32.mrf.mxu1  ;;  %v13229_v49 = vld [vmem:[#allocation11 + $0x30] sm:$0xff]  ;;  %v17346_v32 = vld [vmem:[#allocation56_spill] sm:$0xff]  ;;  %vm8502_vm7 = vcmp.eq.f32.partialorder %v8501_v60, 8.507059e+37  ;;  %vm8512_vm9 = vweird.f32 %v15202_v31  ;;  %vm8280_vm11 = vweird.f32 %v15329_v54 }
 0x743   :  { %v6954_v22 = vadd.f32 %v6953_v29, %v6905_v6  ;;  %v15332_v6 = vadd.f32 1.0, %v13000_v52  ;;  %v8402_v17 = vmul.f32 %v13229_v49, %v14949_v40  ;;  %v17343_v52 = vld [vmem:[#allocation32_spill] sm:$0xff]  ;;  %v8503_v40 = vand.u32 2147483648, %v15159_v14  ;;  %vm15420_vm10 = vmor %vm8512_vm9, %vm8513_vm8 }
 0x744   :  { %v7064_v50 = vadd.f32 %v7063_v56, %v7015_v3  ;;  %7209 = vmatmul.bf16.vlgmr.msra.gmra.mxu0 %v17342_v10  ;;  %v8386_v36 = vadd.f32 %v17286_v13, %v17343_v52  ;;  %7258 = vmatmul.bf16.vlgmr.msra.gmra.mxu1 %v17344_v37  ;;  %v13006_v16 = vpop.eup %13005  ;;  %v8523_v3 = vmul.f32 %v15342_v53, %v15277_v26  ;;  %vm8279_vm13 = vweird.f32 %v15264_v58 }
 0x745   :  { %v15334_v29 = vadd.f32 %v7002_v11, %v6954_v22  ;;  %v17345_v22 = vld [vmem:[#allocation55_spill] sm:$0xff]  ;;  %v12187_v11 = vmul.f32 -1.442695, %v8417_v21  ;;  %13011 = vrcp.f32 %v15332_v6  ;;  %v15369_v21 = vmul.f32 %v15329_v54, %v15264_v58 }
 0x746   :  { %v8733_v45 = vadd.f32 %v15327_v15, %v7064_v50  ;;  %7356 = vmatmul.bf16.vlgmr.msra.gmra.mxu3 %v17346_v32  ;;  %v8418_v2 = vadd.f32 %v8402_v17, %v8386_v36  ;;  %v15383_v50 = vor.u32 1.1754944e-38, %v8285_v5  ;;  %v8500_v10 = vsel %vm15379_vm5, %v15228_v20, %v8496_v63  ;;  %v15388_v37 = vpop.eup %13007 }
 0x747   :  { %17341 = vst [vmem:[#allocation171_spill] sm:$0xff] %v15334_v29  ;;  %7307 = vmatmul.bf16.vlgmr.msra.gmra.mxu2 %v17345_v22  ;;  %v8504_v52 = vor.u32 1.1754944e-38, %v8503_v40  ;;  %v8518_v5 = vand.u32 2147483648, %v15202_v31  ;;  %v15400_v36 = vadd.f32 1.0, %v13006_v16  ;;  %v15403_v20 = vadd.f32 %v15294_v9, %v8510_v42  ;;  %v15406_v63 = vpop.eup %13009  ;;  %v17354_v42 = vld [vmem:[#allocation35_spill] sm:$0xff] }
 0x748   :  { %13013 = vtanh.f32 %v8733_v45  ;;  %v8524_v40 = vsub.f32 1.0, %v8523_v3  ;;  %v8516_v16 = vand.u32 2147483647, %v15202_v31  ;;  %v10850_v3 = vld [vmem:[#allocation5 + $0x7b8] sm:$0xf0]  ;;  %vm8528_vm14 = vweird.f32 %v15342_v53 }
 0x749   :  { %v7161_v41 = vpop.f32.mrf.mxu3  ;;  %v7016_v49 = vpop.f32.mrf.mxu0  ;;  %13015 = vpow2.f32 %v12187_v11  ;;  %v8505_v19 = vsel %vm8502_vm7, %v8504_v52, %v8500_v10  ;;  %v12635_v10 = vld [vmem:[#allocation5 + $0x8ac] sm:$0xf]  ;;  %v10978_v52 = vld [vmem:[#allocation5 + $0x8b8] sm:$0xf0]  ;;  %vm8527_vm15 = vweird.f32 %v15277_v26  ;;  %vm8542_vm5 = vweird.f32 %v15332_v6 }
 0x74a   :  { %v7112_v56 = vpop.f32.mrf.mxu2  ;;  %v7017_v45 = vadd.f32 %v7016_v49, %v14888_v43  ;;  %v7065_v32 = vpop.f32.mrf.mxu1  ;;  %v8276_v43 = vsub.f32 1.0, %v15369_v21  ;;  %v13230_v49 = vld [vmem:[#allocation11 + $0x38] sm:$0xff]  ;;  %13017 = vrcp.f32 %v15400_v36  ;;  %v10981_v14 = vor.u32 %v12635_v10, %v10978_v52  ;;  %vm15478_vm0 = vmor %vm8527_vm15, %vm8528_vm14 }
 0x74b   :  { %v15390_v22 = vadd.f32 %v7161_v41, %v7112_v56  ;;  %v15409_v11 = vpop.eup %13011  ;;  %v12188_v56 = vmul.f32 -1.442695, %v8418_v2  ;;  %v8387_v41 = vadd.f32 %v17286_v13, %v17354_v42  ;;  %v8403_v48 = vmul.f32 %v13230_v49, %v14955_v44  ;;  %v13231_v13 = vld [vmem:[#allocation8] sm:$0xff] }
 0x74c   :  { %v7066_v0 = vadd.f32 %v7065_v32, %v7017_v45  ;;  %v8519_v2 = vor.u32 1.1754944e-38, %v8518_v5  ;;  %v12571_v45 = vld [vmem:[#allocation5 + $0x6ac] sm:$0xf]  ;;  %v8765_v32 = vmul.f32 %v13231_v13, %v8505_v19  ;;  %v8515_v44 = vsel %vm15420_vm10, %v15294_v9, %v15403_v20  ;;  %7497 = vmatpush.bf16.msrb.mxu2 %v10981_v14 }
 0x74d   :  { %17351 = vst [vmem:[#allocation172_spill] sm:$0xff] %v15390_v22  ;;  %v8525_v42 = vmul.f32 %v15342_v53, %v8524_v40  ;;  %v8538_v5 = vmul.f32 %v15409_v11, %v15332_v6  ;;  %v12603_v22 = vld [vmem:[#allocation5 + $0x7ac] sm:$0xf]  ;;  %v8419_v20 = vadd.f32 %v8403_v48, %v8387_v41  ;;  %vm8517_vm12 = vcmp.eq.f32.partialorder %v8516_v16, 8.507059e+37 }
 0x74e   :  { %v13014_v60 = vpop.eup %13013  ;;  %v8734_v21 = vadd.f32 %v15327_v15, %v7066_v0  ;;  %v8277_v14 = vmul.f32 %v15329_v54, %v8276_v43  ;;  %vm8543_vm2 = vweird.f32 %v15409_v11  ;;  %vm8557_vm9 = vweird.f32 %v15400_v36 }
 0x74f   :  { %v8781_v31 = vmul.f32 %v13014_v60, %v15069_v1  ;;  %v13016_v0 = vpop.eup %13015  ;;  %v10722_v1 = vld [vmem:[#allocation5 + $0x6b8] sm:$0xf0]  ;;  %v12667_v60 = vld [vmem:[#allocation5 + $0x9ac] sm:$0xf]  ;;  %v8539_v48 = vsub.f32 1.0, %v8538_v5  ;;  %v8526_v17 = vadd.f32 %v15342_v53, %v8525_v42 }
 0x750   :  { %13019 = vtanh.f32 %v8734_v21  ;;  %v10725_v13 = vor.u32 %v12571_v45, %v10722_v1  ;;  %v11109_v62 = vor.u32 %v12667_v60, %v11106_v27  ;;  %v10853_v21 = vor.u32 %v12603_v22, %v10850_v3  ;;  %v15452_v24 = vpop.eup %13017  ;;  %v17363_v5 = vld [vmem:[#allocation180_spill] sm:$0xff] }
 0x751   :  { %13021 = vpow2.f32 %v12188_v56  ;;  %v7163_v30 = vpop.f32.mrf.mxu3  ;;  %v7019_v19 = vpop.f32.mrf.mxu0  ;;  %v8797_v9 = vadd.f32 %v8781_v31, %v8765_v32  ;;  %v15437_v10 = vadd.f32 1.0, %v13016_v0  ;;  %v17357_v27 = vsel %vm15361_vm4, %v15205_v7, %v15340_v47  ;;  %v17358_v56 = vld [vmem:[#allocation29_spill] sm:$0xff]  ;;  %v17359_v7 = vld [vmem:[#allocation30_spill] sm:$0xff]  ;;  %v17360_v47 = vld [vmem:[#allocation59_spill] sm:$0xff] }
 0x752   :  { %v7114_v49 = vpop.f32.mrf.mxu2  ;;  %v7020_v40 = vadd.f32 %v7019_v19, %v14895_v12  ;;  %v7068_v39 = vpop.f32.mrf.mxu1  ;;  %7399 = vmatpush.bf16.msrb.mxu0 %v10725_v13  ;;  %7546 = vmatpush.bf16.msrb.mxu3 %v11109_v62  ;;  %v8520_v62 = vsel %vm8517_vm12, %v8519_v2, %v8515_v44  ;;  %v12189_v43 = vmul.f32 -1.442695, %v8419_v20  ;;  %v17361_v2 = vld [vmem:[#allocation60_spill] sm:$0xff]  ;;  %v17362_v31 = vand.u32 2147483648, %v15303_v59  ;;  %vm15515_vm4 = vmor %vm8279_vm13, %vm8280_vm11 }
 0x753   :  { %v15433_v29 = vadd.f32 %v7163_v30, %v7114_v49  ;;  %v15447_v30 = vsel %vm15395_vm6, %v15301_v28, %v17357_v27  ;;  %v8813_v12 = vmul.f32 0.5, %v8797_v9  ;;  %7448 = vmatpush.bf16.msrb.mxu1 %v10853_v21  ;;  %v8298_v28 = vand.u32 2147483647, %v15303_v59  ;;  %v13232_v44 = vld [vmem:[#allocation8 + $0x8] sm:$0xff]  ;;  %vm15524_vm6 = vmor %vm8542_vm5, %vm8543_vm2 }
 0x754   :  { %v7069_v22 = vadd.f32 %v7068_v39, %v7020_v40  ;;  %7214 = vmatmul.bf16.gmra.mxu0 %v17358_v56  ;;  %7263 = vmatmul.bf16.gmra.mxu1 %v17359_v7  ;;  %v8533_v39 = vand.u32 2147483648, %v15277_v26  ;;  %v15465_v52 = vor.u32 1.1754944e-38, %v17362_v31  ;;  %13023 = vrcp.f32 %v15437_v10 }
 0x755   :  { %9214 = vst [vmem:[#allocation14] sm:$0xff] %v8813_v12  ;;  %v8766_v0 = vmul.f32 %v13232_v44, %v8520_v62  ;;  %v8531_v42 = vand.u32 2147483647, %v15277_v26  ;;  %v12178_v49 = vmul.f32 -1.442695, %v17363_v5  ;;  %v15472_v60 = vadd.f32 %v15329_v54, %v8277_v14 }
 0x756   :  { %v13020_v16 = vpop.eup %13019  ;;  %v8735_v41 = vadd.f32 %v15327_v15, %v7069_v22  ;;  %7361 = vmatmul.bf16.gmra.mxu3 %v17361_v2  ;;  %v8553_v13 = vmul.f32 %v15452_v24, %v15400_v36  ;;  %v8530_v40 = vsel %vm15478_vm0, %v15342_v53, %v8526_v17  ;;  %v8534_v21 = vor.u32 1.1754944e-38, %v8533_v39  ;;  %v12567_v5 = vld [vmem:[#allocation5 + $0x68c] sm:$0xf] }
 0x757   :  { %7312 = vmatmul.bf16.gmra.mxu2 %v17360_v47  ;;  %v13022_v45 = vpop.eup %13021  ;;  %v8782_v32 = vmul.f32 %v13020_v16, %v15116_v35  ;;  %v8540_v35 = vmul.f32 %v15409_v11, %v8539_v48  ;;  %v8548_v22 = vand.u32 2147483648, %v15332_v6  ;;  %vm8532_vm1 = vcmp.eq.f32.partialorder %v8531_v42, 8.507059e+37  ;;  %v10962_v42 = vld [vmem:[#allocation5 + $0x898] sm:$0xf0] }
 0x758   :  { %13025 = vtanh.f32 %v8735_v41  ;;  %v15492_v48 = vadd.f32 1.0, %v13022_v45  ;;  %v15496_v14 = vadd.f32 1.0, %v15388_v37  ;;  %v17366_v53 = vand.u32 2147483647, %v15264_v58  ;;  %v17371_v41 = vld [vmem:[#allocation39_spill] sm:$0xff]  ;;  %v17374_v45 = vld [vmem:[#allocation33_spill] sm:$0xff] }
 0x759   :  { %v7166_v3 = vpop.f32.mrf.mxu3  ;;  %v7021_v9 = vpop.f32.mrf.mxu0  ;;  %v8798_v20 = vadd.f32 %v8782_v32, %v8766_v0  ;;  %13027 = vpow2.f32 %v12189_v43  ;;  %v8541_v47 = vadd.f32 %v15409_v11, %v8540_v35  ;;  %v15509_v39 = vmul.f32 %v15406_v63, %v15303_v59  ;;  %v12631_v0 = vld [vmem:[#allocation5 + $0x88c] sm:$0xf] }
 0x75a   :  { %v7117_v1 = vpop.f32.mrf.mxu2  ;;  %v7022_v26 = vadd.f32 %v7021_v9, %v14898_v25  ;;  %v7070_v12 = vpop.f32.mrf.mxu1  ;;  %vm15500_vm3 = vcmp.eq.f32.partialorder %v17366_v53, 8.507059e+37  ;;  %v8535_v25 = vsel %vm8532_vm1, %v8534_v21, %v8530_v40  ;;  %13029 = vpow2.f32 %v12178_v49  ;;  %v10706_v9 = vld [vmem:[#allocation5 + $0x698] sm:$0xf0] }
 0x75b   :  { %v15488_v27 = vadd.f32 %v7166_v3, %v7117_v1  ;;  %v8814_v56 = vmul.f32 0.5, %v8798_v20  ;;  %v15505_v17 = vpop.eup %13023  ;;  %v8554_v16 = vsub.f32 1.0, %v8553_v13  ;;  %v12190_v2 = vmul.f32 -1.442695, %v17371_v41  ;;  %v13233_v1 = vld [vmem:[#allocation8 + $0x10] sm:$0xff] }
 0x75c   :  { %v7071_v62 = vadd.f32 %v7070_v12, %v7022_v26  ;;  %v8546_v58 = vand.u32 2147483647, %v15332_v6  ;;  %v8549_v32 = vor.u32 1.1754944e-38, %v8548_v22  ;;  %13031 = vrcp.f32 %v15492_v48  ;;  %v12663_v20 = vld [vmem:[#allocation5 + $0x98c] sm:$0xf] }
 0x75d   :  { %9215 = vst [vmem:[#allocation14 + $0x8] sm:$0xff] %v8814_v56  ;;  %v8282_v49 = vsel %vm15515_vm4, %v15329_v54, %v15472_v60  ;;  %v8767_v19 = vmul.f32 %v13233_v1, %v8535_v25  ;;  %v8568_v13 = vmul.f32 %v15505_v17, %v15437_v10  ;;  %v10965_v3 = vor.u32 %v12631_v0, %v10962_v42  ;;  %v12599_v22 = vld [vmem:[#allocation5 + $0x78c] sm:$0xf]  ;;  %v10834_v56 = vld [vmem:[#allocation5 + $0x798] sm:$0xf0]  ;;  %v17376_v42 = vld [vmem:[#allocation63_spill] sm:$0xff] }
 0x75e   :  { %v13026_v43 = vpop.eup %13025  ;;  %v8736_v31 = vadd.f32 %v15327_v15, %v7071_v62  ;;  %v8545_v40 = vsel %vm15524_vm6, %v15409_v11, %v8541_v47  ;;  %v8555_v21 = vmul.f32 %v15452_v24, %v8554_v16  ;;  %v10709_v60 = vor.u32 %v12567_v5, %v10706_v9  ;;  %v17375_v0 = vld [vmem:[#allocation34_spill] sm:$0xff] }
 0x75f   :  { %v8783_v44 = vmul.f32 %v13026_v43, %v15129_v57  ;;  %v13028_v35 = vpop.eup %13027  ;;  %v11090_v57 = vld [vmem:[#allocation5 + $0x998] sm:$0xf0]  ;;  %7498 = vmatpush.bf16.msrb.mxu2 %v10965_v3  ;;  %v10837_v43 = vor.u32 %v12599_v22, %v10834_v56  ;;  %vm8547_vm7 = vcmp.eq.f32.partialorder %v8546_v58, 8.507059e+37  ;;  %v8291_v16 = vsub.f32 1.0, %v15509_v39 }
 0x760   :  { %13033 = vtanh.f32 %v8736_v31  ;;  %v11093_v12 = vor.u32 %v12663_v20, %v11090_v57  ;;  %v13030_v41 = vpop.eup %13029  ;;  %v15545_v11 = vadd.f32 1.0, %v13028_v35  ;;  %7400 = vmatpush.bf16.msrb.mxu0 %v10709_v60  ;;  %v8569_v31 = vsub.f32 1.0, %v8568_v13  ;;  %v17378_v13 = vld [vmem:[#allocation64_spill] sm:$0xff] }
 0x761   :  { %v7168_v26 = vpop.f32.mrf.mxu3  ;;  %v7024_v54 = vpop.f32.mrf.mxu0  ;;  %v8799_v62 = vadd.f32 %v8783_v44, %v8767_v19  ;;  %13035 = vpow2.f32 %v12190_v2  ;;  %7449 = vmatpush.bf16.msrb.mxu1 %v10837_v43  ;;  %v15556_v5 = vsel %vm15500_vm3, %v15383_v50, %v8282_v49  ;;  %v8556_v39 = vadd.f32 %v15452_v24, %v8555_v21  ;;  %v13234_v49 = vld [vmem:[#allocation8 + $0x18] sm:$0xff] }
 0x762   :  { %v7119_v6 = vpop.f32.mrf.mxu2  ;;  %v7025_v25 = vadd.f32 %v7024_v54, %v14914_v46  ;;  %v7073_v37 = vpop.f32.mrf.mxu1  ;;  %13037 = vrcp.f32 %v15496_v14  ;;  %7547 = vmatpush.bf16.msrb.mxu3 %v11093_v12  ;;  %v8550_v46 = vsel %vm8547_vm7, %v8549_v32, %v8545_v40  ;;  %vm8558_vm8 = vweird.f32 %v15452_v24  ;;  %v17377_v32 = vld [vmem:[#allocation40_spill] sm:$0xff] }
 0x763   :  { %v15541_v53 = vadd.f32 %v7168_v26, %v7119_v6  ;;  %v8815_v47 = vmul.f32 0.5, %v8799_v62  ;;  %v15549_v44 = vpop.eup %13031  ;;  %v8563_v58 = vand.u32 2147483648, %v15400_v36  ;;  %v12191_v19 = vmul.f32 -1.442695, %v17377_v32  ;;  %vm15575_vm10 = vmor %vm8557_vm9, %vm8558_vm8 }
 0x764   :  { %v7074_v2 = vadd.f32 %v7073_v37, %v7025_v25  ;;  %7219 = vmatmul.bf16.gmra.mxu0 %v17374_v45  ;;  %7268 = vmatmul.bf16.gmra.mxu1 %v17375_v0  ;;  %v8313_v7 = vand.u32 2147483647, %v15496_v14  ;;  %13039 = vrcp.f32 %v15545_v11  ;;  %v8768_v6 = vmul.f32 %v13234_v49, %v8550_v46  ;;  %v17381_v0 = vld [vmem:[#allocation181_spill] sm:$0xff]  ;;  %v12627_v49 = vld [vmem:[#allocation5 + $0x86c] sm:$0xf] }
 0x765   :  { %9216 = vst [vmem:[#allocation14 + $0x10] sm:$0xff] %v8815_v47  ;;  %v8561_v3 = vand.u32 2147483647, %v15400_v36  ;;  %v8292_v57 = vmul.f32 %v15406_v63, %v8291_v16  ;;  %v8315_v40 = vand.u32 2147483648, %v15496_v14  ;;  %v8583_v54 = vmul.f32 %v15549_v44, %v15492_v48 }
 0x766   :  { %v13034_v1 = vpop.eup %13033  ;;  %v8737_v35 = vadd.f32 %v15327_v15, %v7074_v2  ;;  %7366 = vmatmul.bf16.gmra.mxu3 %v17378_v13  ;;  %vm8295_vm11 = vweird.f32 %v15406_v63  ;;  %v8560_v36 = vsel %vm15575_vm10, %v15452_v24, %v8556_v39  ;;  %v8564_v56 = vor.u32 1.1754944e-38, %v8563_v58 }
 0x767   :  { %7317 = vmatmul.bf16.gmra.mxu2 %v17376_v42  ;;  %v8784_v50 = vmul.f32 %v13034_v1, %v15193_v55  ;;  %v13036_v9 = vpop.eup %13035  ;;  %v8570_v55 = vmul.f32 %v15505_v17, %v8569_v31  ;;  %v8578_v43 = vand.u32 2147483648, %v15437_v10  ;;  %vm8294_vm12 = vweird.f32 %v15303_v59  ;;  %v17382_v1 = vld [vmem:[#allocation43_spill] sm:$0xff] }
 0x768   :  { %13041 = vtanh.f32 %v8737_v35  ;;  %v15580_v26 = vpop.eup %13037  ;;  %v15592_v47 = vadd.f32 1.0, %v13036_v9  ;;  %vm8562_vm13 = vcmp.eq.f32.partialorder %v8561_v3, 8.507059e+37  ;;  %vm8573_vm14 = vweird.f32 %v15505_v17  ;;  %v12563_v3 = vld [vmem:[#allocation5 + $0x66c] sm:$0xf]  ;;  %v17387_v35 = vld [vmem:[#allocation37_spill] sm:$0xff]  ;;  %vm15645_vm3 = vmor %vm8294_vm12, %vm8295_vm11 }
 0x769   :  { %v7171_v60 = vpop.f32.mrf.mxu3  ;;  %v7026_v12 = vpop.f32.mrf.mxu0  ;;  %v8800_v22 = vadd.f32 %v8784_v50, %v8768_v6  ;;  %13043 = vpow2.f32 %v12191_v19  ;;  %v15596_v2 = vor.u32 1.1754944e-38, %v8315_v40  ;;  %v8565_v24 = vsel %vm8562_vm13, %v8564_v56, %v8560_v36  ;;  %v10946_v6 = vld [vmem:[#allocation5 + $0x878] sm:$0xf0]  ;;  %v13235_v40 = vld [vmem:[#allocation8 + $0x20] sm:$0xff] }
 0x76a   :  { %v7122_v20 = vpop.f32.mrf.mxu2  ;;  %v7027_v25 = vadd.f32 %v7026_v12, %v14925_v51  ;;  %v7075_v37 = vpop.f32.mrf.mxu1  ;;  %v8571_v45 = vadd.f32 %v15505_v17, %v8570_v55  ;;  %v15601_v51 = vadd.f32 1.0, %v13030_v41  ;;  %v12179_v42 = vmul.f32 -1.442695, %v17381_v0  ;;  %v12659_v12 = vld [vmem:[#allocation5 + $0x96c] sm:$0xf] }
 0x76b   :  { %v15588_v62 = vadd.f32 %v7171_v60, %v7122_v20  ;;  %v8816_v16 = vmul.f32 0.5, %v8800_v22  ;;  %v15599_v46 = vpop.eup %13039  ;;  %v8584_v39 = vsub.f32 1.0, %v8583_v54  ;;  %vm8572_vm15 = vweird.f32 %v15437_v10  ;;  %v10690_v60 = vld [vmem:[#allocation5 + $0x678] sm:$0xf0] }
 0x76c   :  { %v7076_v31 = vadd.f32 %v7075_v37, %v7027_v25  ;;  %v12192_v32 = vmul.f32 -1.442695, %v17382_v1  ;;  %vm15607_vm0 = vmor %vm8572_vm15, %vm8573_vm14  ;;  %v8576_v13 = vand.u32 2147483647, %v15437_v10  ;;  %v8579_v50 = vor.u32 1.1754944e-38, %v8578_v43 }
 0x76d   :  { %9217 = vst [vmem:[#allocation14 + $0x18] sm:$0xff] %v8816_v16  ;;  %13045 = vrcp.f32 %v15592_v47  ;;  %v15615_v9 = vadd.f32 %v15406_v63, %v8292_v57  ;;  %vm15619_vm1 = vcmp.eq.f32.partialorder %v8298_v28, 8.507059e+37  ;;  %v8769_v21 = vmul.f32 %v13235_v40, %v8565_v24  ;;  %v11074_v22 = vld [vmem:[#allocation5 + $0x978] sm:$0xf0]  ;;  %v12595_v43 = vld [vmem:[#allocation5 + $0x76c] sm:$0xf] }
 0x76e   :  { %v13042_v58 = vpop.eup %13041  ;;  %v8738_v19 = vadd.f32 %v15327_v15, %v7076_v31  ;;  %v8598_v55 = vmul.f32 %v15599_v46, %v15545_v11  ;;  %v10949_v54 = vor.u32 %v12627_v49, %v10946_v6  ;;  %v8575_v57 = vsel %vm15607_vm0, %v15505_v17, %v8571_v45  ;;  %v10818_v16 = vld [vmem:[#allocation5 + $0x778] sm:$0xf0]  ;;  %v17392_v40 = vld [vmem:[#allocation184_spill] sm:$0xff] }
 0x76f   :  { %v8785_v41 = vmul.f32 %v13042_v58, %v15238_v18  ;;  %v13044_v10 = vpop.eup %13043  ;;  %v8585_v28 = vmul.f32 %v15549_v44, %v8584_v39  ;;  %v10693_v25 = vor.u32 %v12563_v3, %v10690_v60  ;;  %v11077_v37 = vor.u32 %v12659_v12, %v11074_v22  ;;  %v17390_v6 = vld [vmem:[#allocation38_spill] sm:$0xff] }
 0x770   :  { %13047 = vtanh.f32 %v8738_v19  ;;  %7499 = vmatpush.bf16.msrb.mxu2 %v10949_v54  ;;  %v10821_v1 = vor.u32 %v12595_v43, %v10818_v16  ;;  %v15634_v17 = vmul.f32 %v15580_v26, %v15496_v14  ;;  %v15636_v45 = vadd.f32 1.0, %v13044_v10 }
 0x771   :  { %v7173_v36 = vpop.f32.mrf.mxu3  ;;  %v7029_v56 = vpop.f32.mrf.mxu0  ;;  %v8801_v31 = vadd.f32 %v8785_v41, %v8769_v21  ;;  %13049 = vpow2.f32 %v12192_v32  ;;  %7401 = vmatpush.bf16.msrb.mxu0 %v10693_v25  ;;  %7548 = vmatpush.bf16.msrb.mxu3 %v11077_v37  ;;  %vm8577_vm2 = vcmp.eq.f32.partialorder %v8576_v13, 8.507059e+37  ;;  %v8599_v32 = vsub.f32 1.0, %v8598_v55  ;;  %v17391_v13 = vld [vmem:[#allocation67_spill] sm:$0xff]  ;;  %v17393_v55 = vld [vmem:[#allocation68_spill] sm:$0xff] }
 0x772   :  { %v7124_v18 = vpop.f32.mrf.mxu2  ;;  %v7030_v0 = vadd.f32 %v7029_v56, %v14937_v8  ;;  %v7078_v58 = vpop.f32.mrf.mxu1  ;;  %13051 = vpow2.f32 %v12179_v42  ;;  %7450 = vmatpush.bf16.msrb.mxu1 %v10821_v1  ;;  %v8580_v41 = vsel %vm8577_vm2, %v8579_v50, %v8575_v57  ;;  %v8297_v42 = vsel %vm15645_vm3, %v15406_v63, %v15615_v9  ;;  %v13236_v9 = vld [vmem:[#allocation8 + $0x28] sm:$0xff] }
 0x773   :  { %v15629_v24 = vadd.f32 %v7173_v36, %v7124_v18  ;;  %v15638_v39 = vmul.f32 0.5, %v8801_v31  ;;  %v15649_v49 = vpop.eup %13045  ;;  %v8586_v59 = vadd.f32 %v15549_v44, %v8585_v28  ;;  %vm8588_vm4 = vweird.f32 %v15549_v44 }
 0x774   :  { %v7079_v19 = vadd.f32 %v7078_v58, %v7030_v0  ;;  %7224 = vmatmul.bf16.gmra.mxu0 %v17387_v35  ;;  %7273 = vmatmul.bf16.gmra.mxu1 %v17390_v6  ;;  %v8593_v3 = vand.u32 2147483648, %v15492_v48  ;;  %13053 = vrcp.f32 %v15601_v51  ;;  %vm8587_vm5 = vweird.f32 %v15492_v48 }
 0x775   :  { %9218 = vst [vmem:[#allocation14 + $0x20] sm:$0xff] %v15638_v39  ;;  %v12193_v21 = vmul.f32 -1.442695, %v17392_v40  ;;  %13055 = vrcp.f32 %v15636_v45  ;;  %v8770_v18 = vmul.f32 %v13236_v9, %v8580_v41  ;;  %v8591_v54 = vand.u32 2147483647, %v15492_v48  ;;  %vm15677_vm6 = vmor %vm8587_vm5, %vm8588_vm4  ;;  %v17396_v41 = vld [vmem:[#allocation182_spill] sm:$0xff] }
 0x776   :  { %v13048_v50 = vpop.eup %13047  ;;  %v8739_v10 = vadd.f32 %v15327_v15, %v7079_v19  ;;  %7371 = vmatmul.bf16.gmra.mxu3 %v17393_v55  ;;  %v8306_v12 = vsub.f32 1.0, %v15634_v17  ;;  %v15673_v57 = vsel %vm15619_vm1, %v15465_v52, %v8297_v42  ;;  %v8613_v48 = vmul.f32 %v15649_v49, %v15592_v47  ;;  %v10930_v9 = vld [vmem:[#allocation5 + $0x858] sm:$0xf0] }
 0x777   :  { %7322 = vmatmul.bf16.gmra.mxu2 %v17391_v13  ;;  %v8786_v63 = vmul.f32 %v13048_v50, %v15253_v33  ;;  %v13050_v60 = vpop.eup %13049  ;;  %v8600_v33 = vmul.f32 %v15599_v46, %v8599_v32  ;;  %v8590_v20 = vsel %vm15677_vm6, %v15549_v44, %v8586_v59  ;;  %v8594_v52 = vor.u32 1.1754944e-38, %v8593_v3  ;;  %v17397_v59 = vld [vmem:[#allocation185_spill] sm:$0xff] }
 0x778   :  { %13057 = vtanh.f32 %v8739_v10  ;;  %v13052_v37 = vpop.eup %13051  ;;  %v8608_v0 = vand.u32 2147483648, %v15545_v11  ;;  %v15691_v58 = vadd.f32 1.0, %v13050_v60  ;;  %vm8592_vm7 = vcmp.eq.f32.partialorder %v8591_v54, 8.507059e+37  ;;  %v13237_v60 = vld [vmem:[#allocation8 + $0x30] sm:$0xff] }
 0x779   :  { %v7176_v36 = vpop.f32.mrf.mxu3  ;;  %v7031_v56 = vpop.f32.mrf.mxu0  ;;  %v8802_v25 = vadd.f32 %v8786_v63, %v8770_v18  ;;  %13059 = vpow2.f32 %v12193_v21  ;;  %vm8603_vm8 = vweird.f32 %v15599_v46  ;;  %vm8310_vm9 = vweird.f32 %v15580_v26  ;;  %v12623_v63 = vld [vmem:[#allocation5 + $0x84c] sm:$0xf] }
 0x77a   :  { %v7127_v22 = vpop.f32.mrf.mxu2  ;;  %v7032_v16 = vadd.f32 %v7031_v56, %v14957_v38  ;;  %v7080_v31 = vpop.f32.mrf.mxu1  ;;  %v8330_v32 = vand.u32 2147483648, %v15601_v51  ;;  %v8595_v19 = vsel %vm8592_vm7, %v8594_v52, %v8590_v20  ;;  %v8601_v38 = vadd.f32 %v15599_v46, %v8600_v33  ;;  %v12559_v18 = vld [vmem:[#allocation5 + $0x64c] sm:$0xf] }
 0x77b   :  { %v15687_v43 = vadd.f32 %v7176_v36, %v7127_v22  ;;  %v15693_v1 = vmul.f32 0.5, %v8802_v25  ;;  %v15696_v17 = vpop.eup %13053  ;;  %v15703_v8 = vadd.f32 1.0, %v13052_v37  ;;  %v12180_v6 = vmul.f32 -1.442695, %v17396_v41  ;;  %v12655_v56 = vld [vmem:[#allocation5 + $0x94c] sm:$0xf] }
 0x77c   :  { %v7081_v44 = vadd.f32 %v7080_v31, %v7032_v16  ;;  %v15701_v35 = vpop.eup %13055  ;;  %v8614_v13 = vsub.f32 1.0, %v8613_v48  ;;  %vm8602_vm10 = vweird.f32 %v15545_v11  ;;  %v12194_v3 = vmul.f32 -1.442695, %v17397_v59  ;;  %v11058_v25 = vld [vmem:[#allocation5 + $0x958] sm:$0xf0] }
 0x77d   :  { %9219 = vst [vmem:[#allocation14 + $0x28] sm:$0xff] %v15693_v1  ;;  %vm8309_vm11 = vweird.f32 %v15496_v14  ;;  %vm15713_vm12 = vmor %vm8602_vm10, %vm8603_vm8  ;;  %v8606_v21 = vand.u32 2147483647, %v15545_v11  ;;  %v8609_v10 = vor.u32 1.1754944e-38, %v8608_v0  ;;  %13061 = vrcp.f32 %v15691_v58  ;;  %v10674_v11 = vld [vmem:[#allocation5 + $0x658] sm:$0xf0] }
 0x77e   :  { %v13058_v42 = vpop.eup %13057  ;;  %v8740_v50 = vadd.f32 %v15327_v15, %v7081_v44  ;;  %v8307_v54 = vmul.f32 %v15580_v26, %v8306_v12  ;;  %v8771_v22 = vmul.f32 %v13237_v60, %v8595_v19  ;;  %v8628_v33 = vmul.f32 %v15701_v35, %v15636_v45  ;;  %v12591_v31 = vld [vmem:[#allocation5 + $0x74c] sm:$0xf]  ;;  %v10802_v0 = vld [vmem:[#allocation5 + $0x758] sm:$0xf0]  ;;  %vm15765_vm1 = vmor %vm8309_vm11, %vm8310_vm9 }
 0x77f   :  { %v8787_v55 = vmul.f32 %v13058_v42, %v15317_v61  ;;  %v13060_v28 = vpop.eup %13059  ;;  %v10933_v36 = vor.u32 %v12623_v63, %v10930_v9  ;;  %v8605_v61 = vsel %vm15713_vm12, %v15599_v46, %v8601_v38  ;;  %v8615_v20 = vmul.f32 %v15649_v49, %v8614_v13  ;;  %v17401_v9 = vld [vmem:[#allocation42_spill] sm:$0xff]  ;;  %v12555_v14 = vld [vmem:[#allocation5 + $0x62c] sm:$0xf] }
 0x780   :  { %13063 = vtanh.f32 %v8740_v50  ;;  %v10677_v37 = vor.u32 %v12559_v18, %v10674_v11  ;;  %v11061_v16 = vor.u32 %v12655_v56, %v11058_v25  ;;  %v10805_v59 = vor.u32 %v12591_v31, %v10802_v0  ;;  %v17402_v18 = vld [vmem:[#allocation71_spill] sm:$0xff] }
 0x781   :  { %v7178_v52 = vpop.f32.mrf.mxu3  ;;  %v7034_v12 = vpop.f32.mrf.mxu0  ;;  %v8803_v44 = vadd.f32 %v8787_v55, %v8771_v22  ;;  %13065 = vpow2.f32 %v12194_v3  ;;  %7500 = vmatpush.bf16.msrb.mxu2 %v10933_v36  ;;  %v15730_v50 = vadd.f32 1.0, %v13060_v28  ;;  %v15733_v46 = vadd.f32 %v15580_v26, %v8307_v54  ;;  %v17400_v3 = vld [vmem:[#allocation41_spill] sm:$0xff]  ;;  %v17404_v22 = vld [vmem:[#allocation72_spill] sm:$0xff]  ;;  %v13238_v36 = vld [vmem:[#allocation8 + $0x38] sm:$0xff] }
 0x782   :  { %v7129_v48 = vpop.f32.mrf.mxu2  ;;  %v7035_v41 = vadd.f32 %v7034_v12, %v14978_v23  ;;  %v7083_v42 = vpop.f32.mrf.mxu1  ;;  %7402 = vmatpush.bf16.msrb.mxu0 %v10677_v37  ;;  %7549 = vmatpush.bf16.msrb.mxu3 %v11061_v16  ;;  %vm8607_vm13 = vcmp.eq.f32.partialorder %v8606_v21, 8.507059e+37  ;;  %v8629_v13 = vsub.f32 1.0, %v8628_v33  ;;  %v15738_v55 = vor.u32 1.1754944e-38, %v8330_v32  ;;  %v17403_v32 = vld [vmem:[#allocation186_spill] sm:$0xff] }
 0x783   :  { %v15727_v19 = vadd.f32 %v7178_v52, %v7129_v48  ;;  %v15735_v38 = vmul.f32 0.5, %v8803_v44  ;;  %7451 = vmatpush.bf16.msrb.mxu1 %v10805_v59  ;;  %v8610_v23 = vsel %vm8607_vm13, %v8609_v10, %v8605_v61  ;;  %v15740_v63 = vpop.eup %13061  ;;  %13067 = vpow2.f32 %v12180_v6  ;;  %v17411_v44 = vld [vmem:[#allocation167_spill] sm:$0xff] }
 0x784   :  { %v7084_v40 = vadd.f32 %v7083_v42, %v7035_v41  ;;  %7229 = vmatmul.bf16.gmra.mxu0 %v17400_v3  ;;  %7278 = vmatmul.bf16.gmra.mxu1 %v17401_v9  ;;  %v8616_v54 = vadd.f32 %v15649_v49, %v8615_v20  ;;  %vm8618_vm14 = vweird.f32 %v15649_v49  ;;  %v8623_v21 = vand.u32 2147483648, %v15592_v47 }
 0x785   :  { %9220 = vst [vmem:[#allocation14 + $0x30] sm:$0xff] %v15735_v38  ;;  %13069 = vrcp.f32 %v15703_v8  ;;  %vm8617_vm15 = vweird.f32 %v15592_v47  ;;  %v12195_v10 = vmul.f32 -1.442695, %v17403_v32  ;;  %vm15755_vm0 = vcmp.eq.f32.partialorder %v8313_v7, 8.507059e+37 }
 0x786   :  { %v13064_v60 = vpop.eup %13063  ;;  %v8741_v6 = vadd.f32 %v15327_v15, %v7084_v40  ;;  %7376 = vmatmul.bf16.gmra.mxu3 %v17404_v22  ;;  %13071 = vrcp.f32 %v15730_v50  ;;  %v8772_v11 = vmul.f32 %v13238_v36, %v8610_v23  ;;  %v8621_v56 = vand.u32 2147483647, %v15592_v47  ;;  %vm15780_vm2 = vmor %vm8617_vm15, %vm8618_vm14 }
 0x787   :  { %7327 = vmatmul.bf16.gmra.mxu2 %v17402_v18  ;;  %v8788_v33 = vmul.f32 %v13064_v60, %v15321_v4  ;;  %v13066_v7 = vpop.eup %13065  ;;  %v15772_v25 = vmul.f32 %v15696_v17, %v15601_v51  ;;  %v8643_v4 = vmul.f32 %v15740_v63, %v15691_v58  ;;  %v8630_v20 = vmul.f32 %v15701_v35, %v8629_v13 }
 0x788   :  { %13073 = vtanh.f32 %v8741_v6  ;;  %v8312_v37 = vsel %vm15765_vm1, %v15580_v26, %v15733_v46  ;;  %v8620_v31 = vsel %vm15780_vm2, %v15649_v49, %v8616_v54  ;;  %v8624_v0 = vor.u32 1.1754944e-38, %v8623_v21  ;;  %v17412_v21 = vld [vmem:[#allocation183_spill] sm:$0xff] }
 0x789   :  { %v7181_v52 = vpop.f32.mrf.mxu3  ;;  %v7036_v12 = vpop.f32.mrf.mxu0  ;;  %v8804_v16 = vadd.f32 %v8788_v33, %v8772_v11  ;;  %13075 = vpow2.f32 %v12195_v10  ;;  %v8638_v59 = vand.u32 2147483648, %v15636_v45  ;;  %v15798_v40 = vadd.f32 1.0, %v13066_v7  ;;  %v17413_v6 = vld [vmem:[#allocation187_spill] sm:$0xff] }
 0x78a   :  { %v7132_v61 = vpop.f32.mrf.mxu2  ;;  %v7037_v41 = vadd.f32 %v7036_v12, %v17411_v44  ;;  %v7085_v42 = vpop.f32.mrf.mxu1  ;;  %vm8622_vm3 = vcmp.eq.f32.partialorder %v8621_v56, 8.507059e+37  ;;  %vm8633_vm4 = vweird.f32 %v15701_v35  ;;  %v8644_v49 = vsub.f32 1.0, %v8643_v4  ;;  %v12619_v4 = vld [vmem:[#allocation5 + $0x82c] sm:$0xf] }
 0x78b   :  { %v15792_v47 = vadd.f32 %v7181_v52, %v7132_v61  ;;  %v15796_v13 = vpop.eup %13067  ;;  %v15800_v3 = vmul.f32 0.5, %v8804_v16  ;;  %v8625_v23 = vsel %vm8622_vm3, %v8624_v0, %v8620_v31  ;;  %v8631_v9 = vadd.f32 %v15701_v35, %v8630_v20  ;;  %v10914_v61 = vld [vmem:[#allocation5 + $0x838] sm:$0xf0]  ;;  %v13239_v20 = vld [vmem:[#allocation8 + $0x40] sm:$0xff]  ;;  %v12651_v44 = vld [vmem:[#allocation5 + $0x92c] sm:$0xf] }
 0x78c   :  { %v15803_v26 = vpop.eup %13069  ;;  %v7086_v46 = vadd.f32 %v7085_v42, %v7037_v41  ;;  %v8321_v54 = vsub.f32 1.0, %v15772_v25  ;;  %v12181_v60 = vmul.f32 -1.442695, %v17412_v21  ;;  %vm8632_vm5 = vweird.f32 %v15636_v45  ;;  %v10658_v0 = vld [vmem:[#allocation5 + $0x638] sm:$0xf0] }
 0x78d   :  { %v15806_v18 = vpop.eup %13071  ;;  %9221 = vst [vmem:[#allocation14 + $0x38] sm:$0xff] %v15800_v3  ;;  %v12196_v22 = vmul.f32 -1.442695, %v17413_v6  ;;  %vm15817_vm6 = vmor %vm8632_vm5, %vm8633_vm4  ;;  %v8636_v36 = vand.u32 2147483647, %v15636_v45  ;;  %v8639_v11 = vor.u32 1.1754944e-38, %v8638_v59  ;;  %13077 = vrcp.f32 %v15798_v40 }
 0x78e   :  { %v13074_v10 = vpop.eup %13073  ;;  %v8742_v33 = vadd.f32 %v15327_v15, %v7086_v46  ;;  %v15827_v7 = vsel %vm15755_vm0, %v15596_v2, %v8312_v37  ;;  %v8773_v52 = vmul.f32 %v13239_v20, %v8625_v23  ;;  %v8645_v16 = vmul.f32 %v15740_v63, %v8644_v49  ;;  %v11042_v41 = vld [vmem:[#allocation5 + $0x938] sm:$0xf0]  ;;  %v12587_v46 = vld [vmem:[#allocation5 + $0x72c] sm:$0xf] }
 0x78f   :  { %v8789_v56 = vmul.f32 %v13074_v10, %v15447_v30  ;;  %v13076_v12 = vpop.eup %13075  ;;  %v10917_v31 = vor.u32 %v12619_v4, %v10914_v61  ;;  %v8635_v30 = vsel %vm15817_vm6, %v15701_v35, %v8631_v9  ;;  %v8658_v2 = vmul.f32 %v15806_v18, %v15730_v50  ;;  %v10786_v23 = vld [vmem:[#allocation5 + $0x738] sm:$0xf0]  ;;  %v17416_v10 = vld [vmem:[#allocation175_spill] sm:$0xff]  ;;  %v12583_v35 = vld [vmem:[#allocation5 + $0x70c] sm:$0xf] }
 0x790   :  { %13079 = vtanh.f32 %v8742_v33  ;;  %v10661_v42 = vor.u32 %v12555_v14, %v10658_v0  ;;  %v11045_v59 = vor.u32 %v12651_v44, %v11042_v41  ;;  %v10789_v4 = vor.u32 %v12587_v46, %v10786_v23  ;;  %v8018_v14 = vld [vmem:[#allocation13] sm:$0xff] }
 0x791   :  { %v7183_v28 = vpop.f32.mrf.mxu3  ;;  %v7039_v37 = vpop.f32.mrf.mxu0  ;;  %v8805_v49 = vadd.f32 %v8789_v56, %v8773_v52  ;;  %13081 = vpow2.f32 %v12196_v22  ;;  %7501 = vmatpush.bf16.msrb.mxu2 %v10917_v31  ;;  %v15838_v48 = vadd.f32 1.0, %v13076_v12  ;;  %vm8637_vm7 = vcmp.eq.f32.partialorder %v8636_v36, 8.507059e+37  ;;  %v17418_v56 = vld [vmem:[#allocation45_spill] sm:$0xff]  ;;  %v17420_v31 = vld [vmem:[#allocation75_spill] sm:$0xff] }
 0x792   :  { %v7134_v45 = vpop.f32.mrf.mxu2  ;;  %v7040_v6 = vadd.f32 %v7039_v37, %v17416_v10  ;;  %v7088_v33 = vpop.f32.mrf.mxu1  ;;  %7403 = vmatpush.bf16.msrb.mxu0 %v10661_v42  ;;  %7550 = vmatpush.bf16.msrb.mxu3 %v11045_v59  ;;  %13083 = vpow2.f32 %v12181_v60  ;;  %v8640_v20 = vsel %vm8637_vm7, %v8639_v11, %v8635_v30  ;;  %v8659_v12 = vsub.f32 1.0, %v8658_v2  ;;  %v17421_v11 = vld [vmem:[#allocation188_spill] sm:$0xff] }
 0x793   :  { %v15835_v21 = vadd.f32 %v7183_v28, %v7134_v45  ;;  %v15841_v9 = vmul.f32 0.5, %v8805_v49  ;;  %7452 = vmatpush.bf16.msrb.mxu1 %v10789_v4  ;;  %v15845_v52 = vpop.eup %13077  ;;  %v17419_v45 = vld [vmem:[#allocation46_spill] sm:$0xff]  ;;  %v8646_v60 = vadd.f32 %v15740_v63, %v8645_v16  ;;  %vm8648_vm8 = vweird.f32 %v15740_v63  ;;  %v17422_v30 = vld [vmem:[#allocation76_spill] sm:$0xff] }
 0x794   :  { %v7089_v61 = vadd.f32 %v7088_v33, %v7040_v6  ;;  %7234 = vmatmul.bf16.gmra.mxu0 %v17418_v56  ;;  %7283 = vmatmul.bf16.gmra.mxu1 %v17419_v45  ;;  %vm8647_vm9 = vweird.f32 %v15691_v58  ;;  %v12197_v44 = vmul.f32 -1.442695, %v17421_v11  ;;  %v8653_v2 = vand.u32 2147483648, %v15691_v58  ;;  %v13240_v37 = vld [vmem:[#allocation8 + $0x48] sm:$0xff] }
 0x795   :  { %17417 = vst [vmem:[#allocation173_spill] sm:$0xff] %v15841_v9  ;;  %v15850_v0 = vmul.f32 %v15841_v9, %v8018_v14  ;;  %13085 = vrcp.f32 %v15838_v48  ;;  %v8774_v42 = vmul.f32 %v13240_v37, %v8640_v20  ;;  %v8651_v16 = vand.u32 2147483647, %v15691_v58  ;;  %vm15875_vm10 = vmor %vm8647_vm9, %vm8648_vm8  ;;  %v17425_v56 = vld [vmem:[#allocation168_spill] sm:$0xff] }
 0x796   :  { %9222 = vst [vmem:[#allocation14 + $0x40] sm:$0xff] %v15841_v9  ;;  %v13080_v36 = vpop.eup %13079  ;;  %v8743_v41 = vadd.f32 %v15327_v15, %v7089_v61  ;;  %7381 = vmatmul.bf16.gmra.mxu3 %v17422_v30  ;;  %v15864_v46 = vadd.f32 1.0, %v15796_v13  ;;  %v8673_v23 = vmul.f32 %v15845_v52, %v15798_v40  ;;  %v8322_v10 = vmul.f32 %v15696_v17, %v8321_v54 }
 0x797   :  { %7332 = vmatmul.bf16.gmra.mxu2 %v17420_v31  ;;  %v8790_v28 = vmul.f32 %v13080_v36, %v15556_v5  ;;  %v13082_v59 = vpop.eup %13081  ;;  %v15881_v13 = vmul.f32 %v15803_v26, %v15703_v8  ;;  %vm8325_vm11 = vweird.f32 %v15696_v17  ;;  %v8650_v25 = vsel %vm15875_vm10, %v15740_v63, %v8646_v60  ;;  %v8019_v60 = vld [vmem:[#allocation13 + $0x8] sm:$0xff] }
 0x798   :  { %13087 = vtanh.f32 %v8743_v41  ;;  %v8660_v54 = vmul.f32 %v15806_v18, %v8659_v12  ;;  %v13084_v58 = vpop.eup %13083  ;;  %v8654_v45 = vor.u32 1.1754944e-38, %v8653_v2  ;;  %v15891_v31 = vadd.f32 1.0, %v13082_v59  ;;  %v10770_v41 = vld [vmem:[#allocation5 + $0x718] sm:$0xf0] }
 0x799   :  { %v7186_v6 = vpop.f32.mrf.mxu3  ;;  %v7041_v33 = vpop.f32.mrf.mxu0  ;;  %v8806_v4 = vadd.f32 %v8790_v28, %v8774_v42  ;;  %13089 = vpow2.f32 %v12197_v44  ;;  %vm8324_vm12 = vweird.f32 %v15601_v51  ;;  %vm8652_vm13 = vcmp.eq.f32.partialorder %v8651_v16, 8.507059e+37  ;;  %v11650_v16 = vld [vmem:[#allocation5 + $0xdf8] sm:$0xf0] }
 0x79a   :  { %v7137_v49 = vpop.f32.mrf.mxu2  ;;  %v7042_v14 = vadd.f32 %v7041_v33, %v17425_v56  ;;  %v7090_v20 = vpop.f32.mrf.mxu1  ;;  %vm8663_vm14 = vweird.f32 %v15806_v18  ;;  %13091 = vrcp.f32 %v15864_v46  ;;  %v8674_v63 = vsub.f32 1.0, %v8673_v23  ;;  %v10898_v33 = vld [vmem:[#allocation5 + $0x818] sm:$0xf0]  ;;  %vm15946_vm3 = vmor %vm8324_vm12, %vm8325_vm11 }
 0x79b   :  { %v15888_v61 = vadd.f32 %v7186_v6, %v7137_v49  ;;  %v15894_v36 = vmul.f32 0.5, %v8806_v4  ;;  %v8655_v11 = vsel %vm8652_vm13, %v8654_v45, %v8650_v25  ;;  %v15898_v44 = vpop.eup %13085  ;;  %v8661_v2 = vadd.f32 %v15806_v18, %v8660_v54  ;;  %v12615_v6 = vld [vmem:[#allocation5 + $0x80c] sm:$0xf]  ;;  %v13241_v25 = vld [vmem:[#allocation8 + $0x50] sm:$0xff]  ;;  %v10642_v45 = vld [vmem:[#allocation5 + $0x618] sm:$0xf0] }
 0x79c   :  { %v7091_v12 = vadd.f32 %v7090_v20, %v7042_v14  ;;  %vm8662_vm15 = vweird.f32 %v15730_v50  ;;  %v15907_v37 = vadd.f32 1.0, %v13084_v58  ;;  %v8666_v59 = vand.u32 2147483647, %v15730_v50  ;;  %v12551_v4 = vld [vmem:[#allocation5 + $0x60c] sm:$0xf] }
 0x79d   :  { %17426 = vst [vmem:[#allocation174_spill] sm:$0xff] %v15894_v36  ;;  %v15902_v30 = vmul.f32 %v15894_v36, %v8019_v60  ;;  %vm15912_vm0 = vmor %vm8662_vm15, %vm8663_vm14  ;;  %v8668_v23 = vand.u32 2147483648, %v15730_v50  ;;  %13093 = vrcp.f32 %v15891_v31  ;;  %v15921_v5 = vadd.f32 %v15696_v17, %v8322_v10 }
 0x79e   :  { %9223 = vst [vmem:[#allocation14 + $0x48] sm:$0xff] %v15894_v36  ;;  %v13088_v28 = vpop.eup %13087  ;;  %v8744_v42 = vadd.f32 %v15327_v15, %v7091_v12  ;;  %v8775_v54 = vmul.f32 %v13241_v25, %v8655_v11  ;;  %v8675_v56 = vmul.f32 %v15845_v52, %v8674_v63  ;;  %v15926_v14 = vmul.f32 %v15898_v44, %v15838_v48  ;;  %v11026_v12 = vld [vmem:[#allocation5 + $0x918] sm:$0xf0] }
 0x79f   :  { %17427 = vst [vmem:[#allocation36_spill] sm:$0xff] %v15902_v30  ;;  %v8791_v49 = vmul.f32 %v13088_v28, %v15673_v57  ;;  %v13090_v58 = vpop.eup %13089  ;;  %v10901_v20 = vor.u32 %v12615_v6, %v10898_v33  ;;  %v12647_v57 = vld [vmem:[#allocation5 + $0x90c] sm:$0xf]  ;;  %v10645_v28 = vor.u32 %v12551_v4, %v10642_v45  ;;  %v8665_v63 = vsel %vm15912_vm0, %v15806_v18, %v8661_v2 }
 0x7a0   :  { %13095 = vtanh.f32 %v8744_v42  ;;  %v11029_v22 = vor.u32 %v12647_v57, %v11026_v12  ;;  %v15931_v25 = vpop.eup %13091  ;;  %v17430_v42 = vld [vmem:[#allocation169_spill] sm:$0xff]  ;;  %v10773_v36 = vor.u32 %v12583_v35, %v10770_v41  ;;  %v8669_v9 = vor.u32 1.1754944e-38, %v8668_v23 }
 0x7a1   :  { %v7188_v10 = vpop.f32.mrf.mxu3  ;;  %v7044_v60 = vpop.f32.mrf.mxu0  ;;  %v8807_v11 = vadd.f32 %v8791_v49, %v8775_v54  ;;  %7502 = vmatpush.bf16.msrb.mxu2 %v10901_v20  ;;  %v15936_v30 = vadd.f32 1.0, %v13090_v58  ;;  %7404 = vmatpush.bf16.msrb.mxu0 %v10645_v28  ;;  %vm8667_vm1 = vcmp.eq.f32.partialorder %v8666_v59, 8.507059e+37  ;;  %vm8678_vm2 = vweird.f32 %v15845_v52  ;;  %v17433_v35 = vld [vmem:[#allocation49_spill] sm:$0xff]  ;;  %v12707_v28 = vld [vmem:[#allocation5 + $0xaec] sm:$0xf] }
 0x7a2   :  { %v7139_v50 = vpop.f32.mrf.mxu2  ;;  %v7045_v6 = vadd.f32 %v7044_v60, %v17430_v42  ;;  %v7093_v33 = vpop.f32.mrf.mxu1  ;;  %7551 = vmatpush.bf16.msrb.mxu3 %v11029_v22  ;;  %v8689_v18 = vsub.f32 1.0, %v15926_v14  ;;  %7453 = vmatpush.bf16.msrb.mxu1 %v10773_v36  ;;  %v8020_v22 = vld [vmem:[#allocation13 + $0x10] sm:$0xff]  ;;  %v8670_v41 = vsel %vm8667_vm1, %v8669_v9, %v8665_v63  ;;  %v8676_v59 = vadd.f32 %v15845_v52, %v8675_v56  ;;  %v17437_v36 = vld [vmem:[#allocation50_spill] sm:$0xff]  ;;  %v17438_v9 = vld [vmem:[#allocation79_spill] sm:$0xff] }
 0x7a3   :  { %v15933_v32 = vadd.f32 %v7188_v10, %v7139_v50  ;;  %v15938_v4 = vmul.f32 0.5, %v8807_v11  ;;  %v15952_v23 = vpop.eup %13093  ;;  %vm8677_vm4 = vweird.f32 %v15798_v40  ;;  %v8327_v49 = vsel %vm15946_vm3, %v15696_v17, %v15921_v5  ;;  %v17439_v5 = vld [vmem:[#allocation80_spill] sm:$0xff]  ;;  %v11522_v60 = vld [vmem:[#allocation5 + $0xcf8] sm:$0xf0] }
 0x7a4   :  { %v7094_v2 = vadd.f32 %v7093_v33, %v7045_v6  ;;  %7239 = vmatmul.bf16.gmra.mxu0 %v17433_v35  ;;  %v17434_v54 = vand.u32 2147483647, %v15601_v51  ;;  %7288 = vmatmul.bf16.gmra.mxu1 %v17437_v36  ;;  %13097 = vrcp.f32 %v15907_v37  ;;  %vm15976_vm6 = vmor %vm8677_vm4, %vm8678_vm2  ;;  %v8681_v50 = vand.u32 2147483647, %v15798_v40  ;;  %v12771_v10 = vld [vmem:[#allocation5 + $0xcec] sm:$0xf] }
 0x7a5   :  { %v15968_v56 = vmul.f32 %v15938_v4, %v8020_v22  ;;  %9224 = vst [vmem:[#allocation14 + $0x50] sm:$0xff] %v15938_v4  ;;  %v8683_v20 = vand.u32 2147483648, %v15798_v40  ;;  %13099 = vrcp.f32 %v15936_v30  ;;  %v17442_v57 = vsub.f32 1.0, %v15881_v13  ;;  %v13242_v11 = vld [vmem:[#allocation8 + $0x58] sm:$0xff] }
 0x7a6   :  { %vm15961_vm5 = vcmp.eq.f32.partialorder %v17434_v54, 8.507059e+37  ;;  %v13096_v14 = vpop.eup %13095  ;;  %v8745_v17 = vadd.f32 %v15327_v15, %v7094_v2  ;;  %7386 = vmatmul.bf16.gmra.mxu3 %v17439_v5  ;;  %v8776_v63 = vmul.f32 %v13242_v11, %v8670_v41  ;;  %v11525_v6 = vor.u32 %v12771_v10, %v11522_v60  ;;  %v11266_v33 = vld [vmem:[#allocation5 + $0xaf8] sm:$0xf0]  ;;  %v12803_v2 = vld [vmem:[#allocation5 + $0xdec] sm:$0xf] }
 0x7a7   :  { %7337 = vmatmul.bf16.gmra.mxu2 %v17438_v9  ;;  %v8792_v45 = vmul.f32 %v13096_v14, %v15827_v7  ;;  %v8337_v12 = vmul.f32 %v15803_v26, %v17442_v57  ;;  %v8680_v40 = vsel %vm15976_vm6, %v15845_v52, %v8676_v59  ;;  %v8690_v7 = vmul.f32 %v15898_v44, %v8689_v18  ;;  %v12739_v59 = vld [vmem:[#allocation5 + $0xbec] sm:$0xf]  ;;  %v11394_v51 = vld [vmem:[#allocation5 + $0xbf8] sm:$0xf0] }
 0x7a8   :  { %13101 = vtanh.f32 %v8745_v17  ;;  %v8703_v13 = vmul.f32 %v15952_v23, %v15891_v31  ;;  %v11269_v54 = vor.u32 %v12707_v28, %v11266_v33  ;;  %v11653_v36 = vor.u32 %v12803_v2, %v11650_v16  ;;  %7691 = vmatpush.bf16.msra.mxu2 %v11525_v6  ;;  %v13243_v2 = vld [vmem:[#allocation8 + $0x60] sm:$0xff] }
 0x7a9   :  { %v7191_v35 = vpop.f32.mrf.mxu3  ;;  %v7046_v22 = vpop.f32.mrf.mxu0  ;;  %v8808_v41 = vadd.f32 %v8792_v45, %v8776_v63  ;;  %v8350_v9 = vmul.f32 %v15931_v25, %v15864_v46  ;;  %v8684_v52 = vor.u32 1.1754944e-38, %v8683_v20  ;;  %v8332_v18 = vsel %vm15961_vm5, %v15738_v55, %v8327_v49  ;;  %v8021_v20 = vld [vmem:[#allocation13 + $0x18] sm:$0xff] }
 0x7aa   :  { %v7142_v42 = vpop.f32.mrf.mxu2  ;;  %v7047_v17 = vadd.f32 %v7046_v22, %v15207_v34  ;;  %v7095_v5 = vpop.f32.mrf.mxu1  ;;  %vm8339_vm7 = vweird.f32 %v15703_v8  ;;  %7593 = vmatpush.bf16.msra.mxu0 %v11269_v54  ;;  %7740 = vmatpush.bf16.msra.mxu3 %v11653_v36  ;;  %vm8682_vm8 = vcmp.eq.f32.partialorder %v8681_v50, 8.507059e+37  ;;  %vm8340_vm9 = vweird.f32 %v15803_v26  ;;  %v11506_v36 = vld [vmem:[#allocation5 + $0xcd8] sm:$0xf0] }
 0x7ab   :  { %v15995_v14 = vadd.f32 %v7191_v35, %v7142_v42  ;;  %v16002_v45 = vmul.f32 0.5, %v8808_v41  ;;  %v16004_v57 = vpop.eup %13097  ;;  %v11397_v34 = vor.u32 %v12739_v59, %v11394_v51  ;;  %v8685_v60 = vsel %vm8682_vm8, %v8684_v52, %v8680_v40  ;;  %vm16048_vm14 = vmor %vm8339_vm7, %vm8340_vm9  ;;  %v17451_v51 = vld [vmem:[#allocation170_spill] sm:$0xff] }
 0x7ac   :  { %v7096_v10 = vadd.f32 %v7095_v5, %v7047_v17  ;;  %v16007_v28 = vpop.eup %13099  ;;  %v8704_v55 = vsub.f32 1.0, %v8703_v13  ;;  %v8691_v58 = vadd.f32 %v15898_v44, %v8690_v7  ;;  %vm8693_vm10 = vweird.f32 %v15898_v44 }
 0x7ad   :  { %v16010_v49 = vmul.f32 %v16002_v45, %v8021_v20  ;;  %9225 = vst [vmem:[#allocation14 + $0x58] sm:$0xff] %v16002_v45  ;;  %v8351_v11 = vsub.f32 1.0, %v8350_v9  ;;  %v8338_v63 = vadd.f32 %v15803_v26, %v8337_v12  ;;  %7642 = vmatpush.bf16.msra.mxu1 %v11397_v34  ;;  %v8698_v6 = vand.u32 2147483648, %v15838_v48  ;;  %v13244_v12 = vld [vmem:[#allocation8 + $0x68] sm:$0xff] }
 0x7ae   :  { %v13102_v50 = vpop.eup %13101  ;;  %v8746_v42 = vadd.f32 %v15327_v15, %v7096_v10  ;;  %v8777_v16 = vmul.f32 %v13243_v2, %v8685_v60  ;;  %vm8692_vm11 = vweird.f32 %v15838_v48  ;;  %v8696_v40 = vand.u32 2147483647, %v15838_v48 }
 0x7af   :  { %v8793_v33 = vmul.f32 %v13102_v50, %v8332_v18  ;;  %v16022_v7 = vmul.f32 %v16004_v57, %v15907_v37  ;;  %v17443_v13 = vand.u32 2147483647, %v15703_v8  ;;  %v17446_v35 = vand.u32 2147483648, %v15703_v8  ;;  %vm16034_vm13 = vmor %vm8692_vm11, %vm8693_vm10  ;;  %v17452_v50 = vld [vmem:[#allocation53_spill] sm:$0xff] }
 0x7b0   :  { %13103 = vtanh.f32 %v8746_v42  ;;  %v8705_v48 = vmul.f32 %v15952_v23, %v8704_v55  ;;  %v8718_v41 = vmul.f32 %v16007_v28, %v15936_v30  ;;  %v8695_v52 = vsel %vm16034_vm13, %v15898_v44, %v8691_v58 }
 0x7b1   :  { %vm16026_vm12 = vcmp.eq.f32.partialorder %v17443_v13, 8.507059e+37  ;;  %v8346_v22 = vor.u32 1.1754944e-38, %v17446_v35  ;;  %v7193_v9 = vpop.f32.mrf.mxu3  ;;  %v7049_v17 = vpop.f32.mrf.mxu0  ;;  %v8809_v5 = vadd.f32 %v8793_v33, %v8777_v16  ;;  %v8352_v20 = vmul.f32 %v15931_v25, %v8351_v11  ;;  %v17453_v11 = vld [vmem:[#allocation54_spill] sm:$0xff]  ;;  %v17455_v35 = vld [vmem:[#allocation84_spill] sm:$0xff] }
 0x7b2   :  { %v7144_v54 = vpop.f32.mrf.mxu2  ;;  %v7050_v10 = vadd.f32 %v7049_v17, %v17451_v51  ;;  %v7098_v34 = vpop.f32.mrf.mxu1  ;;  %v8699_v60 = vor.u32 1.1754944e-38, %v8698_v6  ;;  %v8342_v44 = vsel %vm16048_vm14, %v15803_v26, %v8338_v63  ;;  %vm8354_vm15 = vweird.f32 %v15864_v46  ;;  %v17454_v6 = vld [vmem:[#allocation83_spill] sm:$0xff]  ;;  %v11250_v17 = vld [vmem:[#allocation5 + $0xad8] sm:$0xf0] }
 0x7b3   :  { %v16052_v59 = vadd.f32 %v7193_v9, %v7144_v54  ;;  %v16060_v55 = vmul.f32 0.5, %v8809_v5  ;;  %vm8697_vm0 = vcmp.eq.f32.partialorder %v8696_v40, 8.507059e+37  ;;  %v8366_v8 = vsub.f32 1.0, %v16022_v7  ;;  %v12767_v54 = vld [vmem:[#allocation5 + $0xccc] sm:$0xf] }
 0x7b4   :  { %v7099_v58 = vadd.f32 %v7098_v34, %v7050_v10  ;;  %7244 = vmatmul.bf16.gmra.mxu0 %v17452_v50  ;;  %v8700_v42 = vsel %vm8697_vm0, %v8699_v60, %v8695_v52  ;;  %v8711_v33 = vand.u32 2147483647, %v15891_v31  ;;  %v8719_v2 = vsub.f32 1.0, %v8718_v41  ;;  %7293 = vmatmul.bf16.gmra.mxu1 %v17453_v11  ;;  %v12703_v41 = vld [vmem:[#allocation5 + $0xacc] sm:$0xf] }
 0x7b5   :  { %9226 = vst [vmem:[#allocation14 + $0x60] sm:$0xff] %v16060_v55  ;;  %v8706_v26 = vadd.f32 %v15952_v23, %v8705_v48  ;;  %vm8708_vm1 = vweird.f32 %v15952_v23  ;;  %v8713_v63 = vand.u32 2147483648, %v15891_v31  ;;  %v8347_v40 = vsel %vm16026_vm12, %v8346_v22, %v8342_v44  ;;  %v12799_v5 = vld [vmem:[#allocation5 + $0xdcc] sm:$0xf]  ;;  %v11634_v52 = vld [vmem:[#allocation5 + $0xdd8] sm:$0xf0] }
 0x7b6   :  { %v13104_v16 = vpop.eup %13103  ;;  %v8353_v7 = vadd.f32 %v15931_v25, %v8352_v20  ;;  %vm8355_vm2 = vweird.f32 %v15931_v25  ;;  %v8747_v13 = vadd.f32 %v15327_v15, %v7099_v58  ;;  %7391 = vmatmul.bf16.gmra.mxu3 %v17455_v35  ;;  %vm8707_vm3 = vweird.f32 %v15891_v31 }
 0x7b7   :  { %7342 = vmatmul.bf16.gmra.mxu2 %v17454_v6  ;;  %v8794_v48 = vmul.f32 %v13104_v16, %v8347_v40  ;;  %v11509_v9 = vor.u32 %v12767_v54, %v11506_v36  ;;  %v8778_v22 = vmul.f32 %v13244_v12, %v8700_v42  ;;  %v8360_v18 = vand.u32 2147483648, %v15864_v46  ;;  %vm16081_vm4 = vmor %vm8707_vm3, %vm8708_vm1  ;;  %v17460_v16 = vld [vmem:[#allocation171_spill] sm:$0xff] }
 0x7b8   :  { %13105 = vtanh.f32 %v8747_v13  ;;  %v11253_v10 = vor.u32 %v12703_v41, %v11250_v17  ;;  %v11637_v34 = vor.u32 %v12799_v5, %v11634_v52  ;;  %v8358_v31 = vand.u32 2147483647, %v15864_v46  ;;  %vm16094_vm5 = vmor %vm8354_vm15, %vm8355_vm2  ;;  %v11378_v46 = vld [vmem:[#allocation5 + $0xbd8] sm:$0xf0]  ;;  %v13245_v52 = vld [vmem:[#allocation8 + $0x70] sm:$0xff] }
 0x7b9   :  { %v7196_v60 = vpop.f32.mrf.mxu3  ;;  %v7051_v44 = vpop.f32.mrf.mxu0  ;;  %7692 = vmatpush.bf16.msra.mxu2 %v11509_v9  ;;  %v8810_v58 = vadd.f32 %v8794_v48, %v8778_v22  ;;  %v8710_v50 = vsel %vm16081_vm4, %v15952_v23, %v8706_v26  ;;  %v8720_v42 = vmul.f32 %v16007_v28, %v8719_v2  ;;  %v8367_v35 = vmul.f32 %v16004_v57, %v8366_v8  ;;  %v12735_v26 = vld [vmem:[#allocation5 + $0xbcc] sm:$0xf] }
 0x7ba   :  { %v7147_v51 = vpop.f32.mrf.mxu2  ;;  %v7052_v40 = vadd.f32 %v7051_v44, %v17460_v16  ;;  %v7100_v13 = vpop.f32.mrf.mxu1  ;;  %7594 = vmatpush.bf16.msra.mxu0 %v11253_v10  ;;  %7741 = vmatpush.bf16.msra.mxu3 %v11637_v34  ;;  %v8714_v23 = vor.u32 1.1754944e-38, %v8713_v63  ;;  %v8357_v2 = vsel %vm16094_vm5, %v15931_v25, %v8353_v7  ;;  %vm8712_vm6 = vcmp.eq.f32.partialorder %v8711_v33, 8.507059e+37 }
 0x7bb   :  { %v16098_v6 = vadd.f32 %v7196_v60, %v7147_v51  ;;  %v16105_v54 = vmul.f32 0.5, %v8810_v58  ;;  %v8361_v36 = vor.u32 1.1754944e-38, %v8360_v18  ;;  %v11381_v48 = vor.u32 %v12735_v26, %v11378_v46  ;;  %v17465_v58 = vld [vmem:[#allocation172_spill] sm:$0xff]  ;;  %v17468_v26 = vld [vmem:[#allocation87_spill] sm:$0xff] }
 0x7bc   :  { %v7101_v41 = vadd.f32 %v7100_v13, %v7052_v40  ;;  %v8715_v9 = vsel %vm8712_vm6, %v8714_v23, %v8710_v50  ;;  %vm8359_vm7 = vcmp.eq.f32.partialorder %v8358_v31, 8.507059e+37  ;;  %vm8370_vm8 = vweird.f32 %v16004_v57  ;;  %v17466_v13 = vld [vmem:[#allocation57_spill] sm:$0xff]  ;;  %v12731_v60 = vld [vmem:[#allocation5 + $0xbac] sm:$0xf] }
 0x7bd   :  { %9227 = vst [vmem:[#allocation14 + $0x68] sm:$0xff] %v16105_v54  ;;  %v8721_v8 = vadd.f32 %v16007_v28, %v8720_v42  ;;  %vm8723_vm9 = vweird.f32 %v16007_v28  ;;  %v8362_v25 = vsel %vm8359_vm7, %v8361_v36, %v8357_v2  ;;  %v8368_v7 = vadd.f32 %v16004_v57, %v8367_v35  ;;  %7643 = vmatpush.bf16.msra.mxu1 %v11381_v48  ;;  %v8024_v35 = vld [vmem:[#allocation13 + $0x30] sm:$0xff]  ;;  %v17467_v2 = vld [vmem:[#allocation58_spill] sm:$0xff]  ;;  %v12763_v48 = vld [vmem:[#allocation5 + $0xcac] sm:$0xf] }
 0x7be   :  { %v13106_v63 = vpop.eup %13105  ;;  %v8748_v17 = vadd.f32 %v15327_v15, %v7101_v41  ;;  %v8728_v33 = vand.u32 2147483648, %v15936_v30  ;;  %v8779_v12 = vmul.f32 %v13245_v52, %v8715_v9  ;;  %vm8722_vm10 = vweird.f32 %v15936_v30  ;;  %v17469_v41 = vld [vmem:[#allocation88_spill] sm:$0xff]  ;;  %v11490_v9 = vld [vmem:[#allocation5 + $0xcb8] sm:$0xf0] }
 0x7bf   :  { %v8795_v5 = vmul.f32 %v13106_v63, %v8362_v25  ;;  %v8726_v22 = vand.u32 2147483647, %v15936_v30  ;;  %v8375_v18 = vand.u32 2147483648, %v15907_v37  ;;  %vm16119_vm11 = vmor %vm8722_vm10, %vm8723_vm9  ;;  %vm8369_vm12 = vweird.f32 %v15907_v37 }
 0x7c0   :  { %13107 = vtanh.f32 %v8748_v17  ;;  %v8373_v15 = vand.u32 2147483647, %v15907_v37  ;;  %v8725_v30 = vsel %vm16119_vm11, %v16007_v28, %v8721_v8  ;;  %vm16130_vm13 = vmor %vm8369_vm12, %vm8370_vm8  ;;  %v8729_v11 = vor.u32 1.1754944e-38, %v8728_v33  ;;  %v12699_v8 = vld [vmem:[#allocation5 + $0xaac] sm:$0xf] }
 0x7c1   :  { %v7198_v34 = vpop.f32.mrf.mxu3  ;;  %v7210_v20 = vpop.f32.mrf.mxu0  ;;  %v8811_v31 = vadd.f32 %v8795_v5, %v8779_v12  ;;  %v8372_v37 = vsel %vm16130_vm13, %v16004_v57, %v8368_v7  ;;  %vm8727_vm14 = vcmp.eq.f32.partialorder %v8726_v22, 8.507059e+37  ;;  %v8376_v28 = vor.u32 1.1754944e-38, %v8375_v18  ;;  %v11234_v7 = vld [vmem:[#allocation5 + $0xab8] sm:$0xf0]  ;;  %v12795_v17 = vld [vmem:[#allocation5 + $0xdac] sm:$0xf] }
 0x7c2   :  { %v7149_v51 = vpop.f32.mrf.mxu2  ;;  %v7211_v50 = vadd.f32 %v7210_v20, %v17465_v58  ;;  %v7259_v42 = vpop.f32.mrf.mxu1  ;;  %v8730_v23 = vsel %vm8727_vm14, %v8729_v11, %v8725_v30  ;;  %vm8374_vm15 = vcmp.eq.f32.partialorder %v8373_v15, 8.507059e+37  ;;  %v11493_v25 = vor.u32 %v12763_v48, %v11490_v9  ;;  %v11618_v33 = vld [vmem:[#allocation5 + $0xdb8] sm:$0xf0]  ;;  %v17472_v48 = vld [vmem:[#allocation91_spill] sm:$0xff]  ;;  %v17473_v9 = vld [vmem:[#allocation92_spill] sm:$0xff] }
 0x7c3   :  { %v16134_v44 = vadd.f32 %v7198_v34, %v7149_v51  ;;  %v16140_v16 = vmul.f32 0.5, %v8811_v31  ;;  %v8377_v36 = vsel %vm8374_vm15, %v8376_v28, %v8372_v37  ;;  %v13246_v5 = vld [vmem:[#allocation8 + $0x78] sm:$0xff]  ;;  %v11237_v22 = vor.u32 %v12699_v8, %v11234_v7  ;;  %v12759_v8 = vld [vmem:[#allocation5 + $0xc8c] sm:$0xf] }
 0x7c4   :  { %v7260_v40 = vadd.f32 %v7259_v42, %v7211_v50  ;;  %7405 = vmatmul.bf16.vlgmr.msrb.gmra.mxu0 %v17466_v13  ;;  %7454 = vmatmul.bf16.vlgmr.msrb.gmra.mxu1 %v17467_v2  ;;  %v8780_v52 = vmul.f32 %v13246_v5, %v8730_v23  ;;  %v11621_v18 = vor.u32 %v12795_v17, %v11618_v33  ;;  %v11362_v58 = vld [vmem:[#allocation5 + $0xbb8] sm:$0xf0]  ;;  %v12791_v33 = vld [vmem:[#allocation5 + $0xd8c] sm:$0xf] }
 0x7c5   :  { %v16146_v46 = vmul.f32 %v16140_v16, %v8024_v35  ;;  %9228 = vst [vmem:[#allocation14 + $0x70] sm:$0xff] %v16140_v16  ;;  %7693 = vmatpush.bf16.msra.mxu2 %v11493_v25  ;;  %7595 = vmatpush.bf16.msra.mxu0 %v11237_v22  ;;  %v11365_v11 = vor.u32 %v12731_v60, %v11362_v58  ;;  %v8025_v37 = vld [vmem:[#allocation13 + $0x38] sm:$0xff]  ;;  %v12695_v25 = vld [vmem:[#allocation5 + $0xa8c] sm:$0xf] }
 0x7c6   :  { %v13108_v57 = vpop.eup %13107  ;;  %7552 = vmatmul.bf16.vlgmr.msrb.gmra.mxu3 %v17469_v41  ;;  %v17471_v41 = vld [vmem:[#allocation62_spill] sm:$0xff] }
 0x7c7   :  { %7503 = vmatmul.bf16.vlgmr.msrb.gmra.mxu2 %v17468_v26  ;;  %v8796_v63 = vmul.f32 %v13108_v57, %v8377_v36  ;;  %7742 = vmatpush.bf16.msra.mxu3 %v11621_v18  ;;  %v17470_v36 = vld [vmem:[#allocation61_spill] sm:$0xff]  ;;  %v11218_v17 = vld [vmem:[#allocation5 + $0xa98] sm:$0xf0] }
 0x7c8   :  { %7644 = vmatpush.bf16.msra.mxu1 %v11365_v11  ;;  %v11602_v5 = vld [vmem:[#allocation5 + $0xd98] sm:$0xf0] }
 0x7c9   :  { %v7357_v10 = vpop.f32.mrf.mxu3  ;;  %v7212_v15 = vpop.f32.mrf.mxu0  ;;  %v8812_v34 = vadd.f32 %v8796_v63, %v8780_v52  ;;  %v11474_v63 = vld [vmem:[#allocation5 + $0xc98] sm:$0xf0]  ;;  %v11221_v52 = vor.u32 %v12695_v25, %v11218_v17  ;;  %v12787_v25 = vld [vmem:[#allocation5 + $0xd6c] sm:$0xf] }
 0x7ca   :  { %v7308_v12 = vpop.f32.mrf.mxu2  ;;  %v7213_v20 = vadd.f32 %v7212_v15, %v15433_v29  ;;  %v7261_v31 = vpop.f32.mrf.mxu1  ;;  %v11477_v7 = vor.u32 %v12759_v8, %v11474_v63  ;;  %v11202_v63 = vld [vmem:[#allocation5 + $0xa78] sm:$0xf0] }
 0x7cb   :  { %v7309_v51 = vadd.f32 %v7308_v12, %v7260_v40  ;;  %v16153_v50 = vmul.f32 0.5, %v8812_v34  ;;  %v11605_v12 = vor.u32 %v12791_v33, %v11602_v5  ;;  %7596 = vmatpush.bf16.msra.mxu0 %v11221_v52 }
 0x7cc   :  { %v7262_v42 = vadd.f32 %v7261_v31, %v7213_v20  ;;  %7694 = vmatpush.bf16.msra.mxu2 %v11477_v7  ;;  %v12727_v20 = vld [vmem:[#allocation5 + $0xb8c] sm:$0xf]  ;;  %v11346_v31 = vld [vmem:[#allocation5 + $0xb98] sm:$0xf0] }
 0x7cd   :  { %v16151_v30 = vadd.f32 %v7357_v10, %v7309_v51  ;;  %v16156_v28 = vmul.f32 %v16153_v50, %v8025_v37  ;;  %9229 = vst [vmem:[#allocation14 + $0x78] sm:$0xff] %v16153_v50  ;;  %7743 = vmatpush.bf16.msra.mxu3 %v11605_v12  ;;  %v11349_v58 = vor.u32 %v12727_v20, %v11346_v31  ;;  %v11586_v7 = vld [vmem:[#allocation5 + $0xd78] sm:$0xf0] }
 0x7ce   :  { %v11589_v33 = vor.u32 %v12787_v25, %v11586_v7  ;;  %9258 = dma.vmem_to_hbm [thread:$0]  %s9251_s3, 2048, %s9253_s20, [#allocation4], %s13490_s17, %s13490_s17, %s13491_s18  }
 0x7cf   :  { %7645 = vmatpush.bf16.msra.mxu1 %v11349_v58 }
 0x7d1   :  { %v7359_v13 = vpop.f32.mrf.mxu3  ;;  %v7215_v35 = vpop.f32.mrf.mxu0  ;;  %7744 = vmatpush.bf16.msra.mxu3 %v11589_v33 }
 0x7d2   :  { %v7310_v40 = vpop.f32.mrf.mxu2  ;;  %v7216_v23 = vadd.f32 %v7215_v35, %v15488_v27  ;;  %v7264_v2 = vpop.f32.mrf.mxu1 }
 0x7d3   :  { %v7311_v29 = vadd.f32 %v7310_v40, %v7262_v42 }
 0x7d4   :  { %v7265_v57 = vadd.f32 %v7264_v2, %v7216_v23  ;;  %7410 = vmatmul.bf16.gmra.mxu0 %v17470_v36  ;;  %7459 = vmatmul.bf16.gmra.mxu1 %v17471_v41  ;;  %v17474_v23 = vld [vmem:[#allocation65_spill] sm:$0xff]  ;;  %v17475_v2 = vld [vmem:[#allocation66_spill] sm:$0xff]  ;;  %v17477_v36 = vld [vmem:[#allocation96_spill] sm:$0xff] }
 0x7d5   :  { %v16160_v26 = vadd.f32 %v7359_v13, %v7311_v29  ;;  %v12755_v41 = vld [vmem:[#allocation5 + $0xc6c] sm:$0xf] }
 0x7d6   :  { %7557 = vmatmul.bf16.gmra.mxu3 %v17473_v9  ;;  %v12691_v9 = vld [vmem:[#allocation5 + $0xa6c] sm:$0xf] }
 0x7d7   :  { %7508 = vmatmul.bf16.gmra.mxu2 %v17472_v48  ;;  %v11458_v48 = vld [vmem:[#allocation5 + $0xc78] sm:$0xf0]  ;;  %v11205_v17 = vor.u32 %v12691_v9, %v11202_v63  ;;  %v12783_v9 = vld [vmem:[#allocation5 + $0xd4c] sm:$0xf] }
 0x7d8   :  { %v11461_v8 = vor.u32 %v12755_v41, %v11458_v48  ;;  %v11186_v48 = vld [vmem:[#allocation5 + $0xa58] sm:$0xf0] }
 0x7d9   :  { %v7362_v18 = vpop.f32.mrf.mxu3  ;;  %v7217_v51 = vpop.f32.mrf.mxu0  ;;  %7597 = vmatpush.bf16.msra.mxu0 %v11205_v17 }
 0x7da   :  { %v7313_v27 = vpop.f32.mrf.mxu2  ;;  %v7218_v10 = vadd.f32 %v7217_v51, %v15541_v53  ;;  %v7266_v15 = vpop.f32.mrf.mxu1  ;;  %7695 = vmatpush.bf16.msra.mxu2 %v11461_v8  ;;  %v12723_v51 = vld [vmem:[#allocation5 + $0xb6c] sm:$0xf]  ;;  %v11570_v8 = vld [vmem:[#allocation5 + $0xd58] sm:$0xf0] }
 0x7db   :  { %v7314_v22 = vadd.f32 %v7313_v27, %v7265_v57  ;;  %v17476_v57 = vld [vmem:[#allocation95_spill] sm:$0xff]  ;;  %v11573_v25 = vor.u32 %v12783_v9, %v11570_v8 }
 0x7dc   :  { %v7267_v60 = vadd.f32 %v7266_v15, %v7218_v10  ;;  %v11330_v10 = vld [vmem:[#allocation5 + $0xb78] sm:$0xf0] }
 0x7dd   :  { %v16167_v34 = vadd.f32 %v7362_v18, %v7314_v22  ;;  %v11333_v20 = vor.u32 %v12723_v51, %v11330_v10  ;;  %7745 = vmatpush.bf16.msra.mxu3 %v11573_v25 }
 0x7df   :  { %7646 = vmatpush.bf16.msra.mxu1 %v11333_v20 }
 0x7e1   :  { %v7364_v37 = vpop.f32.mrf.mxu3  ;;  %v7220_v40 = vpop.f32.mrf.mxu0 }
 0x7e2   :  { %v7315_v42 = vpop.f32.mrf.mxu2  ;;  %v7221_v29 = vadd.f32 %v7220_v40, %v15588_v62  ;;  %v7269_v13 = vpop.f32.mrf.mxu1 }
 0x7e3   :  { %v7316_v11 = vadd.f32 %v7315_v42, %v7267_v60 }
 0x7e4   :  { %v7270_v53 = vadd.f32 %v7269_v13, %v7221_v29  ;;  %7415 = vmatmul.bf16.gmra.mxu0 %v17474_v23  ;;  %7464 = vmatmul.bf16.gmra.mxu1 %v17475_v2  ;;  %v17478_v29 = vld [vmem:[#allocation69_spill] sm:$0xff]  ;;  %v17479_v13 = vld [vmem:[#allocation70_spill] sm:$0xff]  ;;  %v17481_v23 = vld [vmem:[#allocation100_spill] sm:$0xff] }
 0x7e5   :  { %v16170_v35 = vadd.f32 %v7364_v37, %v7316_v11  ;;  %v12751_v2 = vld [vmem:[#allocation5 + $0xc4c] sm:$0xf] }
 0x7e6   :  { %7562 = vmatmul.bf16.gmra.mxu3 %v17477_v36  ;;  %v12687_v36 = vld [vmem:[#allocation5 + $0xa4c] sm:$0xf] }
 0x7e7   :  { %7513 = vmatmul.bf16.gmra.mxu2 %v17476_v57  ;;  %v11442_v57 = vld [vmem:[#allocation5 + $0xc58] sm:$0xf0]  ;;  %v11189_v63 = vor.u32 %v12687_v36, %v11186_v48  ;;  %v12779_v36 = vld [vmem:[#allocation5 + $0xd2c] sm:$0xf] }
 0x7e8   :  { %v11445_v41 = vor.u32 %v12751_v2, %v11442_v57  ;;  %v11170_v57 = vld [vmem:[#allocation5 + $0xa38] sm:$0xf0] }
 0x7e9   :  { %v7367_v27 = vpop.f32.mrf.mxu3  ;;  %v7222_v52 = vpop.f32.mrf.mxu0  ;;  %7598 = vmatpush.bf16.msra.mxu0 %v11189_v63 }
 0x7ea   :  { %v7318_v62 = vpop.f32.mrf.mxu2  ;;  %v7223_v12 = vadd.f32 %v7222_v52, %v15629_v24  ;;  %v7271_v22 = vpop.f32.mrf.mxu1  ;;  %7696 = vmatpush.bf16.msra.mxu2 %v11445_v41  ;;  %v12719_v52 = vld [vmem:[#allocation5 + $0xb4c] sm:$0xf]  ;;  %v11554_v41 = vld [vmem:[#allocation5 + $0xd38] sm:$0xf0] }
 0x7eb   :  { %v7319_v5 = vadd.f32 %v7318_v62, %v7270_v53  ;;  %v17480_v53 = vld [vmem:[#allocation99_spill] sm:$0xff]  ;;  %v11557_v9 = vor.u32 %v12779_v36, %v11554_v41 }
 0x7ec   :  { %v7272_v15 = vadd.f32 %v7271_v22, %v7223_v12  ;;  %v11314_v12 = vld [vmem:[#allocation5 + $0xb58] sm:$0xf0] }
 0x7ed   :  { %v16177_v18 = vadd.f32 %v7367_v27, %v7319_v5  ;;  %v11317_v51 = vor.u32 %v12719_v52, %v11314_v12  ;;  %7746 = vmatpush.bf16.msra.mxu3 %v11557_v9 }
 0x7ef   :  { %7647 = vmatpush.bf16.msra.mxu1 %v11317_v51 }
 0x7f1   :  { %v7369_v58 = vpop.f32.mrf.mxu3  ;;  %v7225_v42 = vpop.f32.mrf.mxu0 }
 0x7f2   :  { %v7320_v31 = vpop.f32.mrf.mxu2  ;;  %v7226_v11 = vadd.f32 %v7225_v42, %v15687_v43  ;;  %v7274_v37 = vpop.f32.mrf.mxu1 }
 0x7f3   :  { %v7321_v60 = vadd.f32 %v7320_v31, %v7272_v15 }
 0x7f4   :  { %v7275_v24 = vadd.f32 %v7274_v37, %v7226_v11  ;;  %7420 = vmatmul.bf16.gmra.mxu0 %v17478_v29  ;;  %7469 = vmatmul.bf16.gmra.mxu1 %v17479_v13  ;;  %v17482_v11 = vld [vmem:[#allocation73_spill] sm:$0xff]  ;;  %v17483_v37 = vld [vmem:[#allocation74_spill] sm:$0xff]  ;;  %v17485_v29 = vld [vmem:[#allocation104_spill] sm:$0xff] }
 0x7f5   :  { %v16180_v40 = vadd.f32 %v7369_v58, %v7321_v60  ;;  %v12747_v13 = vld [vmem:[#allocation5 + $0xc2c] sm:$0xf] }
 0x7f6   :  { %7567 = vmatmul.bf16.gmra.mxu3 %v17481_v23  ;;  %v12683_v23 = vld [vmem:[#allocation5 + $0xa2c] sm:$0xf] }
 0x7f7   :  { %7518 = vmatmul.bf16.gmra.mxu2 %v17480_v53  ;;  %v11426_v53 = vld [vmem:[#allocation5 + $0xc38] sm:$0xf0]  ;;  %v11173_v48 = vor.u32 %v12683_v23, %v11170_v57  ;;  %v12775_v23 = vld [vmem:[#allocation5 + $0xd0c] sm:$0xf] }
 0x7f8   :  { %v11429_v2 = vor.u32 %v12747_v13, %v11426_v53  ;;  %v11154_v53 = vld [vmem:[#allocation5 + $0xa18] sm:$0xf0] }
 0x7f9   :  { %v7372_v62 = vpop.f32.mrf.mxu3  ;;  %v7227_v17 = vpop.f32.mrf.mxu0  ;;  %7599 = vmatpush.bf16.msra.mxu0 %v11173_v48 }
 0x7fa   :  { %v7323_v43 = vpop.f32.mrf.mxu2  ;;  %v7228_v33 = vadd.f32 %v7227_v17, %v15727_v19  ;;  %v7276_v5 = vpop.f32.mrf.mxu1  ;;  %7697 = vmatpush.bf16.msra.mxu2 %v11429_v2  ;;  %v12715_v17 = vld [vmem:[#allocation5 + $0xb2c] sm:$0xf]  ;;  %v11538_v2 = vld [vmem:[#allocation5 + $0xd18] sm:$0xf0] }
 0x7fb   :  { %v7324_v7 = vadd.f32 %v7323_v43, %v7275_v24  ;;  %v17484_v24 = vld [vmem:[#allocation103_spill] sm:$0xff]  ;;  %v11541_v36 = vor.u32 %v12775_v23, %v11538_v2 }
 0x7fc   :  { %v7277_v22 = vadd.f32 %v7276_v5, %v7228_v33  ;;  %v11298_v33 = vld [vmem:[#allocation5 + $0xb38] sm:$0xf0] }
 0x7fd   :  { %v16187_v27 = vadd.f32 %v7372_v62, %v7324_v7  ;;  %v11301_v52 = vor.u32 %v12715_v17, %v11298_v33  ;;  %7747 = vmatpush.bf16.msra.mxu3 %v11541_v36 }
 0x7ff   :  { %7648 = vmatpush.bf16.msra.mxu1 %v11301_v52 }
 0x801   :  { %v7374_v20 = vpop.f32.mrf.mxu3  ;;  %v7230_v31 = vpop.f32.mrf.mxu0 }
 0x802   :  { %v7325_v10 = vpop.f32.mrf.mxu2  ;;  %v7231_v60 = vadd.f32 %v7230_v31, %v15792_v47  ;;  %v7279_v58 = vpop.f32.mrf.mxu1 }
 0x803   :  { %v7326_v15 = vadd.f32 %v7325_v10, %v7277_v22 }
 0x804   :  { %v7280_v19 = vadd.f32 %v7279_v58, %v7231_v60  ;;  %7425 = vmatmul.bf16.gmra.mxu0 %v17482_v11  ;;  %7474 = vmatmul.bf16.gmra.mxu1 %v17483_v37  ;;  %v17486_v60 = vld [vmem:[#allocation77_spill] sm:$0xff]  ;;  %v17487_v58 = vld [vmem:[#allocation78_spill] sm:$0xff]  ;;  %v17489_v11 = vld [vmem:[#allocation108_spill] sm:$0xff] }
 0x805   :  { %v16190_v42 = vadd.f32 %v7374_v20, %v7326_v15  ;;  %v12743_v37 = vld [vmem:[#allocation5 + $0xc0c] sm:$0xf] }
 0x806   :  { %7572 = vmatmul.bf16.gmra.mxu3 %v17485_v29  ;;  %v12679_v29 = vld [vmem:[#allocation5 + $0xa0c] sm:$0xf] }
 0x807   :  { %7523 = vmatmul.bf16.gmra.mxu2 %v17484_v24  ;;  %v11410_v24 = vld [vmem:[#allocation5 + $0xc18] sm:$0xf0]  ;;  %v11157_v57 = vor.u32 %v12679_v29, %v11154_v53  ;;  %v12931_v29 = vld [vmem:[#allocation5 + $0x11ec] sm:$0xf] }
 0x808   :  { %v11413_v13 = vor.u32 %v12743_v37, %v11410_v24  ;;  %v11778_v24 = vld [vmem:[#allocation5 + $0xef8] sm:$0xf0] }
 0x809   :  { %v7377_v43 = vpop.f32.mrf.mxu3  ;;  %v7232_v63 = vpop.f32.mrf.mxu0  ;;  %7600 = vmatpush.bf16.msra.mxu0 %v11157_v57 }
 0x80a   :  { %v7328_v47 = vpop.f32.mrf.mxu2  ;;  %v7233_v25 = vadd.f32 %v7232_v63, %v15835_v21  ;;  %v7281_v7 = vpop.f32.mrf.mxu1  ;;  %7698 = vmatpush.bf16.msra.mxu2 %v11413_v13  ;;  %v12711_v63 = vld [vmem:[#allocation5 + $0xb0c] sm:$0xf]  ;;  %v12162_v13 = vld [vmem:[#allocation5 + $0x11f8] sm:$0xf0] }
 0x80b   :  { %v7329_v8 = vadd.f32 %v7328_v47, %v7280_v19  ;;  %v17488_v19 = vld [vmem:[#allocation107_spill] sm:$0xff]  ;;  %v12165_v23 = vor.u32 %v12931_v29, %v12162_v13 }
 0x80c   :  { %v7282_v5 = vadd.f32 %v7281_v7, %v7233_v25  ;;  %v11282_v25 = vld [vmem:[#allocation5 + $0xb18] sm:$0xf0] }
 0x80d   :  { %v16197_v62 = vadd.f32 %v7377_v43, %v7329_v8  ;;  %v11285_v17 = vor.u32 %v12711_v63, %v11282_v25  ;;  %7936 = vmatpush.bf16.msrb.mxu3 %v12165_v23 }
 0x80f   :  { %7649 = vmatpush.bf16.msra.mxu1 %v11285_v17 }
 0x811   :  { %v7379_v51 = vpop.f32.mrf.mxu3  ;;  %v7235_v10 = vpop.f32.mrf.mxu0 }
 0x812   :  { %v7330_v12 = vpop.f32.mrf.mxu2  ;;  %v7236_v15 = vadd.f32 %v7235_v10, %v15888_v61  ;;  %v7284_v20 = vpop.f32.mrf.mxu1 }
 0x813   :  { %v7331_v22 = vadd.f32 %v7330_v12, %v7282_v5 }
 0x814   :  { %v7285_v21 = vadd.f32 %v7284_v20, %v7236_v15  ;;  %7430 = vmatmul.bf16.gmra.mxu0 %v17486_v60  ;;  %7479 = vmatmul.bf16.gmra.mxu1 %v17487_v58  ;;  %v17490_v15 = vld [vmem:[#allocation81_spill] sm:$0xff]  ;;  %v17491_v20 = vld [vmem:[#allocation82_spill] sm:$0xff]  ;;  %v17493_v60 = vld [vmem:[#allocation112_spill] sm:$0xff] }
 0x815   :  { %v16200_v31 = vadd.f32 %v7379_v51, %v7331_v22  ;;  %v12899_v58 = vld [vmem:[#allocation5 + $0x10ec] sm:$0xf] }
 0x816   :  { %7577 = vmatmul.bf16.gmra.mxu3 %v17489_v11  ;;  %v12835_v11 = vld [vmem:[#allocation5 + $0xeec] sm:$0xf] }
 0x817   :  { %7528 = vmatmul.bf16.gmra.mxu2 %v17488_v19  ;;  %v12034_v19 = vld [vmem:[#allocation5 + $0x10f8] sm:$0xf0]  ;;  %v11781_v53 = vor.u32 %v12835_v11, %v11778_v24  ;;  %v12927_v11 = vld [vmem:[#allocation5 + $0x11cc] sm:$0xf] }
 0x818   :  { %v12037_v37 = vor.u32 %v12899_v58, %v12034_v19  ;;  %v11762_v19 = vld [vmem:[#allocation5 + $0xed8] sm:$0xf0] }
 0x819   :  { %v7382_v47 = vpop.f32.mrf.mxu3  ;;  %v7237_v48 = vpop.f32.mrf.mxu0  ;;  %7789 = vmatpush.bf16.msrb.mxu0 %v11781_v53 }
 0x81a   :  { %v7333_v61 = vpop.f32.mrf.mxu2  ;;  %v7238_v9 = vadd.f32 %v7237_v48, %v15933_v32  ;;  %v7286_v8 = vpop.f32.mrf.mxu1  ;;  %7887 = vmatpush.bf16.msrb.mxu2 %v12037_v37  ;;  %v12867_v48 = vld [vmem:[#allocation5 + $0xfec] sm:$0xf]  ;;  %v12146_v37 = vld [vmem:[#allocation5 + $0x11d8] sm:$0xf0] }
 0x81b   :  { %v7334_v41 = vadd.f32 %v7333_v61, %v7285_v21  ;;  %v17492_v21 = vld [vmem:[#allocation111_spill] sm:$0xff]  ;;  %v12149_v29 = vor.u32 %v12927_v11, %v12146_v37 }
 0x81c   :  { %v7287_v7 = vadd.f32 %v7286_v8, %v7238_v9  ;;  %v11906_v9 = vld [vmem:[#allocation5 + $0xff8] sm:$0xf0] }
 0x81d   :  { %v16207_v43 = vadd.f32 %v7382_v47, %v7334_v41  ;;  %v11909_v63 = vor.u32 %v12867_v48, %v11906_v9  ;;  %7937 = vmatpush.bf16.msrb.mxu3 %v12149_v29 }
 0x81f   :  { %7838 = vmatpush.bf16.msrb.mxu1 %v11909_v63 }
 0x821   :  { %v7384_v52 = vpop.f32.mrf.mxu3  ;;  %v7240_v12 = vpop.f32.mrf.mxu0 }
 0x822   :  { %v7335_v33 = vpop.f32.mrf.mxu2  ;;  %v7241_v22 = vadd.f32 %v7240_v12, %v15995_v14  ;;  %v7289_v51 = vpop.f32.mrf.mxu1 }
 0x823   :  { %v7336_v5 = vadd.f32 %v7335_v33, %v7287_v7 }
 0x824   :  { %v7290_v32 = vadd.f32 %v7289_v51, %v7241_v22  ;;  %7435 = vmatmul.bf16.gmra.mxu0 %v17490_v15  ;;  %7484 = vmatmul.bf16.gmra.mxu1 %v17491_v20  ;;  %v17494_v22 = vld [vmem:[#allocation85_spill] sm:$0xff]  ;;  %v17495_v51 = vld [vmem:[#allocation86_spill] sm:$0xff]  ;;  %v17497_v15 = vld [vmem:[#allocation116_spill] sm:$0xff] }
 0x825   :  { %v16210_v10 = vadd.f32 %v7384_v52, %v7336_v5  ;;  %v12895_v20 = vld [vmem:[#allocation5 + $0x10cc] sm:$0xf] }
 0x826   :  { %7582 = vmatmul.bf16.gmra.mxu3 %v17493_v60  ;;  %v12831_v60 = vld [vmem:[#allocation5 + $0xecc] sm:$0xf] }
 0x827   :  { %7533 = vmatmul.bf16.gmra.mxu2 %v17492_v21  ;;  %v12018_v21 = vld [vmem:[#allocation5 + $0x10d8] sm:$0xf0]  ;;  %v11765_v24 = vor.u32 %v12831_v60, %v11762_v19  ;;  %v12923_v60 = vld [vmem:[#allocation5 + $0x11ac] sm:$0xf] }
 0x828   :  { %v12021_v58 = vor.u32 %v12895_v20, %v12018_v21  ;;  %v11746_v21 = vld [vmem:[#allocation5 + $0xeb8] sm:$0xf0] }
 0x829   :  { %v7387_v61 = vpop.f32.mrf.mxu3  ;;  %v7242_v57 = vpop.f32.mrf.mxu0  ;;  %7790 = vmatpush.bf16.msrb.mxu0 %v11765_v24 }
 0x82a   :  { %v7338_v14 = vpop.f32.mrf.mxu2  ;;  %v7243_v36 = vadd.f32 %v7242_v57, %v16052_v59  ;;  %v7291_v41 = vpop.f32.mrf.mxu1  ;;  %7888 = vmatpush.bf16.msrb.mxu2 %v12021_v58  ;;  %v12863_v57 = vld [vmem:[#allocation5 + $0xfcc] sm:$0xf]  ;;  %v12130_v58 = vld [vmem:[#allocation5 + $0x11b8] sm:$0xf0] }
 0x82b   :  { %v7339_v2 = vadd.f32 %v7338_v14, %v7290_v32  ;;  %v17496_v32 = vld [vmem:[#allocation115_spill] sm:$0xff]  ;;  %v12133_v11 = vor.u32 %v12923_v60, %v12130_v58 }
 0x82c   :  { %v7292_v8 = vadd.f32 %v7291_v41, %v7243_v36  ;;  %v11890_v36 = vld [vmem:[#allocation5 + $0xfd8] sm:$0xf0] }
 0x82d   :  { %v16217_v47 = vadd.f32 %v7387_v61, %v7339_v2  ;;  %v11893_v48 = vor.u32 %v12863_v57, %v11890_v36  ;;  %7938 = vmatpush.bf16.msrb.mxu3 %v12133_v11 }
 0x82f   :  { %7839 = vmatpush.bf16.msrb.mxu1 %v11893_v48 }
 0x831   :  { %v7389_v17 = vpop.f32.mrf.mxu3  ;;  %v7245_v33 = vpop.f32.mrf.mxu0 }
 0x832   :  { %v7340_v25 = vpop.f32.mrf.mxu2  ;;  %v7246_v5 = vadd.f32 %v7245_v33, %v16098_v6  ;;  %v7294_v52 = vpop.f32.mrf.mxu1 }
 0x833   :  { %v7341_v7 = vadd.f32 %v7340_v25, %v7292_v8 }
 0x834   :  { %v7295_v59 = vadd.f32 %v7294_v52, %v7246_v5  ;;  %7440 = vmatmul.bf16.gmra.mxu0 %v17494_v22  ;;  %7489 = vmatmul.bf16.gmra.mxu1 %v17495_v51  ;;  %v17498_v5 = vld [vmem:[#allocation89_spill] sm:$0xff]  ;;  %v17499_v52 = vld [vmem:[#allocation90_spill] sm:$0xff]  ;;  %v17501_v22 = vld [vmem:[#allocation120_spill] sm:$0xff] }
 0x835   :  { %v16220_v12 = vadd.f32 %v7389_v17, %v7341_v7  ;;  %v12891_v51 = vld [vmem:[#allocation5 + $0x10ac] sm:$0xf] }
 0x836   :  { %7587 = vmatmul.bf16.gmra.mxu3 %v17497_v15  ;;  %v12827_v15 = vld [vmem:[#allocation5 + $0xeac] sm:$0xf] }
 0x837   :  { %7538 = vmatmul.bf16.gmra.mxu2 %v17496_v32  ;;  %v12002_v32 = vld [vmem:[#allocation5 + $0x10b8] sm:$0xf0]  ;;  %v11749_v19 = vor.u32 %v12827_v15, %v11746_v21  ;;  %v12919_v15 = vld [vmem:[#allocation5 + $0x118c] sm:$0xf] }
 0x838   :  { %v12005_v20 = vor.u32 %v12891_v51, %v12002_v32  ;;  %v11730_v32 = vld [vmem:[#allocation5 + $0xe98] sm:$0xf0] }
 0x839   :  { %v7392_v14 = vpop.f32.mrf.mxu3  ;;  %v7247_v53 = vpop.f32.mrf.mxu0  ;;  %7791 = vmatpush.bf16.msrb.mxu0 %v11749_v19 }
 0x83a   :  { %v7343_v6 = vpop.f32.mrf.mxu2  ;;  %v7248_v23 = vadd.f32 %v7247_v53, %v16134_v44  ;;  %v7296_v2 = vpop.f32.mrf.mxu1  ;;  %7889 = vmatpush.bf16.msrb.mxu2 %v12005_v20  ;;  %v12859_v53 = vld [vmem:[#allocation5 + $0xfac] sm:$0xf]  ;;  %v12114_v20 = vld [vmem:[#allocation5 + $0x1198] sm:$0xf0] }
 0x83b   :  { %v7344_v13 = vadd.f32 %v7343_v6, %v7295_v59  ;;  %v17500_v59 = vld [vmem:[#allocation119_spill] sm:$0xff]  ;;  %v12117_v60 = vor.u32 %v12919_v15, %v12114_v20 }
 0x83c   :  { %v7297_v41 = vadd.f32 %v7296_v2, %v7248_v23  ;;  %v11874_v23 = vld [vmem:[#allocation5 + $0xfb8] sm:$0xf0] }
 0x83d   :  { %v16227_v61 = vadd.f32 %v7392_v14, %v7344_v13  ;;  %v11877_v57 = vor.u32 %v12859_v53, %v11874_v23  ;;  %7939 = vmatpush.bf16.msrb.mxu3 %v12117_v60 }
 0x83f   :  { %7840 = vmatpush.bf16.msrb.mxu1 %v11877_v57 }
 0x841   :  { %v7394_v63 = vpop.f32.mrf.mxu3  ;;  %v7406_v25 = vpop.f32.mrf.mxu0 }
 0x842   :  { %v7345_v9 = vpop.f32.mrf.mxu2  ;;  %v7407_v7 = vadd.f32 %v7406_v25, %v16151_v30  ;;  %v7455_v17 = vpop.f32.mrf.mxu1 }
 0x843   :  { %v7346_v8 = vadd.f32 %v7345_v9, %v7297_v41 }
 0x844   :  { %v7456_v44 = vadd.f32 %v7455_v17, %v7407_v7  ;;  %7601 = vmatmul.bf16.vlgmr.msra.gmra.mxu0 %v17498_v5  ;;  %7650 = vmatmul.bf16.vlgmr.msra.gmra.mxu1 %v17499_v52  ;;  %v17502_v7 = vld [vmem:[#allocation93_spill] sm:$0xff]  ;;  %v17503_v17 = vld [vmem:[#allocation94_spill] sm:$0xff]  ;;  %v17505_v5 = vld [vmem:[#allocation124_spill] sm:$0xff] }
 0x845   :  { %v16230_v33 = vadd.f32 %v7394_v63, %v7346_v8  ;;  %v12887_v52 = vld [vmem:[#allocation5 + $0x108c] sm:$0xf] }
 0x846   :  { %7748 = vmatmul.bf16.vlgmr.msra.gmra.mxu3 %v17501_v22  ;;  %v12823_v22 = vld [vmem:[#allocation5 + $0xe8c] sm:$0xf] }
 0x847   :  { %7699 = vmatmul.bf16.vlgmr.msra.gmra.mxu2 %v17500_v59  ;;  %v11986_v59 = vld [vmem:[#allocation5 + $0x1098] sm:$0xf0]  ;;  %v11733_v21 = vor.u32 %v12823_v22, %v11730_v32  ;;  %v12915_v22 = vld [vmem:[#allocation5 + $0x116c] sm:$0xf] }
 0x848   :  { %v11989_v51 = vor.u32 %v12887_v52, %v11986_v59  ;;  %v11714_v59 = vld [vmem:[#allocation5 + $0xe78] sm:$0xf0] }
 0x849   :  { %v7553_v6 = vpop.f32.mrf.mxu3  ;;  %v7408_v24 = vpop.f32.mrf.mxu0  ;;  %7792 = vmatpush.bf16.msrb.mxu0 %v11733_v21 }
 0x84a   :  { %v7504_v30 = vpop.f32.mrf.mxu2  ;;  %v7409_v29 = vadd.f32 %v7408_v24, %v16160_v26  ;;  %v7457_v13 = vpop.f32.mrf.mxu1  ;;  %7890 = vmatpush.bf16.msrb.mxu2 %v11989_v51  ;;  %v12855_v24 = vld [vmem:[#allocation5 + $0xf8c] sm:$0xf]  ;;  %v12098_v51 = vld [vmem:[#allocation5 + $0x1178] sm:$0xf0] }
 0x84b   :  { %v7505_v37 = vadd.f32 %v7504_v30, %v7456_v44  ;;  %v17504_v44 = vld [vmem:[#allocation123_spill] sm:$0xff]  ;;  %v12101_v15 = vor.u32 %v12915_v22, %v12098_v51 }
 0x84c   :  { %v7458_v2 = vadd.f32 %v7457_v13, %v7409_v29  ;;  %v11858_v29 = vld [vmem:[#allocation5 + $0xf98] sm:$0xf0] }
 0x84d   :  { %v16237_v14 = vadd.f32 %v7553_v6, %v7505_v37  ;;  %v11861_v53 = vor.u32 %v12855_v24, %v11858_v29  ;;  %7940 = vmatpush.bf16.msrb.mxu3 %v12101_v15 }
 0x84f   :  { %7841 = vmatpush.bf16.msrb.mxu1 %v11861_v53 }
 0x851   :  { %v7555_v48 = vpop.f32.mrf.mxu3  ;;  %v7411_v9 = vpop.f32.mrf.mxu0 }
 0x852   :  { %v7506_v36 = vpop.f32.mrf.mxu2  ;;  %v7412_v8 = vadd.f32 %v7411_v9, %v16167_v34  ;;  %v7460_v63 = vpop.f32.mrf.mxu1 }
 0x853   :  { %v7507_v41 = vadd.f32 %v7506_v36, %v7458_v2 }
 0x854   :  { %v7461_v26 = vadd.f32 %v7460_v63, %v7412_v8  ;;  %7606 = vmatmul.bf16.gmra.mxu0 %v17502_v7  ;;  %7655 = vmatmul.bf16.gmra.mxu1 %v17503_v17  ;;  %v17506_v8 = vld [vmem:[#allocation97_spill] sm:$0xff]  ;;  %v17507_v63 = vld [vmem:[#allocation98_spill] sm:$0xff]  ;;  %v17509_v7 = vld [vmem:[#allocation128_spill] sm:$0xff] }
 0x855   :  { %v16240_v25 = vadd.f32 %v7555_v48, %v7507_v41  ;;  %v12883_v17 = vld [vmem:[#allocation5 + $0x106c] sm:$0xf] }
 0x856   :  { %7753 = vmatmul.bf16.gmra.mxu3 %v17505_v5  ;;  %v12819_v5 = vld [vmem:[#allocation5 + $0xe6c] sm:$0xf] }
 0x857   :  { %7704 = vmatmul.bf16.gmra.mxu2 %v17504_v44  ;;  %v11970_v44 = vld [vmem:[#allocation5 + $0x1078] sm:$0xf0]  ;;  %v11717_v32 = vor.u32 %v12819_v5, %v11714_v59  ;;  %v12911_v5 = vld [vmem:[#allocation5 + $0x114c] sm:$0xf] }
 0x858   :  { %v11973_v52 = vor.u32 %v12883_v17, %v11970_v44  ;;  %v11698_v44 = vld [vmem:[#allocation5 + $0xe58] sm:$0xf0] }
 0x859   :  { %v7558_v30 = vpop.f32.mrf.mxu3  ;;  %v7413_v19 = vpop.f32.mrf.mxu0  ;;  %7793 = vmatpush.bf16.msrb.mxu0 %v11717_v32 }
 0x85a   :  { %v7509_v34 = vpop.f32.mrf.mxu2  ;;  %v7414_v11 = vadd.f32 %v7413_v19, %v16170_v35  ;;  %v7462_v37 = vpop.f32.mrf.mxu1  ;;  %7891 = vmatpush.bf16.msrb.mxu2 %v11973_v52  ;;  %v12851_v19 = vld [vmem:[#allocation5 + $0xf6c] sm:$0xf]  ;;  %v12082_v52 = vld [vmem:[#allocation5 + $0x1158] sm:$0xf0] }
 0x85b   :  { %v7510_v58 = vadd.f32 %v7509_v34, %v7461_v26  ;;  %v17508_v26 = vld [vmem:[#allocation127_spill] sm:$0xff]  ;;  %v12085_v22 = vor.u32 %v12911_v5, %v12082_v52 }
 0x85c   :  { %v7463_v13 = vadd.f32 %v7462_v37, %v7414_v11  ;;  %v11842_v11 = vld [vmem:[#allocation5 + $0xf78] sm:$0xf0] }
 0x85d   :  { %v16247_v6 = vadd.f32 %v7558_v30, %v7510_v58  ;;  %v11845_v24 = vor.u32 %v12851_v19, %v11842_v11  ;;  %7941 = vmatpush.bf16.msrb.mxu3 %v12085_v22 }
 0x85f   :  { %7842 = vmatpush.bf16.msrb.mxu1 %v11845_v24 }
 0x861   :  { %v7560_v57 = vpop.f32.mrf.mxu3  ;;  %v7416_v36 = vpop.f32.mrf.mxu0 }
 0x862   :  { %v7511_v23 = vpop.f32.mrf.mxu2  ;;  %v7417_v41 = vadd.f32 %v7416_v36, %v16177_v18  ;;  %v7465_v48 = vpop.f32.mrf.mxu1 }
 0x863   :  { %v7512_v2 = vadd.f32 %v7511_v23, %v7463_v13 }
 0x864   :  { %v7466_v35 = vadd.f32 %v7465_v48, %v7417_v41  ;;  %7611 = vmatmul.bf16.gmra.mxu0 %v17506_v8  ;;  %7660 = vmatmul.bf16.gmra.mxu1 %v17507_v63  ;;  %v17510_v41 = vld [vmem:[#allocation101_spill] sm:$0xff]  ;;  %v17511_v48 = vld [vmem:[#allocation102_spill] sm:$0xff]  ;;  %v17513_v8 = vld [vmem:[#allocation132_spill] sm:$0xff] }
 0x865   :  { %v16250_v9 = vadd.f32 %v7560_v57, %v7512_v2  ;;  %v12879_v63 = vld [vmem:[#allocation5 + $0x104c] sm:$0xf] }
 0x866   :  { %7758 = vmatmul.bf16.gmra.mxu3 %v17509_v7  ;;  %v12815_v7 = vld [vmem:[#allocation5 + $0xe4c] sm:$0xf] }
 0x867   :  { %7709 = vmatmul.bf16.gmra.mxu2 %v17508_v26  ;;  %v11954_v26 = vld [vmem:[#allocation5 + $0x1058] sm:$0xf0]  ;;  %v11701_v59 = vor.u32 %v12815_v7, %v11698_v44  ;;  %v12907_v7 = vld [vmem:[#allocation5 + $0x112c] sm:$0xf] }
 0x868   :  { %v11957_v17 = vor.u32 %v12879_v63, %v11954_v26  ;;  %v11682_v26 = vld [vmem:[#allocation5 + $0xe38] sm:$0xf0] }
 0x869   :  { %v7563_v34 = vpop.f32.mrf.mxu3  ;;  %v7418_v21 = vpop.f32.mrf.mxu0  ;;  %7794 = vmatpush.bf16.msrb.mxu0 %v11701_v59 }
 0x86a   :  { %v7514_v18 = vpop.f32.mrf.mxu2  ;;  %v7419_v60 = vadd.f32 %v7418_v21, %v16180_v40  ;;  %v7467_v58 = vpop.f32.mrf.mxu1  ;;  %7892 = vmatpush.bf16.msrb.mxu2 %v11957_v17  ;;  %v12847_v21 = vld [vmem:[#allocation5 + $0xf4c] sm:$0xf]  ;;  %v12066_v17 = vld [vmem:[#allocation5 + $0x1138] sm:$0xf0] }
 0x86b   :  { %v7515_v20 = vadd.f32 %v7514_v18, %v7466_v35  ;;  %v17512_v35 = vld [vmem:[#allocation131_spill] sm:$0xff]  ;;  %v12069_v5 = vor.u32 %v12907_v7, %v12066_v17 }
 0x86c   :  { %v7468_v37 = vadd.f32 %v7467_v58, %v7419_v60  ;;  %v11826_v60 = vld [vmem:[#allocation5 + $0xf58] sm:$0xf0] }
 0x86d   :  { %v16257_v30 = vadd.f32 %v7563_v34, %v7515_v20  ;;  %v11829_v19 = vor.u32 %v12847_v21, %v11826_v60  ;;  %7942 = vmatpush.bf16.msrb.mxu3 %v12069_v5 }
 0x86f   :  { %7843 = vmatpush.bf16.msrb.mxu1 %v11829_v19 }
 0x871   :  { %v7565_v53 = vpop.f32.mrf.mxu3  ;;  %v7421_v23 = vpop.f32.mrf.mxu0 }
 0x872   :  { %v7516_v29 = vpop.f32.mrf.mxu2  ;;  %v7422_v2 = vadd.f32 %v7421_v23, %v16187_v27  ;;  %v7470_v57 = vpop.f32.mrf.mxu1 }
 0x873   :  { %v7517_v13 = vadd.f32 %v7516_v29, %v7468_v37 }
 0x874   :  { %v7471_v40 = vadd.f32 %v7470_v57, %v7422_v2  ;;  %7616 = vmatmul.bf16.gmra.mxu0 %v17510_v41  ;;  %7665 = vmatmul.bf16.gmra.mxu1 %v17511_v48  ;;  %v17514_v2 = vld [vmem:[#allocation105_spill] sm:$0xff]  ;;  %v17515_v57 = vld [vmem:[#allocation106_spill] sm:$0xff]  ;;  %v17517_v41 = vld [vmem:[#allocation136_spill] sm:$0xff] }
 0x875   :  { %v16260_v36 = vadd.f32 %v7565_v53, %v7517_v13  ;;  %v12875_v48 = vld [vmem:[#allocation5 + $0x102c] sm:$0xf] }
 0x876   :  { %7763 = vmatmul.bf16.gmra.mxu3 %v17513_v8  ;;  %v12811_v8 = vld [vmem:[#allocation5 + $0xe2c] sm:$0xf] }
 0x877   :  { %7714 = vmatmul.bf16.gmra.mxu2 %v17512_v35  ;;  %v11938_v35 = vld [vmem:[#allocation5 + $0x1038] sm:$0xf0]  ;;  %v11685_v44 = vor.u32 %v12811_v8, %v11682_v26  ;;  %v12903_v8 = vld [vmem:[#allocation5 + $0x110c] sm:$0xf] }
 0x878   :  { %v11941_v63 = vor.u32 %v12875_v48, %v11938_v35  ;;  %v11666_v35 = vld [vmem:[#allocation5 + $0xe18] sm:$0xf0] }
 0x879   :  { %v7568_v18 = vpop.f32.mrf.mxu3  ;;  %v7423_v32 = vpop.f32.mrf.mxu0  ;;  %7795 = vmatpush.bf16.msrb.mxu0 %v11685_v44 }
 0x87a   :  { %v7519_v27 = vpop.f32.mrf.mxu2  ;;  %v7424_v15 = vadd.f32 %v7423_v32, %v16190_v42  ;;  %v7472_v20 = vpop.f32.mrf.mxu1  ;;  %7893 = vmatpush.bf16.msrb.mxu2 %v11941_v63  ;;  %v12843_v32 = vld [vmem:[#allocation5 + $0xf2c] sm:$0xf]  ;;  %v12050_v63 = vld [vmem:[#allocation5 + $0x1118] sm:$0xf0] }
 0x87b   :  { %v7520_v51 = vadd.f32 %v7519_v27, %v7471_v40  ;;  %v17516_v40 = vld [vmem:[#allocation135_spill] sm:$0xff]  ;;  %v12053_v7 = vor.u32 %v12903_v8, %v12050_v63 }
 0x87c   :  { %v7473_v58 = vadd.f32 %v7472_v20, %v7424_v15  ;;  %v11810_v15 = vld [vmem:[#allocation5 + $0xf38] sm:$0xf0] }
 0x87d   :  { %v16267_v34 = vadd.f32 %v7568_v18, %v7520_v51  ;;  %v11813_v21 = vor.u32 %v12843_v32, %v11810_v15  ;;  %7943 = vmatpush.bf16.msrb.mxu3 %v12053_v7 }
 0x87f   :  { %7844 = vmatpush.bf16.msrb.mxu1 %v11813_v21 }
 0x881   :  { %v7570_v24 = vpop.f32.mrf.mxu3  ;;  %v7426_v29 = vpop.f32.mrf.mxu0 }
 0x882   :  { %v7521_v11 = vpop.f32.mrf.mxu2  ;;  %v7427_v13 = vadd.f32 %v7426_v29, %v16197_v62  ;;  %v7475_v53 = vpop.f32.mrf.mxu1 }
 0x883   :  { %v7522_v37 = vadd.f32 %v7521_v11, %v7473_v58 }
 0x884   :  { %v7476_v42 = vadd.f32 %v7475_v53, %v7427_v13  ;;  %7621 = vmatmul.bf16.gmra.mxu0 %v17514_v2  ;;  %7670 = vmatmul.bf16.gmra.mxu1 %v17515_v57  ;;  %v17518_v13 = vld [vmem:[#allocation109_spill] sm:$0xff]  ;;  %v17519_v53 = vld [vmem:[#allocation110_spill] sm:$0xff]  ;;  %v17521_v2 = vld [vmem:[#allocation140_spill] sm:$0xff] }
 0x885   :  { %v16270_v23 = vadd.f32 %v7570_v24, %v7522_v37  ;;  %v12871_v57 = vld [vmem:[#allocation5 + $0x100c] sm:$0xf] }
 0x886   :  { %7768 = vmatmul.bf16.gmra.mxu3 %v17517_v41  ;;  %v12807_v41 = vld [vmem:[#allocation5 + $0xe0c] sm:$0xf] }
 0x887   :  { %7719 = vmatmul.bf16.gmra.mxu2 %v17516_v40  ;;  %v11922_v40 = vld [vmem:[#allocation5 + $0x1018] sm:$0xf0]  ;;  %v11669_v26 = vor.u32 %v12807_v41, %v11666_v35 }
 0x888   :  { %v11925_v48 = vor.u32 %v12871_v57, %v11922_v40 }
 0x889   :  { %v7573_v27 = vpop.f32.mrf.mxu3  ;;  %v7428_v59 = vpop.f32.mrf.mxu0  ;;  %7796 = vmatpush.bf16.msrb.mxu0 %v11669_v26 }
 0x88a   :  { %v7524_v62 = vpop.f32.mrf.mxu2  ;;  %v7429_v22 = vadd.f32 %v7428_v59, %v16200_v31  ;;  %v7477_v51 = vpop.f32.mrf.mxu1  ;;  %7894 = vmatpush.bf16.msrb.mxu2 %v11925_v48  ;;  %v12839_v59 = vld [vmem:[#allocation5 + $0xf0c] sm:$0xf] }
 0x88b   :  { %v7525_v52 = vadd.f32 %v7524_v62, %v7476_v42  ;;  %v17520_v42 = vld [vmem:[#allocation139_spill] sm:$0xff] }
 0x88c   :  { %v7478_v20 = vadd.f32 %v7477_v51, %v7429_v22  ;;  %v11794_v22 = vld [vmem:[#allocation5 + $0xf18] sm:$0xf0] }
 0x88d   :  { %v16277_v18 = vadd.f32 %v7573_v27, %v7525_v52  ;;  %v11797_v32 = vor.u32 %v12839_v59, %v11794_v22 }
 0x88f   :  { %7845 = vmatpush.bf16.msrb.mxu1 %v11797_v32 }
 0x891   :  { %v7575_v19 = vpop.f32.mrf.mxu3  ;;  %v7431_v11 = vpop.f32.mrf.mxu0 }
 0x892   :  { %v7526_v60 = vpop.f32.mrf.mxu2  ;;  %v7432_v37 = vadd.f32 %v7431_v11, %v16207_v43  ;;  %v7480_v24 = vpop.f32.mrf.mxu1 }
 0x893   :  { %v7527_v58 = vadd.f32 %v7526_v60, %v7478_v20 }
 0x894   :  { %v7481_v31 = vadd.f32 %v7480_v24, %v7432_v37  ;;  %7626 = vmatmul.bf16.gmra.mxu0 %v17518_v13  ;;  %7675 = vmatmul.bf16.gmra.mxu1 %v17519_v53  ;;  %v17522_v37 = vld [vmem:[#allocation113_spill] sm:$0xff]  ;;  %v17523_v24 = vld [vmem:[#allocation114_spill] sm:$0xff]  ;;  %v17525_v13 = vld [vmem:[#allocation144_spill] sm:$0xff] }
 0x895   :  { %v16280_v29 = vadd.f32 %v7575_v19, %v7527_v58 }
 0x896   :  { %7773 = vmatmul.bf16.gmra.mxu3 %v17521_v2 }
 0x897   :  { %7724 = vmatmul.bf16.gmra.mxu2 %v17520_v42 }
 0x899   :  { %v7578_v62 = vpop.f32.mrf.mxu3  ;;  %v7433_v44 = vpop.f32.mrf.mxu0 }
 0x89a   :  { %v7529_v43 = vpop.f32.mrf.mxu2  ;;  %v7434_v5 = vadd.f32 %v7433_v44, %v16210_v10  ;;  %v7482_v52 = vpop.f32.mrf.mxu1  ;;  %v17526_v44 = vld [vmem:[#allocation117_spill] sm:$0xff] }
 0x89b   :  { %v7530_v17 = vadd.f32 %v7529_v43, %v7481_v31  ;;  %v17524_v31 = vld [vmem:[#allocation143_spill] sm:$0xff] }
 0x89c   :  { %v7483_v51 = vadd.f32 %v7482_v52, %v7434_v5  ;;  %v17527_v5 = vld [vmem:[#allocation118_spill] sm:$0xff]  ;;  %v17528_v52 = vld [vmem:[#allocation147_spill] sm:$0xff] }
 0x89d   :  { %v16287_v27 = vadd.f32 %v7578_v62, %v7530_v17 }
 0x8a1   :  { %v7580_v21 = vpop.f32.mrf.mxu3  ;;  %v7436_v60 = vpop.f32.mrf.mxu0 }
 0x8a2   :  { %v7531_v15 = vpop.f32.mrf.mxu2  ;;  %v7437_v58 = vadd.f32 %v7436_v60, %v16217_v47  ;;  %v7485_v19 = vpop.f32.mrf.mxu1 }
 0x8a3   :  { %v7532_v20 = vadd.f32 %v7531_v15, %v7483_v51 }
 0x8a4   :  { %v7486_v10 = vadd.f32 %v7485_v19, %v7437_v58  ;;  %7631 = vmatmul.bf16.gmra.mxu0 %v17522_v37  ;;  %7680 = vmatmul.bf16.gmra.mxu1 %v17523_v24 }
 0x8a5   :  { %v16290_v11 = vadd.f32 %v7580_v21, %v7532_v20 }
 0x8a6   :  { %7778 = vmatmul.bf16.gmra.mxu3 %v17525_v13 }
 0x8a7   :  { %7729 = vmatmul.bf16.gmra.mxu2 %v17524_v31 }
 0x8a9   :  { %v7583_v2 = vpop.f32.mrf.mxu3  ;;  %v7438_v57 = vpop.f32.mrf.mxu0 }
 0x8aa   :  { %v7534_v53 = vpop.f32.mrf.mxu2  ;;  %v7439_v40 = vadd.f32 %v7438_v57, %v16220_v12  ;;  %v7487_v41 = vpop.f32.mrf.mxu1  ;;  %v17529_v12 = vld [vmem:[#allocation148_spill] sm:$0xff] }
 0x8ab   :  { %v7535_v42 = vadd.f32 %v7534_v53, %v7486_v10  ;;  %v17530_v53 = vld [vmem:[#allocation121_spill] sm:$0xff] }
 0x8ac   :  { %v7488_v48 = vadd.f32 %v7487_v41, %v7439_v40 }
 0x8ad   :  { %v16297_v47 = vadd.f32 %v7583_v2, %v7535_v42  ;;  %v17531_v42 = vld [vmem:[#allocation122_spill] sm:$0xff]  ;;  %v17532_v2 = vld [vmem:[#allocation151_spill] sm:$0xff] }
 0x8b1   :  { %v7585_v63 = vpop.f32.mrf.mxu3  ;;  %v7441_v43 = vpop.f32.mrf.mxu0 }
 0x8b2   :  { %v7536_v35 = vpop.f32.mrf.mxu2  ;;  %v7442_v26 = vadd.f32 %v7441_v43, %v16227_v61  ;;  %v7490_v7 = vpop.f32.mrf.mxu1 }
 0x8b3   :  { %v7537_v8 = vadd.f32 %v7536_v35, %v7488_v48 }
 0x8b4   :  { %v7491_v62 = vadd.f32 %v7490_v7, %v7442_v26  ;;  %7636 = vmatmul.bf16.gmra.mxu0 %v17526_v44  ;;  %7685 = vmatmul.bf16.gmra.mxu1 %v17527_v5 }
 0x8b5   :  { %v16300_v17 = vadd.f32 %v7585_v63, %v7537_v8 }
 0x8b6   :  { %7783 = vmatmul.bf16.gmra.mxu3 %v17529_v12 }
 0x8b7   :  { %7734 = vmatmul.bf16.gmra.mxu2 %v17528_v52 }
 0x8b9   :  { %v7588_v51 = vpop.f32.mrf.mxu3  ;;  %v7443_v32 = vpop.f32.mrf.mxu0 }
 0x8ba   :  { %v7539_v59 = vpop.f32.mrf.mxu2  ;;  %v7444_v15 = vadd.f32 %v7443_v32, %v16230_v33  ;;  %v7492_v20 = vpop.f32.mrf.mxu1  ;;  %v17533_v33 = vld [vmem:[#allocation152_spill] sm:$0xff] }
 0x8bb   :  { %v7540_v22 = vadd.f32 %v7539_v59, %v7491_v62  ;;  %v17534_v59 = vld [vmem:[#allocation125_spill] sm:$0xff] }
 0x8bc   :  { %v7493_v21 = vadd.f32 %v7492_v20, %v7444_v15 }
 0x8bd   :  { %v16307_v61 = vadd.f32 %v7588_v51, %v7540_v22  ;;  %v17535_v22 = vld [vmem:[#allocation126_spill] sm:$0xff]  ;;  %v17536_v51 = vld [vmem:[#allocation153_spill] sm:$0xff] }
 0x8c1   :  { %v7590_v19 = vpop.f32.mrf.mxu3  ;;  %v7602_v10 = vpop.f32.mrf.mxu0 }
 0x8c2   :  { %v7541_v60 = vpop.f32.mrf.mxu2  ;;  %v7603_v37 = vadd.f32 %v7602_v10, %v16237_v14  ;;  %v7651_v24 = vpop.f32.mrf.mxu1 }
 0x8c3   :  { %v7542_v58 = vadd.f32 %v7541_v60, %v7493_v21 }
 0x8c4   :  { %v7652_v13 = vadd.f32 %v7651_v24, %v7603_v37  ;;  %7797 = vmatmul.bf16.vlgmr.msrb.gmra.mxu0 %v17530_v53  ;;  %7846 = vmatmul.bf16.vlgmr.msrb.gmra.mxu1 %v17531_v42 }
 0x8c5   :  { %v16310_v31 = vadd.f32 %v7590_v19, %v7542_v58 }
 0x8c6   :  { %7944 = vmatmul.bf16.vlgmr.msrb.gmra.mxu3 %v17533_v33 }
 0x8c7   :  { %7895 = vmatmul.bf16.vlgmr.msrb.gmra.mxu2 %v17532_v2 }
 0x8c9   :  { %v7749_v41 = vpop.f32.mrf.mxu3  ;;  %v7604_v48 = vpop.f32.mrf.mxu0 }
 0x8ca   :  { %v7700_v57 = vpop.f32.mrf.mxu2  ;;  %v7605_v35 = vadd.f32 %v7604_v48, %v16240_v25  ;;  %v7653_v8 = vpop.f32.mrf.mxu1  ;;  %v17537_v25 = vld [vmem:[#allocation154_spill] sm:$0xff] }
 0x8cb   :  { %v7701_v40 = vadd.f32 %v7700_v57, %v7652_v13  ;;  %v17538_v57 = vld [vmem:[#allocation129_spill] sm:$0xff] }
 0x8cc   :  { %v7654_v63 = vadd.f32 %v7653_v8, %v7605_v35 }
 0x8cd   :  { %v16317_v14 = vadd.f32 %v7749_v41, %v7701_v40  ;;  %v17539_v40 = vld [vmem:[#allocation130_spill] sm:$0xff]  ;;  %v17540_v41 = vld [vmem:[#allocation155_spill] sm:$0xff] }
 0x8d1   :  { %v7751_v7 = vpop.f32.mrf.mxu3  ;;  %v7607_v62 = vpop.f32.mrf.mxu0 }
 0x8d2   :  { %v7702_v43 = vpop.f32.mrf.mxu2  ;;  %v7608_v44 = vadd.f32 %v7607_v62, %v16247_v6  ;;  %v7656_v5 = vpop.f32.mrf.mxu1 }
 0x8d3   :  { %v7703_v26 = vadd.f32 %v7702_v43, %v7654_v63 }
 0x8d4   :  { %v7657_v12 = vadd.f32 %v7656_v5, %v7608_v44  ;;  %7802 = vmatmul.bf16.gmra.mxu0 %v17534_v59  ;;  %7851 = vmatmul.bf16.gmra.mxu1 %v17535_v22 }
 0x8d5   :  { %v16320_v52 = vadd.f32 %v7751_v7, %v7703_v26 }
 0x8d6   :  { %7949 = vmatmul.bf16.gmra.mxu3 %v17537_v25 }
 0x8d7   :  { %7900 = vmatmul.bf16.gmra.mxu2 %v17536_v51 }
 0x8d9   :  { %v7754_v20 = vpop.f32.mrf.mxu3  ;;  %v7609_v21 = vpop.f32.mrf.mxu0 }
 0x8da   :  { %v7705_v32 = vpop.f32.mrf.mxu2  ;;  %v7610_v60 = vadd.f32 %v7609_v21, %v16250_v9  ;;  %v7658_v58 = vpop.f32.mrf.mxu1  ;;  %v17541_v9 = vld [vmem:[#allocation156_spill] sm:$0xff] }
 0x8db   :  { %v7706_v15 = vadd.f32 %v7705_v32, %v7657_v12  ;;  %v17542_v32 = vld [vmem:[#allocation133_spill] sm:$0xff] }
 0x8dc   :  { %v7659_v19 = vadd.f32 %v7658_v58, %v7610_v60 }
 0x8dd   :  { %v16327_v6 = vadd.f32 %v7754_v20, %v7706_v15  ;;  %v17543_v15 = vld [vmem:[#allocation134_spill] sm:$0xff]  ;;  %v17544_v20 = vld [vmem:[#allocation157_spill] sm:$0xff] }
 0x8e1   :  { %v7756_v24 = vpop.f32.mrf.mxu3  ;;  %v7612_v13 = vpop.f32.mrf.mxu0 }
 0x8e2   :  { %v7707_v10 = vpop.f32.mrf.mxu2  ;;  %v7613_v53 = vadd.f32 %v7612_v13, %v16257_v30  ;;  %v7661_v42 = vpop.f32.mrf.mxu1 }
 0x8e3   :  { %v7708_v37 = vadd.f32 %v7707_v10, %v7659_v19 }
 0x8e4   :  { %v7662_v33 = vadd.f32 %v7661_v42, %v7613_v53  ;;  %7807 = vmatmul.bf16.gmra.mxu0 %v17538_v57  ;;  %7856 = vmatmul.bf16.gmra.mxu1 %v17539_v40 }
 0x8e5   :  { %v16330_v2 = vadd.f32 %v7756_v24, %v7708_v37 }
 0x8e6   :  { %7954 = vmatmul.bf16.gmra.mxu3 %v17541_v9 }
 0x8e7   :  { %7905 = vmatmul.bf16.gmra.mxu2 %v17540_v41 }
 0x8e9   :  { %v7759_v8 = vpop.f32.mrf.mxu3  ;;  %v7614_v63 = vpop.f32.mrf.mxu0 }
 0x8ea   :  { %v7710_v48 = vpop.f32.mrf.mxu2  ;;  %v7615_v43 = vadd.f32 %v7614_v63, %v16260_v36  ;;  %v7663_v26 = vpop.f32.mrf.mxu1  ;;  %v17545_v36 = vld [vmem:[#allocation158_spill] sm:$0xff] }
 0x8eb   :  { %v7711_v35 = vadd.f32 %v7710_v48, %v7662_v33  ;;  %v17546_v48 = vld [vmem:[#allocation137_spill] sm:$0xff] }
 0x8ec   :  { %v7664_v7 = vadd.f32 %v7663_v26, %v7615_v43 }
 0x8ed   :  { %v16337_v30 = vadd.f32 %v7759_v8, %v7711_v35  ;;  %v17547_v35 = vld [vmem:[#allocation138_spill] sm:$0xff]  ;;  %v17548_v8 = vld [vmem:[#allocation159_spill] sm:$0xff] }
 0x8f1   :  { %v7761_v5 = vpop.f32.mrf.mxu3  ;;  %v7617_v12 = vpop.f32.mrf.mxu0 }
 0x8f2   :  { %v7712_v62 = vpop.f32.mrf.mxu2  ;;  %v7618_v59 = vadd.f32 %v7617_v12, %v16267_v34  ;;  %v7666_v22 = vpop.f32.mrf.mxu1 }
 0x8f3   :  { %v7713_v44 = vadd.f32 %v7712_v62, %v7664_v7 }
 0x8f4   :  { %v7667_v25 = vadd.f32 %v7666_v22, %v7618_v59  ;;  %7812 = vmatmul.bf16.gmra.mxu0 %v17542_v32  ;;  %7861 = vmatmul.bf16.gmra.mxu1 %v17543_v15 }
 0x8f5   :  { %v16340_v51 = vadd.f32 %v7761_v5, %v7713_v44 }
 0x8f6   :  { %7959 = vmatmul.bf16.gmra.mxu3 %v17545_v36 }
 0x8f7   :  { %7910 = vmatmul.bf16.gmra.mxu2 %v17544_v20 }
 0x8f9   :  { %v7764_v58 = vpop.f32.mrf.mxu3  ;;  %v7619_v19 = vpop.f32.mrf.mxu0 }
 0x8fa   :  { %v7715_v21 = vpop.f32.mrf.mxu2  ;;  %v7620_v10 = vadd.f32 %v7619_v19, %v16270_v23  ;;  %v7668_v37 = vpop.f32.mrf.mxu1  ;;  %v17549_v23 = vld [vmem:[#allocation160_spill] sm:$0xff] }
 0x8fb   :  { %v7716_v60 = vadd.f32 %v7715_v21, %v7667_v25  ;;  %v17550_v21 = vld [vmem:[#allocation141_spill] sm:$0xff] }
 0x8fc   :  { %v7669_v24 = vadd.f32 %v7668_v37, %v7620_v10 }
 0x8fd   :  { %v16347_v34 = vadd.f32 %v7764_v58, %v7716_v60  ;;  %v17551_v60 = vld [vmem:[#allocation142_spill] sm:$0xff]  ;;  %v17552_v58 = vld [vmem:[#allocation161_spill] sm:$0xff] }
 0x901   :  { %v7766_v42 = vpop.f32.mrf.mxu3  ;;  %v7622_v33 = vpop.f32.mrf.mxu0 }
 0x902   :  { %v7717_v13 = vpop.f32.mrf.mxu2  ;;  %v7623_v57 = vadd.f32 %v7622_v33, %v16277_v18  ;;  %v7671_v40 = vpop.f32.mrf.mxu1 }
 0x903   :  { %v7718_v53 = vadd.f32 %v7717_v13, %v7669_v24 }
 0x904   :  { %v7672_v9 = vadd.f32 %v7671_v40, %v7623_v57  ;;  %7817 = vmatmul.bf16.gmra.mxu0 %v17546_v48  ;;  %7866 = vmatmul.bf16.gmra.mxu1 %v17547_v35 }
 0x905   :  { %v16350_v41 = vadd.f32 %v7766_v42, %v7718_v53 }
 0x906   :  { %7964 = vmatmul.bf16.gmra.mxu3 %v17549_v23 }
 0x907   :  { %7915 = vmatmul.bf16.gmra.mxu2 %v17548_v8 }
 0x909   :  { %v7769_v26 = vpop.f32.mrf.mxu3  ;;  %v7624_v7 = vpop.f32.mrf.mxu0 }
 0x90a   :  { %v7720_v63 = vpop.f32.mrf.mxu2  ;;  %v7625_v62 = vadd.f32 %v7624_v7, %v16280_v29  ;;  %v7673_v44 = vpop.f32.mrf.mxu1  ;;  %v17553_v29 = vld [vmem:[#allocation162_spill] sm:$0xff] }
 0x90b   :  { %v7721_v43 = vadd.f32 %v7720_v63, %v7672_v9  ;;  %v17554_v63 = vld [vmem:[#allocation145_spill] sm:$0xff] }
 0x90c   :  { %v7674_v5 = vadd.f32 %v7673_v44, %v7625_v62 }
 0x90d   :  { %v16357_v18 = vadd.f32 %v7769_v26, %v7721_v43  ;;  %v17555_v43 = vld [vmem:[#allocation146_spill] sm:$0xff]  ;;  %v17556_v26 = vld [vmem:[#allocation163_spill] sm:$0xff] }
 0x911   :  { %v7771_v22 = vpop.f32.mrf.mxu3  ;;  %v7627_v25 = vpop.f32.mrf.mxu0 }
 0x912   :  { %v7722_v12 = vpop.f32.mrf.mxu2  ;;  %v7628_v32 = vadd.f32 %v7627_v25, %v16287_v27  ;;  %v7676_v15 = vpop.f32.mrf.mxu1 }
 0x913   :  { %v7723_v59 = vadd.f32 %v7722_v12, %v7674_v5 }
 0x914   :  { %v7677_v36 = vadd.f32 %v7676_v15, %v7628_v32  ;;  %7822 = vmatmul.bf16.gmra.mxu0 %v17550_v21  ;;  %7871 = vmatmul.bf16.gmra.mxu1 %v17551_v60 }
 0x915   :  { %v16360_v20 = vadd.f32 %v7771_v22, %v7723_v59 }
 0x916   :  { %7969 = vmatmul.bf16.gmra.mxu3 %v17553_v29 }
 0x917   :  { %7920 = vmatmul.bf16.gmra.mxu2 %v17552_v58 }
 0x919   :  { %v7774_v37 = vpop.f32.mrf.mxu3  ;;  %v7629_v24 = vpop.f32.mrf.mxu0 }
 0x91a   :  { %v7725_v19 = vpop.f32.mrf.mxu2  ;;  %v7630_v13 = vadd.f32 %v7629_v24, %v16290_v11  ;;  %v7678_v53 = vpop.f32.mrf.mxu1  ;;  %v17557_v11 = vld [vmem:[#allocation164_spill] sm:$0xff] }
 0x91b   :  { %v7726_v10 = vadd.f32 %v7725_v19, %v7677_v36  ;;  %v17558_v19 = vld [vmem:[#allocation149_spill] sm:$0xff] }
 0x91c   :  { %v7679_v42 = vadd.f32 %v7678_v53, %v7630_v13 }
 0x91d   :  { %v16367_v27 = vadd.f32 %v7774_v37, %v7726_v10  ;;  %v17559_v10 = vld [vmem:[#allocation150_spill] sm:$0xff]  ;;  %v17560_v37 = vld [vmem:[#allocation165_spill] sm:$0xff] }
 0x921   :  { %v7776_v40 = vpop.f32.mrf.mxu3  ;;  %v7632_v9 = vpop.f32.mrf.mxu0 }
 0x922   :  { %v7727_v33 = vpop.f32.mrf.mxu2  ;;  %v7633_v48 = vadd.f32 %v7632_v9, %v16297_v47  ;;  %v7681_v35 = vpop.f32.mrf.mxu1 }
 0x923   :  { %v7728_v57 = vadd.f32 %v7727_v33, %v7679_v42 }
 0x924   :  { %v7682_v23 = vadd.f32 %v7681_v35, %v7633_v48  ;;  %7827 = vmatmul.bf16.gmra.mxu0 %v17554_v63  ;;  %7876 = vmatmul.bf16.gmra.mxu1 %v17555_v43 }
 0x925   :  { %v16370_v8 = vadd.f32 %v7776_v40, %v7728_v57 }
 0x926   :  { %7974 = vmatmul.bf16.gmra.mxu3 %v17557_v11 }
 0x927   :  { %7925 = vmatmul.bf16.gmra.mxu2 %v17556_v26 }
 0x929   :  { %v7779_v44 = vpop.f32.mrf.mxu3  ;;  %v7634_v5 = vpop.f32.mrf.mxu0 }
 0x92a   :  { %v7730_v7 = vpop.f32.mrf.mxu2  ;;  %v7635_v12 = vadd.f32 %v7634_v5, %v16300_v17  ;;  %v7683_v59 = vpop.f32.mrf.mxu1  ;;  %v17561_v17 = vld [vmem:[#allocation166_spill] sm:$0xff] }
 0x92b   :  { %v7731_v62 = vadd.f32 %v7730_v7, %v7682_v23  ;;  %v13247_v5 = vld [vmem:[#allocation7] sm:$0xf] }
 0x92c   :  { %v7684_v22 = vadd.f32 %v7683_v59, %v7635_v12  ;;  %v16392_v12 = vperm.slane %v13247_v5, 3 }
 0x92d   :  { %v16377_v47 = vadd.f32 %v7779_v44, %v7731_v62 }
 0x931   :  { %v7781_v15 = vpop.f32.mrf.mxu3  ;;  %v7637_v36 = vpop.f32.mrf.mxu0 }
 0x932   :  { %v7732_v25 = vpop.f32.mrf.mxu2  ;;  %v7638_v21 = vadd.f32 %v7637_v36, %v16307_v61  ;;  %v7686_v60 = vpop.f32.mrf.mxu1  ;;  %v13249_v36 = vld [vmem:[#allocation13] sm:$0xff] }
 0x933   :  { %v7733_v32 = vadd.f32 %v7732_v25, %v7684_v22 }
 0x934   :  { %v7687_v29 = vadd.f32 %v7686_v60, %v7638_v21  ;;  %7832 = vmatmul.bf16.gmra.mxu0 %v17558_v19  ;;  %7881 = vmatmul.bf16.gmra.mxu1 %v17559_v10 }
 0x935   :  { %v16380_v58 = vadd.f32 %v7781_v15, %v7733_v32  ;;  %v13248_v15 = vld [vmem:[#allocation14] sm:$0xff] }
 0x936   :  { %7979 = vmatmul.bf16.gmra.mxu3 %v17561_v17  ;;  %v8846_v21 = vmul.f32 %v13249_v36, %v13248_v15 }
 0x937   :  { %7930 = vmatmul.bf16.gmra.mxu2 %v17560_v37 }
 0x939   :  { %v7784_v53 = vpop.f32.mrf.mxu3  ;;  %v7639_v42 = vpop.f32.mrf.mxu0 }
 0x93a   :  { %v7735_v24 = vpop.f32.mrf.mxu2  ;;  %v7640_v33 = vadd.f32 %v7639_v42, %v16310_v31  ;;  %v7688_v57 = vpop.f32.mrf.mxu1 }
 0x93b   :  { %v7736_v13 = vadd.f32 %v7735_v24, %v7687_v29 }
 0x93c   :  { %v7689_v40 = vadd.f32 %v7688_v57, %v7640_v33  ;;  %v13251_v33 = vld [vmem:[#allocation13 + $0x8] sm:$0xff] }
 0x93d   :  { %v16387_v61 = vadd.f32 %v7784_v53, %v7736_v13 }
 0x941   :  { %v7786_v35 = vpop.f32.mrf.mxu3  ;;  %v7798_v23 = vpop.f32.mrf.mxu0 }
 0x942   :  { %v7737_v9 = vpop.f32.mrf.mxu2  ;;  %v7847_v63 = vpop.f32.mrf.mxu1  ;;  %v7799_v26 = vadd.f32 %v7798_v23, %v16317_v14 }
 0x943   :  { %v7738_v48 = vadd.f32 %v7737_v9, %v7689_v40 }
 0x944   :  { %v7848_v11 = vadd.f32 %v7847_v63, %v7799_v26 }
 0x945   :  { %v16389_v43 = vadd.f32 %v7786_v35, %v7738_v48 }
 0x949   :  { %v7945_v44 = vpop.f32.mrf.mxu3  ;;  %v7800_v31 = vpop.f32.mrf.mxu0 }
 0x94a   :  { %v7896_v7 = vpop.f32.mrf.mxu2  ;;  %v7849_v59 = vpop.f32.mrf.mxu1  ;;  %v7801_v25 = vadd.f32 %v7800_v31, %v16320_v52  ;;  %v16398_v52 = vld [vmem:[#allocation14 + $0x8] sm:$0xff]  ;;  %v16403_v31 = vld [vmem:[#allocation14 + $0x10] sm:$0xff] }
 0x94b   :  { %v7897_v62 = vadd.f32 %v7896_v7, %v7848_v11  ;;  %v8847_v57 = vmul.f32 %v13251_v33, %v16398_v52  ;;  %v16411_v33 = vld [vmem:[#allocation14 + $0x18] sm:$0xff] }
 0x94c   :  { %v7850_v29 = vadd.f32 %v7849_v59, %v7801_v25  ;;  %v13253_v59 = vld [vmem:[#allocation13 + $0x10] sm:$0xff] }
 0x94d   :  { %v7946_v22 = vadd.f32 %v7945_v44, %v7897_v62 }
 0x94f   :  { %v8830_v32 = vadd.f32 %v16392_v12, %v7946_v22  ;;  %v8848_v22 = vmul.f32 %v13253_v59, %v16403_v31 }
 0x951   :  { %v8862_v60 = vadd.f32 %v8846_v21, %v8830_v32  ;;  %v7947_v37 = vpop.f32.mrf.mxu3  ;;  %v7803_v17 = vpop.f32.mrf.mxu0 }
 0x952   :  { %v7898_v14 = vpop.f32.mrf.mxu2  ;;  %v7852_v24 = vpop.f32.mrf.mxu1  ;;  %v7804_v53 = vadd.f32 %v7803_v17, %v16327_v6 }
 0x953   :  { %v12198_v19 = vmul.f32 -1.442695, %v8862_v60  ;;  %v7899_v10 = vadd.f32 %v7898_v14, %v7850_v29 }
 0x954   :  { %v7853_v9 = vadd.f32 %v7852_v24, %v7804_v53 }
 0x955   :  { %13109 = vpow2.f32 %v12198_v19  ;;  %v7948_v13 = vadd.f32 %v7947_v37, %v7899_v10 }
 0x957   :  { %v8831_v42 = vadd.f32 %v16392_v12, %v7948_v13 }
 0x959   :  { %v8863_v40 = vadd.f32 %v8847_v57, %v8831_v42  ;;  %v7950_v26 = vpop.f32.mrf.mxu3  ;;  %v7805_v11 = vpop.f32.mrf.mxu0  ;;  %v13255_v57 = vld [vmem:[#allocation13 + $0x18] sm:$0xff] }
 0x95a   :  { %v7901_v48 = vpop.f32.mrf.mxu2  ;;  %v7854_v62 = vpop.f32.mrf.mxu1  ;;  %v7806_v6 = vadd.f32 %v7805_v11, %v16330_v2 }
 0x95b   :  { %v13110_v35 = vpop.eup %13109  ;;  %v12199_v23 = vmul.f32 -1.442695, %v8863_v40  ;;  %v7902_v63 = vadd.f32 %v7901_v48, %v7853_v9  ;;  %v8849_v40 = vmul.f32 %v13255_v57, %v16411_v33 }
 0x95c   :  { %v8926_v7 = vadd.f32 1.0, %v13110_v35  ;;  %v7855_v32 = vadd.f32 %v7854_v62, %v7806_v6 }
 0x95d   :  { %13111 = vpow2.f32 %v12199_v23  ;;  %v7951_v44 = vadd.f32 %v7950_v26, %v7902_v63 }
 0x95e   :  { %13113 = vrcp.f32 %v8926_v7  ;;  %v8951_v9 = vand.u32 2147483647, %v8926_v7  ;;  %v8953_v48 = vand.u32 2147483648, %v8926_v7  ;;  %vm8947_vm1 = vweird.f32 %v8926_v7 }
 0x95f   :  { %v8832_v5 = vadd.f32 %v16392_v12, %v7951_v44 }
 0x960   :  { %vm8952_vm3 = vcmp.eq.f32.partialorder %v8951_v9, 8.507059e+37 }
 0x961   :  { %v8864_v25 = vadd.f32 %v8848_v22, %v8832_v5  ;;  %v7952_v14 = vpop.f32.mrf.mxu3  ;;  %v7808_v19 = vpop.f32.mrf.mxu0  ;;  %v8954_v22 = vor.u32 1.1754944e-38, %v8953_v48 }
 0x962   :  { %v7903_v36 = vpop.f32.mrf.mxu2  ;;  %v7857_v2 = vpop.f32.mrf.mxu1  ;;  %v7809_v13 = vadd.f32 %v7808_v19, %v16337_v30 }
 0x963   :  { %v13112_v21 = vpop.eup %13111  ;;  %v12200_v60 = vmul.f32 -1.442695, %v8864_v25  ;;  %v7904_v29 = vadd.f32 %v7903_v36, %v7855_v32 }
 0x964   :  { %v13114_v10 = vpop.eup %13113  ;;  %v16406_v37 = vadd.f32 1.0, %v13112_v21  ;;  %v7858_v63 = vadd.f32 %v7857_v2, %v7809_v13 }
 0x965   :  { %v8943_v17 = vmul.f32 %v13114_v10, %v8926_v7  ;;  %13115 = vpow2.f32 %v12200_v60  ;;  %v7953_v24 = vadd.f32 %v7952_v14, %v7904_v29  ;;  %vm8948_vm0 = vweird.f32 %v13114_v10  ;;  %v16421_v60 = vld [vmem:[#allocation13 + $0x20] sm:$0xff] }
 0x966   :  { %13117 = vrcp.f32 %v16406_v37  ;;  %vm8949_vm2 = vmor %vm8947_vm1, %vm8948_vm0  ;;  %v8966_v2 = vand.u32 2147483647, %v16406_v37  ;;  %v8850_v13 = vmul.f32 %v15638_v39, %v16421_v60  ;;  %vm8962_vm5 = vweird.f32 %v16406_v37 }
 0x967   :  { %v8944_v53 = vsub.f32 1.0, %v8943_v17  ;;  %v8833_v42 = vadd.f32 %v16392_v12, %v7953_v24  ;;  %13119 = vtanh.f32 %v13248_v15  ;;  %v8968_v17 = vand.u32 2147483648, %v16406_v37 }
 0x968   :  { %vm8967_vm7 = vcmp.eq.f32.partialorder %v8966_v2, 8.507059e+37 }
 0x969   :  { %v8945_v35 = vmul.f32 %v13114_v10, %v8944_v53  ;;  %v8865_v23 = vadd.f32 %v8849_v40, %v8833_v42  ;;  %v7955_v6 = vpop.f32.mrf.mxu3  ;;  %v7810_v5 = vpop.f32.mrf.mxu0 }
 0x96a   :  { %v7906_v26 = vpop.f32.mrf.mxu2  ;;  %v7859_v32 = vpop.f32.mrf.mxu1  ;;  %v7811_v29 = vadd.f32 %v7810_v5, %v16340_v51 }
 0x96b   :  { %v13116_v11 = vpop.eup %13115  ;;  %v8946_v30 = vadd.f32 %v13114_v10, %v8945_v35  ;;  %v12201_v62 = vmul.f32 -1.442695, %v8865_v23  ;;  %v7907_v44 = vadd.f32 %v7906_v26, %v7858_v63  ;;  %v8969_v23 = vor.u32 1.1754944e-38, %v8968_v17 }
 0x96c   :  { %v13118_v59 = vpop.eup %13117  ;;  %v16414_v25 = vadd.f32 1.0, %v13116_v11  ;;  %v7860_v53 = vadd.f32 %v7859_v32, %v7811_v29 }
 0x96d   :  { %v8950_v36 = vsel %vm8949_vm2, %v13114_v10, %v8946_v30  ;;  %v8958_v15 = vmul.f32 %v13118_v59, %v16406_v37  ;;  %13121 = vpow2.f32 %v12201_v62  ;;  %v13120_v7 = vpop.eup %13119  ;;  %v7956_v10 = vadd.f32 %v7955_v6, %v7907_v44 }
 0x96e   :  { %v8955_v21 = vsel %vm8952_vm3, %v8954_v22, %v8950_v36  ;;  %13123 = vrcp.f32 %v16414_v25  ;;  %vm8963_vm4 = vweird.f32 %v13118_v59  ;;  %v16439_v36 = vld [vmem:[#allocation13 + $0x28] sm:$0xff]  ;;  %vm8977_vm9 = vweird.f32 %v16414_v25 }
 0x96f   :  { %v9198_v14 = vmul.f32 %v13120_v7, %v8955_v21  ;;  %v8959_v19 = vsub.f32 1.0, %v8958_v15  ;;  %13125 = vtanh.f32 %v16398_v52  ;;  %v8834_v51 = vadd.f32 %v16392_v12, %v7956_v10  ;;  %vm8964_vm6 = vmor %vm8962_vm5, %vm8963_vm4 }
 0x970   :  { %v8981_v15 = vand.u32 2147483647, %v16414_v25  ;;  %v8983_v7 = vand.u32 2147483648, %v16414_v25 }
 0x971   :  { %9230 = vst [vmem:[#allocation15] sm:$0xff] %v9198_v14  ;;  %v8960_v24 = vmul.f32 %v13118_v59, %v8959_v19  ;;  %v8866_v9 = vadd.f32 %v8850_v13, %v8834_v51  ;;  %v7957_v52 = vpop.f32.mrf.mxu3  ;;  %v7813_v48 = vpop.f32.mrf.mxu0  ;;  %v8851_v14 = vmul.f32 %v15693_v1, %v16439_v36 }
 0x972   :  { %v7908_v42 = vpop.f32.mrf.mxu2  ;;  %v7862_v11 = vpop.f32.mrf.mxu1  ;;  %v7814_v6 = vadd.f32 %v7813_v48, %v16347_v34  ;;  %vm8982_vm11 = vcmp.eq.f32.partialorder %v8981_v15, 8.507059e+37 }
 0x973   :  { %v13122_v57 = vpop.eup %13121  ;;  %v8961_v40 = vadd.f32 %v13118_v59, %v8960_v24  ;;  %v7909_v26 = vadd.f32 %v7908_v42, %v7860_v53  ;;  %v12202_v44 = vmul.f32 -1.442695, %v8866_v9 }
 0x974   :  { %v13124_v35 = vpop.eup %13123  ;;  %v16434_v63 = vadd.f32 1.0, %v13122_v57  ;;  %v7863_v34 = vadd.f32 %v7862_v11, %v7814_v6 }
 0x975   :  { %v8965_v30 = vsel %vm8964_vm6, %v13118_v59, %v8961_v40  ;;  %v8973_v62 = vmul.f32 %v13124_v35, %v16414_v25  ;;  %v13126_v5 = vpop.eup %13125  ;;  %v7958_v59 = vadd.f32 %v7957_v52, %v7909_v26  ;;  %vm8978_vm8 = vweird.f32 %v13124_v35 }
 0x976   :  { %v8970_v22 = vsel %vm8967_vm7, %v8969_v23, %v8965_v30  ;;  %13127 = vrcp.f32 %v16434_v63  ;;  %vm8979_vm10 = vmor %vm8977_vm9, %vm8978_vm8  ;;  %vm8992_vm13 = vweird.f32 %v16434_v63 }
 0x977   :  { %v9199_v37 = vmul.f32 %v13126_v5, %v8970_v22  ;;  %v8974_v32 = vsub.f32 1.0, %v8973_v62  ;;  %13129 = vpow2.f32 %v12202_v44  ;;  %v8835_v29 = vadd.f32 %v16392_v12, %v7958_v59  ;;  %v13256_v44 = vld [vmem:[#allocation13 + $0x30] sm:$0xff] }
 0x978   :  { %13131 = vtanh.f32 %v16403_v31  ;;  %v8984_v31 = vor.u32 1.1754944e-38, %v8983_v7  ;;  %v8852_v6 = vmul.f32 %v13256_v44, %v15735_v38  ;;  %v8998_v5 = vand.u32 2147483648, %v16434_v63 }
 0x979   :  { %9231 = vst [vmem:[#allocation15 + $0x8] sm:$0xff] %v9199_v37  ;;  %v8975_v21 = vmul.f32 %v13124_v35, %v8974_v32  ;;  %v7960_v17 = vpop.f32.mrf.mxu3  ;;  %v7815_v24 = vpop.f32.mrf.mxu0  ;;  %v8867_v13 = vadd.f32 %v8851_v14, %v8835_v29  ;;  %13133 = vtanh.f32 %v16411_v33 }
 0x97a   :  { %v7911_v19 = vpop.f32.mrf.mxu2  ;;  %v7864_v53 = vpop.f32.mrf.mxu1  ;;  %v7816_v52 = vadd.f32 %v7815_v24, %v16350_v41  ;;  %v8999_v29 = vor.u32 1.1754944e-38, %v8998_v5 }
 0x97b   :  { %v8976_v10 = vadd.f32 %v13124_v35, %v8975_v21  ;;  %v7912_v2 = vadd.f32 %v7911_v19, %v7863_v34  ;;  %v12203_v26 = vmul.f32 -1.442695, %v8867_v13 }
 0x97c   :  { %v13128_v51 = vpop.eup %13127  ;;  %v7865_v22 = vadd.f32 %v7864_v53, %v7816_v52 }
 0x97d   :  { %v13130_v42 = vpop.eup %13129  ;;  %v8980_v57 = vsel %vm8979_vm10, %v13124_v35, %v8976_v10  ;;  %v8988_v40 = vmul.f32 %v13128_v51, %v16434_v63  ;;  %v7961_v9 = vadd.f32 %v7960_v17, %v7912_v2  ;;  %vm8993_vm12 = vweird.f32 %v13128_v51 }
 0x97e   :  { %v13132_v48 = vpop.eup %13131  ;;  %v8985_v23 = vsel %vm8982_vm11, %v8984_v31, %v8980_v57  ;;  %v16451_v25 = vadd.f32 1.0, %v13130_v42  ;;  %v8996_v35 = vand.u32 2147483647, %v16434_v63  ;;  %vm8994_vm14 = vmor %vm8992_vm13, %vm8993_vm12  ;;  %v13257_v42 = vld [vmem:[#allocation13 + $0x38] sm:$0xff] }
 0x97f   :  { %v9200_v11 = vmul.f32 %v13132_v48, %v8985_v23  ;;  %v8989_v30 = vsub.f32 1.0, %v8988_v40  ;;  %v8836_v62 = vadd.f32 %v16392_v12, %v7961_v9  ;;  %v13134_v34 = vpop.eup %13133  ;;  %v8853_v57 = vmul.f32 %v13257_v42, %v15800_v3 }
 0x980   :  { %13135 = vrcp.f32 %v16451_v25  ;;  %vm8997_vm15 = vcmp.eq.f32.partialorder %v8996_v35, 8.507059e+37  ;;  %v9013_v48 = vand.u32 2147483648, %v16451_v25  ;;  %vm9007_vm1 = vweird.f32 %v16451_v25 }
 0x981   :  { %9232 = vst [vmem:[#allocation15 + $0x10] sm:$0xff] %v9200_v11  ;;  %v8990_v41 = vmul.f32 %v13128_v51, %v8989_v30  ;;  %13137 = vpow2.f32 %v12203_v26  ;;  %v8868_v33 = vadd.f32 %v8852_v6, %v8836_v62  ;;  %v7962_v59 = vpop.f32.mrf.mxu3  ;;  %v7818_v21 = vpop.f32.mrf.mxu0 }
 0x982   :  { %v7913_v37 = vpop.f32.mrf.mxu2  ;;  %v7867_v14 = vpop.f32.mrf.mxu1  ;;  %v7819_v2 = vadd.f32 %v7818_v21, %v16357_v18  ;;  %v9011_v18 = vand.u32 2147483647, %v16451_v25 }
 0x983   :  { %v8991_v32 = vadd.f32 %v13128_v51, %v8990_v41  ;;  %v12204_v15 = vmul.f32 -1.442695, %v8868_v33  ;;  %v7914_v7 = vadd.f32 %v7913_v37, %v7865_v22  ;;  %v9014_v22 = vor.u32 1.1754944e-38, %v9013_v48 }
 0x984   :  { %v7868_v52 = vadd.f32 %v7867_v14, %v7819_v2  ;;  %vm9012_vm3 = vcmp.eq.f32.partialorder %v9011_v18, 8.507059e+37 }
 0x985   :  { %v8995_v19 = vsel %vm8994_vm14, %v13128_v51, %v8991_v32  ;;  %13139 = vpow2.f32 %v12204_v15  ;;  %v7963_v10 = vadd.f32 %v7962_v59, %v7914_v7 }
 0x986   :  { %v13136_v17 = vpop.eup %13135  ;;  %v9000_v24 = vsel %vm8997_vm15, %v8999_v29, %v8995_v19  ;;  %13141 = vtanh.f32 %v15638_v39 }
 0x987   :  { %v13138_v31 = vpop.eup %13137  ;;  %v9201_v13 = vmul.f32 %v13134_v34, %v9000_v24  ;;  %v9003_v63 = vmul.f32 %v13136_v17, %v16451_v25  ;;  %v8837_v53 = vadd.f32 %v16392_v12, %v7963_v10  ;;  %vm9008_vm0 = vweird.f32 %v13136_v17 }
 0x988   :  { %v16464_v40 = vadd.f32 1.0, %v13138_v31  ;;  %vm9009_vm2 = vmor %vm9007_vm1, %vm9008_vm0 }
 0x989   :  { %9233 = vst [vmem:[#allocation15 + $0x18] sm:$0xff] %v9201_v13  ;;  %v9004_v9 = vsub.f32 1.0, %v9003_v63  ;;  %v8869_v51 = vadd.f32 %v8853_v57, %v8837_v53  ;;  %v7965_v44 = vpop.f32.mrf.mxu3  ;;  %v7820_v6 = vpop.f32.mrf.mxu0 }
 0x98a   :  { %13143 = vrcp.f32 %v16464_v40  ;;  %v7916_v23 = vpop.f32.mrf.mxu2  ;;  %v7869_v39 = vpop.f32.mrf.mxu1  ;;  %v7821_v33 = vadd.f32 %v7820_v6, %v16360_v20  ;;  %v9026_v13 = vand.u32 2147483647, %v16464_v40  ;;  %v9028_v63 = vand.u32 2147483648, %v16464_v40 }
 0x98b   :  { %v13140_v26 = vpop.eup %13139  ;;  %v9005_v11 = vmul.f32 %v13136_v17, %v9004_v9  ;;  %v12205_v30 = vmul.f32 -1.442695, %v8869_v51  ;;  %v7917_v62 = vadd.f32 %v7916_v23, %v7868_v52  ;;  %vm9022_vm5 = vweird.f32 %v16464_v40 }
 0x98c   :  { %v16471_v35 = vadd.f32 1.0, %v13140_v26  ;;  %v13142_v37 = vpop.eup %13141  ;;  %v7870_v29 = vadd.f32 %v7869_v39, %v7821_v33  ;;  %vm9027_vm7 = vcmp.eq.f32.partialorder %v9026_v13, 8.507059e+37 }
 0x98d   :  { %v9006_v5 = vadd.f32 %v13136_v17, %v9005_v11  ;;  %13145 = vpow2.f32 %v12205_v30  ;;  %v7966_v41 = vadd.f32 %v7965_v44, %v7917_v62 }
 0x98e   :  { %13147 = vrcp.f32 %v16471_v35  ;;  %v9041_v18 = vand.u32 2147483647, %v16471_v35  ;;  %v9043_v48 = vand.u32 2147483648, %v16471_v35  ;;  %vm9037_vm9 = vweird.f32 %v16471_v35 }
 0x98f   :  { %v9010_v32 = vsel %vm9009_vm2, %v13136_v17, %v9006_v5  ;;  %v8838_v15 = vadd.f32 %v16392_v12, %v7966_v41  ;;  %13149 = vtanh.f32 %v15693_v1  ;;  %v17562_v41 = vld [vmem:[#allocation36_spill] sm:$0xff] }
 0x990   :  { %v13144_v7 = vpop.eup %13143  ;;  %v9015_v59 = vsel %vm9012_vm3, %v9014_v22, %v9010_v32  ;;  %13151 = vtanh.f32 %v15735_v38  ;;  %v9029_v38 = vor.u32 1.1754944e-38, %v9028_v63  ;;  %vm9042_vm11 = vcmp.eq.f32.partialorder %v9041_v18, 8.507059e+37 }
 0x991   :  { %v9202_v25 = vmul.f32 %v13142_v37, %v9015_v59  ;;  %v9018_v21 = vmul.f32 %v13144_v7, %v16464_v40  ;;  %v8870_v34 = vadd.f32 %v15850_v0, %v8838_v15  ;;  %v7967_v17 = vpop.f32.mrf.mxu3  ;;  %v7823_v24 = vpop.f32.mrf.mxu0  ;;  %vm9023_vm4 = vweird.f32 %v13144_v7 }
 0x992   :  { %v7918_v14 = vpop.f32.mrf.mxu2  ;;  %v7872_v0 = vpop.f32.mrf.mxu1  ;;  %v7824_v1 = vadd.f32 %v7823_v24, %v16367_v27  ;;  %vm9024_vm6 = vmor %vm9022_vm5, %vm9023_vm4  ;;  %v9044_v15 = vor.u32 1.1754944e-38, %v9043_v48 }
 0x993   :  { %v13146_v19 = vpop.eup %13145  ;;  %9234 = vst [vmem:[#allocation15 + $0x20] sm:$0xff] %v9202_v25  ;;  %v9019_v20 = vsub.f32 1.0, %v9018_v21  ;;  %v12206_v10 = vmul.f32 -1.442695, %v8870_v34  ;;  %v7919_v2 = vadd.f32 %v7918_v14, %v7870_v29 }
 0x994   :  { %v13148_v31 = vpop.eup %13147  ;;  %v16482_v53 = vadd.f32 1.0, %v13146_v19  ;;  %v7873_v44 = vadd.f32 %v7872_v0, %v7824_v1 }
 0x995   :  { %v9020_v42 = vmul.f32 %v13144_v7, %v9019_v20  ;;  %v9033_v57 = vmul.f32 %v13148_v31, %v16471_v35  ;;  %13153 = vpow2.f32 %v12206_v10  ;;  %v7968_v52 = vadd.f32 %v7967_v17, %v7919_v2  ;;  %v13150_v23 = vpop.eup %13149 }
 0x996   :  { %13155 = vrcp.f32 %v16482_v53  ;;  %vm9038_vm8 = vweird.f32 %v13148_v31  ;;  %v13152_v62 = vpop.eup %13151  ;;  %v9056_v10 = vand.u32 2147483647, %v16482_v53  ;;  %v9058_v2 = vand.u32 2147483648, %v16482_v53 }
 0x997   :  { %v9021_v9 = vadd.f32 %v13144_v7, %v9020_v42  ;;  %v9034_v51 = vsub.f32 1.0, %v9033_v57  ;;  %v8839_v30 = vadd.f32 %v16392_v12, %v7968_v52  ;;  %vm9039_vm10 = vmor %vm9037_vm9, %vm9038_vm8  ;;  %vm9052_vm13 = vweird.f32 %v16482_v53 }
 0x998   :  { %vm9057_vm15 = vcmp.eq.f32.partialorder %v9056_v10, 8.507059e+37 }
 0x999   :  { %v9025_v26 = vsel %vm9024_vm6, %v13144_v7, %v9021_v9  ;;  %v9035_v11 = vmul.f32 %v13148_v31, %v9034_v51  ;;  %v8871_v33 = vadd.f32 %v17562_v41, %v8839_v30  ;;  %v7970_v22 = vpop.f32.mrf.mxu3  ;;  %v7825_v37 = vpop.f32.mrf.mxu0  ;;  %v9059_v9 = vor.u32 1.1754944e-38, %v9058_v2 }
 0x99a   :  { %v9030_v27 = vsel %vm9027_vm7, %v9029_v38, %v9025_v26  ;;  %v7921_v6 = vpop.f32.mrf.mxu2  ;;  %v7874_v25 = vpop.f32.mrf.mxu1  ;;  %v7826_v14 = vadd.f32 %v7825_v37, %v16370_v8  ;;  %v8858_v2 = vmul.f32 %v16060_v55, %v16421_v60 }
 0x99b   :  { %v13154_v40 = vpop.eup %13153  ;;  %v9203_v39 = vmul.f32 %v13150_v23, %v9030_v27  ;;  %v9036_v5 = vadd.f32 %v13148_v31, %v9035_v11  ;;  %v7922_v59 = vadd.f32 %v7921_v6, %v7873_v44  ;;  %v12207_v29 = vmul.f32 -1.442695, %v8871_v33  ;;  %v17563_v44 = vld [vmem:[#allocation173_spill] sm:$0xff] }
 0x99c   :  { %v13156_v32 = vpop.eup %13155  ;;  %v16493_v7 = vadd.f32 1.0, %v13154_v40 }
 0x99d   :  { %9235 = vst [vmem:[#allocation15 + $0x28] sm:$0xff] %v9203_v39  ;;  %v9040_v21 = vsel %vm9039_vm10, %v13148_v31, %v9036_v5  ;;  %v9048_v34 = vmul.f32 %v13156_v32, %v16482_v53  ;;  %v7971_v17 = vadd.f32 %v7970_v22, %v7922_v59  ;;  %vm9053_vm12 = vweird.f32 %v13156_v32 }
 0x99e   :  { %v9045_v35 = vsel %vm9042_vm11, %v9044_v15, %v9040_v21  ;;  %13157 = vrcp.f32 %v16493_v7  ;;  %v7875_v31 = vadd.f32 %v7874_v25, %v7826_v14  ;;  %vm9054_vm14 = vmor %vm9052_vm13, %vm9053_vm12  ;;  %v9073_v40 = vand.u32 2147483648, %v16493_v7 }
 0x99f   :  { %v9204_v19 = vmul.f32 %v13152_v62, %v9045_v35  ;;  %v9049_v20 = vsub.f32 1.0, %v9048_v34  ;;  %13159 = vpow2.f32 %v12207_v29  ;;  %v8840_v13 = vadd.f32 %v16392_v12, %v7971_v17 }
 0x9a0   :  { %13161 = vtanh.f32 %v15800_v3  ;;  %vm9067_vm1 = vweird.f32 %v16493_v7  ;;  %v9074_v59 = vor.u32 1.1754944e-38, %v9073_v40 }
 0x9a1   :  { %9236 = vst [vmem:[#allocation15 + $0x30] sm:$0xff] %v9204_v19  ;;  %v9050_v24 = vmul.f32 %v13156_v32, %v9049_v20  ;;  %v7972_v42 = vpop.f32.mrf.mxu3  ;;  %v7828_v57 = vpop.f32.mrf.mxu0  ;;  %v8872_v3 = vadd.f32 %v15968_v56, %v8840_v13  ;;  %13163 = vtanh.f32 %v17563_v44  ;;  %v9071_v56 = vand.u32 2147483647, %v16493_v7 }
 0x9a2   :  { %v7923_v8 = vpop.f32.mrf.mxu2  ;;  %v7877_v51 = vpop.f32.mrf.mxu1  ;;  %v7829_v23 = vadd.f32 %v7828_v57, %v16377_v47 }
 0x9a3   :  { %v9051_v63 = vadd.f32 %v13156_v32, %v9050_v24  ;;  %v7924_v0 = vadd.f32 %v7923_v8, %v7875_v31  ;;  %v12208_v30 = vmul.f32 -1.442695, %v8872_v3  ;;  %vm9072_vm3 = vcmp.eq.f32.partialorder %v9071_v56, 8.507059e+37  ;;  %v17564_v31 = vld [vmem:[#allocation174_spill] sm:$0xff] }
 0x9a4   :  { %v13158_v1 = vpop.eup %13157  ;;  %v7878_v5 = vadd.f32 %v7877_v51, %v7829_v23 }
 0x9a5   :  { %v13160_v52 = vpop.eup %13159  ;;  %v9055_v38 = vsel %vm9054_vm14, %v13156_v32, %v9051_v63  ;;  %v9063_v18 = vmul.f32 %v13158_v1, %v16493_v7  ;;  %v7973_v48 = vadd.f32 %v7972_v42, %v7924_v0  ;;  %vm9068_vm0 = vweird.f32 %v13158_v1 }
 0x9a6   :  { %v13162_v26 = vpop.eup %13161  ;;  %v9060_v11 = vsel %vm9057_vm15, %v9059_v9, %v9055_v38  ;;  %v16506_v53 = vadd.f32 1.0, %v13160_v52  ;;  %vm9069_vm2 = vmor %vm9067_vm1, %vm9068_vm0 }
 0x9a7   :  { %v9205_v62 = vmul.f32 %v13162_v26, %v9060_v11  ;;  %v9064_v27 = vsub.f32 1.0, %v9063_v18  ;;  %v8841_v6 = vadd.f32 %v16392_v12, %v7973_v48  ;;  %v13164_v25 = vpop.eup %13163 }
 0x9a8   :  { %13165 = vrcp.f32 %v16506_v53  ;;  %v9086_v8 = vand.u32 2147483647, %v16506_v53  ;;  %v9088_v63 = vand.u32 2147483648, %v16506_v53  ;;  %vm9082_vm5 = vweird.f32 %v16506_v53 }
 0x9a9   :  { %9237 = vst [vmem:[#allocation15 + $0x38] sm:$0xff] %v9205_v62  ;;  %v9065_v47 = vmul.f32 %v13158_v1, %v9064_v27  ;;  %13167 = vpow2.f32 %v12208_v30  ;;  %v8873_v39 = vadd.f32 %v16010_v49, %v8841_v6  ;;  %v7975_v32 = vpop.f32.mrf.mxu3  ;;  %v7830_v15 = vpop.f32.mrf.mxu0  ;;  %v8859_v30 = vmul.f32 %v16105_v54, %v16439_v36 }
 0x9aa   :  { %v7926_v41 = vpop.f32.mrf.mxu2  ;;  %v7831_v29 = vadd.f32 %v7830_v15, %v16380_v58  ;;  %v7879_v49 = vpop.f32.mrf.mxu1  ;;  %v9089_v48 = vor.u32 1.1754944e-38, %v9088_v63  ;;  %vm9087_vm7 = vcmp.eq.f32.partialorder %v9086_v8, 8.507059e+37 }
 0x9ab   :  { %v9066_v33 = vadd.f32 %v13158_v1, %v9065_v47  ;;  %v12209_v22 = vmul.f32 -1.442695, %v8873_v39  ;;  %v7927_v37 = vadd.f32 %v7926_v41, %v7878_v5 }
 0x9ac   :  { %v7880_v58 = vadd.f32 %v7879_v49, %v7831_v29 }
 0x9ad   :  { %v9070_v21 = vsel %vm9069_vm2, %v13158_v1, %v9066_v33  ;;  %13169 = vpow2.f32 %v12209_v22  ;;  %v7976_v34 = vadd.f32 %v7975_v32, %v7927_v37 }
 0x9ae   :  { %v13166_v14 = vpop.eup %13165  ;;  %v9075_v35 = vsel %vm9072_vm3, %v9074_v59, %v9070_v21  ;;  %13171 = vtanh.f32 %v17564_v31 }
 0x9af   :  { %v13168_v19 = vpop.eup %13167  ;;  %v9206_v20 = vmul.f32 %v13164_v25, %v9075_v35  ;;  %v9078_v7 = vmul.f32 %v13166_v14, %v16506_v53  ;;  %v8842_v10 = vadd.f32 %v16392_v12, %v7976_v34  ;;  %vm9083_vm4 = vweird.f32 %v13166_v14 }
 0x9b0   :  { %v16521_v17 = vadd.f32 1.0, %v13168_v19  ;;  %vm9084_vm6 = vmor %vm9082_vm5, %vm9083_vm4 }
 0x9b1   :  { %9238 = vst [vmem:[#allocation15 + $0x40] sm:$0xff] %v9206_v20  ;;  %v9079_v24 = vsub.f32 1.0, %v9078_v7  ;;  %v8874_v13 = vadd.f32 %v8858_v2, %v8842_v10  ;;  %v7977_v9 = vpop.f32.mrf.mxu3  ;;  %v7833_v3 = vpop.f32.mrf.mxu0 }
 0x9b2   :  { %13173 = vrcp.f32 %v16521_v17  ;;  %v7928_v0 = vpop.f32.mrf.mxu2  ;;  %v7834_v18 = vadd.f32 %v7833_v3, %v16387_v61  ;;  %v7882_v53 = vpop.f32.mrf.mxu1  ;;  %v9101_v36 = vand.u32 2147483647, %v16521_v17  ;;  %v9103_v37 = vand.u32 2147483648, %v16521_v17 }
 0x9b3   :  { %v13170_v42 = vpop.eup %13169  ;;  %v9080_v57 = vmul.f32 %v13166_v14, %v9079_v24  ;;  %v12210_v1 = vmul.f32 -1.442695, %v8874_v13  ;;  %v7929_v60 = vadd.f32 %v7928_v0, %v7880_v58  ;;  %vm9097_vm9 = vweird.f32 %v16521_v17 }
 0x9b4   :  { %v16528_v51 = vadd.f32 1.0, %v13170_v42  ;;  %v13172_v23 = vpop.eup %13171  ;;  %v7883_v61 = vadd.f32 %v7882_v53, %v7834_v18  ;;  %vm9102_vm11 = vcmp.eq.f32.partialorder %v9101_v36, 8.507059e+37 }
 0x9b5   :  { %v9081_v52 = vadd.f32 %v13166_v14, %v9080_v57  ;;  %13175 = vpow2.f32 %v12210_v1  ;;  %v7978_v38 = vadd.f32 %v7977_v9, %v7929_v60 }
 0x9b6   :  { %13177 = vrcp.f32 %v16528_v51  ;;  %v9116_v49 = vand.u32 2147483647, %v16528_v51  ;;  %vm9112_vm13 = vweird.f32 %v16528_v51 }
 0x9b7   :  { %v9085_v26 = vsel %vm9084_vm6, %v13166_v14, %v9081_v52  ;;  %v8843_v11 = vadd.f32 %v16392_v12, %v7978_v38  ;;  %13179 = vtanh.f32 %v15938_v4  ;;  %v9118_v14 = vand.u32 2147483648, %v16528_v51 }
 0x9b8   :  { %v13174_v62 = vpop.eup %13173  ;;  %v9090_v27 = vsel %vm9087_vm7, %v9089_v48, %v9085_v26  ;;  %13181 = vtanh.f32 %v16002_v45  ;;  %v9104_v45 = vor.u32 1.1754944e-38, %v9103_v37  ;;  %vm9117_vm15 = vcmp.eq.f32.partialorder %v9116_v49, 8.507059e+37 }
 0x9b9   :  { %v9207_v44 = vmul.f32 %v13172_v23, %v9090_v27  ;;  %v9093_v6 = vmul.f32 %v13174_v62, %v16521_v17  ;;  %v8875_v56 = vadd.f32 %v8859_v30, %v8843_v11  ;;  %v7835_v33 = vpop.f32.mrf.mxu0  ;;  %vm9098_vm8 = vweird.f32 %v13174_v62  ;;  %v7980_v25 = vpop.f32.mrf.mxu3 }
 0x9ba   :  { %v7931_v40 = vpop.f32.mrf.mxu2  ;;  %v7836_v4 = vadd.f32 %v7835_v33, %v16389_v43  ;;  %vm9099_vm10 = vmor %vm9097_vm9, %vm9098_vm8  ;;  %v7884_v10 = vpop.f32.mrf.mxu1  ;;  %v9119_v0 = vor.u32 1.1754944e-38, %v9118_v14 }
 0x9bb   :  { %v13176_v47 = vpop.eup %13175  ;;  %9239 = vst [vmem:[#allocation15 + $0x48] sm:$0xff] %v9207_v44  ;;  %v9094_v39 = vsub.f32 1.0, %v9093_v6  ;;  %v12211_v5 = vmul.f32 -1.442695, %v8875_v56  ;;  %v7932_v41 = vadd.f32 %v7931_v40, %v7883_v61 }
 0x9bc   :  { %v13178_v22 = vpop.eup %13177  ;;  %v16540_v32 = vadd.f32 1.0, %v13176_v47  ;;  %v7885_v24 = vadd.f32 %v7884_v10, %v7836_v4 }
 0x9bd   :  { %v9095_v15 = vmul.f32 %v13174_v62, %v9094_v39  ;;  %v9108_v59 = vmul.f32 %v13178_v22, %v16528_v51  ;;  %13183 = vpow2.f32 %v12211_v5  ;;  %v7981_v29 = vadd.f32 %v7980_v25, %v7932_v41  ;;  %v13180_v35 = vpop.eup %13179 }
 0x9be   :  { %13185 = vrcp.f32 %v16540_v32  ;;  %vm9113_vm12 = vweird.f32 %v13178_v22  ;;  %v13182_v43 = vpop.eup %13181  ;;  %v9133_v51 = vand.u32 2147483648, %v16540_v32  ;;  %v9131_v23 = vand.u32 2147483647, %v16540_v32 }
 0x9bf   :  { %v9096_v21 = vadd.f32 %v13174_v62, %v9095_v15  ;;  %v9109_v34 = vsub.f32 1.0, %v9108_v59  ;;  %v8844_v7 = vadd.f32 %v16392_v12, %v7981_v29  ;;  %vm9114_vm14 = vmor %vm9112_vm13, %vm9113_vm12  ;;  %vm9127_vm1 = vweird.f32 %v16540_v32 }
 0x9c0   :  { %v9134_v53 = vor.u32 1.1754944e-38, %v9133_v51  ;;  %vm9132_vm3 = vcmp.eq.f32.partialorder %v9131_v23, 8.507059e+37 }
 0x9c1   :  { %v9100_v19 = vsel %vm9099_vm10, %v13174_v62, %v9096_v21  ;;  %v9110_v20 = vmul.f32 %v13178_v22, %v9109_v34  ;;  %v8876_v8 = vadd.f32 %v16146_v46, %v8844_v7  ;;  %v7982_v18 = vpop.f32.mrf.mxu3 }
 0x9c2   :  { %v9105_v2 = vsel %vm9102_vm11, %v9104_v45, %v9100_v19  ;;  %v7933_v17 = vpop.f32.mrf.mxu2 }
 0x9c3   :  { %v13184_v31 = vpop.eup %13183  ;;  %v9208_v13 = vmul.f32 %v13180_v35, %v9105_v2  ;;  %v9111_v58 = vadd.f32 %v13178_v22, %v9110_v20  ;;  %v7934_v57 = vadd.f32 %v7933_v17, %v7885_v24  ;;  %v12212_v9 = vmul.f32 -1.442695, %v8876_v8 }
 0x9c4   :  { %v13186_v63 = vpop.eup %13185  ;;  %v8939_v42 = vadd.f32 1.0, %v13184_v31 }
 0x9c5   :  { %9240 = vst [vmem:[#allocation15 + $0x50] sm:$0xff] %v9208_v13  ;;  %v9115_v1 = vsel %vm9114_vm14, %v13178_v22, %v9111_v58  ;;  %v9123_v60 = vmul.f32 %v13186_v63, %v16540_v32  ;;  %v7983_v46 = vadd.f32 %v7982_v18, %v7934_v57  ;;  %vm9128_vm0 = vweird.f32 %v13186_v63 }
 0x9c6   :  { %v9120_v3 = vsel %vm9117_vm15, %v9119_v0, %v9115_v1  ;;  %13187 = vrcp.f32 %v8939_v42  ;;  %vm9129_vm2 = vmor %vm9127_vm1, %vm9128_vm0  ;;  %v9146_v41 = vand.u32 2147483647, %v8939_v42  ;;  %vm9142_vm5 = vweird.f32 %v8939_v42 }
 0x9c7   :  { %v9209_v52 = vmul.f32 %v13182_v43, %v9120_v3  ;;  %v9124_v38 = vsub.f32 1.0, %v9123_v60  ;;  %13189 = vpow2.f32 %v12212_v9  ;;  %v8845_v26 = vadd.f32 %v16392_v12, %v7983_v46 }
 0x9c8   :  { %13191 = vtanh.f32 %v16060_v55  ;;  %v9148_v12 = vand.u32 2147483648, %v8939_v42  ;;  %vm9147_vm7 = vcmp.eq.f32.partialorder %v9146_v41, 8.507059e+37 }
 0x9c9   :  { %9241 = vst [vmem:[#allocation15 + $0x58] sm:$0xff] %v9209_v52  ;;  %v9125_v48 = vmul.f32 %v13186_v63, %v9124_v38  ;;  %v8877_v62 = vadd.f32 %v16156_v28, %v8845_v26  ;;  %13193 = vtanh.f32 %v16105_v54 }
 0x9ca   :  { %v9149_v33 = vor.u32 1.1754944e-38, %v9148_v12 }
 0x9cb   :  { %v9126_v11 = vadd.f32 %v13186_v63, %v9125_v48  ;;  %v12213_v40 = vmul.f32 -1.442695, %v8877_v62 }
 0x9cc   :  { %v13188_v30 = vpop.eup %13187 }
 0x9cd   :  { %v13190_v27 = vpop.eup %13189  ;;  %v9130_v44 = vsel %vm9129_vm2, %v13186_v63, %v9126_v11  ;;  %v9138_v55 = vmul.f32 %v13188_v30, %v8939_v42  ;;  %vm9143_vm4 = vweird.f32 %v13188_v30 }
 0x9ce   :  { %v13192_v6 = vpop.eup %13191  ;;  %v9135_v56 = vsel %vm9132_vm3, %v9134_v53, %v9130_v44  ;;  %v8940_v61 = vadd.f32 1.0, %v13190_v27  ;;  %vm9144_vm6 = vmor %vm9142_vm5, %vm9143_vm4 }
 0x9cf   :  { %v9210_v47 = vmul.f32 %v13192_v6, %v9135_v56  ;;  %v9139_v39 = vsub.f32 1.0, %v9138_v55  ;;  %v13194_v22 = vpop.eup %13193 }
 0x9d0   :  { %13195 = vrcp.f32 %v8940_v61  ;;  %v9163_v21 = vand.u32 2147483648, %v8940_v61  ;;  %v9161_v29 = vand.u32 2147483647, %v8940_v61  ;;  %vm9157_vm9 = vweird.f32 %v8940_v61 }
 0x9d1   :  { %9242 = vst [vmem:[#allocation15 + $0x60] sm:$0xff] %v9210_v47  ;;  %v9140_v5 = vmul.f32 %v13188_v30, %v9139_v39  ;;  %13197 = vpow2.f32 %v12213_v40 }
 0x9d2   :  { %13199 = vtanh.f32 %v16140_v16  ;;  %v9164_v49 = vor.u32 1.1754944e-38, %v9163_v21  ;;  %vm9162_vm11 = vcmp.eq.f32.partialorder %v9161_v29, 8.507059e+37 }
 0x9d3   :  { %v9141_v28 = vadd.f32 %v13188_v30, %v9140_v5 }
 0x9d5   :  { %v9145_v36 = vsel %vm9144_vm6, %v13188_v30, %v9141_v28 }
 0x9d6   :  { %v13196_v37 = vpop.eup %13195  ;;  %v9150_v32 = vsel %vm9147_vm7, %v9149_v33, %v9145_v36 }
 0x9d7   :  { %v13198_v15 = vpop.eup %13197  ;;  %v9211_v59 = vmul.f32 %v13194_v22, %v9150_v32  ;;  %v9153_v25 = vmul.f32 %v13196_v37, %v8940_v61  ;;  %vm9158_vm8 = vweird.f32 %v13196_v37 }
 0x9d8   :  { %v8941_v54 = vadd.f32 1.0, %v13198_v15  ;;  %vm9159_vm10 = vmor %vm9157_vm9, %vm9158_vm8  ;;  %v13200_v14 = vpop.eup %13199 }
 0x9d9   :  { %9243 = vst [vmem:[#allocation15 + $0x68] sm:$0xff] %v9211_v59  ;;  %v9154_v4 = vsub.f32 1.0, %v9153_v25 }
 0x9da   :  { %13201 = vrcp.f32 %v8941_v54  ;;  %v9178_v2 = vand.u32 2147483648, %v8941_v54  ;;  %v9176_v24 = vand.u32 2147483647, %v8941_v54  ;;  %vm9172_vm13 = vweird.f32 %v8941_v54 }
 0x9db   :  { %v9155_v34 = vmul.f32 %v13196_v37, %v9154_v4  ;;  %13203 = vtanh.f32 %v16153_v50 }
 0x9dc   :  { %v9179_v31 = vor.u32 1.1754944e-38, %v9178_v2  ;;  %vm9177_vm15 = vcmp.eq.f32.partialorder %v9176_v24, 8.507059e+37 }
 0x9dd   :  { %v9156_v45 = vadd.f32 %v13196_v37, %v9155_v34 }
 0x9df   :  { %v9160_v35 = vsel %vm9159_vm10, %v13196_v37, %v9156_v45 }
 0x9e0   :  { %v13202_v19 = vpop.eup %13201  ;;  %v9165_v20 = vsel %vm9162_vm11, %v9164_v49, %v9160_v35 }
 0x9e1   :  { %v9212_v7 = vmul.f32 %v13200_v14, %v9165_v20  ;;  %v9168_v10 = vmul.f32 %v13202_v19, %v8941_v54  ;;  %vm9173_vm12 = vweird.f32 %v13202_v19  ;;  %v13204_v58 = vpop.eup %13203 }
 0x9e2   :  { %vm9174_vm14 = vmor %vm9172_vm13, %vm9173_vm12 }
 0x9e3   :  { %9244 = vst [vmem:[#allocation15 + $0x70] sm:$0xff] %v9212_v7  ;;  %v9169_v43 = vsub.f32 1.0, %v9168_v10 }
 0x9e5   :  { %v9170_v16 = vmul.f32 %v13202_v19, %v9169_v43 }
 0x9e7   :  { %v9171_v17 = vadd.f32 %v13202_v19, %v9170_v16 }
 0x9e9   :  { %v9175_v13 = vsel %vm9174_vm14, %v13202_v19, %v9171_v17 }
 0x9ea   :  { %v9180_v8 = vsel %vm9177_vm15, %v9179_v31, %v9175_v13 }
 0x9eb   :  { %v9213_v63 = vmul.f32 %v13204_v58, %v9180_v8 }
 0x9ed   :  { %9245 = vst [vmem:[#allocation15 + $0x78] sm:$0xff] %v9213_v63 }
 0x9ee   :  { %9271 = dma.vmem_to_hbm [thread:$0]  %s9264_s22, 2048, %s9266_s25, [#allocation16], %s13490_s17, %s13490_s17, %s13491_s18  }
 0x9ef   :  { %13482 = dma.done.wait [#allocation4], 2048  }
 0x9f0   :  { %13483 = vsyncadd [#allocation4], 4294965248 }
 0x9f1   :  { %13484 = dma.done.wait [#allocation16], 2048  }
 0x9f2   :  { %13485 = vsyncadd [#allocation16], 4294965248 }
 0x9f3   :  { %9280 = vsyncpa [#allocation3], 1 }
 0x9f4   :  { %9281 = vsyncpa [#allocation6], 1 }
 0x9f5   :  { %9282 = vsyncpa [#allocation9], 1 }
 0x9f6   :  { %9283 = vsyncpa [#allocation12], 1 }
 0x9f7   :  { %9284 = vsyncpa [#allocation4], 1 }
 0x9f8   :  { %9285 = vsyncpa [#allocation16], 1 }

</bundles_post_ra>
